<compile_context>
chip_gen: v5e
topology: v5e:2x2
jax: 0.10.0
libtpu: 0.0.40
codegen_flags: <defaults>
</compile_context>

<pallas_src>
import jax
import jax.numpy as jnp
from jax import lax
from jax.experimental import pallas as pl
from jax.experimental.pallas import tpu as pltpu


# ------------------------------- fused kernel --------------------------------

def _switch_layer_kernel(x_ref, w1_ref, s1_ref, h1_ref, w2_ref, s2_ref, h2_ref,
                         wt_ref, bt_ref, o_ref, pad1_ref, pad2_ref, y2p_ref):
    # Static (trace-time) sizes.
    _, Hp, _, Wp, _, Cin = x_ref.shape      # pooled spatial Hp x Wp, Cin input chans
    C1 = w1_ref.shape[-1]                   # conv1/conv2 output channels
    C2 = w2_ref.shape[-1]
    Cout = wt_ref.shape[-1]                 # transpose-conv output channels
    Ho, Wo = 2 * Hp + 1, 2 * Wp + 1         # ConvTranspose2d(k=3, s=2, p=0) output
    He, We = Hp + 1, Wp + 1                 # even-parity phase extents

    # ---------------- MaxPool2d(2): (Hp,2,Wp,2,Cin) -> (Hp,Wp,Cin) ----------------
    x = x_ref[0]
    pooled = jnp.max(jnp.max(x, axis=3), axis=1)

    # ------------- Conv3x3 'same' (no bias) + folded BN + ReLU (x2) ----------------
    def conv3x3_bn_relu(pad_ref, inp, w_ref, s_ref, h_ref, cin, cout):
        # in-kernel 'same' padding: zero the scratch, write the interior
        pad_ref[...] = jnp.zeros(pad_ref.shape, jnp.float32)
        pad_ref[pl.ds(1, Hp), pl.ds(1, Wp), :] = inp
        acc = jnp.zeros((Hp * Wp, cout), jnp.float32)
        for kh in range(3):
            for kw in range(3):
                patch = pad_ref[pl.ds(kh, Hp), pl.ds(kw, Wp), :].reshape(Hp * Wp, cin)
                acc = acc + jnp.dot(patch, w_ref[kh, kw],
                                    preferred_element_type=jnp.float32)
        # folded BatchNorm (inference) + ReLU
        return jnp.maximum(acc * s_ref[...] + h_ref[...], 0.0)      # (Hp*Wp, cout)

    y1 = conv3x3_bn_relu(pad1_ref, pooled, w1_ref, s1_ref, h1_ref, Cin, C1)
    y2 = conv3x3_bn_relu(pad2_ref, y1.reshape(Hp, Wp, C1), w2_ref, s2_ref, h2_ref,
                         C1, C2)

    # ------ ConvTranspose2d(k=3, stride=2, bias) via polyphase decomposition ------
    # With inp padded by one zero ring (y2p[j,k,ci] = y2[j-1,k-1,ci]):
    #   out[2m  ,2n  ] = W00*y2p[m+1,n+1] + W02*y2p[m+1,n] + W20*y2p[m,n+1] + W22*y2p[m,n]
    #   out[2m  ,2n+1] = W01*y2p[m+1,n+1] + W21*y2p[m,n+1]
    #   out[2m+1,2n  ] = W10*y2p[m+1,n+1] + W12*y2p[m+1,n]
    #   out[2m+1,2n+1] = W11*y2p[m+1,n+1]
    # where Wkykx is the (Cin,Cout) matrix wt[:, :, ky, kx].
    y2p_ref[...] = jnp.zeros(y2p_ref.shape, jnp.float32)
    y2p_ref[pl.ds(1, Hp), pl.ds(1, Wp), :] = y2.reshape(Hp, Wp, C2)

    def tap(hs, ws, mh, mw, ky, kx):
        p = y2p_ref[pl.ds(hs, mh), pl.ds(ws, mw), :].reshape(mh * mw, C2)
        return jnp.dot(p, wt_ref[ky, kx], preferred_element_type=jnp.float32)

    ee = (tap(1, 1, He, We, 0, 0) + tap(1, 0, He, We, 0, 2)
          + tap(0, 1, He, We, 2, 0) + tap(0, 0, He, We, 2, 2)).reshape(He, We, Cout)
    eo = (tap(1, 1, He, Wp, 0, 1) + tap(0, 1, He, Wp, 2, 1)).reshape(He, Wp, Cout)
    oe = (tap(1, 1, Hp, We, 1, 0) + tap(1, 0, Hp, We, 1, 2)).reshape(Hp, We, Cout)
    oo = tap(1, 1, Hp, Wp, 1, 1).reshape(Hp, Wp, Cout)

    # Interleave the 4 parity phases into the (Ho, Wo, Cout) output (in registers).
    eo_p = jnp.concatenate([eo, jnp.zeros((He, 1, Cout), jnp.float32)], axis=1)
    oo_p = jnp.concatenate([oo, jnp.zeros((Hp, 1, Cout), jnp.float32)], axis=1)
    even_rows = jnp.stack([ee, eo_p], axis=2).reshape(He, 2 * We, Cout)[:, :Wo, :]
    odd_rows = jnp.stack([oe, oo_p], axis=2).reshape(Hp, 2 * We, Cout)[:, :Wo, :]
    odd_rows = jnp.concatenate(
        [odd_rows, jnp.zeros((1, Wo, Cout), jnp.float32)], axis=0)
    out = jnp.stack([even_rows, odd_rows], axis=1).reshape(2 * He, Wo, Cout)[:Ho, :, :]

    o_ref[0] = out + bt_ref[...]            # ConvTranspose2d bias


# ------------------------------- host wrapper ---------------------------------

def switch_layer_forward(x_nchw, params):
    """SwitchLayer.forward.  x_nchw: (N, C_prev, H, W) -> (N, C_prev, 2*(H//2)+1, ...)."""
    eps = 1e-5
    N, C, H, W = x_nchw.shape
    Hp, Wp = H // 2, W // 2
    C1 = params["w1"].shape[-1]
    Cout = params["wt"].shape[1]
    Ho, Wo = 2 * Hp + 1, 2 * Wp + 1

    # Fold BatchNorm (inference) into per-channel scale/shift (parameter prep).
    scale1 = params["gamma1"] * lax.rsqrt(params["var1"] + eps)
    shift1 = params["beta1"] - params["mean1"] * scale1
    scale2 = params["gamma2"] * lax.rsqrt(params["var2"] + eps)
    shift2 = params["beta2"] - params["mean2"] * scale2
    # PyTorch ConvTranspose2d weight (Cin, Cout, kH, kW) -> (kH, kW, Cin, Cout)
    wt_k = jnp.transpose(params["wt"], (2, 3, 0, 1))
    bt = params["bt"].reshape(1, Cout)

    # NCHW -> NHWC, pre-split into 2x2 pooling windows (single tiny host copy).
    xr = jnp.transpose(x_nchw, (0, 2, 3, 1)).astype(jnp.float32)
    xr = xr.reshape(N, Hp, 2, Wp, 2, C)

    out_nhwc = pl.pallas_call(
        _switch_layer_kernel,
        out_shape=jax.ShapeDtypeStruct((N, Ho, Wo, Cout), jnp.float32),
        grid=(N,),
        in_specs=[
            pl.BlockSpec((1, Hp, 2, Wp, 2, C), lambda n: (n, 0, 0, 0, 0, 0)),
            pl.BlockSpec((3, 3, C, C1), lambda n: (0, 0, 0, 0)),
            pl.BlockSpec((1, C1), lambda n: (0, 0)),
            pl.BlockSpec((1, C1), lambda n: (0, 0)),
            pl.BlockSpec((3, 3, C1, C1), lambda n: (0, 0, 0, 0)),
            pl.BlockSpec((1, C1), lambda n: (0, 0)),
            pl.BlockSpec((1, C1), lambda n: (0, 0)),
            pl.BlockSpec((3, 3, C1, Cout), lambda n: (0, 0, 0, 0)),
            pl.BlockSpec((1, Cout), lambda n: (0, 0)),
        ],
        out_specs=pl.BlockSpec((1, Ho, Wo, Cout), lambda n: (n, 0, 0, 0)),
        scratch_shapes=[
            pltpu.VMEM((Hp + 2, Wp + 2, C), jnp.float32),    # padded conv1 input
            pltpu.VMEM((Hp + 2, Wp + 2, C1), jnp.float32),   # padded conv2 input
            pltpu.VMEM((Hp + 2, Wp + 2, C1), jnp.float32),   # padded deconv input
        ],
        compiler_params=pltpu.CompilerParams(
            dimension_semantics=("parallel",)),              # v7x: split batch over 2 TCs
    )(xr, params["w1"], scale1.reshape(1, C1), shift1.reshape(1, C1),
      params["w2"], scale2.reshape(1, C1), shift2.reshape(1, C1), wt_k, bt)

    return jnp.transpose(out_nhwc, (0, 3, 1, 2))             # NHWC -> NCHW


# ----------------------------- pure-JAX reference ------------------------------

def _reference_forward(x_nchw, params):
    eps = 1e-5
    dn = ("NHWC", "HWIO", "NHWC")
    hi = jax.lax.Precision.HIGHEST
    x = jnp.transpose(x_nchw, (0, 2, 3, 1)).astype(jnp.float32)
    x = lax.reduce_window(x, -jnp.inf, lax.max, (1, 2, 2, 1), (1, 2, 2, 1), "VALID")
    for (w, g, b, m, v) in (
        (params["w1"], params["gamma1"], params["beta1"], params["mean1"], params["var1"]),
        (params["w2"], params["gamma2"], params["beta2"], params["mean2"], params["var2"]),
    ):
        scale = g * lax.rsqrt(v + eps)
        shift = b - m * scale
        x = lax.conv_general_dilated(x, w, (1, 1), "SAME",
                                     dimension_numbers=dn, precision=hi)
        x = jnp.maximum(x * scale + shift, 0.0)
    w_conv = jnp.transpose(params["wt"][:, :, ::-1, ::-1], (2, 3, 0, 1))
    x = lax.conv_general_dilated(x, w_conv, (1, 1), [(2, 2), (2, 2)],
                                 lhs_dilation=(2, 2),
                                 dimension_numbers=dn, precision=hi)
    x = x + params["bt"].reshape(1, 1, 1, -1)
    return jnp.transpose(x, (0, 3, 1, 2))


# ------------------------------------ main -------------------------------------

if __name__ == "__main__":
    key = jax.random.PRNGKey(0)
    ks = jax.random.split(key, 13)
    C_prev, C_curr = 4, 8          # chan_multi=4, max_level=1

    params = {
        "w1":     0.1 * jax.random.normal(ks[1], (3, 3, C_prev, C_curr), jnp.float32),
        "gamma1": jax.random.uniform(ks[2], (C_curr,), jnp.float32, 0.5, 1.5),
        "beta1":  0.1 * jax.random.normal(ks[3], (C_curr,), jnp.float32),
        "mean1":  0.1 * jax.random.normal(ks[4], (C_curr,), jnp.float32),
        "var1":   jax.random.uniform(ks[5], (C_curr,), jnp.float32, 0.5, 1.5),
        "w2":     0.1 * jax.random.normal(ks[6], (3, 3, C_curr, C_curr), jnp.float32),
        "gamma2": jax.random.uniform(ks[7], (C_curr,), jnp.float32, 0.5, 1.5),
        "beta2":  0.1 * jax.random.normal(ks[8], (C_curr,), jnp.float32),
        "mean2":  0.1 * jax.random.normal(ks[9], (C_curr,), jnp.float32),
        "var2":   jax.random.uniform(ks[10], (C_curr,), jnp.float32, 0.5, 1.5),
        # PyTorch ConvTranspose2d weight layout: (C_in, C_out, kH, kW)
        "wt":     0.1 * jax.random.normal(ks[11], (C_curr, C_prev, 3, 3), jnp.float32),
        "bt":     0.1 * jax.random.normal(ks[12], (C_prev,), jnp.float32),
    }

    x = jax.random.normal(ks[0], (2, C_prev, 16, 16), jnp.float32)   # NCHW input

    fwd = jax.jit(switch_layer_forward)
    out = jax.block_until_ready(fwd(x, params))
    assert out.shape == (2, C_prev, 17, 17), out.shape

    ref = _reference_forward(x, params)
    max_err = float(jnp.max(jnp.abs(out - ref)))
    assert max_err < 5e-2, f"mismatch vs reference: {max_err}"

    print("KERNEL_OK")
</pallas_src>

<mosaic_0001>
module attributes {stable_mosaic.version = 11 : i64} {
  func.func @_switch_layer_kernel(%arg0: i32, %arg1: memref<1x8x2x8x2x4xf32, #tpu.memory_space<vmem>>, %arg2: memref<3x3x4x8xf32, #tpu.memory_space<vmem>>, %arg3: memref<1x8xf32, #tpu.memory_space<vmem>>, %arg4: memref<1x8xf32, #tpu.memory_space<vmem>>, %arg5: memref<3x3x8x8xf32, #tpu.memory_space<vmem>>, %arg6: memref<1x8xf32, #tpu.memory_space<vmem>>, %arg7: memref<1x8xf32, #tpu.memory_space<vmem>>, %arg8: memref<3x3x8x4xf32, #tpu.memory_space<vmem>>, %arg9: memref<1x4xf32, #tpu.memory_space<vmem>>, %arg10: memref<1x17x17x4xf32, #tpu.memory_space<vmem>>, %arg11: memref<10x10x4xf32, #tpu.memory_space<vmem>>, %arg12: memref<10x10x8xf32, #tpu.memory_space<vmem>>, %arg13: memref<10x10x8xf32, #tpu.memory_space<vmem>>) attributes {dimension_semantics = [#tpu.dimension_semantics<parallel>], iteration_bounds = array<i64: 2>, scalar_prefetch = 0 : i64, scratch_operands = 3 : i64, tpu.core_type = #tpu.core_type<tc>, window_params = [{transform_indices = @transform_0, window_bounds = array<i64: 1, 8, 2, 8, 2, 4>}, {pipeline_mode = #tpu.pipeline_mode<synchronous>, transform_indices = @transform_1, window_bounds = array<i64: 3, 3, 4, 8>}, {pipeline_mode = #tpu.pipeline_mode<synchronous>, transform_indices = @transform_2, window_bounds = array<i64: 1, 8>}, {pipeline_mode = #tpu.pipeline_mode<synchronous>, transform_indices = @transform_3, window_bounds = array<i64: 1, 8>}, {pipeline_mode = #tpu.pipeline_mode<synchronous>, transform_indices = @transform_4, window_bounds = array<i64: 3, 3, 8, 8>}, {pipeline_mode = #tpu.pipeline_mode<synchronous>, transform_indices = @transform_5, window_bounds = array<i64: 1, 8>}, {pipeline_mode = #tpu.pipeline_mode<synchronous>, transform_indices = @transform_6, window_bounds = array<i64: 1, 8>}, {pipeline_mode = #tpu.pipeline_mode<synchronous>, transform_indices = @transform_7, window_bounds = array<i64: 3, 3, 8, 4>}, {pipeline_mode = #tpu.pipeline_mode<synchronous>, transform_indices = @transform_8, window_bounds = array<i64: 1, 4>}, {transform_indices = @transform_9, window_bounds = array<i64: 1, 17, 17, 4>}]} {
    %c0 = arith.constant 0 : index
    %c0_0 = arith.constant 0 : index
    %c0_1 = arith.constant 0 : index
    %c0_2 = arith.constant 0 : index
    %c0_3 = arith.constant 0 : index
    %c0_4 = arith.constant 0 : index
    %0 = vector.load %arg1[%c0, %c0_0, %c0_1, %c0_2, %c0_3, %c0_4] : memref<1x8x2x8x2x4xf32, #tpu.memory_space<vmem>>, vector<1x8x2x8x2x4xf32>
    %1 = vector.shape_cast %0 : vector<1x8x2x8x2x4xf32> to vector<8x2x8x2x4xf32>
    %cst = arith.constant dense<0xFF800000> : vector<8x2x8x4xf32>
    %2 = vector.multi_reduction <maximumf>, %1, %cst [3] : vector<8x2x8x2x4xf32> to vector<8x2x8x4xf32>
    %cst_5 = arith.constant dense<0xFF800000> : vector<8x8x4xf32>
    %3 = vector.multi_reduction <maximumf>, %2, %cst_5 [1] : vector<8x2x8x4xf32> to vector<8x8x4xf32>
    %cst_6 = arith.constant 0.000000e+00 : f32
    %4 = vector.broadcast %cst_6 : f32 to vector<10x10x4xf32>
    %c0_7 = arith.constant 0 : index
    %c0_8 = arith.constant 0 : index
    %c0_9 = arith.constant 0 : index
    %5 = vector.load %arg11[%c0_7, %c0_8, %c0_9] : memref<10x10x4xf32, #tpu.memory_space<vmem>>, vector<10x10x4xf32>
    tpu.vector_store %arg11[%c0_7, %c0_8, %c0_9], %4 {strides = array<i32>} : memref<10x10x4xf32, #tpu.memory_space<vmem>>, vector<10x10x4xf32>,
    %c1 = arith.constant 1 : index
    %c1_10 = arith.constant 1 : index
    %c0_11 = arith.constant 0 : index
    %6 = vector.load %arg11[%c1, %c1_10, %c0_11] : memref<10x10x4xf32, #tpu.memory_space<vmem>>, vector<8x8x4xf32>
    tpu.vector_store %arg11[%c1, %c1_10, %c0_11], %3 {strides = array<i32>} : memref<10x10x4xf32, #tpu.memory_space<vmem>>, vector<8x8x4xf32>,
    %cst_12 = arith.constant 0.000000e+00 : f32
    %7 = vector.broadcast %cst_12 : f32 to vector<64x8xf32>
    %c0_13 = arith.constant 0 : index
    %c0_14 = arith.constant 0 : index
    %c0_15 = arith.constant 0 : index
    %8 = vector.load %arg11[%c0_13, %c0_14, %c0_15] : memref<10x10x4xf32, #tpu.memory_space<vmem>>, vector<8x8x4xf32>
    %9 = vector.shape_cast %8 : vector<8x8x4xf32> to vector<64x4xf32>
    %c0_16 = arith.constant 0 : index
    %c0_17 = arith.constant 0 : index
    %c0_18 = arith.constant 0 : index
    %c0_19 = arith.constant 0 : index
    %10 = vector.load %arg2[%c0_16, %c0_17, %c0_18, %c0_19] : memref<3x3x4x8xf32, #tpu.memory_space<vmem>>, vector<1x1x4x8xf32>
    %11 = vector.shape_cast %10 : vector<1x1x4x8xf32> to vector<4x8xf32>
    %cst_20 = arith.constant dense<0.000000e+00> : vector<64x8xf32>
    %12 = tpu.matmul %9, %11, %cst_20 {dimension_numbers = #tpu.dot_dimension_numbers<[1], [0], [0], [1], [0, 0, 1, 1], [], []>} : vector<64x4xf32>, vector<4x8xf32>, vector<64x8xf32> -> vector<64x8xf32>
    %13 = arith.addf %7, %12 : vector<64x8xf32>
    %c0_21 = arith.constant 0 : index
    %c1_22 = arith.constant 1 : index
    %c0_23 = arith.constant 0 : index
    %14 = vector.load %arg11[%c0_21, %c1_22, %c0_23] : memref<10x10x4xf32, #tpu.memory_space<vmem>>, vector<8x8x4xf32>
    %15 = vector.shape_cast %14 : vector<8x8x4xf32> to vector<64x4xf32>
    %c0_24 = arith.constant 0 : index
    %c1_25 = arith.constant 1 : index
    %c0_26 = arith.constant 0 : index
    %c0_27 = arith.constant 0 : index
    %16 = vector.load %arg2[%c0_24, %c1_25, %c0_26, %c0_27] : memref<3x3x4x8xf32, #tpu.memory_space<vmem>>, vector<1x1x4x8xf32>
    %17 = vector.shape_cast %16 : vector<1x1x4x8xf32> to vector<4x8xf32>
    %cst_28 = arith.constant dense<0.000000e+00> : vector<64x8xf32>
    %18 = tpu.matmul %15, %17, %cst_28 {dimension_numbers = #tpu.dot_dimension_numbers<[1], [0], [0], [1], [0, 0, 1, 1], [], []>} : vector<64x4xf32>, vector<4x8xf32>, vector<64x8xf32> -> vector<64x8xf32>
    %19 = arith.addf %13, %18 : vector<64x8xf32>
    %c0_29 = arith.constant 0 : index
    %c2 = arith.constant 2 : index
    %c0_30 = arith.constant 0 : index
    %20 = vector.load %arg11[%c0_29, %c2, %c0_30] : memref<10x10x4xf32, #tpu.memory_space<vmem>>, vector<8x8x4xf32>
    %21 = vector.shape_cast %20 : vector<8x8x4xf32> to vector<64x4xf32>
    %c0_31 = arith.constant 0 : index
    %c2_32 = arith.constant 2 : index
    %c0_33 = arith.constant 0 : index
    %c0_34 = arith.constant 0 : index
    %22 = vector.load %arg2[%c0_31, %c2_32, %c0_33, %c0_34] : memref<3x3x4x8xf32, #tpu.memory_space<vmem>>, vector<1x1x4x8xf32>
    %23 = vector.shape_cast %22 : vector<1x1x4x8xf32> to vector<4x8xf32>
    %cst_35 = arith.constant dense<0.000000e+00> : vector<64x8xf32>
    %24 = tpu.matmul %21, %23, %cst_35 {dimension_numbers = #tpu.dot_dimension_numbers<[1], [0], [0], [1], [0, 0, 1, 1], [], []>} : vector<64x4xf32>, vector<4x8xf32>, vector<64x8xf32> -> vector<64x8xf32>
    %25 = arith.addf %19, %24 : vector<64x8xf32>
    %c1_36 = arith.constant 1 : index
    %c0_37 = arith.constant 0 : index
    %c0_38 = arith.constant 0 : index
    %26 = vector.load %arg11[%c1_36, %c0_37, %c0_38] : memref<10x10x4xf32, #tpu.memory_space<vmem>>, vector<8x8x4xf32>
    %27 = vector.shape_cast %26 : vector<8x8x4xf32> to vector<64x4xf32>
    %c1_39 = arith.constant 1 : index
    %c0_40 = arith.constant 0 : index
    %c0_41 = arith.constant 0 : index
    %c0_42 = arith.constant 0 : index
    %28 = vector.load %arg2[%c1_39, %c0_40, %c0_41, %c0_42] : memref<3x3x4x8xf32, #tpu.memory_space<vmem>>, vector<1x1x4x8xf32>
    %29 = vector.shape_cast %28 : vector<1x1x4x8xf32> to vector<4x8xf32>
    %cst_43 = arith.constant dense<0.000000e+00> : vector<64x8xf32>
    %30 = tpu.matmul %27, %29, %cst_43 {dimension_numbers = #tpu.dot_dimension_numbers<[1], [0], [0], [1], [0, 0, 1, 1], [], []>} : vector<64x4xf32>, vector<4x8xf32>, vector<64x8xf32> -> vector<64x8xf32>
    %31 = arith.addf %25, %30 : vector<64x8xf32>
    %c1_44 = arith.constant 1 : index
    %c1_45 = arith.constant 1 : index
    %c0_46 = arith.constant 0 : index
    %32 = vector.load %arg11[%c1_44, %c1_45, %c0_46] : memref<10x10x4xf32, #tpu.memory_space<vmem>>, vector<8x8x4xf32>
    %33 = vector.shape_cast %32 : vector<8x8x4xf32> to vector<64x4xf32>
    %c1_47 = arith.constant 1 : index
    %c1_48 = arith.constant 1 : index
    %c0_49 = arith.constant 0 : index
    %c0_50 = arith.constant 0 : index
    %34 = vector.load %arg2[%c1_47, %c1_48, %c0_49, %c0_50] : memref<3x3x4x8xf32, #tpu.memory_space<vmem>>, vector<1x1x4x8xf32>
    %35 = vector.shape_cast %34 : vector<1x1x4x8xf32> to vector<4x8xf32>
    %cst_51 = arith.constant dense<0.000000e+00> : vector<64x8xf32>
    %36 = tpu.matmul %33, %35, %cst_51 {dimension_numbers = #tpu.dot_dimension_numbers<[1], [0], [0], [1], [0, 0, 1, 1], [], []>} : vector<64x4xf32>, vector<4x8xf32>, vector<64x8xf32> -> vector<64x8xf32>
    %37 = arith.addf %31, %36 : vector<64x8xf32>
    %c1_52 = arith.constant 1 : index
    %c2_53 = arith.constant 2 : index
    %c0_54 = arith.constant 0 : index
    %38 = vector.load %arg11[%c1_52, %c2_53, %c0_54] : memref<10x10x4xf32, #tpu.memory_space<vmem>>, vector<8x8x4xf32>
    %39 = vector.shape_cast %38 : vector<8x8x4xf32> to vector<64x4xf32>
    %c1_55 = arith.constant 1 : index
    %c2_56 = arith.constant 2 : index
    %c0_57 = arith.constant 0 : index
    %c0_58 = arith.constant 0 : index
    %40 = vector.load %arg2[%c1_55, %c2_56, %c0_57, %c0_58] : memref<3x3x4x8xf32, #tpu.memory_space<vmem>>, vector<1x1x4x8xf32>
    %41 = vector.shape_cast %40 : vector<1x1x4x8xf32> to vector<4x8xf32>
    %cst_59 = arith.constant dense<0.000000e+00> : vector<64x8xf32>
    %42 = tpu.matmul %39, %41, %cst_59 {dimension_numbers = #tpu.dot_dimension_numbers<[1], [0], [0], [1], [0, 0, 1, 1], [], []>} : vector<64x4xf32>, vector<4x8xf32>, vector<64x8xf32> -> vector<64x8xf32>
    %43 = arith.addf %37, %42 : vector<64x8xf32>
    %c2_60 = arith.constant 2 : index
    %c0_61 = arith.constant 0 : index
    %c0_62 = arith.constant 0 : index
    %44 = vector.load %arg11[%c2_60, %c0_61, %c0_62] : memref<10x10x4xf32, #tpu.memory_space<vmem>>, vector<8x8x4xf32>
    %45 = vector.shape_cast %44 : vector<8x8x4xf32> to vector<64x4xf32>
    %c2_63 = arith.constant 2 : index
    %c0_64 = arith.constant 0 : index
    %c0_65 = arith.constant 0 : index
    %c0_66 = arith.constant 0 : index
    %46 = vector.load %arg2[%c2_63, %c0_64, %c0_65, %c0_66] : memref<3x3x4x8xf32, #tpu.memory_space<vmem>>, vector<1x1x4x8xf32>
    %47 = vector.shape_cast %46 : vector<1x1x4x8xf32> to vector<4x8xf32>
    %cst_67 = arith.constant dense<0.000000e+00> : vector<64x8xf32>
    %48 = tpu.matmul %45, %47, %cst_67 {dimension_numbers = #tpu.dot_dimension_numbers<[1], [0], [0], [1], [0, 0, 1, 1], [], []>} : vector<64x4xf32>, vector<4x8xf32>, vector<64x8xf32> -> vector<64x8xf32>
    %49 = arith.addf %43, %48 : vector<64x8xf32>
    %c2_68 = arith.constant 2 : index
    %c1_69 = arith.constant 1 : index
    %c0_70 = arith.constant 0 : index
    %50 = vector.load %arg11[%c2_68, %c1_69, %c0_70] : memref<10x10x4xf32, #tpu.memory_space<vmem>>, vector<8x8x4xf32>
    %51 = vector.shape_cast %50 : vector<8x8x4xf32> to vector<64x4xf32>
    %c2_71 = arith.constant 2 : index
    %c1_72 = arith.constant 1 : index
    %c0_73 = arith.constant 0 : index
    %c0_74 = arith.constant 0 : index
    %52 = vector.load %arg2[%c2_71, %c1_72, %c0_73, %c0_74] : memref<3x3x4x8xf32, #tpu.memory_space<vmem>>, vector<1x1x4x8xf32>
    %53 = vector.shape_cast %52 : vector<1x1x4x8xf32> to vector<4x8xf32>
    %cst_75 = arith.constant dense<0.000000e+00> : vector<64x8xf32>
    %54 = tpu.matmul %51, %53, %cst_75 {dimension_numbers = #tpu.dot_dimension_numbers<[1], [0], [0], [1], [0, 0, 1, 1], [], []>} : vector<64x4xf32>, vector<4x8xf32>, vector<64x8xf32> -> vector<64x8xf32>
    %55 = arith.addf %49, %54 : vector<64x8xf32>
    %c2_76 = arith.constant 2 : index
    %c2_77 = arith.constant 2 : index
    %c0_78 = arith.constant 0 : index
    %56 = vector.load %arg11[%c2_76, %c2_77, %c0_78] : memref<10x10x4xf32, #tpu.memory_space<vmem>>, vector<8x8x4xf32>
    %57 = vector.shape_cast %56 : vector<8x8x4xf32> to vector<64x4xf32>
    %c2_79 = arith.constant 2 : index
    %c2_80 = arith.constant 2 : index
    %c0_81 = arith.constant 0 : index
    %c0_82 = arith.constant 0 : index
    %58 = vector.load %arg2[%c2_79, %c2_80, %c0_81, %c0_82] : memref<3x3x4x8xf32, #tpu.memory_space<vmem>>, vector<1x1x4x8xf32>
    %59 = vector.shape_cast %58 : vector<1x1x4x8xf32> to vector<4x8xf32>
    %cst_83 = arith.constant dense<0.000000e+00> : vector<64x8xf32>
    %60 = tpu.matmul %57, %59, %cst_83 {dimension_numbers = #tpu.dot_dimension_numbers<[1], [0], [0], [1], [0, 0, 1, 1], [], []>} : vector<64x4xf32>, vector<4x8xf32>, vector<64x8xf32> -> vector<64x8xf32>
    %61 = arith.addf %55, %60 : vector<64x8xf32>
    %c0_84 = arith.constant 0 : index
    %c0_85 = arith.constant 0 : index
    %62 = vector.load %arg3[%c0_84, %c0_85] : memref<1x8xf32, #tpu.memory_space<vmem>>, vector<1x8xf32>
    %63 = vector.broadcast %62 : vector<1x8xf32> to vector<64x8xf32>
    %64 = arith.mulf %61, %63 : vector<64x8xf32>
    %c0_86 = arith.constant 0 : index
    %c0_87 = arith.constant 0 : index
    %65 = vector.load %arg4[%c0_86, %c0_87] : memref<1x8xf32, #tpu.memory_space<vmem>>, vector<1x8xf32>
    %66 = vector.broadcast %65 : vector<1x8xf32> to vector<64x8xf32>
    %67 = arith.addf %64, %66 : vector<64x8xf32>
    %cst_88 = arith.constant 0.000000e+00 : f32
    %68 = vector.broadcast %cst_88 : f32 to vector<64x8xf32>
    %69 = arith.maximumf %67, %68 : vector<64x8xf32>
    %70 = vector.shape_cast %69 : vector<64x8xf32> to vector<8x8x8xf32>
    %cst_89 = arith.constant 0.000000e+00 : f32
    %71 = vector.broadcast %cst_89 : f32 to vector<10x10x8xf32>
    %c0_90 = arith.constant 0 : index
    %c0_91 = arith.constant 0 : index
    %c0_92 = arith.constant 0 : index
    %72 = vector.load %arg12[%c0_90, %c0_91, %c0_92] : memref<10x10x8xf32, #tpu.memory_space<vmem>>, vector<10x10x8xf32>
    tpu.vector_store %arg12[%c0_90, %c0_91, %c0_92], %71 {strides = array<i32>} : memref<10x10x8xf32, #tpu.memory_space<vmem>>, vector<10x10x8xf32>,
    %c1_93 = arith.constant 1 : index
    %c1_94 = arith.constant 1 : index
    %c0_95 = arith.constant 0 : index
    %73 = vector.load %arg12[%c1_93, %c1_94, %c0_95] : memref<10x10x8xf32, #tpu.memory_space<vmem>>, vector<8x8x8xf32>
    tpu.vector_store %arg12[%c1_93, %c1_94, %c0_95], %70 {strides = array<i32>} : memref<10x10x8xf32, #tpu.memory_space<vmem>>, vector<8x8x8xf32>,
    %cst_96 = arith.constant 0.000000e+00 : f32
    %74 = vector.broadcast %cst_96 : f32 to vector<64x8xf32>
    %c0_97 = arith.constant 0 : index
    %c0_98 = arith.constant 0 : index
    %c0_99 = arith.constant 0 : index
    %75 = vector.load %arg12[%c0_97, %c0_98, %c0_99] : memref<10x10x8xf32, #tpu.memory_space<vmem>>, vector<8x8x8xf32>
    %76 = vector.shape_cast %75 : vector<8x8x8xf32> to vector<64x8xf32>
    %c0_100 = arith.constant 0 : index
    %c0_101 = arith.constant 0 : index
    %c0_102 = arith.constant 0 : index
    %c0_103 = arith.constant 0 : index
    %77 = vector.load %arg5[%c0_100, %c0_101, %c0_102, %c0_103] : memref<3x3x8x8xf32, #tpu.memory_space<vmem>>, vector<1x1x8x8xf32>
    %78 = vector.shape_cast %77 : vector<1x1x8x8xf32> to vector<8x8xf32>
    %cst_104 = arith.constant dense<0.000000e+00> : vector<64x8xf32>
    %79 = tpu.matmul %76, %78, %cst_104 {dimension_numbers = #tpu.dot_dimension_numbers<[1], [0], [0], [1], [0, 0, 1, 1], [], []>} : vector<64x8xf32>, vector<8x8xf32>, vector<64x8xf32> -> vector<64x8xf32>
    %80 = arith.addf %74, %79 : vector<64x8xf32>
    %c0_105 = arith.constant 0 : index
    %c1_106 = arith.constant 1 : index
    %c0_107 = arith.constant 0 : index
    %81 = vector.load %arg12[%c0_105, %c1_106, %c0_107] : memref<10x10x8xf32, #tpu.memory_space<vmem>>, vector<8x8x8xf32>
    %82 = vector.shape_cast %81 : vector<8x8x8xf32> to vector<64x8xf32>
    %c0_108 = arith.constant 0 : index
    %c1_109 = arith.constant 1 : index
    %c0_110 = arith.constant 0 : index
    %c0_111 = arith.constant 0 : index
    %83 = vector.load %arg5[%c0_108, %c1_109, %c0_110, %c0_111] : memref<3x3x8x8xf32, #tpu.memory_space<vmem>>, vector<1x1x8x8xf32>
    %84 = vector.shape_cast %83 : vector<1x1x8x8xf32> to vector<8x8xf32>
    %cst_112 = arith.constant dense<0.000000e+00> : vector<64x8xf32>
    %85 = tpu.matmul %82, %84, %cst_112 {dimension_numbers = #tpu.dot_dimension_numbers<[1], [0], [0], [1], [0, 0, 1, 1], [], []>} : vector<64x8xf32>, vector<8x8xf32>, vector<64x8xf32> -> vector<64x8xf32>
    %86 = arith.addf %80, %85 : vector<64x8xf32>
    %c0_113 = arith.constant 0 : index
    %c2_114 = arith.constant 2 : index
    %c0_115 = arith.constant 0 : index
    %87 = vector.load %arg12[%c0_113, %c2_114, %c0_115] : memref<10x10x8xf32, #tpu.memory_space<vmem>>, vector<8x8x8xf32>
    %88 = vector.shape_cast %87 : vector<8x8x8xf32> to vector<64x8xf32>
    %c0_116 = arith.constant 0 : index
    %c2_117 = arith.constant 2 : index
    %c0_118 = arith.constant 0 : index
    %c0_119 = arith.constant 0 : index
    %89 = vector.load %arg5[%c0_116, %c2_117, %c0_118, %c0_119] : memref<3x3x8x8xf32, #tpu.memory_space<vmem>>, vector<1x1x8x8xf32>
    %90 = vector.shape_cast %89 : vector<1x1x8x8xf32> to vector<8x8xf32>
    %cst_120 = arith.constant dense<0.000000e+00> : vector<64x8xf32>
    %91 = tpu.matmul %88, %90, %cst_120 {dimension_numbers = #tpu.dot_dimension_numbers<[1], [0], [0], [1], [0, 0, 1, 1], [], []>} : vector<64x8xf32>, vector<8x8xf32>, vector<64x8xf32> -> vector<64x8xf32>
    %92 = arith.addf %86, %91 : vector<64x8xf32>
    %c1_121 = arith.constant 1 : index
    %c0_122 = arith.constant 0 : index
    %c0_123 = arith.constant 0 : index
    %93 = vector.load %arg12[%c1_121, %c0_122, %c0_123] : memref<10x10x8xf32, #tpu.memory_space<vmem>>, vector<8x8x8xf32>
    %94 = vector.shape_cast %93 : vector<8x8x8xf32> to vector<64x8xf32>
    %c1_124 = arith.constant 1 : index
    %c0_125 = arith.constant 0 : index
    %c0_126 = arith.constant 0 : index
    %c0_127 = arith.constant 0 : index
    %95 = vector.load %arg5[%c1_124, %c0_125, %c0_126, %c0_127] : memref<3x3x8x8xf32, #tpu.memory_space<vmem>>, vector<1x1x8x8xf32>
    %96 = vector.shape_cast %95 : vector<1x1x8x8xf32> to vector<8x8xf32>
    %cst_128 = arith.constant dense<0.000000e+00> : vector<64x8xf32>
    %97 = tpu.matmul %94, %96, %cst_128 {dimension_numbers = #tpu.dot_dimension_numbers<[1], [0], [0], [1], [0, 0, 1, 1], [], []>} : vector<64x8xf32>, vector<8x8xf32>, vector<64x8xf32> -> vector<64x8xf32>
    %98 = arith.addf %92, %97 : vector<64x8xf32>
    %c1_129 = arith.constant 1 : index
    %c1_130 = arith.constant 1 : index
    %c0_131 = arith.constant 0 : index
    %99 = vector.load %arg12[%c1_129, %c1_130, %c0_131] : memref<10x10x8xf32, #tpu.memory_space<vmem>>, vector<8x8x8xf32>
    %100 = vector.shape_cast %99 : vector<8x8x8xf32> to vector<64x8xf32>
    %c1_132 = arith.constant 1 : index
    %c1_133 = arith.constant 1 : index
    %c0_134 = arith.constant 0 : index
    %c0_135 = arith.constant 0 : index
    %101 = vector.load %arg5[%c1_132, %c1_133, %c0_134, %c0_135] : memref<3x3x8x8xf32, #tpu.memory_space<vmem>>, vector<1x1x8x8xf32>
    %102 = vector.shape_cast %101 : vector<1x1x8x8xf32> to vector<8x8xf32>
    %cst_136 = arith.constant dense<0.000000e+00> : vector<64x8xf32>
    %103 = tpu.matmul %100, %102, %cst_136 {dimension_numbers = #tpu.dot_dimension_numbers<[1], [0], [0], [1], [0, 0, 1, 1], [], []>} : vector<64x8xf32>, vector<8x8xf32>, vector<64x8xf32> -> vector<64x8xf32>
    %104 = arith.addf %98, %103 : vector<64x8xf32>
    %c1_137 = arith.constant 1 : index
    %c2_138 = arith.constant 2 : index
    %c0_139 = arith.constant 0 : index
    %105 = vector.load %arg12[%c1_137, %c2_138, %c0_139] : memref<10x10x8xf32, #tpu.memory_space<vmem>>, vector<8x8x8xf32>
    %106 = vector.shape_cast %105 : vector<8x8x8xf32> to vector<64x8xf32>
    %c1_140 = arith.constant 1 : index
    %c2_141 = arith.constant 2 : index
    %c0_142 = arith.constant 0 : index
    %c0_143 = arith.constant 0 : index
    %107 = vector.load %arg5[%c1_140, %c2_141, %c0_142, %c0_143] : memref<3x3x8x8xf32, #tpu.memory_space<vmem>>, vector<1x1x8x8xf32>
    %108 = vector.shape_cast %107 : vector<1x1x8x8xf32> to vector<8x8xf32>
    %cst_144 = arith.constant dense<0.000000e+00> : vector<64x8xf32>
    %109 = tpu.matmul %106, %108, %cst_144 {dimension_numbers = #tpu.dot_dimension_numbers<[1], [0], [0], [1], [0, 0, 1, 1], [], []>} : vector<64x8xf32>, vector<8x8xf32>, vector<64x8xf32> -> vector<64x8xf32>
    %110 = arith.addf %104, %109 : vector<64x8xf32>
    %c2_145 = arith.constant 2 : index
    %c0_146 = arith.constant 0 : index
    %c0_147 = arith.constant 0 : index
    %111 = vector.load %arg12[%c2_145, %c0_146, %c0_147] : memref<10x10x8xf32, #tpu.memory_space<vmem>>, vector<8x8x8xf32>
    %112 = vector.shape_cast %111 : vector<8x8x8xf32> to vector<64x8xf32>
    %c2_148 = arith.constant 2 : index
    %c0_149 = arith.constant 0 : index
    %c0_150 = arith.constant 0 : index
    %c0_151 = arith.constant 0 : index
    %113 = vector.load %arg5[%c2_148, %c0_149, %c0_150, %c0_151] : memref<3x3x8x8xf32, #tpu.memory_space<vmem>>, vector<1x1x8x8xf32>
    %114 = vector.shape_cast %113 : vector<1x1x8x8xf32> to vector<8x8xf32>
    %cst_152 = arith.constant dense<0.000000e+00> : vector<64x8xf32>
    %115 = tpu.matmul %112, %114, %cst_152 {dimension_numbers = #tpu.dot_dimension_numbers<[1], [0], [0], [1], [0, 0, 1, 1], [], []>} : vector<64x8xf32>, vector<8x8xf32>, vector<64x8xf32> -> vector<64x8xf32>
    %116 = arith.addf %110, %115 : vector<64x8xf32>
    %c2_153 = arith.constant 2 : index
    %c1_154 = arith.constant 1 : index
    %c0_155 = arith.constant 0 : index
    %117 = vector.load %arg12[%c2_153, %c1_154, %c0_155] : memref<10x10x8xf32, #tpu.memory_space<vmem>>, vector<8x8x8xf32>
    %118 = vector.shape_cast %117 : vector<8x8x8xf32> to vector<64x8xf32>
    %c2_156 = arith.constant 2 : index
    %c1_157 = arith.constant 1 : index
    %c0_158 = arith.constant 0 : index
    %c0_159 = arith.constant 0 : index
    %119 = vector.load %arg5[%c2_156, %c1_157, %c0_158, %c0_159] : memref<3x3x8x8xf32, #tpu.memory_space<vmem>>, vector<1x1x8x8xf32>
    %120 = vector.shape_cast %119 : vector<1x1x8x8xf32> to vector<8x8xf32>
    %cst_160 = arith.constant dense<0.000000e+00> : vector<64x8xf32>
    %121 = tpu.matmul %118, %120, %cst_160 {dimension_numbers = #tpu.dot_dimension_numbers<[1], [0], [0], [1], [0, 0, 1, 1], [], []>} : vector<64x8xf32>, vector<8x8xf32>, vector<64x8xf32> -> vector<64x8xf32>
    %122 = arith.addf %116, %121 : vector<64x8xf32>
    %c2_161 = arith.constant 2 : index
    %c2_162 = arith.constant 2 : index
    %c0_163 = arith.constant 0 : index
    %123 = vector.load %arg12[%c2_161, %c2_162, %c0_163] : memref<10x10x8xf32, #tpu.memory_space<vmem>>, vector<8x8x8xf32>
    %124 = vector.shape_cast %123 : vector<8x8x8xf32> to vector<64x8xf32>
    %c2_164 = arith.constant 2 : index
    %c2_165 = arith.constant 2 : index
    %c0_166 = arith.constant 0 : index
    %c0_167 = arith.constant 0 : index
    %125 = vector.load %arg5[%c2_164, %c2_165, %c0_166, %c0_167] : memref<3x3x8x8xf32, #tpu.memory_space<vmem>>, vector<1x1x8x8xf32>
    %126 = vector.shape_cast %125 : vector<1x1x8x8xf32> to vector<8x8xf32>
    %cst_168 = arith.constant dense<0.000000e+00> : vector<64x8xf32>
    %127 = tpu.matmul %124, %126, %cst_168 {dimension_numbers = #tpu.dot_dimension_numbers<[1], [0], [0], [1], [0, 0, 1, 1], [], []>} : vector<64x8xf32>, vector<8x8xf32>, vector<64x8xf32> -> vector<64x8xf32>
    %128 = arith.addf %122, %127 : vector<64x8xf32>
    %c0_169 = arith.constant 0 : index
    %c0_170 = arith.constant 0 : index
    %129 = vector.load %arg6[%c0_169, %c0_170] : memref<1x8xf32, #tpu.memory_space<vmem>>, vector<1x8xf32>
    %130 = vector.broadcast %129 : vector<1x8xf32> to vector<64x8xf32>
    %131 = arith.mulf %128, %130 : vector<64x8xf32>
    %c0_171 = arith.constant 0 : index
    %c0_172 = arith.constant 0 : index
    %132 = vector.load %arg7[%c0_171, %c0_172] : memref<1x8xf32, #tpu.memory_space<vmem>>, vector<1x8xf32>
    %133 = vector.broadcast %132 : vector<1x8xf32> to vector<64x8xf32>
    %134 = arith.addf %131, %133 : vector<64x8xf32>
    %cst_173 = arith.constant 0.000000e+00 : f32
    %135 = vector.broadcast %cst_173 : f32 to vector<64x8xf32>
    %136 = arith.maximumf %134, %135 : vector<64x8xf32>
    %cst_174 = arith.constant 0.000000e+00 : f32
    %137 = vector.broadcast %cst_174 : f32 to vector<10x10x8xf32>
    %c0_175 = arith.constant 0 : index
    %c0_176 = arith.constant 0 : index
    %c0_177 = arith.constant 0 : index
    %138 = vector.load %arg13[%c0_175, %c0_176, %c0_177] : memref<10x10x8xf32, #tpu.memory_space<vmem>>, vector<10x10x8xf32>
    tpu.vector_store %arg13[%c0_175, %c0_176, %c0_177], %137 {strides = array<i32>} : memref<10x10x8xf32, #tpu.memory_space<vmem>>, vector<10x10x8xf32>,
    %139 = vector.shape_cast %136 : vector<64x8xf32> to vector<8x8x8xf32>
    %c1_178 = arith.constant 1 : index
    %c1_179 = arith.constant 1 : index
    %c0_180 = arith.constant 0 : index
    %140 = vector.load %arg13[%c1_178, %c1_179, %c0_180] : memref<10x10x8xf32, #tpu.memory_space<vmem>>, vector<8x8x8xf32>
    tpu.vector_store %arg13[%c1_178, %c1_179, %c0_180], %139 {strides = array<i32>} : memref<10x10x8xf32, #tpu.memory_space<vmem>>, vector<8x8x8xf32>,
    %c1_181 = arith.constant 1 : index
    %c1_182 = arith.constant 1 : index
    %c0_183 = arith.constant 0 : index
    %141 = vector.load %arg13[%c1_181, %c1_182, %c0_183] : memref<10x10x8xf32, #tpu.memory_space<vmem>>, vector<9x9x8xf32>
    %142 = vector.shape_cast %141 : vector<9x9x8xf32> to vector<81x8xf32>
    %c0_184 = arith.constant 0 : index
    %c0_185 = arith.constant 0 : index
    %c0_186 = arith.constant 0 : index
    %c0_187 = arith.constant 0 : index
    %143 = vector.load %arg8[%c0_184, %c0_185, %c0_186, %c0_187] : memref<3x3x8x4xf32, #tpu.memory_space<vmem>>, vector<1x1x8x4xf32>
    %144 = vector.shape_cast %143 : vector<1x1x8x4xf32> to vector<8x4xf32>
    %cst_188 = arith.constant dense<0.000000e+00> : vector<81x4xf32>
    %145 = tpu.matmul %142, %144, %cst_188 {dimension_numbers = #tpu.dot_dimension_numbers<[1], [0], [0], [1], [0, 0, 1, 1], [], []>} : vector<81x8xf32>, vector<8x4xf32>, vector<81x4xf32> -> vector<81x4xf32>
    %c1_189 = arith.constant 1 : index
    %c0_190 = arith.constant 0 : index
    %c0_191 = arith.constant 0 : index
    %146 = vector.load %arg13[%c1_189, %c0_190, %c0_191] : memref<10x10x8xf32, #tpu.memory_space<vmem>>, vector<9x9x8xf32>
    %147 = vector.shape_cast %146 : vector<9x9x8xf32> to vector<81x8xf32>
    %c0_192 = arith.constant 0 : index
    %c2_193 = arith.constant 2 : index
    %c0_194 = arith.constant 0 : index
    %c0_195 = arith.constant 0 : index
    %148 = vector.load %arg8[%c0_192, %c2_193, %c0_194, %c0_195] : memref<3x3x8x4xf32, #tpu.memory_space<vmem>>, vector<1x1x8x4xf32>
    %149 = vector.shape_cast %148 : vector<1x1x8x4xf32> to vector<8x4xf32>
    %cst_196 = arith.constant dense<0.000000e+00> : vector<81x4xf32>
    %150 = tpu.matmul %147, %149, %cst_196 {dimension_numbers = #tpu.dot_dimension_numbers<[1], [0], [0], [1], [0, 0, 1, 1], [], []>} : vector<81x8xf32>, vector<8x4xf32>, vector<81x4xf32> -> vector<81x4xf32>
    %151 = arith.addf %145, %150 : vector<81x4xf32>
    %c0_197 = arith.constant 0 : index
    %c1_198 = arith.constant 1 : index
    %c0_199 = arith.constant 0 : index
    %152 = vector.load %arg13[%c0_197, %c1_198, %c0_199] : memref<10x10x8xf32, #tpu.memory_space<vmem>>, vector<9x9x8xf32>
    %153 = vector.shape_cast %152 : vector<9x9x8xf32> to vector<81x8xf32>
    %c2_200 = arith.constant 2 : index
    %c0_201 = arith.constant 0 : index
    %c0_202 = arith.constant 0 : index
    %c0_203 = arith.constant 0 : index
    %154 = vector.load %arg8[%c2_200, %c0_201, %c0_202, %c0_203] : memref<3x3x8x4xf32, #tpu.memory_space<vmem>>, vector<1x1x8x4xf32>
    %155 = vector.shape_cast %154 : vector<1x1x8x4xf32> to vector<8x4xf32>
    %cst_204 = arith.constant dense<0.000000e+00> : vector<81x4xf32>
    %156 = tpu.matmul %153, %155, %cst_204 {dimension_numbers = #tpu.dot_dimension_numbers<[1], [0], [0], [1], [0, 0, 1, 1], [], []>} : vector<81x8xf32>, vector<8x4xf32>, vector<81x4xf32> -> vector<81x4xf32>
    %157 = arith.addf %151, %156 : vector<81x4xf32>
    %c0_205 = arith.constant 0 : index
    %c0_206 = arith.constant 0 : index
    %c0_207 = arith.constant 0 : index
    %158 = vector.load %arg13[%c0_205, %c0_206, %c0_207] : memref<10x10x8xf32, #tpu.memory_space<vmem>>, vector<9x9x8xf32>
    %159 = vector.shape_cast %158 : vector<9x9x8xf32> to vector<81x8xf32>
    %c2_208 = arith.constant 2 : index
    %c2_209 = arith.constant 2 : index
    %c0_210 = arith.constant 0 : index
    %c0_211 = arith.constant 0 : index
    %160 = vector.load %arg8[%c2_208, %c2_209, %c0_210, %c0_211] : memref<3x3x8x4xf32, #tpu.memory_space<vmem>>, vector<1x1x8x4xf32>
    %161 = vector.shape_cast %160 : vector<1x1x8x4xf32> to vector<8x4xf32>
    %cst_212 = arith.constant dense<0.000000e+00> : vector<81x4xf32>
    %162 = tpu.matmul %159, %161, %cst_212 {dimension_numbers = #tpu.dot_dimension_numbers<[1], [0], [0], [1], [0, 0, 1, 1], [], []>} : vector<81x8xf32>, vector<8x4xf32>, vector<81x4xf32> -> vector<81x4xf32>
    %163 = arith.addf %157, %162 : vector<81x4xf32>
    %164 = vector.shape_cast %163 : vector<81x4xf32> to vector<9x9x4xf32>
    %c1_213 = arith.constant 1 : index
    %c1_214 = arith.constant 1 : index
    %c0_215 = arith.constant 0 : index
    %165 = vector.load %arg13[%c1_213, %c1_214, %c0_215] : memref<10x10x8xf32, #tpu.memory_space<vmem>>, vector<9x8x8xf32>
    %166 = vector.shape_cast %165 : vector<9x8x8xf32> to vector<72x8xf32>
    %c0_216 = arith.constant 0 : index
    %c1_217 = arith.constant 1 : index
    %c0_218 = arith.constant 0 : index
    %c0_219 = arith.constant 0 : index
    %167 = vector.load %arg8[%c0_216, %c1_217, %c0_218, %c0_219] : memref<3x3x8x4xf32, #tpu.memory_space<vmem>>, vector<1x1x8x4xf32>
    %168 = vector.shape_cast %167 : vector<1x1x8x4xf32> to vector<8x4xf32>
    %cst_220 = arith.constant dense<0.000000e+00> : vector<72x4xf32>
    %169 = tpu.matmul %166, %168, %cst_220 {dimension_numbers = #tpu.dot_dimension_numbers<[1], [0], [0], [1], [0, 0, 1, 1], [], []>} : vector<72x8xf32>, vector<8x4xf32>, vector<72x4xf32> -> vector<72x4xf32>
    %c0_221 = arith.constant 0 : index
    %c1_222 = arith.constant 1 : index
    %c0_223 = arith.constant 0 : index
    %170 = vector.load %arg13[%c0_221, %c1_222, %c0_223] : memref<10x10x8xf32, #tpu.memory_space<vmem>>, vector<9x8x8xf32>
    %171 = vector.shape_cast %170 : vector<9x8x8xf32> to vector<72x8xf32>
    %c2_224 = arith.constant 2 : index
    %c1_225 = arith.constant 1 : index
    %c0_226 = arith.constant 0 : index
    %c0_227 = arith.constant 0 : index
    %172 = vector.load %arg8[%c2_224, %c1_225, %c0_226, %c0_227] : memref<3x3x8x4xf32, #tpu.memory_space<vmem>>, vector<1x1x8x4xf32>
    %173 = vector.shape_cast %172 : vector<1x1x8x4xf32> to vector<8x4xf32>
    %cst_228 = arith.constant dense<0.000000e+00> : vector<72x4xf32>
    %174 = tpu.matmul %171, %173, %cst_228 {dimension_numbers = #tpu.dot_dimension_numbers<[1], [0], [0], [1], [0, 0, 1, 1], [], []>} : vector<72x8xf32>, vector<8x4xf32>, vector<72x4xf32> -> vector<72x4xf32>
    %175 = arith.addf %169, %174 : vector<72x4xf32>
    %176 = vector.shape_cast %175 : vector<72x4xf32> to vector<9x8x4xf32>
    %c1_229 = arith.constant 1 : index
    %c1_230 = arith.constant 1 : index
    %c0_231 = arith.constant 0 : index
    %177 = vector.load %arg13[%c1_229, %c1_230, %c0_231] : memref<10x10x8xf32, #tpu.memory_space<vmem>>, vector<8x9x8xf32>
    %178 = vector.shape_cast %177 : vector<8x9x8xf32> to vector<72x8xf32>
    %c1_232 = arith.constant 1 : index
    %c0_233 = arith.constant 0 : index
    %c0_234 = arith.constant 0 : index
    %c0_235 = arith.constant 0 : index
    %179 = vector.load %arg8[%c1_232, %c0_233, %c0_234, %c0_235] : memref<3x3x8x4xf32, #tpu.memory_space<vmem>>, vector<1x1x8x4xf32>
    %180 = vector.shape_cast %179 : vector<1x1x8x4xf32> to vector<8x4xf32>
    %cst_236 = arith.constant dense<0.000000e+00> : vector<72x4xf32>
    %181 = tpu.matmul %178, %180, %cst_236 {dimension_numbers = #tpu.dot_dimension_numbers<[1], [0], [0], [1], [0, 0, 1, 1], [], []>} : vector<72x8xf32>, vector<8x4xf32>, vector<72x4xf32> -> vector<72x4xf32>
    %c1_237 = arith.constant 1 : index
    %c0_238 = arith.constant 0 : index
    %c0_239 = arith.constant 0 : index
    %182 = vector.load %arg13[%c1_237, %c0_238, %c0_239] : memref<10x10x8xf32, #tpu.memory_space<vmem>>, vector<8x9x8xf32>
    %183 = vector.shape_cast %182 : vector<8x9x8xf32> to vector<72x8xf32>
    %c1_240 = arith.constant 1 : index
    %c2_241 = arith.constant 2 : index
    %c0_242 = arith.constant 0 : index
    %c0_243 = arith.constant 0 : index
    %184 = vector.load %arg8[%c1_240, %c2_241, %c0_242, %c0_243] : memref<3x3x8x4xf32, #tpu.memory_space<vmem>>, vector<1x1x8x4xf32>
    %185 = vector.shape_cast %184 : vector<1x1x8x4xf32> to vector<8x4xf32>
    %cst_244 = arith.constant dense<0.000000e+00> : vector<72x4xf32>
    %186 = tpu.matmul %183, %185, %cst_244 {dimension_numbers = #tpu.dot_dimension_numbers<[1], [0], [0], [1], [0, 0, 1, 1], [], []>} : vector<72x8xf32>, vector<8x4xf32>, vector<72x4xf32> -> vector<72x4xf32>
    %187 = arith.addf %181, %186 : vector<72x4xf32>
    %188 = vector.shape_cast %187 : vector<72x4xf32> to vector<8x9x4xf32>
    %c1_245 = arith.constant 1 : index
    %c1_246 = arith.constant 1 : index
    %c0_247 = arith.constant 0 : index
    %189 = vector.load %arg13[%c1_245, %c1_246, %c0_247] : memref<10x10x8xf32, #tpu.memory_space<vmem>>, vector<8x8x8xf32>
    %190 = vector.shape_cast %189 : vector<8x8x8xf32> to vector<64x8xf32>
    %c1_248 = arith.constant 1 : index
    %c1_249 = arith.constant 1 : index
    %c0_250 = arith.constant 0 : index
    %c0_251 = arith.constant 0 : index
    %191 = vector.load %arg8[%c1_248, %c1_249, %c0_250, %c0_251] : memref<3x3x8x4xf32, #tpu.memory_space<vmem>>, vector<1x1x8x4xf32>
    %192 = vector.shape_cast %191 : vector<1x1x8x4xf32> to vector<8x4xf32>
    %cst_252 = arith.constant dense<0.000000e+00> : vector<64x4xf32>
    %193 = tpu.matmul %190, %192, %cst_252 {dimension_numbers = #tpu.dot_dimension_numbers<[1], [0], [0], [1], [0, 0, 1, 1], [], []>} : vector<64x8xf32>, vector<8x4xf32>, vector<64x4xf32> -> vector<64x4xf32>
    %194 = vector.shape_cast %193 : vector<64x4xf32> to vector<8x8x4xf32>
    %cst_253 = arith.constant 0.000000e+00 : f32
    %195 = vector.broadcast %cst_253 : f32 to vector<9x1x4xf32>
    %196 = tpu.concatenate %176, %195 in 1 : vector<9x8x4xf32>, vector<9x1x4xf32> -> vector<9x9x4xf32>
    %cst_254 = arith.constant 0.000000e+00 : f32
    %197 = vector.broadcast %cst_254 : f32 to vector<8x1x4xf32>
    %198 = tpu.concatenate %194, %197 in 1 : vector<8x8x4xf32>, vector<8x1x4xf32> -> vector<8x9x4xf32>
    %199 = vector.shape_cast %164 : vector<9x9x4xf32> to vector<9x9x1x4xf32>
    %200 = vector.shape_cast %196 : vector<9x9x4xf32> to vector<9x9x1x4xf32>
    %201 = tpu.concatenate %199, %200 in 2 : vector<9x9x1x4xf32>, vector<9x9x1x4xf32> -> vector<9x9x2x4xf32>
    %202 = vector.shape_cast %201 : vector<9x9x2x4xf32> to vector<9x18x4xf32>
    %203 = vector.extract_strided_slice %202 {offsets = [0, 0, 0], sizes = [9, 17, 4], strides = [1, 1, 1]} : vector<9x18x4xf32> to vector<9x17x4xf32>
    %204 = vector.shape_cast %188 : vector<8x9x4xf32> to vector<8x9x1x4xf32>
    %205 = vector.shape_cast %198 : vector<8x9x4xf32> to vector<8x9x1x4xf32>
    %206 = tpu.concatenate %204, %205 in 2 : vector<8x9x1x4xf32>, vector<8x9x1x4xf32> -> vector<8x9x2x4xf32>
    %207 = vector.shape_cast %206 : vector<8x9x2x4xf32> to vector<8x18x4xf32>
    %208 = vector.extract_strided_slice %207 {offsets = [0, 0, 0], sizes = [8, 17, 4], strides = [1, 1, 1]} : vector<8x18x4xf32> to vector<8x17x4xf32>
    %cst_255 = arith.constant 0.000000e+00 : f32
    %209 = vector.broadcast %cst_255 : f32 to vector<1x17x4xf32>
    %210 = tpu.concatenate %208, %209 in 0 : vector<8x17x4xf32>, vector<1x17x4xf32> -> vector<9x17x4xf32>
    %211 = vector.shape_cast %203 : vector<9x17x4xf32> to vector<9x1x17x4xf32>
    %212 = vector.shape_cast %210 : vector<9x17x4xf32> to vector<9x1x17x4xf32>
    %213 = tpu.concatenate %211, %212 in 1 : vector<9x1x17x4xf32>, vector<9x1x17x4xf32> -> vector<9x2x17x4xf32>
    %214 = vector.shape_cast %213 : vector<9x2x17x4xf32> to vector<18x17x4xf32>
    %215 = vector.extract_strided_slice %214 {offsets = [0, 0, 0], sizes = [17, 17, 4], strides = [1, 1, 1]} : vector<18x17x4xf32> to vector<17x17x4xf32>
    %c0_256 = arith.constant 0 : index
    %c0_257 = arith.constant 0 : index
    %216 = vector.load %arg9[%c0_256, %c0_257] : memref<1x4xf32, #tpu.memory_space<vmem>>, vector<1x4xf32>
    %217 = vector.shape_cast %216 : vector<1x4xf32> to vector<1x1x4xf32>
    %218 = vector.broadcast %217 : vector<1x1x4xf32> to vector<17x17x4xf32>
    %219 = arith.addf %215, %218 : vector<17x17x4xf32>
    %c0_258 = arith.constant 0 : index
    %c0_259 = arith.constant 0 : index
    %c0_260 = arith.constant 0 : index
    %c0_261 = arith.constant 0 : index
    %220 = vector.load %arg10[%c0_258, %c0_259, %c0_260, %c0_261] : memref<1x17x17x4xf32, #tpu.memory_space<vmem>>, vector<1x17x17x4xf32>
    %221 = vector.shape_cast %220 : vector<1x17x17x4xf32> to vector<17x17x4xf32>
    %222 = vector.shape_cast %219 : vector<17x17x4xf32> to vector<1x17x17x4xf32>
    tpu.vector_store %arg10[%c0_258, %c0_259, %c0_260, %c0_261], %222 {strides = array<i32>} : memref<1x17x17x4xf32, #tpu.memory_space<vmem>>, vector<1x17x17x4xf32>,
    return
  }
  func.func @transform_0(%arg0: i32) -> (i32, i32, i32, i32, i32, i32) {
    %c0_i32 = arith.constant 0 : i32
    %c0_i32_0 = arith.constant 0 : i32
    %c0_i32_1 = arith.constant 0 : i32
    %c0_i32_2 = arith.constant 0 : i32
    %c0_i32_3 = arith.constant 0 : i32
    %c0_i32_4 = arith.constant 0 : i32
    return %arg0, %c0_i32, %c0_i32_0, %c0_i32_1, %c0_i32_2, %c0_i32_3 : i32, i32, i32, i32, i32, i32
  }
  func.func @transform_1(%arg0: i32) -> (i32, i32, i32, i32) {
    %c0_i32 = arith.constant 0 : i32
    %c0_i32_0 = arith.constant 0 : i32
    %c0_i32_1 = arith.constant 0 : i32
    %c0_i32_2 = arith.constant 0 : i32
    %c0_i32_3 = arith.constant 0 : i32
    return %c0_i32, %c0_i32_0, %c0_i32_1, %c0_i32_2 : i32, i32, i32, i32
  }
  func.func @transform_2(%arg0: i32) -> (i32, i32) {
    %c0_i32 = arith.constant 0 : i32
    %c0_i32_0 = arith.constant 0 : i32
    %c0_i32_1 = arith.constant 0 : i32
    return %c0_i32, %c0_i32_0 : i32, i32
  }
  func.func @transform_3(%arg0: i32) -> (i32, i32) {
    %c0_i32 = arith.constant 0 : i32
    %c0_i32_0 = arith.constant 0 : i32
    %c0_i32_1 = arith.constant 0 : i32
    return %c0_i32, %c0_i32_0 : i32, i32
  }
  func.func @transform_4(%arg0: i32) -> (i32, i32, i32, i32) {
    %c0_i32 = arith.constant 0 : i32
    %c0_i32_0 = arith.constant 0 : i32
    %c0_i32_1 = arith.constant 0 : i32
    %c0_i32_2 = arith.constant 0 : i32
    %c0_i32_3 = arith.constant 0 : i32
    return %c0_i32, %c0_i32_0, %c0_i32_1, %c0_i32_2 : i32, i32, i32, i32
  }
  func.func @transform_5(%arg0: i32) -> (i32, i32) {
    %c0_i32 = arith.constant 0 : i32
    %c0_i32_0 = arith.constant 0 : i32
    %c0_i32_1 = arith.constant 0 : i32
    return %c0_i32, %c0_i32_0 : i32, i32
  }
  func.func @transform_6(%arg0: i32) -> (i32, i32) {
    %c0_i32 = arith.constant 0 : i32
    %c0_i32_0 = arith.constant 0 : i32
    %c0_i32_1 = arith.constant 0 : i32
    return %c0_i32, %c0_i32_0 : i32, i32
  }
  func.func @transform_7(%arg0: i32) -> (i32, i32, i32, i32) {
    %c0_i32 = arith.constant 0 : i32
    %c0_i32_0 = arith.constant 0 : i32
    %c0_i32_1 = arith.constant 0 : i32
    %c0_i32_2 = arith.constant 0 : i32
    %c0_i32_3 = arith.constant 0 : i32
    return %c0_i32, %c0_i32_0, %c0_i32_1, %c0_i32_2 : i32, i32, i32, i32
  }
  func.func @transform_8(%arg0: i32) -> (i32, i32) {
    %c0_i32 = arith.constant 0 : i32
    %c0_i32_0 = arith.constant 0 : i32
    %c0_i32_1 = arith.constant 0 : i32
    return %c0_i32, %c0_i32_0 : i32, i32
  }
  func.func @transform_9(%arg0: i32) -> (i32, i32, i32, i32) {
    %c0_i32 = arith.constant 0 : i32
    %c0_i32_0 = arith.constant 0 : i32
    %c0_i32_1 = arith.constant 0 : i32
    %c0_i32_2 = arith.constant 0 : i32
    return %arg0, %c0_i32, %c0_i32_0, %c0_i32_1 : i32, i32, i32, i32
  }
}

</mosaic_0001>

<bundles_post_ra>
// kernel: switch_layer_forward.1
= control target key start
LH: loop header
LB: loop body
LE: loop exit
PB: predicated region body
PF: predicated region fallthrough
CT: control target
= control target key end

     0   :  { %s7047_s30 = smov 0   ;;  %s10062_s0 = inlined_call_operand.vmem [shape: f32[2,8,2,8,2,4], index: 0, kind: input, shape index: {}]   ;;  %s10063_s1 = inlined_call_operand.vmem [shape: f32[3,3,4,8], index: 1, kind: input, shape index: {}]   ;;  %s10064_s2 = inlined_call_operand.vmem [shape: f32[1,8], index: 2, kind: input, shape index: {}]   ;;  %s10065_s3 = inlined_call_operand.vmem [shape: f32[1,8], index: 3, kind: input, shape index: {}]   ;;  %s10066_s4 = inlined_call_operand.vmem [shape: f32[3,3,8,8], index: 4, kind: input, shape index: {}]   ;;  %s10067_s5 = inlined_call_operand.vmem [shape: f32[1,8], index: 5, kind: input, shape index: {}]   ;;  %s10068_s6 = inlined_call_operand.vmem [shape: f32[1,8], index: 6, kind: input, shape index: {}]   ;;  %s10069_s7 = inlined_call_operand.vmem [shape: f32[3,3,8,4], index: 7, kind: input, shape index: {}]   ;;  %s10070_s8 = inlined_call_operand.vmem [shape: f32[1,4], index: 8, kind: input, shape index: {}]   ;;  %s10071_s9 = inlined_call_operand.vmem [shape: f32[2,17,17,4], index: 9, kind: output, shape index: {}]  }
   0x1 LB: > { %s6692_s10 = sadd.s32 4294967295, %s6994_s30   ;;  %p6696_p0 = scmp.ge.s32.totalorder %s6994_s30, 1  ;;  %s6994_s30 = sphi %s7047_s30, %s19_s30  }
   0x2   : > { %p287_p1 = scmp.lt.s32.totalorder %s6994_s30, 3 }
   0x4   : > { %p288_p2 = pnand %p6696_p0, %p287_p1 }
   0x6   : > { %291 = sbr.rel (%p288_p2) target bundleno = 1951 (0x79f), region = 56 }
   0xb   : > { %v6700_v0 = vld [vmem:[%s10063_s1 + $0x4] sm:$0xf]  ;;  %vm1758_vm0 = vcmask 1043456   ;;  %p323_p3 = scmp.lt.s32.totalorder %s6692_s10, 1  ;;  %vm461_vm1 = vcmask 25600   ;;  %vm1358_vm2 = vcmask 31744  }
   0xc   : > { %6968 = vmatpush.msk.msra.mxu3 %vm1758_vm0, %v6700_v0  ;;  %6701 = vmatpush.msk.msra.mxu0 %vm1758_vm0, %v6700_v0  ;;  %vm1635_vm3 = vcmask 1041409   ;;  %vm1637_vm4 = vcmask 1042434   ;;  %vm1639_vm5 = vcmask 1043459   ;;  %vm1641_vm6 = vcmask 1044484  }
   0xd   : > { %s10580_s10 = smov (!%p323_p3, %s6692_s10), 1  ;;  %vm1643_vm7 = vcmask 1045509   ;;  %vm1645_vm8 = vcmask 1046534   ;;  %vm1647_vm9 = vcmask 1047559   ;;  %vm2506_vm10 = vcmask 64512  }
   0xe   : > { %s6967_s13 = sshll.u32 %s10580_s10, 8  ;;  %vm2508_vm11 = vcmask 58368   ;;  %vm5526_vm12 = vcmask 1040384   ;;  %s6971_s22 = smul.u32 408, %s10580_s10  ;;  %vm6587_vm13 = vcmask 24576  }
   0xf   : > { %s7066_s16 = scalar_lea.vmem %s10062_s0, %s6967_s13 }
  0x10   : > { %v413_v1 = vld [vmem:[%s7066_s16 + $0xa0] sm:$0x3]  ;;  %v414_v2 = vld [vmem:[%s7066_s16 + $0xa2] sm:$0x3]  ;;  %v415_v3 = vld [vmem:[%s7066_s16 + $0xa4] sm:$0x3]  ;;  %s9476_s10 = scalar_lea.vmem %s10071_s9, %s6971_s22 }
  0x11   : > { %v416_v4 = vld [vmem:[%s7066_s16 + $0xa6] sm:$0x3]  ;;  %v417_v5 = vld [vmem:[%s7066_s16 + $0xa8] sm:$0x3]  ;;  %v418_v6 = vld [vmem:[%s7066_s16 + $0xaa] sm:$0x3] }
  0x12   : > { %v419_v7 = vld [vmem:[%s7066_s16 + $0xac] sm:$0x3]  ;;  %v420_v8 = vld [vmem:[%s7066_s16 + $0xae] sm:$0x3]  ;;  %v1022_v9 = vsel %vm461_vm1, %v413_v1, -inf  ;;  %v1029_v10 = vsel %vm461_vm1, %v414_v2, -inf }
  0x13   : > { %v1036_v11 = vsel %vm461_vm1, %v415_v3, -inf  ;;  %v1043_v12 = vsel %vm461_vm1, %v416_v4, -inf  ;;  %v1023_v13 = vrot.slane %v1022_v9, 4  ;;  %v1030_v14 = vrot.slane %v1029_v10, 4  ;;  %v421_v45 = vld [vmem:[%s7066_s16 + $0xb0] sm:$0x3] }
  0x14   : > { %v1037_v15 = vrot.slane %v1036_v11, 4  ;;  %v1044_v16 = vrot.slane %v1043_v12, 4  ;;  %v1050_v17 = vsel %vm461_vm1, %v417_v5, -inf  ;;  %v1057_v18 = vsel %vm461_vm1, %v418_v6, -inf  ;;  %v422_v50 = vld [vmem:[%s7066_s16 + $0xb2] sm:$0x3] }
  0x15   : > { %v1064_v19 = vsel %vm461_vm1, %v419_v7, -inf  ;;  %v1071_v20 = vsel %vm461_vm1, %v420_v8, -inf  ;;  %v1024_v21 = vmax.f32 %v1022_v9, %v1023_v13  ;;  %v1031_v22 = vmax.f32 %v1029_v10, %v1030_v14  ;;  %v423_v51 = vld [vmem:[%s7066_s16 + $0xb4] sm:$0x3]  ;;  %v424_v52 = vld [vmem:[%s7066_s16 + $0xb6] sm:$0x3] }
  0x16   : > { %v1038_v23 = vmax.f32 %v1036_v11, %v1037_v15  ;;  %v1045_v24 = vmax.f32 %v1043_v12, %v1044_v16  ;;  %v1051_v25 = vrot.slane %v1050_v17, 4  ;;  %v1058_v26 = vrot.slane %v1057_v18, 4  ;;  %v425_v57 = vld [vmem:[%s7066_s16 + $0xb8] sm:$0x3]  ;;  %v426_v58 = vld [vmem:[%s7066_s16 + $0xba] sm:$0x3] }
  0x17   : > { %v1065_v27 = vrot.slane %v1064_v19, 4  ;;  %v1072_v28 = vrot.slane %v1071_v20, 4  ;;  %v1025_v29 = vrot.slane %v1024_v21, 2  ;;  %v1032_v30 = vrot.slane %v1031_v22, 2  ;;  %v427_v63 = vld [vmem:[%s7066_s16 + $0xbc] sm:$0x3] }
  0x18   : > { %v1039_v31 = vrot.slane %v1038_v23, 2  ;;  %v1046_v32 = vrot.slane %v1045_v24, 2  ;;  %v1052_v33 = vmax.f32 %v1050_v17, %v1051_v25  ;;  %v1059_v34 = vmax.f32 %v1057_v18, %v1058_v26  ;;  %v428_v4 = vld [vmem:[%s7066_s16 + $0xbe] sm:$0x3] }
  0x19   : > { %v1066_v35 = vmax.f32 %v1064_v19, %v1065_v27  ;;  %v1073_v36 = vmax.f32 %v1071_v20, %v1072_v28  ;;  %v1026_v37 = vmax.f32 %v1024_v21, %v1025_v29  ;;  %v1033_v38 = vmax.f32 %v1031_v22, %v1032_v30 }
  0x1a   : > { %v1040_v39 = vmax.f32 %v1038_v23, %v1039_v31  ;;  %v1047_v40 = vmax.f32 %v1045_v24, %v1046_v32  ;;  %v1053_v41 = vrot.slane %v1052_v33, 2  ;;  %v1060_v42 = vrot.slane %v1059_v34, 2 }
  0x1b   : > { %v1067_v43 = vrot.slane %v1066_v35, 2  ;;  %v1074_v44 = vrot.slane %v1073_v36, 2  ;;  %v1027_v46 = vrot.slane %v1026_v37, 1  ;;  %v1034_v47 = vrot.slane %v1033_v38, 1 }
  0x1c   : > { %v1041_v48 = vrot.slane %v1040_v39, 1  ;;  %v1048_v49 = vrot.slane %v1047_v40, 1  ;;  %v1054_v53 = vmax.f32 %v1052_v33, %v1053_v41  ;;  %v1061_v54 = vmax.f32 %v1059_v34, %v1060_v42  ;;  %v7119_v41 = vld [vmem:[%s10063_s1 + $0x8] sm:$0xf] }
  0x1d   : > { %v1068_v55 = vmax.f32 %v1066_v35, %v1067_v43  ;;  %v1075_v56 = vmax.f32 %v1073_v36, %v1074_v44  ;;  %v7090_v59 = vmax.f32 %v1026_v37, %v1027_v46  ;;  %v7092_v60 = vmax.f32 %v1033_v38, %v1034_v47  ;;  %v1723_v46 = vld [vmem:[%s10063_s1] sm:$0xf]  ;;  %6720 = vmatpush.msk.msra.mxu2 %vm1758_vm0, %v7119_v41 }
  0x1e   : > { %v7094_v61 = vmax.f32 %v1040_v39, %v1041_v48  ;;  %v7096_v62 = vmax.f32 %v1047_v40, %v1048_v49  ;;  %v1055_v0 = vrot.slane %v1054_v53, 1  ;;  %v1062_v1 = vrot.slane %v1061_v54, 1  ;;  %6969 = vmatpush.msk.msrb.mxu3 %vm1758_vm0, %v1723_v46  ;;  %6710 = vmatpush.msk.msra.mxu1 %vm1758_vm0, %v1723_v46 }
  0x1f   : > { %v1069_v2 = vrot.slane %v1068_v55, 1  ;;  %v1076_v3 = vrot.slane %v1075_v56, 1  ;;  %v1078_v5 = vsel %vm461_vm1, %v421_v45, -inf  ;;  %v1085_v6 = vsel %vm461_vm1, %v422_v50, -inf }
  0x20   : > { %v1092_v7 = vsel %vm461_vm1, %v423_v51, -inf  ;;  %v1099_v8 = vsel %vm461_vm1, %v424_v52, -inf  ;;  %v7104_v9 = vmax.f32 %v1054_v53, %v1055_v0  ;;  %v7106_v10 = vmax.f32 %v1061_v54, %v1062_v1 }
  0x21   : > { %v7108_v11 = vmax.f32 %v1068_v55, %v1069_v2  ;;  %v7110_v12 = vmax.f32 %v1075_v56, %v1076_v3  ;;  %v1079_v13 = vrot.slane %v1078_v5, 4  ;;  %v1086_v14 = vrot.slane %v1085_v6, 4 }
  0x22   : > { %v1093_v15 = vrot.slane %v1092_v7, 4  ;;  %v1100_v16 = vrot.slane %v1099_v8, 4  ;;  %v1106_v17 = vsel %vm461_vm1, %v425_v57, -inf  ;;  %v1113_v18 = vsel %vm461_vm1, %v426_v58, -inf }
  0x23   : > { %v1120_v19 = vsel %vm461_vm1, %v427_v63, -inf  ;;  %v1127_v20 = vsel %vm461_vm1, %v428_v4, -inf  ;;  %v1080_v21 = vmax.f32 %v1078_v5, %v1079_v13  ;;  %v1087_v22 = vmax.f32 %v1085_v6, %v1086_v14 }
  0x24   : > { %v1094_v23 = vmax.f32 %v1092_v7, %v1093_v15  ;;  %v1101_v24 = vmax.f32 %v1099_v8, %v1100_v16  ;;  %v1107_v25 = vrot.slane %v1106_v17, 4  ;;  %v1114_v26 = vrot.slane %v1113_v18, 4 }
  0x25   : > { %v1121_v27 = vrot.slane %v1120_v19, 4  ;;  %v1128_v28 = vrot.slane %v1127_v20, 4  ;;  %v1081_v29 = vrot.slane %v1080_v21, 2  ;;  %v1088_v30 = vrot.slane %v1087_v22, 2 }
  0x26   : > { %v1095_v31 = vrot.slane %v1094_v23, 2  ;;  %v1102_v32 = vrot.slane %v1101_v24, 2  ;;  %v1108_v33 = vmax.f32 %v1106_v17, %v1107_v25  ;;  %v1115_v34 = vmax.f32 %v1113_v18, %v1114_v26 }
  0x27   : > { %v1122_v35 = vmax.f32 %v1120_v19, %v1121_v27  ;;  %v1129_v36 = vmax.f32 %v1127_v20, %v1128_v28  ;;  %v1082_v37 = vmax.f32 %v1080_v21, %v1081_v29  ;;  %v1089_v38 = vmax.f32 %v1087_v22, %v1088_v30  ;;  %v430_v28 = vld [vmem:[%s7066_s16 + $0xc2] sm:$0x3] }
  0x28   : > { %v1096_v39 = vmax.f32 %v1094_v23, %v1095_v31  ;;  %v1103_v40 = vmax.f32 %v1101_v24, %v1102_v32  ;;  %v1109_v42 = vrot.slane %v1108_v33, 2  ;;  %v1116_v43 = vrot.slane %v1115_v34, 2  ;;  %v429_v24 = vld [vmem:[%s7066_s16 + $0xc0] sm:$0x3]  ;;  %v433_v32 = vld [vmem:[%s7066_s16 + $0xc8] sm:$0x3] }
  0x29   : > { %v1123_v44 = vrot.slane %v1122_v35, 2  ;;  %v1130_v45 = vrot.slane %v1129_v36, 2  ;;  %v1083_v47 = vrot.slane %v1082_v37, 1  ;;  %v1090_v48 = vrot.slane %v1089_v38, 1 }
  0x2a   : > { %v1097_v49 = vrot.slane %v1096_v39, 1  ;;  %v1104_v50 = vrot.slane %v1103_v40, 1  ;;  %v1110_v51 = vmax.f32 %v1108_v33, %v1109_v42  ;;  %v1117_v52 = vmax.f32 %v1115_v34, %v1116_v43 }
  0x2b   : > { %v1124_v53 = vmax.f32 %v1122_v35, %v1123_v44  ;;  %v1131_v54 = vmax.f32 %v1129_v36, %v1130_v45  ;;  %v1084_v55 = vmax.f32 %v1082_v37, %v1083_v47  ;;  %v1091_v56 = vmax.f32 %v1089_v38, %v1090_v48 }
  0x2c   : > { %v1098_v57 = vmax.f32 %v1096_v39, %v1097_v49  ;;  %v1105_v58 = vmax.f32 %v1103_v40, %v1104_v50  ;;  %v1111_v63 = vrot.slane %v1110_v51, 1  ;;  %v1118_v0 = vrot.slane %v1117_v52, 1 }
  0x2d   : > { %v1125_v1 = vrot.slane %v1124_v53, 1  ;;  %v1132_v2 = vrot.slane %v1131_v54, 1  ;;  %v1479_v3 = vsel %vm1358_vm2, %v7090_v59, -inf  ;;  %v1480_v4 = vsel %vm1358_vm2, %v1084_v55, -inf }
  0x2e   : > { %v1482_v5 = vsel %vm1358_vm2, %v7092_v60, -inf  ;;  %v1483_v6 = vsel %vm1358_vm2, %v1091_v56, -inf  ;;  %v1112_v7 = vmax.f32 %v1110_v51, %v1111_v63  ;;  %v1119_v8 = vmax.f32 %v1117_v52, %v1118_v0  ;;  %v435_v52 = vld [vmem:[%s7066_s16 + $0xcc] sm:$0x3] }
  0x2f   : > { %v1126_v13 = vmax.f32 %v1124_v53, %v1125_v1  ;;  %v1133_v14 = vmax.f32 %v1131_v54, %v1132_v2  ;;  %v1481_v15 = vmax.f32 %v1479_v3, %v1480_v4  ;;  %v1484_v16 = vmax.f32 %v1482_v5, %v1483_v6  ;;  %v436_v4 = vld [vmem:[%s7066_s16 + $0xce] sm:$0x3] }
  0x30   : > { %v1485_v17 = vsel %vm1358_vm2, %v7094_v61, -inf  ;;  %v1486_v59 = vsel %vm1358_vm2, %v1098_v57, -inf  ;;  %v1488_v60 = vsel %vm1358_vm2, %v7096_v62, -inf  ;;  %v1489_v19 = vsel %vm1358_vm2, %v1105_v58, -inf }
  0x31   : > { %v1487_v18 = vmax.f32 %v1485_v17, %v1486_v59  ;;  %v1491_v20 = vsel %vm1358_vm2, %v7104_v9, -inf  ;;  %v1490_v21 = vmax.f32 %v1488_v60, %v1489_v19  ;;  %v1492_v22 = vsel %vm1358_vm2, %v1112_v7, -inf  ;;  %v431_v9 = vld [vmem:[%s7066_s16 + $0xc4] sm:$0x3] }
  0x32   : > { %v1494_v61 = vsel %vm1358_vm2, %v7106_v10, -inf  ;;  %v1495_v23 = vsel %vm1358_vm2, %v1119_v8, -inf  ;;  %v1493_v25 = vmax.f32 %v1491_v20, %v1492_v22  ;;  %v1497_v62 = vsel %vm1358_vm2, %v7108_v11, -inf  ;;  %v432_v10 = vld [vmem:[%s7066_s16 + $0xc6] sm:$0x3] }
  0x33   : > { %v1496_v26 = vmax.f32 %v1494_v61, %v1495_v23  ;;  %v1498_v27 = vsel %vm1358_vm2, %v1126_v13, -inf  ;;  %v1500_v30 = vsel %vm1358_vm2, %v7110_v12, -inf  ;;  %v1501_v31 = vsel %vm1358_vm2, %v1133_v14, -inf  ;;  %v434_v11 = vld [vmem:[%s7066_s16 + $0xca] sm:$0x3] }
  0x34   : > { %v1499_v29 = vmax.f32 %v1497_v62, %v1498_v27  ;;  %v1502_v33 = vmax.f32 %v1500_v30, %v1501_v31  ;;  %v10072_v34 = vmov 0.0   ;;  %v1677_v12 = vsel %vm1635_vm3, %v1484_v16, %v1481_v15  ;;  %v437_v15 = vld [vmem:[%s7066_s16 + $0xd0] sm:$0x3]  ;;  %v438_v16 = vld [vmem:[%s7066_s16 + $0xd2] sm:$0x3] }
  0x35   : > { %1563 = vst.msk [vmem:[#allocation2 + $0x60] sm:$0xff] %vm1358_vm2, %v10072_v34  ;;  %v1134_v35 = vsel %vm461_vm1, %v429_v24, -inf  ;;  %v1141_v36 = vsel %vm461_vm1, %v430_v28, -inf  ;;  %v1148_v37 = vsel %vm461_vm1, %v431_v9, -inf  ;;  %v1678_v38 = vsel %vm1637_vm4, %v1487_v18, %v1677_v12 }
  0x36   : > { %1564 = vst.msk [vmem:[#allocation2 + $0x68] sm:$0x3] %vm461_vm1, %v10072_v34  ;;  %v1135_v39 = vrot.slane %v1134_v35, 4  ;;  %v1142_v40 = vrot.slane %v1141_v36, 4  ;;  %v1149_v42 = vrot.slane %v1148_v37, 4  ;;  %v1679_v43 = vsel %vm1639_vm5, %v1490_v21, %v1678_v38 }
  0x37   : > { %1551 = vst.msk [vmem:[#allocation2] sm:$0xff] %vm1358_vm2, %v10072_v34  ;;  %v1155_v44 = vsel %vm461_vm1, %v432_v10, -inf  ;;  %v1162_v45 = vsel %vm461_vm1, %v433_v32, -inf  ;;  %v1169_v46 = vsel %vm461_vm1, %v434_v11, -inf  ;;  %v1680_v47 = vsel %vm1641_vm6, %v1493_v25, %v1679_v43  ;;  %v439_v21 = vld [vmem:[%s7066_s16 + $0xd4] sm:$0x3] }
  0x38   : > { %1552 = vst.msk [vmem:[#allocation2 + $0x8] sm:$0x3] %vm461_vm1, %v10072_v34  ;;  %v1136_v48 = vmax.f32 %v1134_v35, %v1135_v39  ;;  %v1143_v49 = vmax.f32 %v1141_v36, %v1142_v40  ;;  %v1150_v50 = vmax.f32 %v1148_v37, %v1149_v42  ;;  %v1681_v51 = vsel %vm1643_vm7, %v1496_v26, %v1680_v47  ;;  %v440_v25 = vld [vmem:[%s7066_s16 + $0xd6] sm:$0x3]  ;;  %v441_v26 = vld [vmem:[%s7066_s16 + $0xd8] sm:$0x3] }
  0x39   : > { %1553 = vst.msk [vmem:[#allocation2 + $0x10] sm:$0xff] %vm1358_vm2, %v10072_v34  ;;  %v1156_v53 = vrot.slane %v1155_v44, 4  ;;  %v1163_v54 = vrot.slane %v1162_v45, 4  ;;  %v1170_v55 = vrot.slane %v1169_v46, 4  ;;  %v1682_v56 = vsel %vm1645_vm8, %v1499_v29, %v1681_v51  ;;  %v442_v40 = vld [vmem:[%s7066_s16 + $0xda] sm:$0x3] }
  0x3a   : > { %1554 = vst.msk [vmem:[#allocation2 + $0x18] sm:$0x3] %vm461_vm1, %v10072_v34  ;;  %v1137_v57 = vrot.slane %v1136_v48, 2  ;;  %v1144_v58 = vrot.slane %v1143_v49, 2  ;;  %v1151_v63 = vrot.slane %v1150_v50, 2  ;;  %v1683_v0 = vsel %vm1647_vm9, %v1502_v33, %v1682_v56 }
  0x3b   : > { %1555 = vst.msk [vmem:[#allocation2 + $0x20] sm:$0xff] %vm1358_vm2, %v10072_v34  ;;  %v1157_v1 = vmax.f32 %v1155_v44, %v1156_v53  ;;  %v1164_v2 = vmax.f32 %v1162_v45, %v1163_v54  ;;  %v1171_v3 = vmax.f32 %v1169_v46, %v1170_v55  ;;  %v1176_v8 = vsel %vm461_vm1, %v435_v52, -inf }
  0x3c   : > { %1556 = vst.msk [vmem:[#allocation2 + $0x28] sm:$0x3] %vm461_vm1, %v10072_v34  ;;  %v1138_v5 = vmax.f32 %v1136_v48, %v1137_v57  ;;  %v1145_v6 = vmax.f32 %v1143_v49, %v1144_v58  ;;  %v1152_v7 = vmax.f32 %v1150_v50, %v1151_v63  ;;  %v1177_v23 = vrot.slane %v1176_v8, 4  ;;  %v443_v50 = vld [vmem:[%s7066_s16 + $0xdc] sm:$0x3] }
  0x3d   : > { %1557 = vst.msk [vmem:[#allocation2 + $0x30] sm:$0xff] %vm1358_vm2, %v10072_v34  ;;  %v1158_v17 = vrot.slane %v1157_v1, 2  ;;  %v1165_v59 = vrot.slane %v1164_v2, 2  ;;  %v1172_v20 = vrot.slane %v1171_v3, 2  ;;  %v1183_v24 = vsel %vm461_vm1, %v436_v4, -inf }
  0x3e   : > { %1712 = vst.msk [vmem:[#allocation2 + $0x61] sm:$0xff] %vm1358_vm2, %v1683_v0  ;;  %v1139_v18 = vrot.slane %v1138_v5, 1  ;;  %v1146_v60 = vrot.slane %v1145_v6, 1  ;;  %v1153_v19 = vrot.slane %v1152_v7, 1  ;;  %v1178_v31 = vmax.f32 %v1176_v8, %v1177_v23  ;;  %v1715_v55 = vld [vmem:[#allocation2] sm:$0xff] }
  0x3f   : > { %1558 = vst.msk [vmem:[#allocation2 + $0x38] sm:$0x3] %vm461_vm1, %v10072_v34  ;;  %v1871_v13 = vld [vmem:[#allocation2 + $0x2] sm:$0xff]  ;;  %v1159_v22 = vmax.f32 %v1157_v1, %v1158_v17  ;;  %v1166_v61 = vmax.f32 %v1164_v2, %v1165_v59  ;;  %v1173_v9 = vmax.f32 %v1171_v3, %v1172_v20  ;;  %v1184_v10 = vrot.slane %v1183_v24, 4  ;;  %6711 = vmatmul.msk.f32.vlgmr.msra.gmra.mxu1 %vm1358_vm2, %v1715_v55  ;;  %v444_v8 = vld [vmem:[%s7066_s16 + $0xde] sm:$0x3] }
  0x40   : > { %v1724_v14 = vld [vmem:[#allocation2 + $0x1] sm:$0xff]  ;;  %1559 = vst.msk [vmem:[#allocation2 + $0x40] sm:$0xff] %vm1358_vm2, %v10072_v34  ;;  %6721 = vmatmul.msk.f32.vlgmr.msra.gmra.mxu2 %vm1358_vm2, %v1871_v13  ;;  %v7209_v62 = vmax.f32 %v1138_v5, %v1139_v18  ;;  %v7211_v27 = vmax.f32 %v1145_v6, %v1146_v60  ;;  %v7213_v28 = vmax.f32 %v1152_v7, %v1153_v19  ;;  %v1190_v33 = vsel %vm461_vm1, %v437_v15, -inf  ;;  %v333_v55 = vld [vmem:[%s7066_s16] sm:$0x3] }
  0x41   : > { %6702 = vmatmul.msk.f32.vlgmr.msra.gmra.mxu0 %vm1358_vm2, %v1724_v14  ;;  %1560 = vst.msk [vmem:[#allocation2 + $0x48] sm:$0x3] %vm461_vm1, %v10072_v34  ;;  %v1160_v29 = vrot.slane %v1159_v22, 1  ;;  %v1167_v30 = vrot.slane %v1166_v61, 1  ;;  %v1174_v32 = vrot.slane %v1173_v9, 1  ;;  %v1197_v11 = vsel %vm461_vm1, %v438_v16, -inf }
  0x42   : > { %1561 = vst.msk [vmem:[#allocation2 + $0x50] sm:$0xff] %vm1358_vm2, %v10072_v34  ;;  %v1204_v12 = vsel %vm461_vm1, %v439_v21, -inf  ;;  %v1179_v38 = vrot.slane %v1178_v31, 2  ;;  %v1185_v39 = vmax.f32 %v1183_v24, %v1184_v10  ;;  %v1191_v43 = vrot.slane %v1190_v33, 4  ;;  %v6739_v3 = vld [vmem:[%s10063_s1 + $0x10] sm:$0xf] }
  0x43   : > { %1562 = vst.msk [vmem:[#allocation2 + $0x58] sm:$0x3] %vm461_vm1, %v10072_v34  ;;  %v7224_v36 = vmax.f32 %v1159_v22, %v1160_v29  ;;  %v7226_v37 = vmax.f32 %v1166_v61, %v1167_v30  ;;  %v7232_v42 = vmax.f32 %v1173_v9, %v1174_v32  ;;  %v1198_v44 = vrot.slane %v1197_v11, 4  ;;  %6740 = vmatpush.msk.msrb.mxu0 %vm1758_vm0, %v6739_v3 }
  0x44   : > { %1565 = vst.msk [vmem:[#allocation2 + $0x70] sm:$0xff] %vm1358_vm2, %v10072_v34  ;;  %v1205_v45 = vrot.slane %v1204_v12, 4  ;;  %v1180_v46 = vmax.f32 %v1178_v31, %v1179_v38  ;;  %v1186_v47 = vrot.slane %v1185_v39, 2  ;;  %v1211_v48 = vsel %vm461_vm1, %v440_v25, -inf }
  0x45   : > { %v1730_v35 = vld [vmem:[#allocation2 + $0x61] sm:$0xff]  ;;  %1566 = vst.msk [vmem:[#allocation2 + $0x78] sm:$0x3] %vm461_vm1, %v10072_v34  ;;  %v1218_v49 = vsel %vm461_vm1, %v441_v26, -inf  ;;  %v1192_v51 = vmax.f32 %v1190_v33, %v1191_v43  ;;  %v1199_v52 = vmax.f32 %v1197_v11, %v1198_v44  ;;  %v1212_v54 = vrot.slane %v1211_v48, 4 }
  0x46   : > { %6708 = vmatmul.msk.f32.vlgmr.msra.gmra.mxu3 %vm1358_vm2, %v1730_v35  ;;  %1567 = vst.msk [vmem:[#allocation2 + $0x80] sm:$0xff] %vm1358_vm2, %v10072_v34  ;;  %v1206_v53 = vmax.f32 %v1204_v12, %v1205_v45  ;;  %v1181_v56 = vrot.slane %v1180_v46, 1  ;;  %v1187_v57 = vmax.f32 %v1185_v39, %v1186_v47  ;;  %v1219_v58 = vrot.slane %v1218_v49, 4 }
  0x47   : > { %1568 = vst.msk [vmem:[#allocation2 + $0x88] sm:$0x3] %vm461_vm1, %v10072_v34  ;;  %6970 = vmatpush.msk.msra.mxu3 %vm1758_vm0, %v7119_v41  ;;  %v1225_v63 = vsel %vm461_vm1, %v442_v40, -inf  ;;  %v1193_v41 = vrot.slane %v1192_v51, 2  ;;  %v1200_v0 = vrot.slane %v1199_v52, 2  ;;  %v1213_v2 = vmax.f32 %v1211_v48, %v1212_v54 }
  0x48   : > { %1569 = vst.msk [vmem:[#allocation2 + $0x90] sm:$0xff] %vm1358_vm2, %v10072_v34  ;;  %v1207_v1 = vrot.slane %v1206_v53, 2  ;;  %v1182_v4 = vmax.f32 %v1180_v46, %v1181_v56  ;;  %v1188_v5 = vrot.slane %v1187_v57, 1  ;;  %v1220_v6 = vmax.f32 %v1218_v49, %v1219_v58 }
  0x49   : > { %1570 = vst.msk [vmem:[#allocation2 + $0x98] sm:$0x3] %vm461_vm1, %v10072_v34  ;;  %v1226_v7 = vrot.slane %v1225_v63, 4  ;;  %v1194_v13 = vmax.f32 %v1192_v51, %v1193_v41  ;;  %v1201_v14 = vmax.f32 %v1199_v52, %v1200_v0  ;;  %v1214_v16 = vrot.slane %v1213_v2, 2  ;;  %v335_v41 = vld [vmem:[%s7066_s16 + $0x4] sm:$0x3] }
  0x4a   : > { %v1208_v15 = vmax.f32 %v1206_v53, %v1207_v1  ;;  %v1189_v17 = vmax.f32 %v1187_v57, %v1188_v5  ;;  %v1221_v59 = vrot.slane %v1220_v6, 2  ;;  %v1232_v60 = vsel %vm461_vm1, %v443_v50, -inf  ;;  %2510 = vst.msk [vmem:[#allocation3 + $0x10] sm:$0xff] %vm2506_vm10, %v10072_v34 }
  0x4b   : > { %v1227_v18 = vmax.f32 %v1225_v63, %v1226_v7  ;;  %v1195_v19 = vrot.slane %v1194_v13, 1  ;;  %v1202_v20 = vrot.slane %v1201_v14, 1  ;;  %v1215_v22 = vmax.f32 %v1213_v2, %v1214_v16  ;;  %v334_v63 = vld [vmem:[%s7066_s16 + $0x2] sm:$0x3]  ;;  %2507 = vst.msk [vmem:[#allocation3] sm:$0xff] %vm2506_vm10, %v10072_v34 }
  0x4c   : > { %v1209_v21 = vrot.slane %v1208_v15, 1  ;;  %v1222_v61 = vmax.f32 %v1220_v6, %v1221_v59  ;;  %v1233_v24 = vrot.slane %v1232_v60, 4  ;;  %v1239_v25 = vsel %vm461_vm1, %v444_v8, -inf  ;;  %v336_v8 = vld [vmem:[%s7066_s16 + $0x6] sm:$0x3]  ;;  %2512 = vst.msk [vmem:[#allocation3 + $0x20] sm:$0xff] %vm2506_vm10, %v10072_v34 }
  0x4d   : > { %v1228_v23 = vrot.slane %v1227_v18, 2  ;;  %v1196_v26 = vmax.f32 %v1194_v13, %v1195_v19  ;;  %v1203_v9 = vmax.f32 %v1201_v14, %v1202_v20  ;;  %v1216_v30 = vrot.slane %v1215_v22, 1  ;;  %2511 = vst.msk [vmem:[#allocation3 + $0x18] sm:$0x3] %vm2508_vm11, %v10072_v34 }
  0x4e   : > { %v1210_v29 = vmax.f32 %v1208_v15, %v1209_v21  ;;  %v1223_v31 = vrot.slane %v1222_v61, 1  ;;  %v1234_v32 = vmax.f32 %v1232_v60, %v1233_v24  ;;  %v1240_v33 = vrot.slane %v1239_v25, 4  ;;  %v337_v60 = vld [vmem:[%s7066_s16 + $0x8] sm:$0x3]  ;;  %2509 = vst.msk [vmem:[#allocation3 + $0x8] sm:$0x3] %vm2508_vm11, %v10072_v34 }
  0x4f   : > { %v1229_v10 = vmax.f32 %v1227_v18, %v1228_v23  ;;  %v1217_v11 = vmax.f32 %v1215_v22, %v1216_v30  ;;  %v1503_v12 = vsel %vm1358_vm2, %v7209_v62, -inf  ;;  %v1504_v35 = vsel %vm1358_vm2, %v1196_v26, -inf  ;;  %v338_v26 = vld [vmem:[%s7066_s16 + $0xa] sm:$0x3]  ;;  %2513 = vst.msk [vmem:[#allocation3 + $0x28] sm:$0x3] %vm2508_vm11, %v10072_v34 }
  0x50   : > { %v1506_v38 = vsel %vm1358_vm2, %v7211_v27, -inf  ;;  %v1224_v39 = vmax.f32 %v1222_v61, %v1223_v31  ;;  %v1235_v43 = vrot.slane %v1234_v32, 2  ;;  %v1241_v44 = vmax.f32 %v1239_v25, %v1240_v33  ;;  %2514 = vst.msk [vmem:[#allocation3 + $0x30] sm:$0xff] %vm2506_vm10, %v10072_v34 }
  0x51   : > { %v1230_v40 = vrot.slane %v1229_v10, 1  ;;  %v1505_v45 = vmax.f32 %v1503_v12, %v1504_v35  ;;  %v1507_v46 = vsel %vm1358_vm2, %v1203_v9, -inf  ;;  %v1509_v47 = vsel %vm1358_vm2, %v7213_v28, -inf  ;;  %v339_v9 = vld [vmem:[%s7066_s16 + $0xc] sm:$0x3]  ;;  %2516 = vst.msk [vmem:[#allocation3 + $0x40] sm:$0xff] %vm2506_vm10, %v10072_v34 }
  0x52   : > { %v1510_v62 = vsel %vm1358_vm2, %v1210_v29, -inf  ;;  %v1236_v49 = vmax.f32 %v1234_v32, %v1235_v43  ;;  %v1242_v50 = vrot.slane %v1241_v44, 2  ;;  %v1508_v51 = vmax.f32 %v1506_v38, %v1507_v46  ;;  %v340_v12 = vld [vmem:[%s7066_s16 + $0xe] sm:$0x3]  ;;  %2515 = vst.msk [vmem:[#allocation3 + $0x38] sm:$0x3] %vm2508_vm11, %v10072_v34 }
  0x53   : > { %v1231_v48 = vmax.f32 %v1229_v10, %v1230_v40  ;;  %v1511_v27 = vmax.f32 %v1509_v47, %v1510_v62  ;;  %v1512_v52 = vsel %vm1358_vm2, %v7224_v36, -inf  ;;  %v1513_v53 = vsel %vm1358_vm2, %v1217_v11, -inf  ;;  %2517 = vst.msk [vmem:[#allocation3 + $0x48] sm:$0x3] %vm2508_vm11, %v10072_v34 }
  0x54   : > { %v1515_v54 = vsel %vm1358_vm2, %v7226_v37, -inf  ;;  %v1237_v56 = vrot.slane %v1236_v49, 1  ;;  %v1243_v28 = vmax.f32 %v1241_v44, %v1242_v50  ;;  %v1514_v57 = vmax.f32 %v1512_v52, %v1513_v53  ;;  %v341_v52 = vld [vmem:[%s7066_s16 + $0x10] sm:$0x3]  ;;  %2518 = vst.msk [vmem:[#allocation3 + $0x50] sm:$0xff] %vm2506_vm10, %v10072_v34 }
  0x55   : > { %v1516_v58 = vsel %vm1358_vm2, %v1224_v39, -inf  ;;  %v1518_v1 = vsel %vm1358_vm2, %v7232_v42, -inf  ;;  %v1519_v36 = vsel %vm1358_vm2, %v1231_v48, -inf  ;;  %v1521_v2 = vsel %vm1358_vm2, %v1182_v4, -inf  ;;  %2519 = vst.msk [vmem:[#allocation3 + $0x58] sm:$0x3] %vm2508_vm11, %v10072_v34 }
  0x56   : > { %v1517_v0 = vmax.f32 %v1515_v54, %v1516_v58  ;;  %v1238_v3 = vmax.f32 %v1236_v49, %v1237_v56  ;;  %v1244_v37 = vrot.slane %v1243_v28, 1  ;;  %v1520_v5 = vmax.f32 %v1518_v1, %v1519_v36  ;;  %2520 = vst.msk [vmem:[#allocation3 + $0x60] sm:$0xff] %vm2506_vm10, %v10072_v34 }
  0x57   : > { %v1524_v6 = vsel %vm1358_vm2, %v1189_v17, -inf  ;;  %v1684_v7 = vsel %vm1635_vm3, %v1508_v51, %v1505_v45  ;;  %v462_v13 = vsel %vm461_vm1, %v333_v55, -inf  ;;  %v469_v14 = vsel %vm461_vm1, %v334_v63, -inf  ;;  %2521 = vst.msk [vmem:[#allocation3 + $0x68] sm:$0x3] %vm2508_vm11, %v10072_v34 }
  0x58   : > { %v476_v15 = vsel %vm461_vm1, %v335_v41, -inf  ;;  %v1245_v42 = vmax.f32 %v1243_v28, %v1244_v37  ;;  %v1522_v4 = vsel %vm1358_vm2, %v1238_v3, -inf  ;;  %v1685_v16 = vsel %vm1637_vm4, %v1511_v27, %v1684_v7  ;;  %v342_v28 = vld [vmem:[%s7066_s16 + $0x12] sm:$0x3]  ;;  %v343_v3 = vld [vmem:[%s7066_s16 + $0x14] sm:$0x3] }
  0x59   : > { %v463_v59 = vrot.slane %v462_v13, 4  ;;  %v1523_v18 = vmax.f32 %v1521_v2, %v1522_v4  ;;  %v1686_v17 = vsel %vm1639_vm5, %v1514_v57, %v1685_v16  ;;  %v470_v19 = vrot.slane %v469_v14, 4  ;;  %v344_v4 = vld [vmem:[%s7066_s16 + $0x16] sm:$0x3]  ;;  %v345_v16 = vld [vmem:[%s7066_s16 + $0x18] sm:$0x3] }
  0x5a   : > { %v477_v20 = vrot.slane %v476_v15, 4  ;;  %v1525_v21 = vsel %vm1358_vm2, %v1245_v42, -inf  ;;  %v1687_v22 = vsel %vm1641_vm6, %v1517_v0, %v1686_v17  ;;  %v483_v23 = vsel %vm461_vm1, %v336_v8, -inf  ;;  %2522 = vst.msk [vmem:[#allocation3 + $0x70] sm:$0xff] %vm2506_vm10, %v10072_v34 }
  0x5b   : > { %v464_v61 = vmax.f32 %v462_v13, %v463_v59  ;;  %v1526_v24 = vmax.f32 %v1524_v6, %v1525_v21  ;;  %v1688_v25 = vsel %vm1643_vm7, %v1520_v5, %v1687_v22  ;;  %v471_v29 = vmax.f32 %v469_v14, %v470_v19  ;;  %2523 = vst.msk [vmem:[#allocation3 + $0x78] sm:$0x3] %vm2508_vm11, %v10072_v34 }
  0x5c   : > { %v478_v30 = vmax.f32 %v476_v15, %v477_v20  ;;  %v1689_v31 = vsel %vm1645_vm8, %v1523_v18, %v1688_v25  ;;  %v484_v32 = vrot.slane %v483_v23, 4  ;;  %v490_v33 = vsel %vm461_vm1, %v337_v60, -inf  ;;  %2524 = vst.msk [vmem:[#allocation3 + $0x80] sm:$0xff] %vm2506_vm10, %v10072_v34 }
  0x5d   : > { %v465_v10 = vrot.slane %v464_v61, 2  ;;  %v1690_v11 = vsel %vm1647_vm9, %v1526_v24, %v1689_v31  ;;  %v472_v35 = vrot.slane %v471_v29, 2  ;;  %v491_v39 = vrot.slane %v490_v33, 4  ;;  %2525 = vst.msk [vmem:[#allocation3 + $0x88] sm:$0x3] %vm2508_vm11, %v10072_v34 }
  0x5e   : > { %v479_v38 = vrot.slane %v478_v30, 2  ;;  %1713 = vst.msk [vmem:[#allocation2 + $0x71] sm:$0xff] %vm1358_vm2, %v1690_v11  ;;  %v485_v43 = vmax.f32 %v483_v23, %v484_v32  ;;  %v497_v44 = vsel %vm461_vm1, %v338_v26, -inf  ;;  %v504_v45 = vsel %vm461_vm1, %v339_v9, -inf }
  0x5f   : > { %v466_v40 = vmax.f32 %v464_v61, %v465_v10  ;;  %v473_v46 = vmax.f32 %v471_v29, %v472_v35  ;;  %v492_v62 = vmax.f32 %v490_v33, %v491_v39  ;;  %v498_v48 = vrot.slane %v497_v44, 4  ;;  %v346_v61 = vld [vmem:[%s7066_s16 + $0x1a] sm:$0x3]  ;;  %v347_v10 = vld [vmem:[%s7066_s16 + $0x1c] sm:$0x3]  ;;  %2526 = vst.msk [vmem:[#allocation3 + $0x90] sm:$0xff] %vm2506_vm10, %v10072_v34 }
  0x60   : > { %v480_v47 = vmax.f32 %v478_v30, %v479_v38  ;;  %v486_v50 = vrot.slane %v485_v43, 2  ;;  %v505_v51 = vrot.slane %v504_v45, 4  ;;  %v511_v27 = vsel %vm461_vm1, %v340_v12, -inf  ;;  %2527 = vst.msk [vmem:[#allocation3 + $0x98] sm:$0x3] %vm2508_vm11, %v10072_v34 }
  0x61   : > { %v467_v49 = vrot.slane %v466_v40, 1  ;;  %v474_v53 = vrot.slane %v473_v46, 1  ;;  %v493_v55 = vrot.slane %v492_v62, 2  ;;  %v499_v56 = vmax.f32 %v497_v44, %v498_v48  ;;  %v348_v44 = vld [vmem:[%s7066_s16 + $0x1e] sm:$0x3]  ;;  %3300 = vst.msk [vmem:[#allocation4] sm:$0xff] %vm2506_vm10, %v10072_v34 }
  0x62   : > { %v481_v54 = vrot.slane %v480_v47, 1  ;;  %v487_v58 = vmax.f32 %v485_v43, %v486_v50  ;;  %v506_v63 = vmax.f32 %v504_v45, %v505_v51  ;;  %v512_v41 = vrot.slane %v511_v27, 4  ;;  %v1721_v43 = vld [vmem:[#allocation2 + $0x60] sm:$0xff]  ;;  %3301 = vst.msk [vmem:[#allocation4 + $0x8] sm:$0x3] %vm2508_vm11, %v10072_v34 }
  0x63   : > { %v7302_v57 = vmax.f32 %v466_v40, %v467_v49  ;;  %v7304_v0 = vmax.f32 %v473_v46, %v474_v53  ;;  %v494_v36 = vmax.f32 %v492_v62, %v493_v55  ;;  %v500_v2 = vrot.slane %v499_v56, 2  ;;  %3302 = vst.msk [vmem:[#allocation4 + $0x10] sm:$0xff] %vm2506_vm10, %v10072_v34 }
  0x64   : > { %v7306_v1 = vmax.f32 %v480_v47, %v481_v54  ;;  %v488_v37 = vrot.slane %v487_v58, 1  ;;  %v507_v5 = vrot.slane %v506_v63, 2  ;;  %v513_v6 = vmax.f32 %v511_v27, %v512_v41  ;;  %3303 = vst.msk [vmem:[#allocation4 + $0x18] sm:$0x3] %vm2508_vm11, %v10072_v34 }
  0x65   : > { %v518_v7 = vsel %vm461_vm1, %v341_v52, -inf  ;;  %v1731_v8 = vld [vmem:[#allocation2 + $0x71] sm:$0xff]  ;;  %v495_v13 = vrot.slane %v494_v36, 1  ;;  %v501_v14 = vmax.f32 %v499_v56, %v500_v2  ;;  %v525_v42 = vsel %vm461_vm1, %v342_v28, -inf  ;;  %3304 = vst.msk [vmem:[#allocation4 + $0x20] sm:$0xff] %vm2506_vm10, %v10072_v34 }
  0x66   : > { %v519_v15 = vrot.slane %v518_v7, 4  ;;  %6709 = vmatmul.msk.f32.gmra.mxu3 %vm1358_vm2, %v1731_v8  ;;  %v7314_v59 = vmax.f32 %v487_v58, %v488_v37  ;;  %v508_v18 = vmax.f32 %v506_v63, %v507_v5  ;;  %v514_v17 = vrot.slane %v513_v6, 2  ;;  %3305 = vst.msk [vmem:[#allocation4 + $0x28] sm:$0x3] %vm2508_vm11, %v10072_v34 }
  0x67   : > { %v526_v60 = vrot.slane %v525_v42, 4  ;;  %v7316_v19 = vmax.f32 %v494_v36, %v495_v13  ;;  %v502_v20 = vrot.slane %v501_v14, 1  ;;  %v532_v22 = vsel %vm461_vm1, %v343_v3, -inf  ;;  %3306 = vst.msk [vmem:[#allocation4 + $0x30] sm:$0xff] %vm2506_vm10, %v10072_v34 }
  0x68   : > { %v520_v21 = vmax.f32 %v518_v7, %v519_v15  ;;  %v509_v23 = vrot.slane %v508_v18, 1  ;;  %v515_v24 = vmax.f32 %v513_v6, %v514_v17  ;;  %v533_v26 = vrot.slane %v532_v22, 4  ;;  %3307 = vst.msk [vmem:[#allocation4 + $0x38] sm:$0x3] %vm2508_vm11, %v10072_v34 }
  0x69   : > { %v527_v25 = vmax.f32 %v525_v42, %v526_v60  ;;  %v7320_v9 = vmax.f32 %v501_v14, %v502_v20  ;;  %v539_v30 = vsel %vm461_vm1, %v344_v4, -inf  ;;  %v546_v31 = vsel %vm461_vm1, %v345_v16, -inf  ;;  %3308 = vst.msk [vmem:[#allocation4 + $0x40] sm:$0xff] %vm2506_vm10, %v10072_v34 }
  0x6a   : > { %v521_v29 = vrot.slane %v520_v21, 2  ;;  %v7325_v32 = vmax.f32 %v508_v18, %v509_v23  ;;  %v516_v33 = vrot.slane %v515_v24, 1  ;;  %v534_v12 = vmax.f32 %v532_v22, %v533_v26  ;;  %3309 = vst.msk [vmem:[#allocation4 + $0x48] sm:$0x3] %vm2508_vm11, %v10072_v34 }
  0x6b   : > { %v528_v11 = vrot.slane %v527_v25, 2  ;;  %v540_v38 = vrot.slane %v539_v30, 4  ;;  %v547_v39 = vrot.slane %v546_v31, 4  ;;  %v553_v40 = vsel %vm461_vm1, %v346_v61, -inf  ;;  %3310 = vst.msk [vmem:[#allocation4 + $0x50] sm:$0xff] %vm2506_vm10, %v10072_v34 }
  0x6c   : > { %v522_v35 = vmax.f32 %v520_v21, %v521_v29  ;;  %v7329_v45 = vmax.f32 %v515_v24, %v516_v33  ;;  %v535_v47 = vrot.slane %v534_v12, 2  ;;  %v554_v62 = vrot.slane %v553_v40, 4  ;;  %3311 = vst.msk [vmem:[#allocation4 + $0x58] sm:$0x3] %vm2508_vm11, %v10072_v34 }
  0x6d   : > { %v529_v46 = vmax.f32 %v527_v25, %v528_v11  ;;  %v541_v49 = vmax.f32 %v539_v30, %v540_v38  ;;  %v548_v50 = vmax.f32 %v546_v31, %v547_v39  ;;  %v560_v51 = vsel %vm461_vm1, %v347_v10, -inf  ;;  %3312 = vst.msk [vmem:[#allocation4 + $0x60] sm:$0xff] %vm2506_vm10, %v10072_v34 }
  0x6e   : > { %v523_v48 = vrot.slane %v522_v35, 1  ;;  %v536_v52 = vmax.f32 %v534_v12, %v535_v47  ;;  %v555_v53 = vmax.f32 %v553_v40, %v554_v62  ;;  %v561_v54 = vrot.slane %v560_v51, 4  ;;  %6717 = vmatmul.msk.f32.vlgmr.msrb.gmra.mxu3 %vm1358_vm2, %v1721_v43  ;;  %v351_v43 = vld [vmem:[%s7066_s16 + $0x24] sm:$0x3]  ;;  %3313 = vst.msk [vmem:[#allocation4 + $0x68] sm:$0x3] %vm2508_vm11, %v10072_v34 }
  0x6f   : > { %v530_v27 = vrot.slane %v529_v46, 1  ;;  %v542_v56 = vrot.slane %v541_v49, 2  ;;  %v549_v28 = vrot.slane %v548_v50, 2  ;;  %v567_v58 = vsel %vm461_vm1, %v348_v44, -inf  ;;  %3314 = vst.msk [vmem:[#allocation4 + $0x70] sm:$0xff] %vm2506_vm10, %v10072_v34 }
  0x70   : > { %v524_v55 = vmax.f32 %v522_v35, %v523_v48  ;;  %v537_v41 = vrot.slane %v536_v52, 1  ;;  %v556_v36 = vrot.slane %v555_v53, 2  ;;  %v562_v2 = vmax.f32 %v560_v51, %v561_v54  ;;  %v349_v35 = vld [vmem:[%s7066_s16 + $0x20] sm:$0x3]  ;;  %3315 = vst.msk [vmem:[#allocation4 + $0x78] sm:$0x3] %vm2508_vm11, %v10072_v34 }
  0x71   : > { %v531_v63 = vmax.f32 %v529_v46, %v530_v27  ;;  %v543_v3 = vmax.f32 %v541_v49, %v542_v56  ;;  %v550_v37 = vmax.f32 %v548_v50, %v549_v28  ;;  %v568_v5 = vrot.slane %v567_v58, 4  ;;  %v352_v50 = vld [vmem:[%s7066_s16 + $0x26] sm:$0x3]  ;;  %v353_v27 = vld [vmem:[%s7066_s16 + $0x28] sm:$0x3]  ;;  %3316 = vst.msk [vmem:[#allocation4 + $0x80] sm:$0xff] %vm2506_vm10, %v10072_v34 }
  0x72   : > { %v1359_v6 = vsel %vm1358_vm2, %v7302_v57, -inf  ;;  %v538_v7 = vmax.f32 %v536_v52, %v537_v41  ;;  %v557_v8 = vmax.f32 %v555_v53, %v556_v36  ;;  %v563_v13 = vrot.slane %v562_v2, 2  ;;  %3317 = vst.msk [vmem:[#allocation4 + $0x88] sm:$0x3] %vm2508_vm11, %v10072_v34 }
  0x73   : > { %v1360_v14 = vsel %vm1358_vm2, %v524_v55, -inf  ;;  %v544_v15 = vrot.slane %v543_v3, 1  ;;  %v551_v42 = vrot.slane %v550_v37, 1  ;;  %v569_v4 = vmax.f32 %v567_v58, %v568_v5  ;;  %v354_v55 = vld [vmem:[%s7066_s16 + $0x2a] sm:$0x3]  ;;  %3318 = vst.msk [vmem:[#allocation4 + $0x90] sm:$0xff] %vm2506_vm10, %v10072_v34 }
  0x74   : > { %v1361_v16 = vmax.f32 %v1359_v6, %v1360_v14  ;;  %v558_v18 = vrot.slane %v557_v8, 1  ;;  %v564_v17 = vmax.f32 %v562_v2, %v563_v13  ;;  %v1362_v60 = vsel %vm1358_vm2, %v7304_v0, -inf  ;;  %3319 = vst.msk [vmem:[#allocation4 + $0x98] sm:$0x3] %vm2508_vm11, %v10072_v34 }
  0x75   : > { %v1363_v20 = vsel %vm1358_vm2, %v531_v63, -inf  ;;  %v545_v21 = vmax.f32 %v543_v3, %v544_v15  ;;  %v552_v22 = vmax.f32 %v550_v37, %v551_v42  ;;  %v570_v57 = vrot.slane %v569_v4, 2  ;;  %v355_v3 = vld [vmem:[%s7066_s16 + $0x2c] sm:$0x3]  ;;  %v356_v42 = vld [vmem:[%s7066_s16 + $0x2e] sm:$0x3] }
  0x76   : > { %v1364_v61 = vmax.f32 %v1362_v60, %v1363_v20  ;;  %v559_v23 = vmax.f32 %v557_v8, %v558_v18  ;;  %v565_v24 = vrot.slane %v564_v17, 1  ;;  %v1365_v25 = vsel %vm1358_vm2, %v7306_v1, -inf  ;;  %v350_v1 = vld [vmem:[%s7066_s16 + $0x22] sm:$0x3] }
  0x77   : > { %v1366_v26 = vsel %vm1358_vm2, %v538_v7, -inf  ;;  %v571_v29 = vmax.f32 %v569_v4, %v570_v57  ;;  %v1368_v0 = vsel %vm1358_vm2, %v7314_v59, -inf  ;;  %v1369_v31 = vsel %vm1358_vm2, %v545_v21, -inf }
  0x78   : > { %v1367_v30 = vmax.f32 %v1365_v25, %v1366_v26  ;;  %v566_v10 = vmax.f32 %v564_v17, %v565_v24  ;;  %v1370_v33 = vmax.f32 %v1368_v0, %v1369_v31  ;;  %v1371_v11 = vsel %vm1358_vm2, %v7316_v19, -inf }
  0x79   : > { %v1372_v12 = vsel %vm1358_vm2, %v552_v22, -inf  ;;  %v572_v38 = vrot.slane %v571_v29, 1  ;;  %v1374_v40 = vsel %vm1358_vm2, %v7320_v9, -inf  ;;  %v1375_v59 = vsel %vm1358_vm2, %v559_v23, -inf }
  0x7a   : > { %v1373_v39 = vmax.f32 %v1371_v11, %v1372_v12  ;;  %v1376_v44 = vmax.f32 %v1374_v40, %v1375_v59  ;;  %v1377_v46 = vsel %vm1358_vm2, %v7325_v32, -inf  ;;  %v1378_v19 = vsel %vm1358_vm2, %v566_v10, -inf  ;;  %v358_v11 = vld [vmem:[%s7066_s16 + $0x32] sm:$0x3] }
  0x7b   : > { %v1380_v47 = vsel %vm1358_vm2, %v7329_v45, -inf  ;;  %v573_v62 = vmax.f32 %v571_v29, %v572_v38  ;;  %v1379_v48 = vmax.f32 %v1377_v46, %v1378_v19  ;;  %v1636_v49 = vsel %vm1635_vm3, %v1364_v61, %v1361_v16  ;;  %v360_v46 = vld [vmem:[%s7066_s16 + $0x36] sm:$0x3] }
  0x7c   : > { %v574_v9 = vsel %vm461_vm1, %v349_v35, -inf  ;;  %v1638_v51 = vsel %vm1637_vm4, %v1367_v30, %v1636_v49  ;;  %v581_v53 = vsel %vm461_vm1, %v350_v1, -inf  ;;  %v588_v32 = vsel %vm461_vm1, %v351_v43, -inf  ;;  %v357_v30 = vld [vmem:[%s7066_s16 + $0x30] sm:$0x3] }
  0x7d   : > { %v575_v52 = vrot.slane %v574_v9, 4  ;;  %v1381_v54 = vsel %vm1358_vm2, %v573_v62, -inf  ;;  %v1640_v45 = vsel %vm1639_vm5, %v1370_v33, %v1638_v51  ;;  %v582_v56 = vrot.slane %v581_v53, 4 }
  0x7e   : > { %v589_v28 = vrot.slane %v588_v32, 4  ;;  %v1382_v58 = vmax.f32 %v1380_v47, %v1381_v54  ;;  %v1642_v63 = vsel %vm1641_vm6, %v1373_v39, %v1640_v45  ;;  %v595_v36 = vsel %vm461_vm1, %v352_v50, -inf }
  0x7f   : > { %v576_v41 = vmax.f32 %v574_v9, %v575_v52  ;;  %v1644_v2 = vsel %vm1643_vm7, %v1376_v44, %v1642_v63  ;;  %v583_v37 = vmax.f32 %v581_v53, %v582_v56  ;;  %v596_v6 = vrot.slane %v595_v36, 4  ;;  %v359_v44 = vld [vmem:[%s7066_s16 + $0x34] sm:$0x3] }
  0x80   : > { %v590_v5 = vmax.f32 %v588_v32, %v589_v28  ;;  %v1646_v7 = vsel %vm1645_vm8, %v1379_v48, %v1644_v2  ;;  %v602_v13 = vsel %vm461_vm1, %v353_v27, -inf  ;;  %v609_v14 = vsel %vm461_vm1, %v354_v55, -inf  ;;  %v361_v32 = vld [vmem:[%s7066_s16 + $0x38] sm:$0x3]  ;;  %v362_v28 = vld [vmem:[%s7066_s16 + $0x3a] sm:$0x3] }
  0x81   : > { %v577_v8 = vrot.slane %v576_v41, 2  ;;  %v1648_v15 = vsel %vm1647_vm9, %v1382_v58, %v1646_v7  ;;  %v584_v4 = vrot.slane %v583_v37, 2  ;;  %v597_v18 = vmax.f32 %v595_v36, %v596_v6  ;;  %v363_v6 = vld [vmem:[%s7066_s16 + $0x3c] sm:$0x3] }
  0x82   : > { %v591_v16 = vrot.slane %v590_v5, 2  ;;  %1707 = vst.msk [vmem:[#allocation2 + $0x11] sm:$0xff] %vm1358_vm2, %v1648_v15  ;;  %v603_v60 = vrot.slane %v602_v13, 4  ;;  %v610_v20 = vrot.slane %v609_v14, 4  ;;  %v616_v21 = vsel %vm461_vm1, %v355_v3, -inf }
  0x83   : > { %v578_v17 = vmax.f32 %v576_v41, %v577_v8  ;;  %v585_v22 = vmax.f32 %v583_v37, %v584_v4  ;;  %v598_v61 = vrot.slane %v597_v18, 2  ;;  %v617_v23 = vrot.slane %v616_v21, 4 }
  0x84   : > { %v592_v57 = vmax.f32 %v590_v5, %v591_v16  ;;  %v604_v25 = vmax.f32 %v602_v13, %v603_v60  ;;  %v611_v26 = vmax.f32 %v609_v14, %v610_v20  ;;  %v623_v29 = vsel %vm461_vm1, %v356_v42, -inf }
  0x85   : > { %v579_v24 = vrot.slane %v578_v17, 1  ;;  %v586_v0 = vrot.slane %v585_v22, 1  ;;  %v599_v10 = vmax.f32 %v597_v18, %v598_v61  ;;  %v618_v33 = vmax.f32 %v616_v21, %v617_v23  ;;  %v364_v18 = vld [vmem:[%s7066_s16 + $0x3e] sm:$0x3] }
  0x86   : > { %v593_v31 = vrot.slane %v592_v57, 1  ;;  %v605_v35 = vrot.slane %v604_v25, 2  ;;  %v612_v1 = vrot.slane %v611_v26, 2  ;;  %v624_v38 = vrot.slane %v623_v29, 4 }
  0x87   : > { %v7384_v12 = vmax.f32 %v578_v17, %v579_v24  ;;  %v7386_v39 = vmax.f32 %v585_v22, %v586_v0  ;;  %v600_v59 = vrot.slane %v599_v10, 1  ;;  %v619_v43 = vrot.slane %v618_v33, 2  ;;  %v1722_v22 = vld [vmem:[#allocation2 + $0x70] sm:$0xff] }
  0x88   : > { %v7388_v40 = vmax.f32 %v592_v57, %v593_v31  ;;  %v606_v19 = vmax.f32 %v604_v25, %v605_v35  ;;  %v613_v47 = vmax.f32 %v611_v26, %v612_v1  ;;  %v625_v62 = vmax.f32 %v623_v29, %v624_v38  ;;  %6718 = vmatmul.msk.f32.gmra.mxu3 %vm1358_vm2, %v1722_v22 }
  0x89   : > { %v630_v48 = vsel %vm461_vm1, %v357_v30, -inf  ;;  %v1872_v49 = vld [vmem:[#allocation2 + $0x12] sm:$0xff]  ;;  %v7393_v51 = vmax.f32 %v599_v10, %v600_v59  ;;  %v620_v27 = vmax.f32 %v618_v33, %v619_v43  ;;  %v637_v53 = vsel %vm461_vm1, %v358_v11, -inf }
  0x8a   : > { %v1725_v50 = vld [vmem:[#allocation2 + $0x11] sm:$0xff]  ;;  %v631_v52 = vrot.slane %v630_v48, 4  ;;  %6722 = vmatmul.msk.f32.gmra.mxu2 %vm1358_vm2, %v1872_v49  ;;  %v607_v54 = vrot.slane %v606_v19, 1  ;;  %v614_v45 = vrot.slane %v613_v47, 1  ;;  %v626_v55 = vrot.slane %v625_v62, 2 }
  0x8b   : > { %v1716_v9 = vld [vmem:[#allocation2 + $0x10] sm:$0xff]  ;;  %6703 = vmatmul.msk.f32.gmra.mxu0 %vm1358_vm2, %v1725_v50  ;;  %v638_v56 = vrot.slane %v637_v53, 4  ;;  %v621_v58 = vrot.slane %v620_v27, 1  ;;  %v644_v41 = vsel %vm461_vm1, %v359_v44, -inf  ;;  %v651_v36 = vsel %vm461_vm1, %v360_v46, -inf }
  0x8c   : > { %6712 = vmatmul.msk.f32.gmra.mxu1 %vm1358_vm2, %v1716_v9  ;;  %v632_v63 = vmax.f32 %v630_v48, %v631_v52  ;;  %v7403_v2 = vmax.f32 %v606_v19, %v607_v54  ;;  %v7405_v3 = vmax.f32 %v613_v47, %v614_v45  ;;  %v627_v37 = vmax.f32 %v625_v62, %v626_v55 }
  0x8d   : > { %v639_v5 = vmax.f32 %v637_v53, %v638_v56  ;;  %v7408_v7 = vmax.f32 %v620_v27, %v621_v58  ;;  %v645_v13 = vrot.slane %v644_v41, 4  ;;  %v652_v14 = vrot.slane %v651_v36, 4 }
  0x8e   : > { %v633_v8 = vrot.slane %v632_v63, 2  ;;  %v628_v15 = vrot.slane %v627_v37, 1  ;;  %v658_v4 = vsel %vm461_vm1, %v361_v32, -inf  ;;  %v665_v16 = vsel %vm461_vm1, %v362_v28, -inf }
  0x8f   : > { %v640_v42 = vrot.slane %v639_v5, 2  ;;  %v646_v60 = vmax.f32 %v644_v41, %v645_v13  ;;  %v653_v20 = vmax.f32 %v651_v36, %v652_v14  ;;  %v659_v21 = vrot.slane %v658_v4, 4 }
  0x90   : > { %v634_v17 = vmax.f32 %v632_v63, %v633_v8  ;;  %v629_v57 = vmax.f32 %v627_v37, %v628_v15  ;;  %v666_v23 = vrot.slane %v665_v16, 4  ;;  %v672_v24 = vsel %vm461_vm1, %v363_v6, -inf }
  0x91   : > { %v641_v61 = vmax.f32 %v639_v5, %v640_v42  ;;  %v647_v26 = vrot.slane %v646_v60, 2  ;;  %v654_v29 = vrot.slane %v653_v20, 2  ;;  %v660_v30 = vmax.f32 %v658_v4, %v659_v21 }
  0x92   : > { %v635_v25 = vrot.slane %v634_v17, 1  ;;  %v667_v31 = vmax.f32 %v665_v16, %v666_v23  ;;  %v673_v10 = vrot.slane %v672_v24, 4  ;;  %v679_v33 = vsel %vm461_vm1, %v364_v18, -inf  ;;  %v365_v16 = vld [vmem:[%s7066_s16 + $0x40] sm:$0x3] }
  0x93   : > { %v642_v0 = vrot.slane %v641_v61, 1  ;;  %v648_v35 = vmax.f32 %v646_v60, %v647_v26  ;;  %v655_v1 = vmax.f32 %v653_v20, %v654_v29  ;;  %v661_v38 = vrot.slane %v660_v30, 2  ;;  %v366_v18 = vld [vmem:[%s7066_s16 + $0x42] sm:$0x3]  ;;  %v367_v23 = vld [vmem:[%s7066_s16 + $0x44] sm:$0x3] }
  0x94   : > { %v636_v11 = vmax.f32 %v634_v17, %v635_v25  ;;  %v668_v43 = vrot.slane %v667_v31, 2  ;;  %v674_v44 = vmax.f32 %v672_v24, %v673_v10  ;;  %v680_v46 = vrot.slane %v679_v33, 4  ;;  %v368_v24 = vld [vmem:[%s7066_s16 + $0x46] sm:$0x3]  ;;  %v369_v29 = vld [vmem:[%s7066_s16 + $0x48] sm:$0x3] }
  0x95   : > { %v643_v59 = vmax.f32 %v641_v61, %v642_v0  ;;  %v649_v19 = vrot.slane %v648_v35, 1  ;;  %v656_v47 = vrot.slane %v655_v1, 1  ;;  %v662_v62 = vmax.f32 %v660_v30, %v661_v38 }
  0x96   : > { %v1383_v48 = vsel %vm1358_vm2, %v7384_v12, -inf  ;;  %v669_v49 = vmax.f32 %v667_v31, %v668_v43  ;;  %v675_v50 = vrot.slane %v674_v44, 2  ;;  %v681_v9 = vmax.f32 %v679_v33, %v680_v46  ;;  %v370_v31 = vld [vmem:[%s7066_s16 + $0x4a] sm:$0x3] }
  0x97   : > { %v1384_v27 = vsel %vm1358_vm2, %v636_v11, -inf  ;;  %v650_v52 = vmax.f32 %v648_v35, %v649_v19  ;;  %v657_v53 = vmax.f32 %v655_v1, %v656_v47  ;;  %v663_v32 = vrot.slane %v662_v62, 1  ;;  %v371_v19 = vld [vmem:[%s7066_s16 + $0x4c] sm:$0x3] }
  0x98   : > { %v1385_v54 = vmax.f32 %v1383_v48, %v1384_v27  ;;  %v670_v45 = vrot.slane %v669_v49, 1  ;;  %v676_v55 = vmax.f32 %v674_v44, %v675_v50  ;;  %v682_v56 = vrot.slane %v681_v9, 2 }
  0x99   : > { %v1386_v28 = vsel %vm1358_vm2, %v7386_v39, -inf  ;;  %v664_v58 = vmax.f32 %v662_v62, %v663_v32  ;;  %v1387_v63 = vsel %vm1358_vm2, %v643_v59, -inf  ;;  %v1389_v12 = vsel %vm1358_vm2, %v7388_v40, -inf }
  0x9a   : > { %v1390_v41 = vsel %vm1358_vm2, %v650_v52, -inf  ;;  %v671_v36 = vmax.f32 %v669_v49, %v670_v45  ;;  %v677_v37 = vrot.slane %v676_v55, 1  ;;  %v683_v5 = vmax.f32 %v681_v9, %v682_v56 }
  0x9b   : > { %v1388_v6 = vmax.f32 %v1386_v28, %v1387_v63  ;;  %v1391_v8 = vmax.f32 %v1389_v12, %v1390_v41  ;;  %v1392_v13 = vsel %vm1358_vm2, %v7393_v51, -inf  ;;  %v1393_v39 = vsel %vm1358_vm2, %v657_v53, -inf  ;;  %v372_v53 = vld [vmem:[%s7066_s16 + $0x4e] sm:$0x3] }
  0x9c   : > { %v1395_v14 = vsel %vm1358_vm2, %v7403_v2, -inf  ;;  %v678_v15 = vmax.f32 %v676_v55, %v677_v37  ;;  %v684_v42 = vrot.slane %v683_v5, 1  ;;  %v1394_v40 = vmax.f32 %v1392_v13, %v1393_v39  ;;  %v373_v13 = vld [vmem:[%s7066_s16 + $0x50] sm:$0x3]  ;;  %v374_v39 = vld [vmem:[%s7066_s16 + $0x52] sm:$0x3] }
  0x9d   : > { %v1396_v4 = vsel %vm1358_vm2, %v664_v58, -inf  ;;  %v1398_v60 = vsel %vm1358_vm2, %v7405_v3, -inf  ;;  %v1399_v51 = vsel %vm1358_vm2, %v671_v36, -inf  ;;  %v1401_v20 = vsel %vm1358_vm2, %v7408_v7, -inf }
  0x9e   : > { %v1397_v17 = vmax.f32 %v1395_v14, %v1396_v4  ;;  %v685_v2 = vmax.f32 %v683_v5, %v684_v42  ;;  %v1400_v21 = vmax.f32 %v1398_v60, %v1399_v51  ;;  %v1402_v22 = vsel %vm1358_vm2, %v678_v15, -inf  ;;  %v375_v60 = vld [vmem:[%s7066_s16 + $0x54] sm:$0x3] }
  0x9f   : > { %v1404_v61 = vsel %vm1358_vm2, %v629_v57, -inf  ;;  %v1403_v25 = vmax.f32 %v1401_v20, %v1402_v22  ;;  %v1649_v26 = vsel %vm1635_vm3, %v1388_v6, %v1385_v54  ;;  %v686_v3 = vsel %vm461_vm1, %v365_v16, -inf  ;;  %v376_v22 = vld [vmem:[%s7066_s16 + $0x56] sm:$0x3] }
  0xa0   : > { %v693_v30 = vsel %vm461_vm1, %v366_v18, -inf  ;;  %v1405_v0 = vsel %vm1358_vm2, %v685_v2, -inf  ;;  %v1650_v7 = vsel %vm1637_vm4, %v1391_v8, %v1649_v26  ;;  %v687_v10 = vrot.slane %v686_v3, 4 }
  0xa1   : > { %v694_v33 = vrot.slane %v693_v30, 4  ;;  %v1406_v11 = vmax.f32 %v1404_v61, %v1405_v0  ;;  %v1651_v57 = vsel %vm1639_vm5, %v1394_v40, %v1650_v7  ;;  %v700_v35 = vsel %vm461_vm1, %v367_v23, -inf }
  0xa2   : > { %v707_v1 = vsel %vm461_vm1, %v368_v24, -inf  ;;  %v1652_v38 = vsel %vm1641_vm6, %v1397_v17, %v1651_v57  ;;  %v688_v59 = vmax.f32 %v686_v3, %v687_v10  ;;  %v701_v44 = vrot.slane %v700_v35, 4  ;;  %v377_v10 = vld [vmem:[%s7066_s16 + $0x58] sm:$0x3] }
  0xa3   : > { %v695_v43 = vmax.f32 %v693_v30, %v694_v33  ;;  %v1653_v46 = vsel %vm1643_vm7, %v1400_v21, %v1652_v38  ;;  %v708_v47 = vrot.slane %v707_v1, 4  ;;  %v714_v62 = vsel %vm461_vm1, %v369_v29, -inf }
  0xa4   : > { %v721_v48 = vsel %vm461_vm1, %v370_v31, -inf  ;;  %v1654_v49 = vsel %vm1645_vm8, %v1403_v25, %v1653_v46  ;;  %v689_v50 = vrot.slane %v688_v59, 2  ;;  %v702_v27 = vmax.f32 %v700_v35, %v701_v44  ;;  %v378_v44 = vld [vmem:[%s7066_s16 + $0x5a] sm:$0x3]  ;;  %v379_v46 = vld [vmem:[%s7066_s16 + $0x5c] sm:$0x3] }
  0xa5   : > { %v696_v9 = vrot.slane %v695_v43, 2  ;;  %v1655_v52 = vsel %vm1647_vm9, %v1406_v11, %v1654_v49  ;;  %v709_v32 = vmax.f32 %v707_v1, %v708_v47  ;;  %v715_v54 = vrot.slane %v714_v62, 4 }
  0xa6   : > { %v722_v45 = vrot.slane %v721_v48, 4  ;;  %1708 = vst.msk [vmem:[#allocation2 + $0x21] sm:$0xff] %vm1358_vm2, %v1655_v52  ;;  %v690_v55 = vmax.f32 %v688_v59, %v689_v50  ;;  %v703_v28 = vrot.slane %v702_v27, 2  ;;  %v728_v58 = vsel %vm461_vm1, %v371_v19, -inf  ;;  %v380_v52 = vld [vmem:[%s7066_s16 + $0x5e] sm:$0x3] }
  0xa7   : > { %v697_v56 = vmax.f32 %v695_v43, %v696_v9  ;;  %v710_v63 = vrot.slane %v709_v32, 2  ;;  %v716_v12 = vmax.f32 %v714_v62, %v715_v54  ;;  %v729_v36 = vrot.slane %v728_v58, 4 }
  0xa8   : > { %v723_v41 = vmax.f32 %v721_v48, %v722_v45  ;;  %v691_v37 = vrot.slane %v690_v55, 1  ;;  %v704_v6 = vmax.f32 %v702_v27, %v703_v28  ;;  %v735_v8 = vsel %vm461_vm1, %v372_v53, -inf }
  0xa9   : > { %v698_v5 = vrot.slane %v697_v56, 1  ;;  %v711_v14 = vmax.f32 %v709_v32, %v710_v63  ;;  %v717_v15 = vrot.slane %v716_v12, 2  ;;  %v730_v40 = vmax.f32 %v728_v58, %v729_v36  ;;  %v1877_v63 = vld [vmem:[#allocation2 + $0x62] sm:$0xff] }
  0xaa   : > { %v724_v42 = vrot.slane %v723_v41, 2  ;;  %v7465_v4 = vmax.f32 %v690_v55, %v691_v37  ;;  %v705_v18 = vrot.slane %v704_v6, 1  ;;  %v736_v17 = vrot.slane %v735_v8, 4  ;;  %6727 = vmatmul.msk.f32.vlgmr.msra.gmra.mxu3 %vm1358_vm2, %v1877_v63 }
  0xab   : > { %v7467_v16 = vmax.f32 %v697_v56, %v698_v5  ;;  %v712_v51 = vrot.slane %v711_v14, 1  ;;  %v718_v20 = vmax.f32 %v716_v12, %v717_v15  ;;  %v731_v21 = vrot.slane %v730_v40, 2  ;;  %v6729_v12 = vld [vmem:[%s10063_s1 + $0xc] sm:$0xf] }
  0xac   : > { %v725_v2 = vmax.f32 %v723_v41, %v724_v42  ;;  %v7471_v61 = vmax.f32 %v704_v6, %v705_v18  ;;  %v737_v23 = vmax.f32 %v735_v8, %v736_v17  ;;  %v742_v24 = vsel %vm461_vm1, %v373_v13, -inf  ;;  %6730 = vmatpush.msk.msrb.mxu3 %vm1758_vm0, %v6729_v12 }
  0xad   : > { %v749_v25 = vsel %vm461_vm1, %v374_v39, -inf  ;;  %v1873_v26 = vld [vmem:[#allocation2 + $0x22] sm:$0xff]  ;;  %v7475_v30 = vmax.f32 %v711_v14, %v712_v51  ;;  %v719_v0 = vrot.slane %v718_v20, 1  ;;  %v732_v31 = vmax.f32 %v730_v40, %v731_v21 }
  0xae   : > { %v1726_v29 = vld [vmem:[#allocation2 + $0x21] sm:$0xff]  ;;  %v726_v7 = vrot.slane %v725_v2, 1  ;;  %6723 = vmatmul.msk.f32.gmra.mxu2 %vm1358_vm2, %v1873_v26  ;;  %v738_v33 = vrot.slane %v737_v23, 2  ;;  %v743_v11 = vrot.slane %v742_v24, 4  ;;  %v750_v57 = vrot.slane %v749_v25, 4 }
  0xaf   : > { %v1717_v3 = vld [vmem:[#allocation2 + $0x20] sm:$0xff]  ;;  %6704 = vmatmul.msk.f32.gmra.mxu0 %vm1358_vm2, %v1726_v29  ;;  %v756_v35 = vsel %vm461_vm1, %v375_v60, -inf  ;;  %v7482_v1 = vmax.f32 %v718_v20, %v719_v0  ;;  %v733_v59 = vrot.slane %v732_v31, 1  ;;  %v763_v48 = vsel %vm461_vm1, %v376_v22, -inf }
  0xb0   : > { %6713 = vmatmul.msk.f32.gmra.mxu1 %vm1358_vm2, %v1717_v3  ;;  %v7484_v38 = vmax.f32 %v725_v2, %v726_v7  ;;  %v757_v43 = vrot.slane %v756_v35, 4  ;;  %v739_v19 = vmax.f32 %v737_v23, %v738_v33  ;;  %v744_v47 = vmax.f32 %v742_v24, %v743_v11 }
  0xb1   : > { %v751_v62 = vmax.f32 %v749_v25, %v750_v57  ;;  %v7489_v49 = vmax.f32 %v732_v31, %v733_v59  ;;  %v764_v9 = vrot.slane %v763_v48, 4  ;;  %v770_v27 = vsel %vm461_vm1, %v377_v10, -inf }
  0xb2   : > { %v758_v50 = vmax.f32 %v756_v35, %v757_v43  ;;  %v740_v53 = vrot.slane %v739_v19, 1  ;;  %v745_v32 = vrot.slane %v744_v47, 2  ;;  %v771_v45 = vrot.slane %v770_v27, 4 }
  0xb3   : > { %v752_v54 = vrot.slane %v751_v62, 2  ;;  %v765_v56 = vmax.f32 %v763_v48, %v764_v9  ;;  %v777_v28 = vsel %vm461_vm1, %v378_v44, -inf  ;;  %v784_v58 = vsel %vm461_vm1, %v379_v46, -inf }
  0xb4   : > { %v759_v55 = vrot.slane %v758_v50, 2  ;;  %v7498_v41 = vmax.f32 %v739_v19, %v740_v53  ;;  %v746_v36 = vmax.f32 %v744_v47, %v745_v32  ;;  %v772_v5 = vmax.f32 %v770_v27, %v771_v45  ;;  %v381_v53 = vld [vmem:[%s7066_s16 + $0x60] sm:$0x3]  ;;  %v382_v32 = vld [vmem:[%s7066_s16 + $0x62] sm:$0x3] }
  0xb5   : > { %v753_v37 = vmax.f32 %v751_v62, %v752_v54  ;;  %v766_v8 = vrot.slane %v765_v56, 2  ;;  %v778_v13 = vrot.slane %v777_v28, 4  ;;  %v785_v39 = vrot.slane %v784_v58, 4 }
  0xb6   : > { %v760_v6 = vmax.f32 %v758_v50, %v759_v55  ;;  %v747_v14 = vrot.slane %v746_v36, 1  ;;  %v773_v42 = vrot.slane %v772_v5, 2  ;;  %v791_v40 = vsel %vm461_vm1, %v380_v52, -inf }
  0xb7   : > { %v754_v15 = vrot.slane %v753_v37, 1  ;;  %v767_v17 = vmax.f32 %v765_v56, %v766_v8  ;;  %v779_v60 = vmax.f32 %v777_v28, %v778_v13  ;;  %v786_v51 = vmax.f32 %v784_v58, %v785_v39 }
  0xb8   : > { %v761_v18 = vrot.slane %v760_v6, 1  ;;  %v748_v20 = vmax.f32 %v746_v36, %v747_v14  ;;  %v774_v21 = vmax.f32 %v772_v5, %v773_v42  ;;  %v792_v22 = vrot.slane %v791_v40, 4  ;;  %v384_v5 = vld [vmem:[%s7066_s16 + $0x66] sm:$0x3] }
  0xb9   : > { %v755_v2 = vmax.f32 %v753_v37, %v754_v15  ;;  %v768_v24 = vrot.slane %v767_v17, 1  ;;  %v780_v25 = vrot.slane %v779_v60, 2  ;;  %v787_v26 = vrot.slane %v786_v51, 2  ;;  %v386_v15 = vld [vmem:[%s7066_s16 + $0x6a] sm:$0x3] }
  0xba   : > { %v762_v23 = vmax.f32 %v760_v6, %v761_v18  ;;  %v775_v29 = vrot.slane %v774_v21, 1  ;;  %v793_v3 = vmax.f32 %v791_v40, %v792_v22  ;;  %v1407_v0 = vsel %vm1358_vm2, %v7465_v4, -inf }
  0xbb   : > { %v1408_v7 = vsel %vm1358_vm2, %v748_v20, -inf  ;;  %v769_v31 = vmax.f32 %v767_v17, %v768_v24  ;;  %v781_v10 = vmax.f32 %v779_v60, %v780_v25  ;;  %v788_v33 = vmax.f32 %v786_v51, %v787_v26 }
  0xbc   : > { %v1409_v11 = vmax.f32 %v1407_v0, %v1408_v7  ;;  %v776_v57 = vmax.f32 %v774_v21, %v775_v29  ;;  %v794_v35 = vrot.slane %v793_v3, 2  ;;  %v1410_v59 = vsel %vm1358_vm2, %v7467_v16, -inf }
  0xbd   : > { %v1411_v43 = vsel %vm1358_vm2, %v755_v2, -inf  ;;  %v782_v44 = vrot.slane %v781_v10, 1  ;;  %v789_v46 = vrot.slane %v788_v33, 1  ;;  %v1413_v4 = vsel %vm1358_vm2, %v7471_v61, -inf }
  0xbe   : > { %v1412_v19 = vmax.f32 %v1410_v59, %v1411_v43  ;;  %v795_v47 = vmax.f32 %v793_v3, %v794_v35  ;;  %v1414_v62 = vsel %vm1358_vm2, %v762_v23, -inf  ;;  %v1416_v48 = vsel %vm1358_vm2, %v7475_v30, -inf  ;;  %v383_v30 = vld [vmem:[%s7066_s16 + $0x64] sm:$0x3]  ;;  %v387_v23 = vld [vmem:[%s7066_s16 + $0x6c] sm:$0x3] }
  0xbf   : > { %v1417_v50 = vsel %vm1358_vm2, %v769_v31, -inf  ;;  %v783_v9 = vmax.f32 %v781_v10, %v782_v44  ;;  %v790_v27 = vmax.f32 %v788_v33, %v789_v46  ;;  %v1415_v16 = vmax.f32 %v1413_v4, %v1414_v62  ;;  %v388_v10 = vld [vmem:[%s7066_s16 + $0x6e] sm:$0x3]  ;;  %v389_v62 = vld [vmem:[%s7066_s16 + $0x70] sm:$0x3] }
  0xc0   : > { %v1418_v52 = vmax.f32 %v1416_v48, %v1417_v50  ;;  %v796_v54 = vrot.slane %v795_v47, 1  ;;  %v1419_v61 = vsel %vm1358_vm2, %v7482_v1, -inf  ;;  %v1420_v45 = vsel %vm1358_vm2, %v776_v57, -inf }
  0xc1   : > { %v1422_v55 = vsel %vm1358_vm2, %v7484_v38, -inf  ;;  %v1421_v56 = vmax.f32 %v1419_v61, %v1420_v45  ;;  %v1423_v28 = vsel %vm1358_vm2, %v783_v9, -inf  ;;  %v1425_v58 = vsel %vm1358_vm2, %v7489_v49, -inf  ;;  %v385_v38 = vld [vmem:[%s7066_s16 + $0x68] sm:$0x3] }
  0xc2   : > { %v1426_v63 = vsel %vm1358_vm2, %v790_v27, -inf  ;;  %v797_v12 = vmax.f32 %v795_v47, %v796_v54  ;;  %v1424_v36 = vmax.f32 %v1422_v55, %v1423_v28  ;;  %v1428_v1 = vsel %vm1358_vm2, %v7498_v41, -inf  ;;  %v392_v28 = vld [vmem:[%s7066_s16 + $0x76] sm:$0x3] }
  0xc3   : > { %v1427_v37 = vmax.f32 %v1425_v58, %v1426_v63  ;;  %v1656_v6 = vsel %vm1635_vm3, %v1412_v19, %v1409_v11  ;;  %v798_v8 = vsel %vm461_vm1, %v381_v53, -inf  ;;  %v805_v13 = vsel %vm461_vm1, %v382_v32, -inf }
  0xc4   : > { %v812_v39 = vsel %vm461_vm1, %v383_v30, -inf  ;;  %v1429_v49 = vsel %vm1358_vm2, %v797_v12, -inf  ;;  %v1657_v14 = vsel %vm1637_vm4, %v1415_v16, %v1656_v6  ;;  %v799_v42 = vrot.slane %v798_v8, 4  ;;  %v390_v16 = vld [vmem:[%s7066_s16 + $0x72] sm:$0x3] }
  0xc5   : > { %v806_v40 = vrot.slane %v805_v13, 4  ;;  %v1430_v18 = vmax.f32 %v1428_v1, %v1429_v49  ;;  %v1658_v41 = vsel %vm1639_vm5, %v1418_v52, %v1657_v14  ;;  %v813_v17 = vrot.slane %v812_v39, 4 }
  0xc6   : > { %v819_v60 = vsel %vm461_vm1, %v384_v5, -inf  ;;  %v1659_v51 = vsel %vm1641_vm6, %v1421_v56, %v1658_v41  ;;  %v800_v20 = vmax.f32 %v798_v8, %v799_v42  ;;  %v826_v25 = vsel %vm461_vm1, %v385_v38, -inf  ;;  %v391_v56 = vld [vmem:[%s7066_s16 + $0x74] sm:$0x3] }
  0xc7   : > { %v807_v2 = vmax.f32 %v805_v13, %v806_v40  ;;  %v820_v21 = vrot.slane %v819_v60, 4  ;;  %v1660_v22 = vsel %vm1643_vm7, %v1424_v36, %v1659_v51  ;;  %v814_v24 = vmax.f32 %v812_v39, %v813_v17  ;;  %v394_v40 = vld [vmem:[%s7066_s16 + $0x7a] sm:$0x3] }
  0xc8   : > { %v833_v26 = vsel %vm461_vm1, %v386_v15, -inf  ;;  %v1661_v29 = vsel %vm1645_vm8, %v1427_v37, %v1660_v22  ;;  %v801_v3 = vrot.slane %v800_v20, 2  ;;  %v827_v11 = vrot.slane %v826_v25, 4  ;;  %v393_v37 = vld [vmem:[%s7066_s16 + $0x78] sm:$0x3] }
  0xc9   : > { %v808_v0 = vrot.slane %v807_v2, 2  ;;  %v821_v7 = vmax.f32 %v819_v60, %v820_v21  ;;  %v1662_v31 = vsel %vm1647_vm9, %v1430_v18, %v1661_v29  ;;  %v815_v33 = vrot.slane %v814_v24, 2  ;;  %v395_v22 = vld [vmem:[%s7066_s16 + $0x7c] sm:$0x3] }
  0xca   : > { %v834_v57 = vrot.slane %v833_v26, 4  ;;  %1709 = vst.msk [vmem:[#allocation2 + $0x31] sm:$0xff] %vm1358_vm2, %v1662_v31  ;;  %v802_v35 = vmax.f32 %v800_v20, %v801_v3  ;;  %v840_v44 = vsel %vm461_vm1, %v387_v23, -inf  ;;  %v828_v19 = vmax.f32 %v826_v25, %v827_v11 }
  0xcb   : > { %v809_v59 = vmax.f32 %v807_v2, %v808_v0  ;;  %v822_v43 = vrot.slane %v821_v7, 2  ;;  %v816_v46 = vmax.f32 %v814_v24, %v815_v33  ;;  %v841_v47 = vrot.slane %v840_v44, 4 }
  0xcc   : > { %v835_v4 = vmax.f32 %v833_v26, %v834_v57  ;;  %v803_v48 = vrot.slane %v802_v35, 1  ;;  %v847_v27 = vsel %vm461_vm1, %v388_v10, -inf  ;;  %v829_v53 = vrot.slane %v828_v19, 2  ;;  %v7590_v57 = vld [vmem:[#allocation2 + $0x72] sm:$0xff] }
  0xcd   : > { %v810_v50 = vrot.slane %v809_v59, 1  ;;  %v823_v9 = vmax.f32 %v821_v7, %v822_v43  ;;  %v817_v52 = vrot.slane %v816_v46, 1  ;;  %v842_v54 = vmax.f32 %v840_v44, %v841_v47  ;;  %6728 = vmatmul.msk.f32.gmra.mxu3 %vm1358_vm2, %v7590_v57 }
  0xce   : > { %v836_v32 = vrot.slane %v835_v4, 2  ;;  %v7553_v61 = vmax.f32 %v802_v35, %v803_v48  ;;  %v848_v30 = vrot.slane %v847_v27, 4  ;;  %v830_v63 = vmax.f32 %v828_v19, %v829_v53  ;;  %v396_v35 = vld [vmem:[%s7066_s16 + $0x7e] sm:$0x3] }
  0xcf   : > { %v7555_v45 = vmax.f32 %v809_v59, %v810_v50  ;;  %v824_v55 = vrot.slane %v823_v9, 1  ;;  %v7559_v58 = vmax.f32 %v816_v46, %v817_v52  ;;  %v843_v36 = vrot.slane %v842_v54, 2 }
  0xd0   : > { %v837_v12 = vmax.f32 %v835_v4, %v836_v32  ;;  %v849_v5 = vmax.f32 %v847_v27, %v848_v30  ;;  %v854_v6 = vsel %vm461_vm1, %v389_v62, -inf  ;;  %v861_v38 = vsel %vm461_vm1, %v390_v16, -inf }
  0xd1   : > { %v7562_v1 = vmax.f32 %v823_v9, %v824_v55  ;;  %v7566_v8 = vld [vmem:[#allocation2 + $0x32] sm:$0xff]  ;;  %v831_v49 = vrot.slane %v830_v63, 1  ;;  %v844_v15 = vmax.f32 %v842_v54, %v843_v36  ;;  %v855_v42 = vrot.slane %v854_v6, 4 }
  0xd2   : > { %v7568_v13 = vld [vmem:[#allocation2 + $0x31] sm:$0xff]  ;;  %v838_v14 = vrot.slane %v837_v12, 1  ;;  %6724 = vmatmul.msk.f32.gmra.mxu2 %vm1358_vm2, %v7566_v8  ;;  %v850_v18 = vrot.slane %v849_v5, 2  ;;  %v862_v41 = vrot.slane %v861_v38, 4  ;;  %v868_v17 = vsel %vm461_vm1, %v391_v56, -inf }
  0xd3   : > { %v7570_v39 = vld [vmem:[#allocation2 + $0x30] sm:$0xff]  ;;  %6705 = vmatmul.msk.f32.gmra.mxu0 %vm1358_vm2, %v7568_v13  ;;  %v875_v60 = vsel %vm461_vm1, %v392_v28, -inf  ;;  %v7581_v51 = vmax.f32 %v830_v63, %v831_v49  ;;  %v845_v2 = vrot.slane %v844_v15, 1  ;;  %v856_v21 = vmax.f32 %v854_v6, %v855_v42 }
  0xd4   : > { %6714 = vmatmul.msk.f32.gmra.mxu1 %vm1358_vm2, %v7570_v39  ;;  %v7583_v20 = vmax.f32 %v837_v12, %v838_v14  ;;  %v851_v23 = vmax.f32 %v849_v5, %v850_v18  ;;  %v863_v24 = vmax.f32 %v861_v38, %v862_v41  ;;  %v869_v25 = vrot.slane %v868_v17, 4 }
  0xd5   : > { %v876_v26 = vrot.slane %v875_v60, 4  ;;  %v7586_v29 = vmax.f32 %v844_v15, %v845_v2  ;;  %v857_v3 = vrot.slane %v856_v21, 2  ;;  %v882_v0 = vsel %vm461_vm1, %v393_v37, -inf }
  0xd6   : > { %v889_v7 = vsel %vm461_vm1, %v394_v40, -inf  ;;  %v852_v31 = vrot.slane %v851_v23, 1  ;;  %v864_v10 = vrot.slane %v863_v24, 2  ;;  %v870_v33 = vmax.f32 %v868_v17, %v869_v25 }
  0xd7   : > { %v877_v11 = vmax.f32 %v875_v60, %v876_v26  ;;  %v858_v59 = vmax.f32 %v856_v21, %v857_v3  ;;  %v883_v43 = vrot.slane %v882_v0, 4  ;;  %v890_v44 = vrot.slane %v889_v7, 4 }
  0xd8   : > { %v896_v46 = vsel %vm461_vm1, %v395_v22, -inf  ;;  %v853_v19 = vmax.f32 %v851_v23, %v852_v31  ;;  %v865_v4 = vmax.f32 %v863_v24, %v864_v10  ;;  %v871_v47 = vrot.slane %v870_v33, 2 }
  0xd9   : > { %v878_v62 = vrot.slane %v877_v11, 2  ;;  %v859_v48 = vrot.slane %v858_v59, 1  ;;  %v884_v50 = vmax.f32 %v882_v0, %v883_v43  ;;  %v891_v9 = vmax.f32 %v889_v7, %v890_v44  ;;  %v399_v44 = vld [vmem:[%s7066_s16 + $0x84] sm:$0x3] }
  0xda   : > { %v897_v27 = vrot.slane %v896_v46, 4  ;;  %v866_v16 = vrot.slane %v865_v4, 1  ;;  %v872_v52 = vmax.f32 %v870_v33, %v871_v47  ;;  %v903_v32 = vsel %vm461_vm1, %v396_v35, -inf }
  0xdb   : > { %v879_v53 = vmax.f32 %v877_v11, %v878_v62  ;;  %v860_v54 = vmax.f32 %v858_v59, %v859_v48  ;;  %v885_v55 = vrot.slane %v884_v50, 2  ;;  %v892_v30 = vrot.slane %v891_v9, 2  ;;  %v398_v11 = vld [vmem:[%s7066_s16 + $0x82] sm:$0x3] }
  0xdc   : > { %v898_v56 = vmax.f32 %v896_v46, %v897_v27  ;;  %v867_v28 = vmax.f32 %v865_v4, %v866_v16  ;;  %v873_v63 = vrot.slane %v872_v52, 1  ;;  %v904_v36 = vrot.slane %v903_v32, 4  ;;  %v400_v27 = vld [vmem:[%s7066_s16 + $0x86] sm:$0x3]  ;;  %v401_v16 = vld [vmem:[%s7066_s16 + $0x88] sm:$0x3] }
  0xdd   : > { %v880_v12 = vrot.slane %v879_v53, 1  ;;  %v886_v37 = vmax.f32 %v884_v50, %v885_v55  ;;  %v893_v5 = vmax.f32 %v891_v9, %v892_v30  ;;  %v1431_v38 = vsel %vm1358_vm2, %v7553_v61, -inf  ;;  %v402_v55 = vld [vmem:[%s7066_s16 + $0x8a] sm:$0x3] }
  0xde   : > { %v899_v6 = vrot.slane %v898_v56, 2  ;;  %v874_v49 = vmax.f32 %v872_v52, %v873_v63  ;;  %v905_v15 = vmax.f32 %v903_v32, %v904_v36  ;;  %v1432_v42 = vsel %vm1358_vm2, %v860_v54, -inf }
  0xdf   : > { %v881_v14 = vmax.f32 %v879_v53, %v880_v12  ;;  %v887_v40 = vrot.slane %v886_v37, 1  ;;  %v894_v18 = vrot.slane %v893_v5, 1  ;;  %v1433_v17 = vmax.f32 %v1431_v38, %v1432_v42 }
  0xe0   : > { %v900_v41 = vmax.f32 %v898_v56, %v899_v6  ;;  %v906_v60 = vrot.slane %v905_v15, 2  ;;  %v1434_v2 = vsel %vm1358_vm2, %v7555_v45, -inf  ;;  %v1435_v21 = vsel %vm1358_vm2, %v867_v28, -inf }
  0xe1   : > { %v1437_v61 = vsel %vm1358_vm2, %v7559_v58, -inf  ;;  %v888_v22 = vmax.f32 %v886_v37, %v887_v40  ;;  %v895_v23 = vmax.f32 %v893_v5, %v894_v18  ;;  %v1436_v25 = vmax.f32 %v1434_v2, %v1435_v21  ;;  %v397_v58 = vld [vmem:[%s7066_s16 + $0x80] sm:$0x3]  ;;  %v403_v37 = vld [vmem:[%s7066_s16 + $0x8c] sm:$0x3] }
  0xe2   : > { %v901_v24 = vrot.slane %v900_v41, 1  ;;  %v907_v26 = vmax.f32 %v905_v15, %v906_v60  ;;  %v1438_v3 = vsel %vm1358_vm2, %v874_v49, -inf  ;;  %v1440_v0 = vsel %vm1358_vm2, %v7562_v1, -inf  ;;  %v404_v18 = vld [vmem:[%s7066_s16 + $0x8e] sm:$0x3] }
  0xe3   : > { %v1441_v7 = vsel %vm1358_vm2, %v881_v14, -inf  ;;  %v1439_v31 = vmax.f32 %v1437_v61, %v1438_v3  ;;  %v1443_v33 = vsel %vm1358_vm2, %v7581_v51, -inf  ;;  %v1444_v59 = vsel %vm1358_vm2, %v888_v22, -inf }
  0xe4   : > { %v902_v45 = vmax.f32 %v900_v41, %v901_v24  ;;  %v1442_v10 = vmax.f32 %v1440_v0, %v1441_v7  ;;  %v908_v35 = vrot.slane %v907_v26, 1  ;;  %v1446_v43 = vsel %vm1358_vm2, %v7583_v20, -inf }
  0xe5   : > { %v1447_v1 = vsel %vm1358_vm2, %v895_v23, -inf  ;;  %v1445_v46 = vmax.f32 %v1443_v33, %v1444_v59  ;;  %v1449_v47 = vsel %vm1358_vm2, %v7586_v29, -inf  ;;  %v1452_v50 = vsel %vm1358_vm2, %v853_v19, -inf }
  0xe6   : > { %v1448_v4 = vmax.f32 %v1446_v43, %v1447_v1  ;;  %v1450_v51 = vsel %vm1358_vm2, %v902_v45, -inf  ;;  %v909_v62 = vmax.f32 %v907_v26, %v908_v35  ;;  %v1663_v9 = vsel %vm1635_vm3, %v1436_v25, %v1433_v17  ;;  %v406_v35 = vld [vmem:[%s7066_s16 + $0x92] sm:$0x3] }
  0xe7   : > { %v1451_v48 = vmax.f32 %v1449_v47, %v1450_v51  ;;  %v1664_v20 = vsel %vm1637_vm4, %v1439_v31, %v1663_v9  ;;  %v910_v52 = vsel %vm461_vm1, %v397_v58, -inf  ;;  %v917_v53 = vsel %vm461_vm1, %v398_v11, -inf  ;;  %v405_v31 = vld [vmem:[%s7066_s16 + $0x90] sm:$0x3] }
  0xe8   : > { %v924_v32 = vsel %vm461_vm1, %v399_v44, -inf  ;;  %v1453_v29 = vsel %vm1358_vm2, %v909_v62, -inf  ;;  %v1665_v54 = vsel %vm1639_vm5, %v1442_v10, %v1664_v20  ;;  %v911_v30 = vrot.slane %v910_v52, 4  ;;  %v407_v62 = vld [vmem:[%s7066_s16 + $0x94] sm:$0x3] }
  0xe9   : > { %v918_v19 = vrot.slane %v917_v53, 4  ;;  %v1454_v56 = vmax.f32 %v1452_v50, %v1453_v29  ;;  %v1666_v28 = vsel %vm1641_vm6, %v1445_v46, %v1665_v54  ;;  %v925_v63 = vrot.slane %v924_v32, 4 }
  0xea   : > { %v931_v12 = vsel %vm461_vm1, %v400_v27, -inf  ;;  %v1667_v36 = vsel %vm1643_vm7, %v1448_v4, %v1666_v28  ;;  %v912_v5 = vmax.f32 %v910_v52, %v911_v30  ;;  %v938_v15 = vsel %vm461_vm1, %v401_v16, -inf  ;;  %v409_v30 = vld [vmem:[%s7066_s16 + $0x98] sm:$0x3] }
  0xeb   : > { %v919_v6 = vmax.f32 %v917_v53, %v918_v19  ;;  %v932_v38 = vrot.slane %v931_v12, 4  ;;  %v1668_v49 = vsel %vm1645_vm8, %v1451_v48, %v1667_v36  ;;  %v926_v14 = vmax.f32 %v924_v32, %v925_v63  ;;  %v408_v48 = vld [vmem:[%s7066_s16 + $0x96] sm:$0x3] }
  0xec   : > { %v945_v42 = vsel %vm461_vm1, %v402_v55, -inf  ;;  %v1669_v40 = vsel %vm1647_vm9, %v1454_v56, %v1668_v49  ;;  %v913_v41 = vrot.slane %v912_v5, 2  ;;  %v939_v21 = vrot.slane %v938_v15, 4 }
  0xed   : > { %v920_v17 = vrot.slane %v919_v6, 2  ;;  %v933_v60 = vmax.f32 %v931_v12, %v932_v38  ;;  %1710 = vst.msk [vmem:[#allocation2 + $0x41] sm:$0xff] %vm1358_vm2, %v1669_v40  ;;  %v927_v2 = vrot.slane %v926_v14, 2  ;;  %v946_v61 = vrot.slane %v945_v42, 4  ;;  %v410_v12 = vld [vmem:[%s7066_s16 + $0x9a] sm:$0x3] }
  0xee   : > { %v952_v22 = vsel %vm461_vm1, %v403_v37, -inf  ;;  %v914_v23 = vmax.f32 %v912_v5, %v913_v41  ;;  %v940_v0 = vmax.f32 %v938_v15, %v939_v21  ;;  %v959_v45 = vsel %vm461_vm1, %v404_v18, -inf }
  0xef   : > { %v921_v24 = vmax.f32 %v919_v6, %v920_v17  ;;  %v934_v25 = vrot.slane %v933_v60, 2  ;;  %v953_v26 = vrot.slane %v952_v22, 4  ;;  %v928_v3 = vmax.f32 %v926_v14, %v927_v2 }
  0xf0   : > { %v947_v7 = vmax.f32 %v945_v42, %v946_v61  ;;  %v915_v10 = vrot.slane %v914_v23, 1  ;;  %v941_v43 = vrot.slane %v940_v0, 2  ;;  %v960_v44 = vrot.slane %v959_v45, 4  ;;  %v411_v42 = vld [vmem:[%s7066_s16 + $0x9c] sm:$0x3] }
  0xf1   : > { %v922_v33 = vrot.slane %v921_v24, 1  ;;  %v935_v58 = vmax.f32 %v933_v60, %v934_v25  ;;  %v954_v11 = vmax.f32 %v952_v22, %v953_v26  ;;  %v929_v59 = vrot.slane %v928_v3, 1  ;;  %v412_v60 = vld [vmem:[%s7066_s16 + $0x9e] sm:$0x3] }
  0xf2   : > { %v948_v1 = vrot.slane %v947_v7, 2  ;;  %v7646_v46 = vmax.f32 %v914_v23, %v915_v10  ;;  %v942_v9 = vmax.f32 %v940_v0, %v941_v43  ;;  %v961_v20 = vmax.f32 %v959_v45, %v960_v44  ;;  %v6769_v0 = vld [vmem:[%s10063_s1 + $0x1c] sm:$0xf] }
  0xf3   : > { %v7648_v4 = vmax.f32 %v921_v24, %v922_v33  ;;  %v936_v47 = vrot.slane %v935_v58, 1  ;;  %v955_v51 = vrot.slane %v954_v11, 2  ;;  %v7652_v50 = vmax.f32 %v928_v3, %v929_v59  ;;  %v1957_v3 = vld [vmem:[#allocation2 + $0x10] sm:$0xff]  ;;  %6770 = vmatpush.msk.msra.mxu3 %vm1758_vm0, %v6769_v0 }
  0xf4   : > { %v949_v27 = vmax.f32 %v947_v7, %v948_v1  ;;  %v7654_v16 = vld [vmem:[#allocation2 + $0x42] sm:$0xff]  ;;  %v966_v54 = vsel %vm461_vm1, %v405_v31, -inf  ;;  %v973_v55 = vsel %vm461_vm1, %v406_v35, -inf  ;;  %v943_v19 = vrot.slane %v942_v9, 1  ;;  %6731 = vmatmul.msk.f32.vlgmr.msrb.gmra.mxu3 %vm1358_vm2, %v1957_v3  ;;  %v6759_v33 = vld [vmem:[%s10063_s1 + $0x18] sm:$0xf] }
  0xf5   : > { %v7656_v52 = vld [vmem:[#allocation2 + $0x41] sm:$0xff]  ;;  %v7660_v32 = vmax.f32 %v935_v58, %v936_v47  ;;  %v956_v29 = vmax.f32 %v954_v11, %v955_v51  ;;  %6725 = vmatmul.msk.f32.gmra.mxu2 %vm1358_vm2, %v7654_v16  ;;  %v962_v28 = vrot.slane %v961_v20, 2  ;;  %v967_v63 = vrot.slane %v966_v54, 4 }
  0xf6   : > { %v7658_v53 = vld [vmem:[#allocation2 + $0x40] sm:$0xff]  ;;  %6706 = vmatmul.msk.f32.gmra.mxu0 %vm1358_vm2, %v7656_v52  ;;  %v950_v56 = vrot.slane %v949_v27, 1  ;;  %v974_v37 = vrot.slane %v973_v55, 4  ;;  %v980_v5 = vsel %vm461_vm1, %v407_v62, -inf  ;;  %v987_v6 = vsel %vm461_vm1, %v408_v48, -inf  ;;  %6760 = vmatpush.msk.msrb.mxu2 %vm1758_vm0, %v6759_v33 }
  0xf7   : > { %6715 = vmatmul.msk.f32.gmra.mxu1 %vm1358_vm2, %v7658_v53  ;;  %v957_v36 = vrot.slane %v956_v29, 1  ;;  %v7674_v38 = vmax.f32 %v942_v9, %v943_v19  ;;  %v963_v14 = vmax.f32 %v961_v20, %v962_v28  ;;  %v968_v15 = vmax.f32 %v966_v54, %v967_v63 }
  0xf8   : > { %v7676_v49 = vmax.f32 %v949_v27, %v950_v56  ;;  %v975_v18 = vmax.f32 %v973_v55, %v974_v37  ;;  %v981_v41 = vrot.slane %v980_v5, 4  ;;  %v988_v17 = vrot.slane %v987_v6, 4  ;;  %v6779_v37 = vld [vmem:[%s10063_s1 + $0x20] sm:$0xf] }
  0xf9   : > { %v7679_v40 = vmax.f32 %v956_v29, %v957_v36  ;;  %v964_v2 = vrot.slane %v963_v14, 1  ;;  %v969_v21 = vrot.slane %v968_v15, 2  ;;  %v994_v61 = vsel %vm461_vm1, %v409_v30, -inf  ;;  %6780 = vmatpush.msk.msra.mxu0 %vm1758_vm0, %v6779_v37 }
  0xfa   : > { %v1001_v22 = vsel %vm461_vm1, %v410_v12, -inf  ;;  %v976_v23 = vrot.slane %v975_v18, 2  ;;  %v982_v24 = vmax.f32 %v980_v5, %v981_v41  ;;  %v989_v25 = vmax.f32 %v987_v6, %v988_v17 }
  0xfb   : > { %v995_v26 = vrot.slane %v994_v61, 4  ;;  %v7687_v7 = vmax.f32 %v963_v14, %v964_v2  ;;  %v970_v45 = vmax.f32 %v968_v15, %v969_v21  ;;  %v1002_v31 = vrot.slane %v1001_v22, 4 }
  0xfc   : > { %v1008_v10 = vsel %vm461_vm1, %v411_v42, -inf  ;;  %v977_v58 = vmax.f32 %v975_v18, %v976_v23  ;;  %v983_v11 = vrot.slane %v982_v24, 2  ;;  %v990_v35 = vrot.slane %v989_v25, 2  ;;  %v7703_v42 = vld [vmem:[#allocation2 + $0x20] sm:$0xff]  ;;  %v6749_v18 = vld [vmem:[%s10063_s1 + $0x14] sm:$0xf] }
  0xfd   : > { %v996_v59 = vmax.f32 %v994_v61, %v995_v26  ;;  %v971_v43 = vrot.slane %v970_v45, 1  ;;  %v1003_v1 = vmax.f32 %v1001_v22, %v1002_v31  ;;  %v1009_v44 = vrot.slane %v1008_v10, 4  ;;  %6732 = vmatmul.msk.f32.gmra.mxu3 %vm1358_vm2, %v7703_v42  ;;  %6750 = vmatpush.msk.msrb.mxu1 %vm1758_vm0, %v6749_v18 }
  0xfe   : > { %v1015_v47 = vsel %vm461_vm1, %v412_v60, -inf  ;;  %v978_v51 = vrot.slane %v977_v58, 1  ;;  %v984_v62 = vmax.f32 %v982_v24, %v983_v11  ;;  %v991_v48 = vmax.f32 %v989_v25, %v990_v35 }
  0xff   : > { %v997_v9 = vrot.slane %v996_v59, 2  ;;  %v972_v27 = vmax.f32 %v970_v45, %v971_v43  ;;  %v1004_v20 = vrot.slane %v1003_v1, 2  ;;  %v1010_v29 = vmax.f32 %v1008_v10, %v1009_v44 }
 0x100   : > { %v1016_v54 = vrot.slane %v1015_v47, 4  ;;  %v979_v55 = vmax.f32 %v977_v58, %v978_v51  ;;  %v985_v30 = vrot.slane %v984_v62, 1  ;;  %v992_v19 = vrot.slane %v991_v48, 1 }
 0x101   : > { %v998_v56 = vmax.f32 %v996_v59, %v997_v9  ;;  %v1005_v28 = vmax.f32 %v1003_v1, %v1004_v20  ;;  %v1011_v63 = vrot.slane %v1010_v29, 2  ;;  %v1455_v36 = vsel %vm1358_vm2, %v7646_v46, -inf }
 0x102   : > { %v1017_v12 = vmax.f32 %v1015_v47, %v1016_v54  ;;  %v986_v5 = vmax.f32 %v984_v62, %v985_v30  ;;  %v993_v6 = vmax.f32 %v991_v48, %v992_v19  ;;  %v1456_v15 = vsel %vm1358_vm2, %v972_v27, -inf  ;;  %v446_v54 = vld [vmem:[%s7066_s16 + $0xe2] sm:$0x3]  ;;  %v448_v30 = vld [vmem:[%s7066_s16 + $0xe6] sm:$0x3] }
 0x103   : > { %v999_v14 = vrot.slane %v998_v56, 1  ;;  %v1006_v41 = vrot.slane %v1005_v28, 1  ;;  %v1012_v17 = vmax.f32 %v1010_v29, %v1011_v63  ;;  %v1457_v60 = vmax.f32 %v1455_v36, %v1456_v15  ;;  %v445_v29 = vld [vmem:[%s7066_s16 + $0xe0] sm:$0x3]  ;;  %v450_v36 = vld [vmem:[%s7066_s16 + $0xea] sm:$0x3] }
 0x104   : > { %v1018_v46 = vrot.slane %v1017_v12, 2  ;;  %v1458_v21 = vsel %vm1358_vm2, %v7648_v4, -inf  ;;  %v1459_v61 = vsel %vm1358_vm2, %v979_v55, -inf  ;;  %v1461_v22 = vsel %vm1358_vm2, %v7652_v50, -inf  ;;  %v447_v55 = vld [vmem:[%s7066_s16 + $0xe4] sm:$0x3] }
 0x105   : > { %v1000_v2 = vmax.f32 %v998_v56, %v999_v14  ;;  %v1007_v23 = vmax.f32 %v1005_v28, %v1006_v41  ;;  %v1013_v24 = vrot.slane %v1012_v17, 1  ;;  %v1460_v26 = vmax.f32 %v1458_v21, %v1459_v61  ;;  %6733 = vmatmul.msk.f32.gmra.mxu3 %vm1358_vm2, %v7570_v39 }
 0x106   : > { %v1019_v25 = vmax.f32 %v1017_v12, %v1018_v46  ;;  %v1462_v3 = vsel %vm1358_vm2, %v986_v5, -inf  ;;  %v1464_v0 = vsel %vm1358_vm2, %v7660_v32, -inf  ;;  %v1465_v45 = vsel %vm1358_vm2, %v993_v6, -inf  ;;  %v449_v12 = vld [vmem:[%s7066_s16 + $0xe8] sm:$0x3] }
 0x107   : > { %v1467_v31 = vsel %vm1358_vm2, %v7674_v38, -inf  ;;  %v1014_v4 = vmax.f32 %v1012_v17, %v1013_v24  ;;  %v1463_v33 = vmax.f32 %v1461_v22, %v1462_v3  ;;  %v1466_v58 = vmax.f32 %v1464_v0, %v1465_v45 }
 0x108   : > { %v1020_v10 = vrot.slane %v1019_v25, 1  ;;  %v1468_v50 = vsel %vm1358_vm2, %v1000_v2, -inf  ;;  %v1470_v11 = vsel %vm1358_vm2, %v7676_v49, -inf  ;;  %v1471_v35 = vsel %vm1358_vm2, %v1007_v23, -inf  ;;  %v452_v2 = vld [vmem:[%s7066_s16 + $0xee] sm:$0x3] }
 0x109   : > { %v1473_v59 = vsel %vm1358_vm2, %v7679_v40, -inf  ;;  %v1469_v43 = vmax.f32 %v1467_v31, %v1468_v50  ;;  %v1474_v1 = vsel %vm1358_vm2, %v1014_v4, -inf  ;;  %v1472_v38 = vmax.f32 %v1470_v11, %v1471_v35  ;;  %v2043_v11 = vld [vmem:[#allocation2 + $0x11] sm:$0xff] }
 0x10a   : > { %v1021_v32 = vmax.f32 %v1019_v25, %v1020_v10  ;;  %v1476_v44 = vsel %vm1358_vm2, %v7687_v7, -inf  ;;  %v1670_v47 = vsel %vm1635_vm3, %v1460_v26, %v1457_v60  ;;  %v1475_v49 = vmax.f32 %v1473_v59, %v1474_v1  ;;  %v451_v60 = vld [vmem:[%s7066_s16 + $0xec] sm:$0x3]  ;;  %v2129_v1 = vld [vmem:[#allocation2 + $0x12] sm:$0xff] }
 0x10b   : > { %v1671_v62 = vsel %vm1637_vm4, %v1463_v33, %v1670_v47  ;;  %v1246_v19 = vsel %vm461_vm1, %v445_v29, -inf  ;;  %v1253_v56 = vsel %vm461_vm1, %v446_v54, -inf  ;;  %v1260_v37 = vsel %vm461_vm1, %v447_v55, -inf }
 0x10c   : > { %v1477_v51 = vsel %vm1358_vm2, %v1021_v32, -inf  ;;  %v1672_v48 = vsel %vm1639_vm5, %v1466_v58, %v1671_v62  ;;  %v1247_v28 = vrot.slane %v1246_v19, 4  ;;  %v1254_v63 = vrot.slane %v1253_v56, 4 }
 0x10d   : > { %v1478_v40 = vmax.f32 %v1476_v44, %v1477_v51  ;;  %v1673_v9 = vsel %vm1641_vm6, %v1469_v43, %v1672_v48  ;;  %6734 = vmatmul.msk.f32.gmra.mxu3 %vm1358_vm2, %v7658_v53  ;;  %v1267_v5 = vsel %vm461_vm1, %v448_v30, -inf  ;;  %v1261_v17 = vrot.slane %v1260_v37, 4  ;;  %v454_v44 = vld [vmem:[%s7066_s16 + $0xf2] sm:$0x3] }
 0x10e   : > { %v1674_v7 = vsel %vm1643_vm7, %v1472_v38, %v1673_v9  ;;  %v1248_v18 = vmax.f32 %v1246_v19, %v1247_v28  ;;  %v1255_v41 = vmax.f32 %v1253_v56, %v1254_v63  ;;  %v1268_v46 = vrot.slane %v1267_v5, 4  ;;  %v453_v38 = vld [vmem:[%s7066_s16 + $0xf0] sm:$0x3]  ;;  %v7787_v19 = vld [vmem:[#allocation2 + $0x60] sm:$0xff] }
 0x10f   : > { %v1675_v27 = vsel %vm1645_vm8, %v1475_v49, %v1674_v7  ;;  %v1262_v22 = vmax.f32 %v1260_v37, %v1261_v17  ;;  %v1274_v24 = vsel %vm461_vm1, %v449_v12, -inf  ;;  %v1281_v25 = vsel %vm461_vm1, %v450_v36, -inf }
 0x110   : > { %v1676_v20 = vsel %vm1647_vm9, %v1478_v40, %v1675_v27  ;;  %v1249_v21 = vrot.slane %v1248_v18, 2  ;;  %v1256_v61 = vrot.slane %v1255_v41, 2  ;;  %v1269_v23 = vmax.f32 %v1267_v5, %v1268_v46  ;;  %v455_v40 = vld [vmem:[%s7066_s16 + $0xf4] sm:$0x3] }
 0x111   : > { %1711 = vst.msk [vmem:[#allocation2 + $0x51] sm:$0xff] %vm1358_vm2, %v1676_v20  ;;  %v1288_v26 = vsel %vm461_vm1, %v451_v60, -inf  ;;  %v1295_v3 = vsel %vm461_vm1, %v452_v2, -inf  ;;  %v1263_v31 = vrot.slane %v1262_v22, 2  ;;  %v1275_v10 = vrot.slane %v1274_v24, 4 }
 0x112   : > { %v1250_v0 = vmax.f32 %v1248_v18, %v1249_v21  ;;  %v1257_v45 = vmax.f32 %v1255_v41, %v1256_v61  ;;  %v1270_v4 = vrot.slane %v1269_v23, 2  ;;  %v1282_v33 = vrot.slane %v1281_v25, 4  ;;  %v456_v20 = vld [vmem:[%s7066_s16 + $0xf6] sm:$0x3]  ;;  %v7797_v18 = vld [vmem:[#allocation2 + $0x21] sm:$0xff] }
 0x113   : > { %v1289_v58 = vrot.slane %v1288_v26, 4  ;;  %v1296_v50 = vrot.slane %v1295_v3, 4  ;;  %v1264_v32 = vmax.f32 %v1262_v22, %v1263_v31  ;;  %v1276_v47 = vmax.f32 %v1274_v24, %v1275_v10  ;;  %v457_v41 = vld [vmem:[%s7066_s16 + $0xf8] sm:$0x3]  ;;  %v458_v21 = vld [vmem:[%s7066_s16 + $0xfa] sm:$0x3] }
 0x114   : > { %v1251_v35 = vrot.slane %v1250_v0, 1  ;;  %v1258_v59 = vrot.slane %v1257_v45, 1  ;;  %v1271_v43 = vmax.f32 %v1269_v23, %v1270_v4  ;;  %v1283_v49 = vmax.f32 %v1281_v25, %v1282_v33  ;;  %v459_v25 = vld [vmem:[%s7066_s16 + $0xfc] sm:$0x3]  ;;  %v7805_v4 = vld [vmem:[#allocation2 + $0x22] sm:$0xff] }
 0x115   : > { %v1290_v51 = vmax.f32 %v1288_v26, %v1289_v58  ;;  %v1297_v62 = vmax.f32 %v1295_v3, %v1296_v50  ;;  %v1265_v7 = vrot.slane %v1264_v32, 1  ;;  %v1277_v29 = vrot.slane %v1276_v47, 2  ;;  %v460_v26 = vld [vmem:[%s7066_s16 + $0xfe] sm:$0x3] }
 0x116   : > { %v7778_v48 = vmax.f32 %v1250_v0, %v1251_v35  ;;  %v7780_v9 = vmax.f32 %v1257_v45, %v1258_v59  ;;  %v1272_v27 = vrot.slane %v1271_v43, 1  ;;  %v1284_v54 = vrot.slane %v1283_v49, 2 }
 0x117   : > { %v1291_v55 = vrot.slane %v1290_v51, 2  ;;  %v1298_v30 = vrot.slane %v1297_v62, 2  ;;  %v7789_v56 = vmax.f32 %v1264_v32, %v1265_v7  ;;  %v1302_v63 = vsel %vm461_vm1, %v453_v38, -inf }
 0x118   : > { %v7755_v6 = vld [vmem:[#allocation2 + $0x52] sm:$0xff]  ;;  %v7791_v28 = vmax.f32 %v1271_v43, %v1272_v27  ;;  %v1278_v12 = vmax.f32 %v1276_v47, %v1277_v29  ;;  %v1285_v36 = vmax.f32 %v1283_v49, %v1284_v54  ;;  %v1303_v17 = vrot.slane %v1302_v63, 4 }
 0x119   : > { %v7757_v14 = vld [vmem:[#allocation2 + $0x51] sm:$0xff]  ;;  %6726 = vmatmul.msk.f32.gmra.mxu2 %vm1358_vm2, %v7755_v6  ;;  %v1292_v37 = vmax.f32 %v1290_v51, %v1291_v55  ;;  %v1299_v5 = vmax.f32 %v1297_v62, %v1298_v30  ;;  %v1316_v60 = vsel %vm461_vm1, %v455_v40, -inf  ;;  %v1323_v2 = vsel %vm461_vm1, %v456_v20, -inf }
 0x11a   : > { %v7759_v15 = vld [vmem:[#allocation2 + $0x50] sm:$0xff]  ;;  %6707 = vmatmul.msk.f32.gmra.mxu0 %vm1358_vm2, %v7757_v14  ;;  %v1279_v61 = vrot.slane %v1278_v12, 1  ;;  %v1286_v22 = vrot.slane %v1285_v36, 1  ;;  %v1304_v3 = vmax.f32 %v1302_v63, %v1303_v17  ;;  %v1317_v45 = vrot.slane %v1316_v60, 4 }
 0x11b   : > { %6716 = vmatmul.msk.f32.gmra.mxu1 %vm1358_vm2, %v7759_v15  ;;  %6735 = vmatmul.msk.f32.gmra.mxu3 %vm1358_vm2, %v7759_v15  ;;  %v1293_v23 = vrot.slane %v1292_v37, 1  ;;  %v1300_v24 = vrot.slane %v1299_v5, 1  ;;  %v1324_v31 = vrot.slane %v1323_v2, 4  ;;  %v1330_v43 = vsel %vm461_vm1, %v457_v41, -inf  ;;  %v7825_v47 = vld [vmem:[#allocation2 + $0x70] sm:$0xff] }
 0x11c   : > { %v7807_v10 = vmax.f32 %v1278_v12, %v1279_v61  ;;  %v7809_v33 = vmax.f32 %v1285_v36, %v1286_v22  ;;  %v1318_v59 = vmax.f32 %v1316_v60, %v1317_v45  ;;  %v1344_v38 = vsel %vm461_vm1, %v459_v25, -inf }
 0x11d   : > { %v7811_v58 = vmax.f32 %v1292_v37, %v1293_v23  ;;  %v7813_v50 = vmax.f32 %v1299_v5, %v1300_v24  ;;  %v1325_v32 = vmax.f32 %v1323_v2, %v1324_v31  ;;  %v1331_v40 = vrot.slane %v1330_v43, 4 }
 0x11e   : > { %v1319_v62 = vrot.slane %v1318_v59, 2  ;;  %v1345_v27 = vrot.slane %v1344_v38, 4  ;;  %v1527_v23 = vsel %vm1358_vm2, %v7778_v48, -inf }
 0x11f   : > { %v1332_v63 = vmax.f32 %v1330_v43, %v1331_v40 }
 0x120   : > { %v1320_v55 = vmax.f32 %v1318_v59, %v1319_v62  ;;  %v1346_v12 = vmax.f32 %v1344_v38, %v1345_v27 }
 0x121   : > { %6761 = vmatmul.msk.f32.vlgmr.msrb.gmra.mxu2 %vm1358_vm2, %v7703_v42  ;;  %v1309_v42 = vsel %vm461_vm1, %v454_v44, -inf  ;;  %v1351_v44 = vsel %vm461_vm1, %v460_v26, -inf }
 0x122   : > { %6741 = vmatmul.msk.f32.vlgmr.msrb.gmra.mxu0 %vm1358_vm2, %v2043_v11  ;;  %v1310_v46 = vrot.slane %v1309_v42, 4  ;;  %v1305_v11 = vrot.slane %v1304_v3, 2  ;;  %v1352_v20 = vrot.slane %v1351_v44, 4  ;;  %v1321_v41 = vrot.slane %v1320_v55, 1 }
 0x123   : > { %6751 = vmatmul.msk.f32.vlgmr.msrb.gmra.mxu1 %vm1358_vm2, %v2129_v1  ;;  %6736 = vmatmul.msk.f32.gmra.mxu3 %vm1358_vm2, %v7787_v19  ;;  %v1337_v1 = vsel %vm461_vm1, %v458_v21, -inf  ;;  %v1347_v2 = vrot.slane %v1346_v12, 2 }
 0x124   : > { %v1311_v0 = vmax.f32 %v1309_v42, %v1310_v46  ;;  %v1306_v49 = vmax.f32 %v1304_v3, %v1305_v11  ;;  %v1338_v7 = vrot.slane %v1337_v1, 4  ;;  %v1353_v36 = vmax.f32 %v1351_v44, %v1352_v20 }
 0x125   : > { %v1333_v46 = vrot.slane %v1332_v63, 2  ;;  %v1322_v61 = vmax.f32 %v1320_v55, %v1321_v41  ;;  %v1348_v3 = vmax.f32 %v1346_v12, %v1347_v2  ;;  %v1533_v11 = vsel %vm1358_vm2, %v7789_v56, -inf  ;;  %v6986_v41 = vld [vmem:[#allocation2 + $0x62] sm:$0xff] }
 0x126   : > { %v1312_v35 = vrot.slane %v1311_v0, 2  ;;  %v1307_v29 = vrot.slane %v1306_v49, 1  ;;  %v1339_v42 = vmax.f32 %v1337_v1, %v1338_v7  ;;  %v1354_v21 = vrot.slane %v1353_v36, 2 }
 0x127   : > { %v1334_v25 = vmax.f32 %v1332_v63, %v1333_v46  ;;  %v1349_v59 = vrot.slane %v1348_v3, 1  ;;  %v1534_v43 = vsel %vm1358_vm2, %v1322_v61, -inf  ;;  %v1539_v56 = vsel %vm1358_vm2, %v7807_v10, -inf  ;;  %v2223_v46 = vld [vmem:[#allocation2 + $0x90] sm:$0xff] }
 0x128   : > { %v1313_v51 = vmax.f32 %v1311_v0, %v1312_v35  ;;  %v1308_v37 = vmax.f32 %v1306_v49, %v1307_v29  ;;  %v1340_v60 = vrot.slane %v1339_v42, 2  ;;  %v1530_v0 = vsel %vm1358_vm2, %v7780_v9, -inf  ;;  %v2389_v61 = vld [vmem:[#allocation2 + $0x32] sm:$0xff] }
 0x129   : > { %6762 = vmatmul.msk.f32.gmra.mxu2 %vm1358_vm2, %v7570_v39  ;;  %v1326_v39 = vrot.slane %v1325_v32, 2  ;;  %v1355_v45 = vmax.f32 %v1353_v36, %v1354_v21  ;;  %v1536_v9 = vsel %vm1358_vm2, %v7791_v28, -inf  ;;  %v1350_v44 = vmax.f32 %v1348_v3, %v1349_v59  ;;  %v2048_v36 = vld [vmem:[#allocation2 + $0x61] sm:$0xff]  ;;  %v7904_v21 = vpop.f32.mrf.mxu0 }
 0x12a   : > { %6742 = vmatmul.msk.f32.gmra.mxu0 %vm1358_vm2, %v7797_v18  ;;  %v1314_v54 = vrot.slane %v1313_v51, 1  ;;  %v1528_v24 = vsel %vm1358_vm2, %v1308_v37, -inf  ;;  %v1341_v26 = vmax.f32 %v1339_v42, %v1340_v60  ;;  %v1535_v49 = vmax.f32 %v1533_v11, %v1534_v43  ;;  %v6789_v3 = vld [vmem:[%s10066_s4 + $0x8] sm:$0xff] }
 0x12b   : > { %6752 = vmatmul.msk.f32.gmra.mxu1 %vm1358_vm2, %v7805_v4  ;;  %6737 = vmatmul.msk.f32.gmra.mxu3 %vm1358_vm2, %v7825_v47  ;;  %v1327_v30 = vmax.f32 %v1325_v32, %v1326_v39  ;;  %v1529_v31 = vmax.f32 %v1527_v23, %v1528_v24  ;;  %v1356_v32 = vrot.slane %v1355_v45, 1  ;;  %v1542_v39 = vsel %vm1358_vm2, %v7809_v33, -inf }
 0x12c   : > { %v1315_v5 = vmax.f32 %v1313_v51, %v1314_v54  ;;  %v1342_v35 = vrot.slane %v1341_v26, 1  ;;  %v1545_v28 = vsel %vm1358_vm2, %v7811_v58, -inf  ;;  %v1546_v27 = vsel %vm1358_vm2, %v1350_v44, -inf  ;;  %2595 = vmatpush.msra.mxu1 %v6789_v3 }
 0x12d   : > { %v1328_v17 = vrot.slane %v1327_v30, 1  ;;  %v1357_v51 = vmax.f32 %v1355_v45, %v1356_v32  ;;  %v1548_v29 = vsel %vm1358_vm2, %v7813_v50, -inf  ;;  %v1547_v58 = vmax.f32 %v1545_v28, %v1546_v27  ;;  %v1925_v45 = vpop.f32.mrf.mxu2 }
 0x12e   : > { %v1531_v48 = vsel %vm1358_vm2, %v1315_v5, -inf  ;;  %v1343_v38 = vmax.f32 %v1341_v26, %v1342_v35  ;;  %v7883_v5 = vpop.f32.mrf.mxu3  ;;  %v2309_v26 = vld [vmem:[#allocation2 + $0x91] sm:$0xff] }
 0x12f   : > { %v1329_v22 = vmax.f32 %v1327_v30, %v1328_v17  ;;  %v1549_v33 = vsel %vm1358_vm2, %v1357_v51, -inf }
 0x130   : > { %v1543_v7 = vsel %vm1358_vm2, %v1343_v38, -inf  ;;  %v1550_v30 = vmax.f32 %v1548_v29, %v1549_v33 }
 0x131   : > { %6763 = vmatmul.msk.f32.gmra.mxu2 %vm1358_vm2, %v7658_v53  ;;  %v1335_v53 = vrot.slane %v1334_v25, 1  ;;  %v1537_v1 = vsel %vm1358_vm2, %v1329_v22, -inf  ;;  %v1544_v10 = vmax.f32 %v1542_v39, %v1543_v7  ;;  %v7911_v23 = vpop.f32.mrf.mxu0  ;;  %v6806_v7 = vld [vmem:[%s10066_s4 + $0x10] sm:$0xff] }
 0x132   : > { %6743 = vmatmul.msk.f32.gmra.mxu0 %vm1358_vm2, %v7568_v13  ;;  %v1532_v13 = vmax.f32 %v1530_v0, %v1531_v48  ;;  %v1538_v62 = vmax.f32 %v1536_v9, %v1537_v1  ;;  %2735 = vmatpush.msrb.mxu3 %v6806_v7 }
 0x133   : > { %6753 = vmatmul.msk.f32.gmra.mxu1 %vm1358_vm2, %v7566_v8  ;;  %v1336_v8 = vmax.f32 %v1334_v25, %v1335_v53  ;;  %v2395_v53 = vld [vmem:[#allocation2 + $0x92] sm:$0xff] }
 0x134   : > { %v1691_v54 = vsel %vm1635_vm3, %v1532_v13, %v1529_v31 }
 0x135   : > { %v1540_v40 = vsel %vm1358_vm2, %v1336_v8, -inf  ;;  %v1692_v55 = vsel %vm1637_vm4, %v1535_v49, %v1691_v54  ;;  %v7946_v35 = vpop.f32.mrf.mxu2 }
 0x136   : > { %v1541_v20 = vmax.f32 %v1539_v56, %v1540_v40  ;;  %v1693_v50 = vsel %vm1639_vm5, %v1538_v62, %v1692_v55  ;;  %v7892_v17 = vpop.f32.mrf.mxu3  ;;  %v2545_v40 = vld [vmem:[%s10066_s4] sm:$0xff]  ;;  %v6815_v55 = vld [vmem:[%s10066_s4 + $0x18] sm:$0xff] }
 0x137   : > { %2660 = vmatpush.msra.mxu2 %v2545_v40  ;;  %2818 = vmatpush.msrb.mxu0 %v6815_v55 }
 0x138   : > { %v1694_v63 = vsel %vm1641_vm6, %v1541_v20, %v1693_v50  ;;  %v2546_v50 = vld [vmem:[#allocation3 + $0x1] sm:$0xff] }
 0x139   : > { %6764 = vmatmul.msk.f32.gmra.mxu2 %vm1358_vm2, %v7759_v15  ;;  %v1695_v15 = vsel %vm1643_vm7, %v1544_v10, %v1694_v63  ;;  %v2537_v10 = vld [vmem:[#allocation3] sm:$0xff] }
 0x13a   : > { %6744 = vmatmul.msk.f32.gmra.mxu0 %vm1358_vm2, %v7656_v52  ;;  %v1696_v42 = vsel %vm1645_vm8, %v1547_v58, %v1695_v15  ;;  %v2686_v58 = vld [vmem:[#allocation3 + $0x2] sm:$0xff] }
 0x13b   : > { %6754 = vmatmul.msk.f32.gmra.mxu1 %vm1358_vm2, %v7654_v16  ;;  %v1697_v12 = vsel %vm1647_vm9, %v1550_v30, %v1696_v42 }
 0x13c   : > { %1714 = vst.msk [vmem:[#allocation2 + $0x81] sm:$0xff] %vm1358_vm2, %v1697_v12 }
 0x13d   : > { %v7953_v32 = vpop.f32.mrf.mxu2 }
 0x141   : > { %6765 = vmatmul.msk.f32.gmra.mxu2 %vm1358_vm2, %v7787_v19  ;;  %v2049_v19 = vld [vmem:[#allocation2 + $0x71] sm:$0xff] }
 0x142   : > { %6745 = vmatmul.msk.f32.gmra.mxu0 %vm1358_vm2, %v7757_v14 }
 0x143   : > { %6755 = vmatmul.msk.f32.gmra.mxu1 %vm1358_vm2, %v7755_v6  ;;  %v2222_v37 = vld [vmem:[#allocation2 + $0x80] sm:$0xff] }
 0x144   : > { %6738 = vmatmul.msk.f32.gmra.mxu3 %vm1358_vm2, %v2222_v37  ;;  %v2050_v60 = vld [vmem:[#allocation2 + $0x81] sm:$0xff] }
 0x145   : > { %v2136_v2 = vld [vmem:[#allocation2 + $0x82] sm:$0xff] }
 0x149   : > { %6766 = vmatmul.msk.f32.gmra.mxu2 %vm1358_vm2, %v7825_v47  ;;  %v2303_v47 = vld [vmem:[#allocation2 + $0x31] sm:$0xff] }
 0x14a   : > { %6746 = vmatmul.msk.f32.gmra.mxu0 %vm1358_vm2, %v2048_v36 }
 0x14b   : > { %6756 = vmatmul.msk.f32.gmra.mxu1 %vm1358_vm2, %v6986_v41  ;;  %v6824_v41 = vld [vmem:[%s10066_s4 + $0x20] sm:$0xff] }
 0x14c   : > { %6771 = vmatmul.msk.f32.vlgmr.msra.gmra.mxu3 %vm1358_vm2, %v7797_v18  ;;  %v7898_v18 = vpop.f32.mrf.mxu3  ;;  %2901 = vmatpush.msrb.mxu1 %v6824_v41 }
 0x151   : > { %6767 = vmatmul.msk.f32.gmra.mxu2 %vm1358_vm2, %v2222_v37 }
 0x152   : > { %6747 = vmatmul.msk.f32.gmra.mxu0 %vm1358_vm2, %v2049_v19 }
 0x153   : > { %6757 = vmatmul.msk.f32.gmra.mxu1 %vm1358_vm2, %v7590_v57 }
 0x154   : > { %6772 = vmatmul.msk.f32.gmra.mxu3 %vm1358_vm2, %v2303_v47  ;;  %v7906_v22 = vpop.f32.mrf.mxu3 }
 0x155   : > { %v7961_v8 = vpop.f32.mrf.mxu2 }
 0x159   : > { %6768 = vmatmul.msk.f32.gmra.mxu2 %vm1358_vm2, %v2223_v46 }
 0x15a   : > { %6748 = vmatmul.msk.f32.gmra.mxu0 %vm1358_vm2, %v2050_v60 }
 0x15b   : > { %6758 = vmatmul.msk.f32.gmra.mxu1 %vm1358_vm2, %v2136_v2 }
 0x15c   : > { %6773 = vmatmul.msk.f32.gmra.mxu3 %vm1358_vm2, %v7656_v52  ;;  %v7916_v52 = vpop.f32.mrf.mxu3 }
 0x161   : > { %6798 = vmatmul.msk.f32.vlgmr.msra.gmra.mxu2 %vm2506_vm10, %v2537_v10 }
 0x162   : > { %6781 = vmatmul.msk.f32.vlgmr.msra.gmra.mxu0 %vm1358_vm2, %v7805_v4  ;;  %v7918_v4 = vpop.f32.mrf.mxu0 }
 0x163   : > { %6790 = vmatmul.msk.f32.vlgmr.msra.gmra.mxu1 %vm2506_vm10, %v2546_v50 }
 0x164   : > { %6774 = vmatmul.msk.f32.gmra.mxu3 %vm1358_vm2, %v7757_v14  ;;  %v7923_v24 = vpop.f32.mrf.mxu3  ;;  %v2392_v14 = vld [vmem:[#allocation2 + $0x62] sm:$0xff] }
 0x16a   : > { %6782 = vmatmul.msk.f32.gmra.mxu0 %vm1358_vm2, %v2389_v61  ;;  %v7927_v25 = vpop.f32.mrf.mxu0 }
 0x16c   : > { %6775 = vmatmul.msk.f32.gmra.mxu3 %vm1358_vm2, %v2048_v36 }
 0x172   : > { %6783 = vmatmul.msk.f32.gmra.mxu0 %vm1358_vm2, %v7654_v16 }
 0x173   : > { %v7937_v0 = vpop.f32.mrf.mxu0 }
 0x174   : > { %6776 = vmatmul.msk.f32.gmra.mxu3 %vm1358_vm2, %v2049_v19 }
 0x177   : > { %v7929_v16 = vpop.f32.mrf.mxu3 }
 0x178   : > { %v7969_v51 = vpop.f32.mrf.mxu2 }
 0x17a   : > { %6784 = vmatmul.msk.f32.gmra.mxu0 %vm1358_vm2, %v7755_v6  ;;  %v1847_v6 = vpop.f32.mrf.mxu1 }
 0x17b   : > { %v1848_v54 = vadd.f32 %v1847_v6, %v7904_v21 }
 0x17c   : > { %6777 = vmatmul.msk.f32.gmra.mxu3 %vm1358_vm2, %v2050_v60 }
 0x17d   : > { %v1949_v63 = vadd.f32 %v1925_v45, %v1848_v54 }
 0x17f   : > { %v2035_v42 = vadd.f32 %v7929_v16, %v1949_v63 }
 0x180   : > { %v7939_v31 = vpop.f32.mrf.mxu3 }
 0x182   : > { %6785 = vmatmul.msk.f32.gmra.mxu0 %vm1358_vm2, %v2392_v14  ;;  %v7942_v48 = vpop.f32.mrf.mxu1 }
 0x183   : > { %v1851_v37 = vadd.f32 %v7942_v48, %v7911_v23 }
 0x184   : > { %6778 = vmatmul.msk.f32.gmra.mxu3 %vm1358_vm2, %v2309_v26 }
 0x185   : > { %v1950_v46 = vadd.f32 %v7946_v35, %v1851_v37 }
 0x187   : > { %v2036_v21 = vadd.f32 %v7939_v31, %v1950_v46 }
 0x188   : > { %v7949_v59 = vpop.f32.mrf.mxu3 }
 0x18a   : > { %6786 = vmatmul.msk.f32.gmra.mxu0 %vm1358_vm2, %v7590_v57  ;;  %v7951_v57 = vpop.f32.mrf.mxu1 }
 0x18b   : > { %v1854_v23 = vadd.f32 %v7951_v57, %v7918_v4 }
 0x18c   : > { %6807 = vmatmul.msk.f32.vlgmr.msrb.gmra.mxu3 %vm2506_vm10, %v2686_v58 }
 0x18d   : > { %v1951_v3 = vadd.f32 %v7953_v32, %v1854_v23 }
 0x18f   : > { %v2037_v48 = vadd.f32 %v7949_v59, %v1951_v3  ;;  %v8095_v59 = vld [vmem:[%s10065_s3] ss:$0 sm:$0xff] }
 0x190   : > { %v7955_v43 = vpop.f32.mrf.mxu3 }
 0x192   : > { %6787 = vmatmul.msk.f32.gmra.mxu0 %vm1358_vm2, %v2136_v2  ;;  %v7959_v1 = vpop.f32.mrf.mxu1 }
 0x193   : > { %v1857_v57 = vadd.f32 %v7959_v1, %v7927_v25 }
 0x195   : > { %v1952_v1 = vadd.f32 %v7961_v8, %v1857_v57 }
 0x197   : > { %v7944_v11 = vpop.f32.mrf.mxu0  ;;  %v2038_v54 = vadd.f32 %v7955_v43, %v1952_v1 }
 0x19a   : > { %6788 = vmatmul.msk.f32.gmra.mxu0 %vm1358_vm2, %v2395_v53  ;;  %v7967_v49 = vpop.f32.mrf.mxu1  ;;  %v8084_v53 = vld [vmem:[%s10064_s2] ss:$0 sm:$0xff] }
 0x19b   : > { %v1860_v50 = vadd.f32 %v7967_v49, %v7937_v0 }
 0x19c   : > { %v7991_v27 = vpop.f32.mrf.mxu2 }
 0x19d   : > { %v1953_v37 = vadd.f32 %v7969_v51, %v1860_v50  ;;  %v1869_v50 = vadd.f32 %v7906_v22, %v7892_v17 }
 0x19e   : > { %v7963_v38 = vpop.f32.mrf.mxu3 }
 0x19f   : > { %v2097_v13 = vpop.f32.mrf.mxu0  ;;  %v1956_v17 = vadd.f32 %v7923_v24, %v1869_v50  ;;  %v6860_v24 = vld [vmem:[%s10066_s4 + $0x40] sm:$0xff] }
 0x1a0   : > { %v2121_v19 = vadd.f32 %v2097_v13, %v2035_v42  ;;  %3234 = vmatpush.msra.mxu1 %v6860_v24 }
 0x1a2   : > { %v7975_v39 = vpop.f32.mrf.mxu1 }
 0x1a4   : > { %v2270_v30 = vpop.f32.mrf.mxu2 }
 0x1a6   : > { %v7973_v56 = vpop.f32.mrf.mxu3 }
 0x1a7   : > { %v7957_v9 = vpop.f32.mrf.mxu0 }
 0x1a8   : > { %v2122_v16 = vadd.f32 %v7957_v9, %v2036_v21 }
 0x1aa   : > { %v2183_v29 = vpop.f32.mrf.mxu1 }
 0x1ab   : > { %v2207_v2 = vadd.f32 %v2183_v29, %v2121_v19 }
 0x1ac   : > { %v2273_v47 = vpop.f32.mrf.mxu2 }
 0x1ad   : > { %v2294_v26 = vadd.f32 %v2270_v30, %v2207_v2 }
 0x1ae   : > { %v7995_v20 = vpop.f32.mrf.mxu3 }
 0x1af   : > { %v7965_v44 = vpop.f32.mrf.mxu0 }
 0x1b0   : > { %v2123_v9 = vadd.f32 %v7965_v44, %v2037_v48 }
 0x1b2   : > { %v2186_v12 = vpop.f32.mrf.mxu1 }
 0x1b3   : > { %v2208_v31 = vadd.f32 %v2186_v12, %v2122_v16 }
 0x1b4   : > { %v2276_v45 = vpop.f32.mrf.mxu2 }
 0x1b5   : > { %v2295_v32 = vadd.f32 %v2273_v47, %v2208_v31 }
 0x1b7   : > { %v7971_v62 = vpop.f32.mrf.mxu0 }
 0x1b8   : > { %v2124_v42 = vadd.f32 %v7971_v62, %v2038_v54  ;;  %v1863_v62 = vadd.f32 %v7975_v39, %v7944_v11 }
 0x1ba   : > { %v2189_v14 = vpop.f32.mrf.mxu1  ;;  %v1954_v11 = vadd.f32 %v7991_v27, %v1863_v62 }
 0x1bb   : > { %v2209_v44 = vadd.f32 %v2189_v14, %v2123_v9 }
 0x1bc   : > { %v2279_v55 = vpop.f32.mrf.mxu2 }
 0x1bd   : > { %v2296_v63 = vadd.f32 %v2276_v45, %v2209_v44  ;;  %v2040_v45 = vadd.f32 %v7973_v56, %v1954_v11  ;;  %v1866_v56 = vadd.f32 %v7898_v18, %v7883_v5 }
 0x1bf   : > { %v7985_v28 = vpop.f32.mrf.mxu0  ;;  %v1955_v1 = vadd.f32 %v7916_v52, %v1866_v56  ;;  %v6833_v52 = vld [vmem:[%s10066_s4 + $0x28] sm:$0xff] }
 0x1c0   : > { %2984 = vmatpush.msrb.mxu2 %v6833_v52 }
 0x1c1   : > { %v2041_v54 = vadd.f32 %v7995_v20, %v1955_v1  ;;  %v6842_v20 = vld [vmem:[%s10066_s4 + $0x30] sm:$0xff] }
 0x1c2   : > { %v2192_v25 = vpop.f32.mrf.mxu1  ;;  %3068 = vmatpush.msra.mxu3 %v6842_v20 }
 0x1c3   : > { %v2210_v46 = vadd.f32 %v2192_v25, %v2124_v42 }
 0x1c4   : > { %v2282_v14 = vpop.f32.mrf.mxu2 }
 0x1c7   : > { %v8007_v33 = vpop.f32.mrf.mxu0  ;;  %v8025_v15 = vpop.f32.mrf.mxu3 }
 0x1c8   : > { %v2126_v9 = vadd.f32 %v8007_v33, %v2040_v45 }
 0x1ca   : > { %v2195_v47 = vpop.f32.mrf.mxu1 }
 0x1cc   : > { %v2285_v25 = vpop.f32.mrf.mxu2 }
 0x1cf   : > { %v8035_v36 = vpop.f32.mrf.mxu0  ;;  %v2356_v60 = vpop.f32.mrf.mxu3 }
 0x1d0   : > { %v2380_v6 = vadd.f32 %v2356_v60, %v2294_v26  ;;  %v2039_v60 = vadd.f32 %v7963_v38, %v1953_v37  ;;  %v2297_v38 = vadd.f32 %v2279_v55, %v2210_v46 }
 0x1d2   : > { %v2125_v26 = vadd.f32 %v7985_v28, %v2039_v60  ;;  %v2198_v48 = vpop.f32.mrf.mxu1 }
 0x1d3   : > { %v2212_v44 = vadd.f32 %v2198_v48, %v2126_v9 }
 0x1d5   : > { %v2299_v42 = vadd.f32 %v2285_v25, %v2212_v44 }
 0x1d7   : > { %v8060_v61 = vpop.f32.mrf.mxu0  ;;  %v2359_v4 = vpop.f32.mrf.mxu3 }
 0x1d8   : > { %v2381_v29 = vadd.f32 %v2359_v4, %v2295_v32  ;;  %v2211_v4 = vadd.f32 %v2195_v47, %v2125_v26  ;;  %v2042_v47 = vadd.f32 %v8025_v15, %v1956_v17 }
 0x1da   : > { %v2298_v27 = vadd.f32 %v2282_v14, %v2211_v4 }
 0x1df   : > { %v2442_v35 = vpop.f32.mrf.mxu0  ;;  %v2362_v10 = vpop.f32.mrf.mxu3 }
 0x1e0   : > { %v2466_v13 = vadd.f32 %v2442_v35, %v2380_v6  ;;  %v2382_v19 = vadd.f32 %v2362_v10, %v2296_v63  ;;  %v6851_v63 = vld [vmem:[%s10066_s4 + $0x38] sm:$0xff] }
 0x1e1   : > { %3151 = vmatpush.msra.mxu0 %v6851_v63 }
 0x1e2   : > { %v2478_v40 = vmul.f32 %v8084_v53, %v2466_v13 }
 0x1e4   : > { %v2490_v7 = vadd.f32 %v8095_v59, %v2478_v40 }
 0x1e6   : > { %v2498_v58 = vmax.f32 %v2490_v7, 0.0 }
 0x1e7   : > { %v2445_v30 = vpop.f32.mrf.mxu0  ;;  %v2365_v43 = vpop.f32.mrf.mxu3 }
 0x1e8   : > { %2529 = vst.msk [vmem:[#allocation3 + $0x11] sm:$0xff] %vm2506_vm10, %v2498_v58  ;;  %v2467_v8 = vadd.f32 %v2445_v30, %v2381_v29  ;;  %v2383_v3 = vadd.f32 %v2365_v43, %v2297_v38 }
 0x1ea   : > { %v2479_v12 = vmul.f32 %v8084_v53, %v2467_v8  ;;  %v2201_v8 = vpop.f32.mrf.mxu1 }
 0x1ec   : > { %v2491_v41 = vadd.f32 %v8095_v59, %v2479_v12  ;;  %v2127_v12 = vadd.f32 %v8035_v36, %v2041_v54 }
 0x1ee   : > { %v2499_v2 = vmax.f32 %v2491_v41, 0.0  ;;  %v2213_v43 = vadd.f32 %v2201_v8, %v2127_v12 }
 0x1ef   : > { %v2448_v0 = vpop.f32.mrf.mxu0  ;;  %v8122_v49 = vld [vmem:[#allocation3 + $0x11] sm:$0xff]  ;;  %v2368_v6 = vpop.f32.mrf.mxu3 }
 0x1f0   : > { %v2538_v21 = vld [vmem:[#allocation3 + $0x10] sm:$0xff]  ;;  %2530 = vst.msk [vmem:[#allocation3 + $0x21] sm:$0xff] %vm2506_vm10, %v2499_v2  ;;  %v2468_v51 = vadd.f32 %v2448_v0, %v2382_v19  ;;  %6791 = vmatmul.msk.f32.gmra.mxu1 %vm2506_vm10, %v8122_v49  ;;  %v2384_v29 = vadd.f32 %v2368_v6, %v2298_v27  ;;  %v2288_v19 = vpop.f32.mrf.mxu2 }
 0x1f1   : > { %v8124_v23 = vld [vmem:[#allocation3 + $0x12] sm:$0xff]  ;;  %6799 = vmatmul.msk.f32.gmra.mxu2 %vm2506_vm10, %v2538_v21  ;;  %6816 = vmatmul.msk.f32.vlgmr.msrb.gmra.mxu0 %vm2506_vm10, %v2538_v21  ;;  %v2300_v15 = vadd.f32 %v2288_v19, %v2213_v43 }
 0x1f2   : > { %6808 = vmatmul.msk.f32.gmra.mxu3 %vm2506_vm10, %v8124_v23  ;;  %v2480_v16 = vmul.f32 %v8084_v53, %v2468_v51  ;;  %v2128_v51 = vadd.f32 %v8060_v61, %v2042_v47  ;;  %v2204_v38 = vpop.f32.mrf.mxu1  ;;  %v3192_v19 = vld [vmem:[#allocation3 + $0x92] sm:$0xff] }
 0x1f4   : > { %v2492_v39 = vadd.f32 %v8095_v59, %v2480_v16  ;;  %v2214_v11 = vadd.f32 %v2204_v38, %v2128_v51 }
 0x1f6   : > { %v2500_v31 = vmax.f32 %v2492_v39, 0.0 }
 0x1f7   : > { %v2451_v35 = vpop.f32.mrf.mxu0  ;;  %v8140_v57 = vld [vmem:[#allocation3 + $0x21] sm:$0xff]  ;;  %v2371_v10 = vpop.f32.mrf.mxu3 }
 0x1f8   : > { %v8142_v13 = vld [vmem:[#allocation3 + $0x20] sm:$0xff]  ;;  %2531 = vst.msk [vmem:[#allocation3 + $0x31] sm:$0xff] %vm2506_vm10, %v2500_v31  ;;  %v2469_v28 = vadd.f32 %v2451_v35, %v2383_v3  ;;  %6792 = vmatmul.msk.f32.gmra.mxu1 %vm2506_vm10, %v8140_v57  ;;  %v2385_v41 = vadd.f32 %v2371_v10, %v2299_v42  ;;  %v2291_v3 = vpop.f32.mrf.mxu2 }
 0x1f9   : > { %v8144_v32 = vld [vmem:[#allocation3 + $0x22] sm:$0xff]  ;;  %6800 = vmatmul.msk.f32.gmra.mxu2 %vm2506_vm10, %v8142_v13  ;;  %6817 = vmatmul.msk.f32.gmra.mxu0 %vm2506_vm10, %v8142_v13  ;;  %v2301_v35 = vadd.f32 %v2291_v3, %v2214_v11 }
 0x1fa   : > { %6809 = vmatmul.msk.f32.gmra.mxu3 %vm2506_vm10, %v8144_v32  ;;  %v2481_v40 = vmul.f32 %v8084_v53, %v2469_v28 }
 0x1fc   : > { %v2493_v7 = vadd.f32 %v8095_v59, %v2481_v40 }
 0x1fe   : > { %v2501_v58 = vmax.f32 %v2493_v7, 0.0 }
 0x1ff   : > { %v2454_v55 = vpop.f32.mrf.mxu0  ;;  %v8162_v30 = vld [vmem:[#allocation3 + $0x31] sm:$0xff]  ;;  %v2374_v21 = vpop.f32.mrf.mxu3 }
 0x200   : > { %v8164_v5 = vld [vmem:[#allocation3 + $0x30] sm:$0xff]  ;;  %2532 = vst.msk [vmem:[#allocation3 + $0x41] sm:$0xff] %vm2506_vm10, %v2501_v58  ;;  %v2470_v33 = vadd.f32 %v2454_v55, %v2384_v29  ;;  %6793 = vmatmul.msk.f32.gmra.mxu1 %vm2506_vm10, %v8162_v30  ;;  %v2386_v16 = vadd.f32 %v2374_v21, %v2300_v15  ;;  %v2662_v20 = vpop.f32.mrf.mxu2 }
 0x201   : > { %v8166_v18 = vld [vmem:[#allocation3 + $0x32] sm:$0xff]  ;;  %6801 = vmatmul.msk.f32.gmra.mxu2 %vm2506_vm10, %v8164_v5  ;;  %6818 = vmatmul.msk.f32.gmra.mxu0 %vm2506_vm10, %v8164_v5 }
 0x202   : > { %6810 = vmatmul.msk.f32.gmra.mxu3 %vm2506_vm10, %v8166_v18  ;;  %v2482_v37 = vmul.f32 %v8084_v53, %v2470_v33 }
 0x204   : > { %v2494_v22 = vadd.f32 %v8095_v59, %v2482_v37 }
 0x206   : > { %v2502_v46 = vmax.f32 %v2494_v22, 0.0 }
 0x207   : > { %v2457_v60 = vpop.f32.mrf.mxu0  ;;  %v8193_v2 = vld [vmem:[#allocation3 + $0x41] sm:$0xff]  ;;  %v2377_v61 = vpop.f32.mrf.mxu3 }
 0x208   : > { %v8195_v0 = vld [vmem:[#allocation3 + $0x40] sm:$0xff]  ;;  %2533 = vst.msk [vmem:[#allocation3 + $0x51] sm:$0xff] %vm2506_vm10, %v2502_v46  ;;  %v2471_v62 = vadd.f32 %v2457_v60, %v2385_v41  ;;  %6794 = vmatmul.msk.f32.gmra.mxu1 %vm2506_vm10, %v8193_v2  ;;  %v2387_v27 = vadd.f32 %v2377_v61, %v2301_v35 }
 0x209   : > { %v8197_v36 = vld [vmem:[#allocation3 + $0x42] sm:$0xff]  ;;  %6802 = vmatmul.msk.f32.gmra.mxu2 %vm2506_vm10, %v8195_v0  ;;  %6819 = vmatmul.msk.f32.gmra.mxu0 %vm2506_vm10, %v8195_v0 }
 0x20a   : > { %6811 = vmatmul.msk.f32.gmra.mxu3 %vm2506_vm10, %v8197_v36  ;;  %v2483_v14 = vmul.f32 %v8084_v53, %v2471_v62 }
 0x20c   : > { %v2495_v26 = vadd.f32 %v8095_v59, %v2483_v14 }
 0x20e   : > { %v2503_v39 = vmax.f32 %v2495_v26, 0.0 }
 0x20f   : > { %v2460_v6 = vpop.f32.mrf.mxu0  ;;  %v2551_v4 = vld [vmem:[#allocation3 + $0x51] sm:$0xff] }
 0x210   : > { %v2542_v45 = vld [vmem:[#allocation3 + $0x50] sm:$0xff]  ;;  %2534 = vst.msk [vmem:[#allocation3 + $0x61] sm:$0xff] %vm2506_vm10, %v2503_v39  ;;  %v2472_v48 = vadd.f32 %v2460_v6, %v2386_v16  ;;  %6795 = vmatmul.msk.f32.gmra.mxu1 %vm2506_vm10, %v2551_v4 }
 0x211   : > { %v8214_v31 = vld [vmem:[#allocation3 + $0x52] sm:$0xff]  ;;  %6803 = vmatmul.msk.f32.gmra.mxu2 %vm2506_vm10, %v2542_v45  ;;  %6820 = vmatmul.msk.f32.gmra.mxu0 %vm2506_vm10, %v2542_v45 }
 0x212   : > { %6812 = vmatmul.msk.f32.gmra.mxu3 %vm2506_vm10, %v8214_v31  ;;  %v2484_v28 = vmul.f32 %v8084_v53, %v2472_v48 }
 0x214   : > { %v2496_v56 = vadd.f32 %v8095_v59, %v2484_v28 }
 0x216   : > { %v2504_v9 = vmax.f32 %v2496_v56, 0.0 }
 0x217   : > { %v2463_v40 = vpop.f32.mrf.mxu0  ;;  %v2552_v25 = vld [vmem:[#allocation3 + $0x61] sm:$0xff] }
 0x218   : > { %v2543_v1 = vld [vmem:[#allocation3 + $0x60] sm:$0xff]  ;;  %2535 = vst.msk [vmem:[#allocation3 + $0x71] sm:$0xff] %vm2506_vm10, %v2504_v9  ;;  %v2473_v29 = vadd.f32 %v2463_v40, %v2387_v27  ;;  %6796 = vmatmul.msk.f32.gmra.mxu1 %vm2506_vm10, %v2552_v25 }
 0x219   : > { %v8224_v7 = vld [vmem:[#allocation3 + $0x62] sm:$0xff]  ;;  %6804 = vmatmul.msk.f32.gmra.mxu2 %vm2506_vm10, %v2543_v1  ;;  %6821 = vmatmul.msk.f32.gmra.mxu0 %vm2506_vm10, %v2543_v1 }
 0x21a   : > { %6813 = vmatmul.msk.f32.gmra.mxu3 %vm2506_vm10, %v8224_v7  ;;  %v2485_v10 = vmul.f32 %v8084_v53, %v2473_v29  ;;  %v3026_v53 = vld [vmem:[#allocation3 + $0x90] sm:$0xff] }
 0x21c   : > { %v2497_v44 = vadd.f32 %v8095_v59, %v2485_v10 }
 0x21e   : > { %v2505_v54 = vmax.f32 %v2497_v44, 0.0 }
 0x21f   : > { %v2553_v58 = vld [vmem:[#allocation3 + $0x71] sm:$0xff] }
 0x220   : > { %v2544_v55 = vld [vmem:[#allocation3 + $0x70] sm:$0xff]  ;;  %2536 = vst.msk [vmem:[#allocation3 + $0x81] sm:$0xff] %vm2506_vm10, %v2505_v54  ;;  %6797 = vmatmul.msk.f32.gmra.mxu1 %vm2506_vm10, %v2553_v58 }
 0x221   : > { %v2693_v33 = vld [vmem:[#allocation3 + $0x72] sm:$0xff]  ;;  %6805 = vmatmul.msk.f32.gmra.mxu2 %vm2506_vm10, %v2544_v55  ;;  %6822 = vmatmul.msk.f32.gmra.mxu0 %vm2506_vm10, %v2544_v55 }
 0x222   : > { %6814 = vmatmul.msk.f32.gmra.mxu3 %vm2506_vm10, %v2693_v33 }
 0x227   : > { %v2776_v52 = vld [vmem:[#allocation3 + $0x80] sm:$0xff] }
 0x228   : > { %6825 = vmatmul.msk.f32.vlgmr.msrb.gmra.mxu1 %vm2506_vm10, %v8122_v49  ;;  %v2859_v59 = vld [vmem:[#allocation3 + $0x81] sm:$0xff] }
 0x229   : > { %6834 = vmatmul.msk.f32.vlgmr.msrb.gmra.mxu2 %vm2506_vm10, %v8124_v23  ;;  %6823 = vmatmul.msk.f32.gmra.mxu0 %vm2506_vm10, %v2776_v52  ;;  %v2942_v49 = vld [vmem:[#allocation3 + $0x82] sm:$0xff]  ;;  %v2597_v23 = vpop.f32.mrf.mxu1 }
 0x22a   : > { %6843 = vmatmul.msk.f32.vlgmr.msra.gmra.mxu3 %vm2506_vm10, %v8142_v13 }
 0x230   : > { %6826 = vmatmul.msk.f32.gmra.mxu1 %vm2506_vm10, %v8140_v57 }
 0x231   : > { %6835 = vmatmul.msk.f32.gmra.mxu2 %vm2506_vm10, %v8144_v32  ;;  %6852 = vmatmul.msk.f32.vlgmr.msra.gmra.mxu0 %vm2506_vm10, %v8140_v57  ;;  %v3109_v57 = vld [vmem:[#allocation3 + $0x91] sm:$0xff] }
 0x232   : > { %6844 = vmatmul.msk.f32.gmra.mxu3 %vm2506_vm10, %v8164_v5 }
 0x238   : > { %6827 = vmatmul.msk.f32.gmra.mxu1 %vm2506_vm10, %v8162_v30 }
 0x239   : > { %6836 = vmatmul.msk.f32.gmra.mxu2 %vm2506_vm10, %v8166_v18  ;;  %6853 = vmatmul.msk.f32.gmra.mxu0 %vm2506_vm10, %v8162_v30 }
 0x23a   : > { %6845 = vmatmul.msk.f32.gmra.mxu3 %vm2506_vm10, %v8195_v0 }
 0x240   : > { %6828 = vmatmul.msk.f32.gmra.mxu1 %vm2506_vm10, %v8193_v2 }
 0x241   : > { %6837 = vmatmul.msk.f32.gmra.mxu2 %vm2506_vm10, %v8197_v36  ;;  %6854 = vmatmul.msk.f32.gmra.mxu0 %vm2506_vm10, %v8193_v2 }
 0x242   : > { %6846 = vmatmul.msk.f32.gmra.mxu3 %vm2506_vm10, %v2542_v45  ;;  %v2663_v45 = vadd.f32 %v2662_v20, %v2597_v23 }
 0x248   : > { %6829 = vmatmul.msk.f32.gmra.mxu1 %vm2506_vm10, %v2551_v4 }
 0x249   : > { %6838 = vmatmul.msk.f32.gmra.mxu2 %vm2506_vm10, %v8214_v31  ;;  %6855 = vmatmul.msk.f32.gmra.mxu0 %vm2506_vm10, %v2551_v4 }
 0x24a   : > { %6847 = vmatmul.msk.f32.gmra.mxu3 %vm2506_vm10, %v2543_v1 }
 0x250   : > { %6830 = vmatmul.msk.f32.gmra.mxu1 %vm2506_vm10, %v2552_v25 }
 0x251   : > { %6839 = vmatmul.msk.f32.gmra.mxu2 %vm2506_vm10, %v8224_v7  ;;  %6856 = vmatmul.msk.f32.gmra.mxu0 %vm2506_vm10, %v2552_v25 }
 0x252   : > { %6848 = vmatmul.msk.f32.gmra.mxu3 %vm2506_vm10, %v2544_v55 }
 0x258   : > { %6831 = vmatmul.msk.f32.gmra.mxu1 %vm2506_vm10, %v2553_v58 }
 0x259   : > { %6840 = vmatmul.msk.f32.gmra.mxu2 %vm2506_vm10, %v2693_v33  ;;  %6857 = vmatmul.msk.f32.gmra.mxu0 %vm2506_vm10, %v2553_v58 }
 0x25a   : > { %6849 = vmatmul.msk.f32.gmra.mxu3 %vm2506_vm10, %v2776_v52  ;;  %v8344_v52 = vld [vmem:[%s10067_s5] ss:$0 sm:$0xff] }
 0x260   : > { %6832 = vmatmul.msk.f32.gmra.mxu1 %vm2506_vm10, %v2859_v59 }
 0x261   : > { %6841 = vmatmul.msk.f32.gmra.mxu2 %vm2506_vm10, %v2942_v49  ;;  %6858 = vmatmul.msk.f32.gmra.mxu0 %vm2506_vm10, %v2859_v59 }
 0x262   : > { %6850 = vmatmul.msk.f32.gmra.mxu3 %vm2506_vm10, %v3026_v53 }
 0x268   : > { %6861 = vmatmul.msk.f32.vlgmr.msra.gmra.mxu1 %vm2506_vm10, %v8144_v32  ;;  %v2737_v32 = vpop.f32.mrf.mxu3 }
 0x269   : > { %6859 = vmatmul.msk.f32.gmra.mxu0 %vm2506_vm10, %v3109_v57  ;;  %v2761_v35 = vadd.f32 %v2737_v32, %v2663_v45 }
 0x26d   : > { %v2600_v13 = vpop.f32.mrf.mxu1 }
 0x26e   : > { %v2820_v8 = vpop.f32.mrf.mxu0 }
 0x26f   : > { %v2844_v28 = vadd.f32 %v2820_v8, %v2761_v35 }
 0x270   : > { %6862 = vmatmul.msk.f32.gmra.mxu1 %vm2506_vm10, %v8166_v18 }
 0x274   : > { %v2665_v63 = vpop.f32.mrf.mxu2 }
 0x275   : > { %v2603_v30 = vpop.f32.mrf.mxu1  ;;  %v2740_v18 = vpop.f32.mrf.mxu3  ;;  %v2666_v27 = vadd.f32 %v2665_v63, %v2600_v13  ;;  %v8349_v13 = vld [vmem:[%s10068_s6] ss:$0 sm:$0xff] }
 0x276   : > { %v2823_v37 = vpop.f32.mrf.mxu0 }
 0x277   : > { %v2762_v29 = vadd.f32 %v2740_v18, %v2666_v27 }
 0x278   : > { %6863 = vmatmul.msk.f32.gmra.mxu1 %vm2506_vm10, %v8197_v36 }
 0x279   : > { %v2845_v44 = vadd.f32 %v2823_v37, %v2762_v29 }
 0x27c   : > { %v2668_v17 = vpop.f32.mrf.mxu2 }
 0x27d   : > { %v8294_v5 = vpop.f32.mrf.mxu1  ;;  %v2743_v22 = vpop.f32.mrf.mxu3  ;;  %v2669_v58 = vadd.f32 %v2668_v17, %v2603_v30 }
 0x27e   : > { %v2826_v43 = vpop.f32.mrf.mxu0 }
 0x27f   : > { %v2763_v20 = vadd.f32 %v2743_v22, %v2669_v58 }
 0x280   : > { %6864 = vmatmul.msk.f32.gmra.mxu1 %vm2506_vm10, %v8214_v31 }
 0x281   : > { %v2846_v18 = vadd.f32 %v2826_v43, %v2763_v20 }
 0x284   : > { %v2671_v47 = vpop.f32.mrf.mxu2 }
 0x285   : > { %v8298_v50 = vpop.f32.mrf.mxu1  ;;  %v2746_v60 = vpop.f32.mrf.mxu3  ;;  %v2672_v30 = vadd.f32 %v2671_v47, %v8294_v5 }
 0x286   : > { %v2829_v2 = vpop.f32.mrf.mxu0 }
 0x287   : > { %v2764_v37 = vadd.f32 %v2746_v60, %v2672_v30 }
 0x288   : > { %6865 = vmatmul.msk.f32.gmra.mxu1 %vm2506_vm10, %v8224_v7 }
 0x28c   : > { %v2674_v0 = vpop.f32.mrf.mxu2 }
 0x28d   : > { %v8302_v42 = vpop.f32.mrf.mxu1  ;;  %v8311_v21 = vpop.f32.mrf.mxu3  ;;  %v2675_v5 = vadd.f32 %v2674_v0, %v8298_v50 }
 0x28e   : > { %v8313_v62 = vpop.f32.mrf.mxu0 }
 0x28f   : > { %v2765_v60 = vadd.f32 %v8311_v21, %v2675_v5 }
 0x290   : > { %6866 = vmatmul.msk.f32.gmra.mxu1 %vm2506_vm10, %v2693_v33 }
 0x294   : > { %v8315_v24 = vpop.f32.mrf.mxu2 }
 0x295   : > { %v8305_v12 = vpop.f32.mrf.mxu1  ;;  %v8317_v51 = vpop.f32.mrf.mxu3 }
 0x296   : > { %v8319_v38 = vpop.f32.mrf.mxu0 }
 0x298   : > { %6867 = vmatmul.msk.f32.gmra.mxu1 %vm2506_vm10, %v2942_v49 }
 0x29c   : > { %v8321_v26 = vpop.f32.mrf.mxu2 }
 0x29d   : > { %v8308_v41 = vpop.f32.mrf.mxu1  ;;  %v8323_v16 = vpop.f32.mrf.mxu3 }
 0x29e   : > { %v8327_v39 = vpop.f32.mrf.mxu0 }
 0x2a0   : > { %6868 = vmatmul.msk.f32.gmra.mxu1 %vm2506_vm10, %v3192_v19 }
 0x2a4   : > { %v8329_v3 = vpop.f32.mrf.mxu2 }
 0x2a5   : > { %v2903_v46 = vpop.f32.mrf.mxu1  ;;  %v8333_v4 = vpop.f32.mrf.mxu3 }
 0x2a6   : > { %v8335_v31 = vpop.f32.mrf.mxu0  ;;  %v2927_v9 = vadd.f32 %v2903_v46, %v2844_v28 }
 0x2ac   : > { %v2986_v48 = vpop.f32.mrf.mxu2 }
 0x2ad   : > { %v2906_v36 = vpop.f32.mrf.mxu1  ;;  %v3070_v56 = vpop.f32.mrf.mxu3  ;;  %v3010_v40 = vadd.f32 %v2986_v48, %v2927_v9  ;;  %v2847_v48 = vadd.f32 %v2829_v2, %v2764_v37  ;;  %v2678_v37 = vadd.f32 %v8315_v24, %v8302_v42 }
 0x2ae   : > { %v3153_v25 = vpop.f32.mrf.mxu0  ;;  %v2928_v55 = vadd.f32 %v2906_v36, %v2845_v44 }
 0x2af   : > { %v3094_v10 = vadd.f32 %v3070_v56, %v3010_v40 }
 0x2b1   : > { %v3177_v33 = vadd.f32 %v3153_v25, %v3094_v10  ;;  %v2848_v10 = vadd.f32 %v8313_v62, %v2765_v60 }
 0x2b4   : > { %v2989_v1 = vpop.f32.mrf.mxu2 }
 0x2b5   : > { %v2909_v15 = vpop.f32.mrf.mxu1  ;;  %v3073_v54 = vpop.f32.mrf.mxu3  ;;  %v3011_v59 = vadd.f32 %v2989_v1, %v2928_v55 }
 0x2b6   : > { %v3156_v49 = vpop.f32.mrf.mxu0  ;;  %v2929_v46 = vadd.f32 %v2909_v15, %v2846_v18 }
 0x2b7   : > { %v3095_v8 = vadd.f32 %v3073_v54, %v3011_v59 }
 0x2b9   : > { %v3178_v45 = vadd.f32 %v3156_v49, %v3095_v8  ;;  %v6869_v8 = vld [vmem:[%s10069_s7 + $0x10] sm:$0xff] }
 0x2ba   : > { %3666 = vmatpush.msra.mxu2 %v6869_v8 }
 0x2bc   : > { %v2992_v23 = vpop.f32.mrf.mxu2 }
 0x2bd   : > { %v2912_v14 = vpop.f32.mrf.mxu1  ;;  %v3076_v17 = vpop.f32.mrf.mxu3  ;;  %v3012_v35 = vadd.f32 %v2992_v23, %v2929_v46 }
 0x2be   : > { %v3159_v28 = vpop.f32.mrf.mxu0  ;;  %v2930_v47 = vadd.f32 %v2912_v14, %v2847_v48 }
 0x2bf   : > { %v3096_v27 = vadd.f32 %v3076_v17, %v3012_v35 }
 0x2c1   : > { %v3179_v2 = vadd.f32 %v3159_v28, %v3096_v27 }
 0x2c4   : > { %v2995_v22 = vpop.f32.mrf.mxu2 }
 0x2c5   : > { %v8325_v11 = vpop.f32.mrf.mxu1  ;;  %v3013_v9 = vadd.f32 %v2995_v22, %v2930_v47  ;;  %v3079_v25 = vpop.f32.mrf.mxu3 }
 0x2c6   : > { %v3162_v58 = vpop.f32.mrf.mxu0 }
 0x2c7   : > { %v3097_v1 = vadd.f32 %v3079_v25, %v3013_v9 }
 0x2c9   : > { %v3180_v49 = vadd.f32 %v3162_v58, %v3097_v1  ;;  %v2681_v1 = vadd.f32 %v8321_v26, %v8305_v12 }
 0x2cc   : > { %v2998_v55 = vpop.f32.mrf.mxu2 }
 0x2cd   : > { %v8331_v6 = vpop.f32.mrf.mxu1 }
 0x2ce   : > { %v3165_v46 = vpop.f32.mrf.mxu0 }
 0x2d5   : > { %v8337_v61 = vpop.f32.mrf.mxu1 }
 0x2dd   : > { %v8339_v7 = vpop.f32.mrf.mxu1 }
 0x2e5   : > { %v3236_v53 = vpop.f32.mrf.mxu1 }
 0x2e6   : > { %v3260_v57 = vadd.f32 %v3236_v53, %v3177_v33  ;;  %v2931_v53 = vadd.f32 %v8325_v11, %v2848_v10 }
 0x2e8   : > { %v3272_v32 = vmul.f32 %v8344_v52, %v3260_v57  ;;  %v3014_v57 = vadd.f32 %v2998_v55, %v2931_v53  ;;  %v2767_v55 = vadd.f32 %v8323_v16, %v2681_v1 }
 0x2ea   : > { %v3284_v63 = vadd.f32 %v8349_v13, %v3272_v32  ;;  %v2850_v16 = vadd.f32 %v8327_v39, %v2767_v55 }
 0x2ec   : > { %v3292_v19 = vmax.f32 %v3284_v63, 0.0  ;;  %v3082_v63 = vpop.f32.mrf.mxu3 }
 0x2ed   : > { %v3239_v36 = vpop.f32.mrf.mxu1  ;;  %v3098_v17 = vadd.f32 %v3082_v63, %v3014_v57  ;;  %v2933_v63 = vadd.f32 %v8337_v61, %v2850_v16  ;;  %v2684_v61 = vadd.f32 %v8329_v3, %v8308_v41 }
 0x2ee   : > { %3321 = vst.msk [vmem:[#allocation4 + $0x11] sm:$0xff] %vm2506_vm10, %v3292_v19  ;;  %v3261_v56 = vadd.f32 %v3239_v36, %v3178_v45  ;;  %v2766_v45 = vadd.f32 %v8317_v51, %v2678_v37  ;;  %v3001_v51 = vpop.f32.mrf.mxu2 }
 0x2ef   : > { %v3181_v48 = vadd.f32 %v3165_v46, %v3098_v17 }
 0x2f0   : > { %v3273_v43 = vmul.f32 %v8344_v52, %v3261_v56  ;;  %v2849_v24 = vadd.f32 %v8319_v38, %v2766_v45 }
 0x2f2   : > { %v3285_v21 = vadd.f32 %v8349_v13, %v3273_v43  ;;  %v2932_v43 = vadd.f32 %v8331_v6, %v2849_v24 }
 0x2f4   : > { %v3293_v23 = vmax.f32 %v3285_v21, 0.0  ;;  %v3015_v25 = vadd.f32 %v3001_v51, %v2932_v43  ;;  %v3085_v6 = vpop.f32.mrf.mxu3 }
 0x2f5   : > { %v8358_v40 = vld [vmem:[#allocation4 + $0x10] sm:$0xff]  ;;  %v3242_v15 = vpop.f32.mrf.mxu1  ;;  %v3430_v35 = vld [vmem:[#allocation4 + $0x18] sm:$0x1] }
 0x2f6   : > { %10283 = vst [vmem:[#allocation5_spill] sm:$0xff] %v8358_v40  ;;  %v8362_v29 = vrot.slane %v8358_v40, 1  ;;  %v8365_v50 = vrot.slane %v8358_v40, 2  ;;  %v8368_v0 = vrot.slane %v8358_v40, 3  ;;  %v8371_v14 = vrot.slane %v8358_v40, 4 }
 0x2f7   : > { %3530 = vst [vmem:[#allocation1] ss:$9 sm:$0xff] %v8358_v40  ;;  %v8376_v44 = vrot.slane %v8358_v40, 5  ;;  %v3262_v54 = vadd.f32 %v3242_v15, %v3179_v2  ;;  %v8380_v33 = vrot.slane %v8358_v40, 6  ;;  %v8385_v59 = vrot.slane %v8358_v40, 7 }
 0x2f8   : > { %10284 = vst [vmem:[#allocation6_spill] sm:$0xff] %v8362_v29  ;;  %v3099_v21 = vadd.f32 %v3085_v6, %v3015_v25 }
 0x2f9   : > { %10285 = vst [vmem:[#allocation7_spill] sm:$0xff] %v8365_v50  ;;  %v3274_v62 = vmul.f32 %v8344_v52, %v3262_v54  ;;  %v3168_v54 = vpop.f32.mrf.mxu0 }
 0x2fa   : > { %10286 = vst [vmem:[#allocation8_spill] sm:$0xff] %v8368_v0  ;;  %v3182_v53 = vadd.f32 %v3168_v54, %v3099_v21 }
 0x2fb   : > { %10287 = vst [vmem:[#allocation9_spill] sm:$0xff] %v8371_v14  ;;  %v3286_v20 = vadd.f32 %v8349_v13, %v3274_v62 }
 0x2fc   : > { %10288 = vst [vmem:[#allocation10_spill] sm:$0xff] %v8376_v44  ;;  %v3088_v17 = vpop.f32.mrf.mxu3 }
 0x2fd   : > { %3532 = vst [vmem:[#allocation1 + $0x1] ss:$9 sm:$0xff] %v8362_v29  ;;  %v3245_v30 = vpop.f32.mrf.mxu1  ;;  %v3294_v32 = vmax.f32 %v3286_v20, 0.0 }
 0x2fe   : > { %10289 = vst [vmem:[#allocation11_spill] sm:$0xff] %v8380_v33  ;;  %v3263_v11 = vadd.f32 %v3245_v30, %v3180_v49 }
 0x2ff   : > { %3534 = vst [vmem:[#allocation1 + $0x2] ss:$9 sm:$0xff] %v8365_v50 }
 0x300   : > { %10290 = vst [vmem:[#allocation12_spill] sm:$0xff] %v8385_v59  ;;  %v3275_v18 = vmul.f32 %v8344_v52, %v3263_v11 }
 0x301   : > { %3536 = vst [vmem:[#allocation1 + $0x3] ss:$9 sm:$0xff] %v8368_v0 }
 0x302   : > { %3538 = vst [vmem:[#allocation1 + $0x4] ss:$9 sm:$0xff] %v8371_v14  ;;  %v3287_v19 = vadd.f32 %v8349_v13, %v3275_v18 }
 0x303   : > { %3540 = vst [vmem:[#allocation1 + $0x5] ss:$9 sm:$0xff] %v8376_v44 }
 0x304   : > { %3542 = vst [vmem:[#allocation1 + $0x6] ss:$9 sm:$0xff] %v8380_v33  ;;  %v3295_v36 = vmax.f32 %v3287_v19, 0.0  ;;  %v3342_v33 = vld [vmem:[#allocation4 + $0x79] sm:$0x1] }
 0x305   : > { %3544 = vst [vmem:[#allocation1 + $0x7] ss:$9 sm:$0xff] %v8385_v59  ;;  %v3248_v22 = vpop.f32.mrf.mxu1 }
 0x306   : > { %3322 = vst.msk [vmem:[#allocation4 + $0x21] sm:$0xff] %vm2506_vm10, %v3293_v23  ;;  %v3264_v42 = vadd.f32 %v3248_v22, %v3181_v48  ;;  %v2768_v48 = vadd.f32 %v8333_v4, %v2684_v61 }
 0x307   : > { %3323 = vst.msk [vmem:[#allocation4 + $0x31] sm:$0xff] %vm2506_vm10, %v3294_v32  ;;  %v3004_v32 = vpop.f32.mrf.mxu2 }
 0x308   : > { %3324 = vst.msk [vmem:[#allocation4 + $0x41] sm:$0xff] %vm2506_vm10, %v3295_v36  ;;  %v3276_v38 = vmul.f32 %v8344_v52, %v3264_v42  ;;  %v3016_v39 = vadd.f32 %v3004_v32, %v2933_v63  ;;  %v3171_v36 = vpop.f32.mrf.mxu0  ;;  %v2851_v43 = vadd.f32 %v8335_v31, %v2768_v48 }
 0x30a   : > { %v3288_v2 = vadd.f32 %v8349_v13, %v3276_v38  ;;  %v3100_v19 = vadd.f32 %v3088_v17, %v3016_v39  ;;  %v2934_v1 = vadd.f32 %v8339_v7, %v2851_v43 }
 0x30c   : > { %v3545_v28 = vld [vmem:[#allocation1] sm:$0xff]  ;;  %v3296_v10 = vmax.f32 %v3288_v2, 0.0 }
 0x30d   : > { %3546 = vst [vmem:[#allocation1] ss:$9 sm:$0xff] %v3430_v35  ;;  %v8405_v56 = vld [vmem:[#allocation4 + $0x20] sm:$0xff]  ;;  %6870 = vmatmul.msk.f32.vlgmr.msra.gmra.mxu2 %vm2506_vm10, %v3545_v28  ;;  %v3251_v49 = vpop.f32.mrf.mxu1  ;;  %v3432_v12 = vld [vmem:[#allocation4 + $0x28] sm:$0x1]  ;;  %v3183_v35 = vadd.f32 %v3171_v36, %v3100_v19 }
 0x30e   : > { %10291 = vst [vmem:[#allocation13_spill] sm:$0xff] %v8405_v56  ;;  %v8411_v5 = vrot.slane %v8405_v56, 1  ;;  %v8414_v47 = vrot.slane %v8405_v56, 2  ;;  %v8417_v27 = vrot.slane %v8405_v56, 3  ;;  %v8420_v9 = vrot.slane %v8405_v56, 4  ;;  %v8439_v58 = vld [vmem:[#allocation4 + $0x30] sm:$0xff] }
 0x30f   : > { %3547 = vst [vmem:[#allocation1 + $0x1] ss:$9 sm:$0xff] %v8405_v56  ;;  %v8424_v60 = vrot.slane %v8405_v56, 5  ;;  %v8429_v15 = vrot.slane %v8405_v56, 6  ;;  %v8444_v62 = vrot.slane %v8405_v56, 7  ;;  %v8447_v57 = vrot.slane %v8439_v58, 1  ;;  %v3007_v2 = vpop.f32.mrf.mxu2 }
 0x310   : > { %10292 = vst [vmem:[#allocation14_spill] sm:$0xff] %v8411_v5  ;;  %v3265_v20 = vadd.f32 %v3251_v49, %v3182_v53  ;;  %v8451_v26 = vrot.slane %v8439_v58, 2  ;;  %v8456_v30 = vrot.slane %v8439_v58, 3  ;;  %v8460_v8 = vrot.slane %v8439_v58, 4  ;;  %v8476_v45 = vld [vmem:[#allocation4 + $0x40] sm:$0xff]  ;;  %v3174_v53 = vpop.f32.mrf.mxu0 }
 0x311   : > { %10293 = vst [vmem:[#allocation15_spill] sm:$0xff] %v8414_v47  ;;  %v8465_v18 = vrot.slane %v8439_v58, 5  ;;  %v8480_v28 = vrot.slane %v8439_v58, 6  ;;  %v8483_v22 = vrot.slane %v8439_v58, 7  ;;  %v8487_v41 = vrot.slane %v8476_v45, 1 }
 0x312   : > { %10294 = vst [vmem:[#allocation16_spill] sm:$0xff] %v8417_v27  ;;  %v3277_v11 = vmul.f32 %v8344_v52, %v3265_v20  ;;  %v3434_v51 = vld [vmem:[#allocation4 + $0x38] sm:$0x1]  ;;  %v8492_v4 = vrot.slane %v8476_v45, 2  ;;  %v8496_v38 = vrot.slane %v8476_v45, 3  ;;  %v8500_v6 = vrot.slane %v8476_v45, 4 }
 0x313   : > { %10295 = vst [vmem:[#allocation17_spill] sm:$0xff] %v8420_v9  ;;  %v3017_v21 = vadd.f32 %v3007_v2, %v2934_v1  ;;  %v8511_v49 = vrot.slane %v8476_v45, 5  ;;  %v8516_v20 = vrot.slane %v8476_v45, 6  ;;  %v8519_v16 = vrot.slane %v8476_v45, 7  ;;  %v3436_v39 = vld [vmem:[#allocation4 + $0x48] sm:$0x1] }
 0x314   : > { %10296 = vst [vmem:[#allocation18_spill] sm:$0xff] %v8424_v60  ;;  %v3289_v37 = vadd.f32 %v8349_v13, %v3277_v11 }
 0x315   : > { %3548 = vst [vmem:[#allocation1 + $0x2] ss:$9 sm:$0xff] %v8411_v5  ;;  %v3254_v24 = vpop.f32.mrf.mxu1 }
 0x316   : > { %10297 = vst [vmem:[#allocation19_spill] sm:$0xff] %v8429_v15  ;;  %v3297_v46 = vmax.f32 %v3289_v37, 0.0  ;;  %v3266_v3 = vadd.f32 %v3254_v24, %v3183_v35 }
 0x317   : > { %3549 = vst [vmem:[#allocation1 + $0x3] ss:$9 sm:$0xff] %v8414_v47 }
 0x318   : > { %3550 = vst [vmem:[#allocation1 + $0x4] ss:$9 sm:$0xff] %v8417_v27  ;;  %v3278_v25 = vmul.f32 %v8344_v52, %v3266_v3 }
 0x319   : > { %3551 = vst [vmem:[#allocation1 + $0x5] ss:$9 sm:$0xff] %v8420_v9 }
 0x31a   : > { %3552 = vst [vmem:[#allocation1 + $0x6] ss:$9 sm:$0xff] %v8424_v60  ;;  %v3290_v31 = vadd.f32 %v8349_v13, %v3278_v25 }
 0x31b   : > { %3553 = vst [vmem:[#allocation1 + $0x7] ss:$9 sm:$0xff] %v8429_v15  ;;  %v3340_v15 = vld [vmem:[#allocation4 + $0x69] sm:$0x1] }
 0x31c   : > { %10298 = vst [vmem:[#allocation20_spill] sm:$0xff] %v8439_v58  ;;  %v3298_v54 = vmax.f32 %v3290_v31, 0.0 }
 0x31d   : > { %3325 = vst.msk [vmem:[#allocation4 + $0x51] sm:$0xff] %vm2506_vm10, %v3296_v10  ;;  %v3091_v10 = vpop.f32.mrf.mxu3  ;;  %v3257_v11 = vpop.f32.mrf.mxu1 }
 0x31e   : > { %10299 = vst [vmem:[#allocation21_spill] sm:$0xff] %v8444_v62  ;;  %v3101_v55 = vadd.f32 %v3091_v10, %v3017_v21 }
 0x31f   : > { %10300 = vst [vmem:[#allocation22_spill] sm:$0xff] %v8447_v57 }
 0x320   : > { %10301 = vst [vmem:[#allocation23_spill] sm:$0xff] %v8451_v26 }
 0x321   : > { %10302 = vst [vmem:[#allocation24_spill] sm:$0xff] %v8456_v30 }
 0x322   : > { %v3554_v23 = vld [vmem:[#allocation1] sm:$0xff]  ;;  %10303 = vst [vmem:[#allocation25_spill] sm:$0xff] %v8460_v8 }
 0x323   : > { %3555 = vst [vmem:[#allocation1] ss:$9 sm:$0xff] %v8444_v62  ;;  %6871 = vmatmul.msk.f32.gmra.mxu2 %vm2506_vm10, %v3554_v23  ;;  %v3184_v23 = vadd.f32 %v3174_v53, %v3101_v55 }
 0x324   : > { %3556 = vst [vmem:[#allocation1 + $0x1] ss:$9 sm:$0xff] %v3432_v12  ;;  %v8513_v7 = vld [vmem:[#allocation4 + $0x50] sm:$0xff]  ;;  %v3438_v3 = vld [vmem:[#allocation4 + $0x58] sm:$0x1] }
 0x325   : > { %3557 = vst [vmem:[#allocation1 + $0x2] ss:$9 sm:$0xff] %v8439_v58  ;;  %v8525_v32 = vrot.slane %v8513_v7, 1  ;;  %v3267_v63 = vadd.f32 %v3257_v11, %v3184_v23  ;;  %v8529_v37 = vrot.slane %v8513_v7, 2  ;;  %v8532_v17 = vrot.slane %v8513_v7, 3 }
 0x326   : > { %10304 = vst [vmem:[#allocation26_spill] sm:$0xff] %v8465_v18  ;;  %v8542_v36 = vrot.slane %v8513_v7, 4  ;;  %v8545_v48 = vrot.slane %v8513_v7, 5 }
 0x327   : > { %3558 = vst [vmem:[#allocation1 + $0x3] ss:$9 sm:$0xff] %v8447_v57  ;;  %v3279_v61 = vmul.f32 %v8344_v52, %v3267_v63  ;;  %v8550_v52 = vrot.slane %v8513_v7, 6 }
 0x328   : > { %3559 = vst [vmem:[#allocation1 + $0x4] ss:$9 sm:$0xff] %v8451_v26 }
 0x329   : > { %3560 = vst [vmem:[#allocation1 + $0x5] ss:$9 sm:$0xff] %v8456_v30  ;;  %v3291_v19 = vadd.f32 %v8349_v13, %v3279_v61  ;;  %v8555_v13 = vrot.slane %v8513_v7, 7 }
 0x32a   : > { %3561 = vst [vmem:[#allocation1 + $0x6] ss:$9 sm:$0xff] %v8460_v8 }
 0x32b   : > { %3562 = vst [vmem:[#allocation1 + $0x7] ss:$9 sm:$0xff] %v8465_v18  ;;  %v3338_v18 = vld [vmem:[#allocation4 + $0x59] sm:$0x1] }
 0x32c   : > { %3326 = vst.msk [vmem:[#allocation4 + $0x61] sm:$0xff] %vm2506_vm10, %v3297_v46  ;;  %v3299_v46 = vmax.f32 %v3291_v19, 0.0 }
 0x32d   : > { %10305 = vst [vmem:[#allocation27_spill] sm:$0xff] %v8476_v45 }
 0x32e   : > { %10306 = vst [vmem:[#allocation28_spill] sm:$0xff] %v8480_v28 }
 0x32f   : > { %10307 = vst [vmem:[#allocation29_spill] sm:$0xff] %v8483_v22 }
 0x330   : > { %10308 = vst [vmem:[#allocation30_spill] sm:$0xff] %v8487_v41 }
 0x331   : > { %10309 = vst [vmem:[#allocation31_spill] sm:$0xff] %v8492_v4 }
 0x332   : > { %v3563_v42 = vld [vmem:[#allocation1] sm:$0xff]  ;;  %10310 = vst [vmem:[#allocation32_spill] sm:$0xff] %v8496_v38 }
 0x333   : > { %3564 = vst [vmem:[#allocation1] ss:$9 sm:$0xff] %v8480_v28  ;;  %6872 = vmatmul.msk.f32.gmra.mxu2 %vm2506_vm10, %v3563_v42  ;;  %v8547_v42 = vld [vmem:[#allocation4 + $0x60] sm:$0xff]  ;;  %v3440_v55 = vld [vmem:[#allocation4 + $0x68] sm:$0x1] }
 0x334   : > { %3565 = vst [vmem:[#allocation1 + $0x1] ss:$9 sm:$0xff] %v8483_v22  ;;  %v8560_v24 = vrot.slane %v8547_v42, 1  ;;  %v8570_v43 = vrot.slane %v8547_v42, 3  ;;  %v8573_v25 = vrot.slane %v8547_v42, 4  ;;  %v8576_v1 = vrot.slane %v8547_v42, 5 }
 0x335   : > { %3566 = vst [vmem:[#allocation1 + $0x2] ss:$9 sm:$0xff] %v3434_v51  ;;  %v8564_v51 = vrot.slane %v8547_v42, 2  ;;  %v8583_v31 = vrot.slane %v8547_v42, 6  ;;  %v8587_v10 = vrot.slane %v8547_v42, 7  ;;  %v8823_v30 = vld [vmem:[#allocation4 + $0x61] sm:$0xff] }
 0x336   : > { %10311 = vst [vmem:[#allocation33_spill] sm:$0xff] %v8500_v6  ;;  %v8833_v26 = vrot.slane %v8823_v30, 2  ;;  %v8839_v57 = vrot.slane %v8823_v30, 3  ;;  %v8842_v58 = vrot.slane %v8823_v30, 4  ;;  %v8845_v62 = vrot.slane %v8823_v30, 5 }
 0x337   : > { %3567 = vst [vmem:[#allocation1 + $0x3] ss:$9 sm:$0xff] %v8476_v45  ;;  %v8854_v60 = vrot.slane %v8823_v30, 7 }
 0x338   : > { %3568 = vst [vmem:[#allocation1 + $0x4] ss:$9 sm:$0xff] %v8487_v41 }
 0x339   : > { %3569 = vst [vmem:[#allocation1 + $0x5] ss:$9 sm:$0xff] %v8492_v4  ;;  %v8790_v4 = vld [vmem:[#allocation4 + $0x51] sm:$0xff] }
 0x33a   : > { %3570 = vst [vmem:[#allocation1 + $0x6] ss:$9 sm:$0xff] %v8496_v38  ;;  %v8800_v41 = vrot.slane %v8790_v4, 2  ;;  %v8804_v45 = vrot.slane %v8790_v4, 3  ;;  %v8817_v28 = vrot.slane %v8790_v4, 6  ;;  %v8821_v8 = vrot.slane %v8790_v4, 7 }
 0x33b   : > { %3571 = vst [vmem:[#allocation1 + $0x7] ss:$9 sm:$0xff] %v8500_v6  ;;  %v3336_v6 = vld [vmem:[#allocation4 + $0x49] sm:$0x1] }
 0x33c   : > { %3327 = vst.msk [vmem:[#allocation4 + $0x71] sm:$0xff] %vm2506_vm10, %v3298_v54 }
 0x33d   : > { %10312 = vst [vmem:[#allocation34_spill] sm:$0xff] %v8511_v49 }
 0x33e   : > { %10313 = vst [vmem:[#allocation35_spill] sm:$0xff] %v8513_v7 }
 0x33f   : > { %10314 = vst [vmem:[#allocation36_spill] sm:$0xff] %v8516_v20 }
 0x340   : > { %10315 = vst [vmem:[#allocation37_spill] sm:$0xff] %v8519_v16 }
 0x341   : > { %10316 = vst [vmem:[#allocation38_spill] sm:$0xff] %v8525_v32 }
 0x342   : > { %v3572_v12 = vld [vmem:[#allocation1] sm:$0xff]  ;;  %10317 = vst [vmem:[#allocation39_spill] sm:$0xff] %v8529_v37 }
 0x343   : > { %3573 = vst [vmem:[#allocation1] ss:$9 sm:$0xff] %v8511_v49  ;;  %6873 = vmatmul.msk.f32.gmra.mxu2 %vm2506_vm10, %v3572_v12  ;;  %v8579_v21 = vld [vmem:[#allocation4 + $0x70] sm:$0xff]  ;;  %v3442_v19 = vld [vmem:[#allocation4 + $0x78] sm:$0x1] }
 0x344   : > { %3574 = vst [vmem:[#allocation1 + $0x1] ss:$9 sm:$0xff] %v8516_v20  ;;  %v8592_v54 = vrot.slane %v8579_v21, 1  ;;  %v8598_v53 = vrot.slane %v8579_v21, 2  ;;  %v8601_v23 = vrot.slane %v8579_v21, 3  ;;  %v8604_v11 = vrot.slane %v8579_v21, 4 }
 0x345   : > { %3575 = vst [vmem:[#allocation1 + $0x2] ss:$9 sm:$0xff] %v8519_v16  ;;  %v8609_v63 = vrot.slane %v8579_v21, 5  ;;  %v8617_v61 = vrot.slane %v8579_v21, 7  ;;  %v8856_v9 = vld [vmem:[#allocation4 + $0x71] sm:$0xff] }
 0x346   : > { %3576 = vst [vmem:[#allocation1 + $0x3] ss:$9 sm:$0xff] %v3436_v39  ;;  %v8613_v39 = vrot.slane %v8579_v21, 6  ;;  %v8862_v27 = vrot.slane %v8856_v9, 1  ;;  %v8870_v47 = vrot.slane %v8856_v9, 3  ;;  %v8873_v56 = vrot.slane %v8856_v9, 4 }
 0x347   : > { %10318 = vst [vmem:[#allocation40_spill] sm:$0xff] %v8532_v17  ;;  %v8882_v59 = vrot.slane %v8856_v9, 6  ;;  %v8886_v44 = vrot.slane %v8856_v9, 7 }
 0x348   : > { %3577 = vst [vmem:[#allocation1 + $0x4] ss:$9 sm:$0xff] %v8513_v7  ;;  %v8757_v7 = vld [vmem:[#allocation4 + $0x1] sm:$0xff] }
 0x349   : > { %3578 = vst [vmem:[#allocation1 + $0x5] ss:$9 sm:$0xff] %v8525_v32  ;;  %v6917_v32 = vld [vmem:[%s10069_s7 + $0x38] sm:$0xff] }
 0x34a   : > { %3579 = vst [vmem:[#allocation1 + $0x6] ss:$9 sm:$0xff] %v8529_v37  ;;  %v3428_v37 = vld [vmem:[%s10069_s7] sm:$0xff]  ;;  %4502 = vmatpush.msrb.mxu2 %v6917_v32 }
 0x34b   : > { %3580 = vst [vmem:[#allocation1 + $0x7] ss:$9 sm:$0xff] %v8532_v17  ;;  %3837 = vmatpush.msrb.mxu3 %v3428_v37 }
 0x34c   : > { %3328 = vst.msk [vmem:[#allocation4 + $0x81] sm:$0xff] %vm2506_vm10, %v3299_v46 }
 0x34d   : > { %10319 = vst [vmem:[#allocation41_spill] sm:$0xff] %v8542_v36 }
 0x34e   : > { %10320 = vst [vmem:[#allocation42_spill] sm:$0xff] %v8545_v48 }
 0x34f   : > { %10321 = vst [vmem:[#allocation43_spill] sm:$0xff] %v8547_v42 }
 0x350   : > { %10322 = vst [vmem:[#allocation44_spill] sm:$0xff] %v8550_v52 }
 0x351   : > { %10323 = vst [vmem:[#allocation45_spill] sm:$0xff] %v8555_v13 }
 0x352   : > { %v3581_v35 = vld [vmem:[#allocation1] sm:$0xff]  ;;  %10324 = vst [vmem:[#allocation46_spill] sm:$0xff] %v8560_v24 }
 0x353   : > { %3582 = vst [vmem:[#allocation1] ss:$9 sm:$0xff] %v8542_v36  ;;  %6874 = vmatmul.msk.f32.gmra.mxu2 %vm2506_vm10, %v3581_v35  ;;  %v8622_v46 = vld [vmem:[#allocation4 + $0x80] sm:$0xff] }
 0x354   : > { %3583 = vst [vmem:[#allocation1 + $0x1] ss:$9 sm:$0xff] %v8545_v48  ;;  %v8626_v35 = vrot.slane %v8622_v46, 1  ;;  %v8645_v34 = vrot.slane %v8622_v46, 6  ;;  %v8745_v48 = vld [vmem:[#allocation4 + $0x41] sm:$0xff] }
 0x355   : > { %3584 = vst [vmem:[#allocation1 + $0x2] ss:$9 sm:$0xff] %v8550_v52  ;;  %v8764_v16 = vrot.slane %v8745_v48, 1  ;;  %v8767_v20 = vrot.slane %v8745_v48, 2  ;;  %v8771_v32 = vrot.slane %v8745_v48, 3  ;;  %v8775_v37 = vrot.slane %v8745_v48, 4 }
 0x356   : > { %3585 = vst [vmem:[#allocation1 + $0x3] ss:$9 sm:$0xff] %v8555_v13  ;;  %v8788_v38 = vrot.slane %v8745_v48, 7 }
 0x357   : > { %10325 = vst [vmem:[#allocation47_spill] sm:$0xff] %v8564_v51 }
 0x358   : > { %3586 = vst [vmem:[#allocation1 + $0x4] ss:$9 sm:$0xff] %v3438_v3  ;;  %v8629_v3 = vrot.slane %v8622_v46, 2 }
 0x359   : > { %3587 = vst [vmem:[#allocation1 + $0x5] ss:$9 sm:$0xff] %v8547_v42 }
 0x35a   : > { %3588 = vst [vmem:[#allocation1 + $0x6] ss:$9 sm:$0xff] %v8560_v24 }
 0x35b   : > { %3589 = vst [vmem:[#allocation1 + $0x7] ss:$9 sm:$0xff] %v8564_v51 }
 0x35c   : > { %10326 = vst [vmem:[#allocation48_spill] sm:$0xff] %v8570_v43 }
 0x35d   : > { %10327 = vst [vmem:[#allocation49_spill] sm:$0xff] %v8573_v25 }
 0x35e   : > { %10328 = vst [vmem:[#allocation50_spill] sm:$0xff] %v8576_v1 }
 0x35f   : > { %10329 = vst [vmem:[#allocation51_spill] sm:$0xff] %v8579_v21 }
 0x360   : > { %10330 = vst [vmem:[#allocation52_spill] sm:$0xff] %v8583_v31 }
 0x361   : > { %10331 = vst [vmem:[#allocation53_spill] sm:$0xff] %v8587_v10 }
 0x362   : > { %v3590_v2 = vld [vmem:[#allocation1] sm:$0xff]  ;;  %10332 = vst [vmem:[#allocation54_spill] sm:$0xff] %v8592_v54 }
 0x363   : > { %3591 = vst [vmem:[#allocation1] ss:$9 sm:$0xff] %v8570_v43  ;;  %6875 = vmatmul.msk.f32.gmra.mxu2 %vm2506_vm10, %v3590_v2 }
 0x364   : > { %3592 = vst [vmem:[#allocation1 + $0x1] ss:$9 sm:$0xff] %v8573_v25 }
 0x365   : > { %3593 = vst [vmem:[#allocation1 + $0x2] ss:$9 sm:$0xff] %v8576_v1  ;;  %v8718_v1 = vld [vmem:[#allocation4 + $0x31] sm:$0xff] }
 0x366   : > { %3594 = vst [vmem:[#allocation1 + $0x3] ss:$9 sm:$0xff] %v8583_v31  ;;  %v8722_v43 = vrot.slane %v8718_v1, 1  ;;  %v8725_v51 = vrot.slane %v8718_v1, 2  ;;  %v8729_v24 = vrot.slane %v8718_v1, 3  ;;  %v8733_v42 = vrot.slane %v8718_v1, 4 }
 0x367   : > { %3595 = vst [vmem:[#allocation1 + $0x4] ss:$9 sm:$0xff] %v8587_v10  ;;  %v3332_v10 = vld [vmem:[#allocation4 + $0x29] sm:$0x1]  ;;  %v8737_v13 = vrot.slane %v8718_v1, 5  ;;  %v8743_v52 = vrot.slane %v8718_v1, 6 }
 0x368   : > { %3596 = vst [vmem:[#allocation1 + $0x5] ss:$9 sm:$0xff] %v3440_v55  ;;  %v8632_v55 = vrot.slane %v8622_v46, 3  ;;  %v8748_v36 = vrot.slane %v8718_v1, 7 }
 0x369   : > { %3597 = vst [vmem:[#allocation1 + $0x6] ss:$9 sm:$0xff] %v8579_v21 }
 0x36a   : > { %3598 = vst [vmem:[#allocation1 + $0x7] ss:$9 sm:$0xff] %v8592_v54 }
 0x36b   : > { %10333 = vst [vmem:[#allocation55_spill] sm:$0xff] %v8598_v53 }
 0x36c   : > { %10334 = vst [vmem:[#allocation56_spill] sm:$0xff] %v8601_v23 }
 0x36d   : > { %10335 = vst [vmem:[#allocation57_spill] sm:$0xff] %v8604_v11 }
 0x36e   : > { %10336 = vst [vmem:[#allocation58_spill] sm:$0xff] %v8609_v63 }
 0x36f   : > { %10337 = vst [vmem:[#allocation59_spill] sm:$0xff] %v8613_v39 }
 0x370   : > { %10338 = vst [vmem:[#allocation60_spill] sm:$0xff] %v8617_v61 }
 0x371   : > { %v3599_v12 = vld [vmem:[#allocation1] sm:$0xff]  ;;  %10339 = vst [vmem:[#allocation61_spill] sm:$0xff] %v8622_v46 }
 0x372   : > { %3600 = vst [vmem:[#allocation1] ss:$9 sm:$0xff] %v8598_v53  ;;  %6876 = vmatmul.msk.f32.gmra.mxu2 %vm2506_vm10, %v3599_v12  ;;  %v8637_v12 = vrot.slane %v8622_v46, 4 }
 0x373   : > { %3601 = vst [vmem:[#allocation1 + $0x1] ss:$9 sm:$0xff] %v8601_v23 }
 0x374   : > { %3602 = vst [vmem:[#allocation1 + $0x2] ss:$9 sm:$0xff] %v8604_v11 }
 0x375   : > { %3603 = vst [vmem:[#allocation1 + $0x3] ss:$9 sm:$0xff] %v8609_v63 }
 0x376   : > { %3604 = vst [vmem:[#allocation1 + $0x4] ss:$9 sm:$0xff] %v8613_v39 }
 0x377   : > { %3605 = vst [vmem:[#allocation1 + $0x5] ss:$9 sm:$0xff] %v8617_v61  ;;  %v8649_v61 = vrot.slane %v8622_v46, 7 }
 0x378   : > { %3606 = vst [vmem:[#allocation1 + $0x6] ss:$9 sm:$0xff] %v3442_v19  ;;  %v8641_v19 = vrot.slane %v8622_v46, 5 }
 0x379   : > { %3607 = vst [vmem:[#allocation1 + $0x7] ss:$9 sm:$0xff] %v8622_v46 }
 0x37a   : > { %10340 = vst [vmem:[#allocation62_spill] sm:$0xff] %v8626_v35 }
 0x37b   : > { %10341 = vst [vmem:[#allocation63_spill] sm:$0xff] %v8629_v3 }
 0x37c   : > { %10342 = vst [vmem:[#allocation64_spill] sm:$0xff] %v8632_v55 }
 0x37d   : > { %10343 = vst [vmem:[#allocation65_spill] sm:$0xff] %v8637_v12 }
 0x37e   : > { %10344 = vst [vmem:[#allocation66_spill] sm:$0xff] %v8641_v19 }
 0x37f   : > { %10345 = vst [vmem:[#allocation67_spill] sm:$0xff] %v8645_v34 }
 0x380   : > { %v3608_v2 = vld [vmem:[#allocation1] sm:$0xff]  ;;  %10346 = vst [vmem:[#allocation68_spill] sm:$0xff] %v8649_v61 }
 0x381   : > { %3609 = vst [vmem:[#allocation1] ss:$9 sm:$0xff] %v8626_v35  ;;  %6877 = vmatmul.msk.f32.gmra.mxu2 %vm2506_vm10, %v3608_v2  ;;  %v3444_v2 = vld [vmem:[#allocation4 + $0x88] sm:$0x1] }
 0x382   : > { %3610 = vst [vmem:[#allocation1 + $0x1] ss:$9 sm:$0xff] %v8629_v3  ;;  %v3445_v3 = vld [vmem:[#allocation4 + $0x90] sm:$0xff] }
 0x383   : > { %3611 = vst [vmem:[#allocation1 + $0x2] ss:$9 sm:$0xff] %v8632_v55  ;;  %v3521_v35 = vrot.slane %v3445_v3, 1  ;;  %v3522_v39 = vrot.slane %v3445_v3, 2  ;;  %v3523_v55 = vrot.slane %v3445_v3, 3  ;;  %v3524_v11 = vrot.slane %v3445_v3, 4 }
 0x384   : > { %3612 = vst [vmem:[#allocation1 + $0x3] ss:$9 sm:$0xff] %v8637_v12  ;;  %v3525_v12 = vrot.slane %v3445_v3, 5  ;;  %v3526_v46 = vrot.slane %v3445_v3, 6 }
 0x385   : > { %3613 = vst [vmem:[#allocation1 + $0x4] ss:$9 sm:$0xff] %v8641_v19  ;;  %v3527_v19 = vrot.slane %v3445_v3, 7 }
 0x386   : > { %3614 = vst [vmem:[#allocation1 + $0x5] ss:$9 sm:$0xff] %v8645_v34  ;;  %v8656_v34 = vld [vmem:[#allocation4 + $0x11] sm:$0xff] }
 0x387   : > { %3615 = vst [vmem:[#allocation1 + $0x6] ss:$9 sm:$0xff] %v8649_v61  ;;  %v8659_v23 = vrot.slane %v8656_v34, 1 }
 0x388   : > { %3616 = vst [vmem:[#allocation1 + $0x7] ss:$9 sm:$0xff] %v3444_v2  ;;  %v3446_v2 = vld [vmem:[#allocation4 + $0x98] sm:$0x1] }
 0x389   : > { %10347 = vst [vmem:[#allocation69_spill] sm:$0xff] %v8656_v34 }
 0x38a   : > { %10348 = vst [vmem:[#allocation70_spill] sm:$0xff] %v8659_v23 }
 0x38b   : > { %10363 = vst [vmem:[#allocation85_spill] sm:$0xff] %v8718_v1 }
 0x38c   : > { %10364 = vst [vmem:[#allocation86_spill] sm:$0xff] %v8722_v43 }
 0x38d   : > { %10365 = vst [vmem:[#allocation87_spill] sm:$0xff] %v8725_v51 }
 0x38e   : > { %10366 = vst [vmem:[#allocation88_spill] sm:$0xff] %v8729_v24 }
 0x38f   : > { %v3617_v63 = vld [vmem:[#allocation1] sm:$0xff]  ;;  %10367 = vst [vmem:[#allocation89_spill] sm:$0xff] %v8733_v42 }
 0x390   : > { %3618 = vst [vmem:[#allocation1] ss:$9 sm:$0xff] %v3445_v3  ;;  %6878 = vmatmul.msk.f32.gmra.mxu2 %vm2506_vm10, %v3617_v63  ;;  %v8683_v3 = vrot.slane %v8656_v34, 7 }
 0x391   : > { %3619 = vst [vmem:[#allocation1 + $0x1] ss:$9 sm:$0xff] %v3521_v35  ;;  %v8662_v35 = vrot.slane %v8656_v34, 2 }
 0x392   : > { %3620 = vst [vmem:[#allocation1 + $0x2] ss:$9 sm:$0xff] %v3522_v39  ;;  %v8671_v39 = vrot.slane %v8656_v34, 4 }
 0x393   : > { %3621 = vst [vmem:[#allocation1 + $0x3] ss:$9 sm:$0xff] %v3523_v55  ;;  %v3330_v55 = vld [vmem:[#allocation4 + $0x19] sm:$0x1] }
 0x394   : > { %3622 = vst [vmem:[#allocation1 + $0x4] ss:$9 sm:$0xff] %v3524_v11  ;;  %v8667_v11 = vrot.slane %v8656_v34, 3 }
 0x395   : > { %3623 = vst [vmem:[#allocation1 + $0x5] ss:$9 sm:$0xff] %v3525_v12  ;;  %v8688_v12 = vld [vmem:[#allocation4 + $0x21] sm:$0xff] }
 0x396   : > { %3624 = vst [vmem:[#allocation1 + $0x6] ss:$9 sm:$0xff] %v3526_v46  ;;  %v8679_v46 = vrot.slane %v8656_v34, 6  ;;  %v8698_v53 = vrot.slane %v8688_v12, 3  ;;  %v8702_v54 = vrot.slane %v8688_v12, 4  ;;  %v8706_v21 = vrot.slane %v8688_v12, 5 }
 0x397   : > { %3625 = vst [vmem:[#allocation1 + $0x7] ss:$9 sm:$0xff] %v3527_v19  ;;  %v8716_v31 = vrot.slane %v8688_v12, 7 }
 0x398   : > { %10349 = vst [vmem:[#allocation71_spill] sm:$0xff] %v8662_v35 }
 0x399   : > { %10350 = vst [vmem:[#allocation72_spill] sm:$0xff] %v8667_v11 }
 0x39a   : > { %10351 = vst [vmem:[#allocation73_spill] sm:$0xff] %v8671_v39 }
 0x39b   : > { %10353 = vst [vmem:[#allocation75_spill] sm:$0xff] %v8679_v46 }
 0x39c   : > { %10354 = vst [vmem:[#allocation76_spill] sm:$0xff] %v8683_v3 }
 0x39d   : > { %10355 = vst [vmem:[#allocation77_spill] sm:$0xff] %v8688_v12 }
 0x39e   : > { %v3626_v61 = vld [vmem:[#allocation1] sm:$0xff]  ;;  %10358 = vst [vmem:[#allocation80_spill] sm:$0xff] %v8698_v53 }
 0x39f   : > { %3627 = vst [vmem:[#allocation1] ss:$9 sm:$0xff] %v3446_v2  ;;  %6879 = vmatmul.msk.f32.gmra.mxu2 %vm2506_vm10, %v3626_v61  ;;  %v8675_v61 = vrot.slane %v8656_v34, 5  ;;  %v8691_v2 = vrot.slane %v8688_v12, 1 }
 0x3a0   : > { %10359 = vst [vmem:[#allocation81_spill] sm:$0xff] %v8702_v54 }
 0x3a1   : > { %10352 = vst [vmem:[#allocation74_spill] sm:$0xff] %v8675_v61 }
 0x3a2   : > { %10356 = vst [vmem:[#allocation78_spill] sm:$0xff] %v8691_v2 }
 0x3a3   : > { %10360 = vst [vmem:[#allocation82_spill] sm:$0xff] %v8706_v21 }
 0x3a4   : > { %10362 = vst [vmem:[#allocation84_spill] sm:$0xff] %v8716_v31 }
 0x3a5   : > { %10368 = vst [vmem:[#allocation90_spill] sm:$0xff] %v8737_v13 }
 0x3a6   : > { %v3628_v63 = vld [vmem:[#allocation1] sm:$0xff]  ;;  %10369 = vst [vmem:[#allocation91_spill] sm:$0xff] %v8743_v52 }
 0x3a7   : > { %3701 = vst [vmem:[#allocation1] ss:$9 sm:$0xff] %v8656_v34  ;;  %6880 = vmatmul.msk.f32.gmra.mxu2 %vm2506_vm10, %v3628_v63  ;;  %v8694_v63 = vrot.slane %v8688_v12, 2 }
 0x3a8   : > { %3703 = vst [vmem:[#allocation1 + $0x1] ss:$9 sm:$0xff] %v8659_v23 }
 0x3a9   : > { %3705 = vst [vmem:[#allocation1 + $0x2] ss:$9 sm:$0xff] %v8662_v35 }
 0x3aa   : > { %3707 = vst [vmem:[#allocation1 + $0x3] ss:$9 sm:$0xff] %v8667_v11 }
 0x3ab   : > { %3709 = vst [vmem:[#allocation1 + $0x4] ss:$9 sm:$0xff] %v8671_v39 }
 0x3ac   : > { %3711 = vst [vmem:[#allocation1 + $0x5] ss:$9 sm:$0xff] %v8675_v61 }
 0x3ad   : > { %3713 = vst [vmem:[#allocation1 + $0x6] ss:$9 sm:$0xff] %v8679_v46 }
 0x3ae   : > { %3715 = vst [vmem:[#allocation1 + $0x7] ss:$9 sm:$0xff] %v8683_v3 }
 0x3af   : > { %10357 = vst [vmem:[#allocation79_spill] sm:$0xff] %v8694_v63  ;;  %6918 = vmatmul.msk.f32.vlgmr.msrb.gmra.mxu2 %vm2506_vm10, %v8757_v7 }
 0x3b0   : > { %10370 = vst [vmem:[#allocation92_spill] sm:$0xff] %v8745_v48 }
 0x3b1   : > { %10371 = vst [vmem:[#allocation93_spill] sm:$0xff] %v8748_v36 }
 0x3b2   : > { %10372 = vst [vmem:[#allocation94_spill] sm:$0xff] %v8764_v16 }
 0x3b3   : > { %10373 = vst [vmem:[#allocation95_spill] sm:$0xff] %v8767_v20 }
 0x3b4   : > { %10374 = vst [vmem:[#allocation96_spill] sm:$0xff] %v8771_v32 }
 0x3b5   : > { %v3716_v19 = vld [vmem:[#allocation1] sm:$0xff]  ;;  %10375 = vst [vmem:[#allocation97_spill] sm:$0xff] %v8775_v37 }
 0x3b6   : > { %3717 = vst [vmem:[#allocation1] ss:$9 sm:$0xff] %v3330_v55  ;;  %v8710_v55 = vrot.slane %v8688_v12, 6  ;;  %6881 = vmatmul.msk.f32.vlgmr.msrb.gmra.mxu3 %vm2506_vm10, %v3716_v19  ;;  %v8782_v19 = vrot.slane %v8745_v48, 5 }
 0x3b7   : > { %3718 = vst [vmem:[#allocation1 + $0x1] ss:$9 sm:$0xff] %v8688_v12 }
 0x3b8   : > { %3719 = vst [vmem:[#allocation1 + $0x2] ss:$9 sm:$0xff] %v8691_v2 }
 0x3b9   : > { %3720 = vst [vmem:[#allocation1 + $0x3] ss:$9 sm:$0xff] %v8694_v63 }
 0x3ba   : > { %3721 = vst [vmem:[#allocation1 + $0x4] ss:$9 sm:$0xff] %v8698_v53 }
 0x3bb   : > { %10361 = vst [vmem:[#allocation83_spill] sm:$0xff] %v8710_v55 }
 0x3bc   : > { %3722 = vst [vmem:[#allocation1 + $0x5] ss:$9 sm:$0xff] %v8702_v54 }
 0x3bd   : > { %3723 = vst [vmem:[#allocation1 + $0x6] ss:$9 sm:$0xff] %v8706_v21 }
 0x3be   : > { %3724 = vst [vmem:[#allocation1 + $0x7] ss:$9 sm:$0xff] %v8710_v55 }
 0x3bf   : > { %10376 = vst [vmem:[#allocation98_spill] sm:$0xff] %v8782_v19 }
 0x3c0   : > { %10378 = vst [vmem:[#allocation100_spill] sm:$0xff] %v8788_v38 }
 0x3c1   : > { %10379 = vst [vmem:[#allocation101_spill] sm:$0xff] %v8790_v4 }
 0x3c2   : > { %10381 = vst [vmem:[#allocation103_spill] sm:$0xff] %v8800_v41 }
 0x3c3   : > { %10382 = vst [vmem:[#allocation104_spill] sm:$0xff] %v8804_v45 }
 0x3c4   : > { %10385 = vst [vmem:[#allocation107_spill] sm:$0xff] %v8817_v28 }
 0x3c5   : > { %v3725_v25 = vld [vmem:[#allocation1] sm:$0xff]  ;;  %10386 = vst [vmem:[#allocation108_spill] sm:$0xff] %v8821_v8 }
 0x3c6   : > { %3726 = vst [vmem:[#allocation1] ss:$9 sm:$0xff] %v8716_v31  ;;  %6882 = vmatmul.msk.f32.gmra.mxu3 %vm2506_vm10, %v3725_v25  ;;  %v8797_v25 = vrot.slane %v8790_v4, 1 }
 0x3c7   : > { %3727 = vst [vmem:[#allocation1 + $0x1] ss:$9 sm:$0xff] %v3332_v10  ;;  %v3334_v10 = vld [vmem:[#allocation4 + $0x39] sm:$0x1] }
 0x3c8   : > { %3728 = vst [vmem:[#allocation1 + $0x2] ss:$9 sm:$0xff] %v8718_v1 }
 0x3c9   : > { %3729 = vst [vmem:[#allocation1 + $0x3] ss:$9 sm:$0xff] %v8722_v43 }
 0x3ca   : > { %3730 = vst [vmem:[#allocation1 + $0x4] ss:$9 sm:$0xff] %v8725_v51 }
 0x3cb   : > { %3731 = vst [vmem:[#allocation1 + $0x5] ss:$9 sm:$0xff] %v8729_v24 }
 0x3cc   : > { %3732 = vst [vmem:[#allocation1 + $0x6] ss:$9 sm:$0xff] %v8733_v42 }
 0x3cd   : > { %3733 = vst [vmem:[#allocation1 + $0x7] ss:$9 sm:$0xff] %v8737_v13 }
 0x3ce   : > { %10380 = vst [vmem:[#allocation102_spill] sm:$0xff] %v8797_v25 }
 0x3cf   : > { %10387 = vst [vmem:[#allocation109_spill] sm:$0xff] %v8823_v30 }
 0x3d0   : > { %10389 = vst [vmem:[#allocation111_spill] sm:$0xff] %v8833_v26 }
 0x3d1   : > { %10390 = vst [vmem:[#allocation112_spill] sm:$0xff] %v8839_v57 }
 0x3d2   : > { %10391 = vst [vmem:[#allocation113_spill] sm:$0xff] %v8842_v58 }
 0x3d3   : > { %10392 = vst [vmem:[#allocation114_spill] sm:$0xff] %v8845_v62 }
 0x3d4   : > { %v3734_v17 = vld [vmem:[#allocation1] sm:$0xff]  ;;  %10394 = vst [vmem:[#allocation116_spill] sm:$0xff] %v8854_v60 }
 0x3d5   : > { %3735 = vst [vmem:[#allocation1] ss:$9 sm:$0xff] %v8743_v52  ;;  %6883 = vmatmul.msk.f32.gmra.mxu3 %vm2506_vm10, %v3734_v17  ;;  %v8811_v17 = vrot.slane %v8790_v4, 4 }
 0x3d6   : > { %3736 = vst [vmem:[#allocation1 + $0x1] ss:$9 sm:$0xff] %v8748_v36 }
 0x3d7   : > { %3737 = vst [vmem:[#allocation1 + $0x2] ss:$9 sm:$0xff] %v3334_v10  ;;  %v8785_v10 = vrot.slane %v8745_v48, 6 }
 0x3d8   : > { %3738 = vst [vmem:[#allocation1 + $0x3] ss:$9 sm:$0xff] %v8745_v48 }
 0x3d9   : > { %3739 = vst [vmem:[#allocation1 + $0x4] ss:$9 sm:$0xff] %v8764_v16 }
 0x3da   : > { %3740 = vst [vmem:[#allocation1 + $0x5] ss:$9 sm:$0xff] %v8767_v20 }
 0x3db   : > { %3741 = vst [vmem:[#allocation1 + $0x6] ss:$9 sm:$0xff] %v8771_v32 }
 0x3dc   : > { %3742 = vst [vmem:[#allocation1 + $0x7] ss:$9 sm:$0xff] %v8775_v37 }
 0x3dd   : > { %10377 = vst [vmem:[#allocation99_spill] sm:$0xff] %v8785_v10 }
 0x3de   : > { %10383 = vst [vmem:[#allocation105_spill] sm:$0xff] %v8811_v17 }
 0x3df   : > { %10395 = vst [vmem:[#allocation117_spill] sm:$0xff] %v8856_v9 }
 0x3e0   : > { %10396 = vst [vmem:[#allocation118_spill] sm:$0xff] %v8862_v27 }
 0x3e1   : > { %10398 = vst [vmem:[#allocation120_spill] sm:$0xff] %v8870_v47 }
 0x3e2   : > { %10399 = vst [vmem:[#allocation121_spill] sm:$0xff] %v8873_v56 }
 0x3e3   : > { %v3743_v49 = vld [vmem:[#allocation1] sm:$0xff]  ;;  %10401 = vst [vmem:[#allocation123_spill] sm:$0xff] %v8882_v59 }
 0x3e4   : > { %3744 = vst [vmem:[#allocation1] ss:$9 sm:$0xff] %v8782_v19  ;;  %6884 = vmatmul.msk.f32.gmra.mxu3 %vm2506_vm10, %v3743_v49  ;;  %v8830_v49 = vrot.slane %v8823_v30, 1 }
 0x3e5   : > { %3745 = vst [vmem:[#allocation1 + $0x1] ss:$9 sm:$0xff] %v8785_v10 }
 0x3e6   : > { %3746 = vst [vmem:[#allocation1 + $0x2] ss:$9 sm:$0xff] %v8788_v38 }
 0x3e7   : > { %3747 = vst [vmem:[#allocation1 + $0x3] ss:$9 sm:$0xff] %v3336_v6  ;;  %v8814_v6 = vrot.slane %v8790_v4, 5 }
 0x3e8   : > { %3748 = vst [vmem:[#allocation1 + $0x4] ss:$9 sm:$0xff] %v8790_v4 }
 0x3e9   : > { %3749 = vst [vmem:[#allocation1 + $0x5] ss:$9 sm:$0xff] %v8797_v25 }
 0x3ea   : > { %3750 = vst [vmem:[#allocation1 + $0x6] ss:$9 sm:$0xff] %v8800_v41 }
 0x3eb   : > { %3751 = vst [vmem:[#allocation1 + $0x7] ss:$9 sm:$0xff] %v8804_v45 }
 0x3ec   : > { %10384 = vst [vmem:[#allocation106_spill] sm:$0xff] %v8814_v6 }
 0x3ed   : > { %10388 = vst [vmem:[#allocation110_spill] sm:$0xff] %v8830_v49 }
 0x3ee   : > { %10402 = vst [vmem:[#allocation124_spill] sm:$0xff] %v8886_v44 }
 0x3f2   : > { %v3752_v22 = vld [vmem:[#allocation1] sm:$0xff] }
 0x3f3   : > { %3753 = vst [vmem:[#allocation1] ss:$9 sm:$0xff] %v8811_v17  ;;  %6885 = vmatmul.msk.f32.gmra.mxu3 %vm2506_vm10, %v3752_v22 }
 0x3f4   : > { %3754 = vst [vmem:[#allocation1 + $0x1] ss:$9 sm:$0xff] %v8814_v6 }
 0x3f5   : > { %3755 = vst [vmem:[#allocation1 + $0x2] ss:$9 sm:$0xff] %v8817_v28 }
 0x3f6   : > { %3756 = vst [vmem:[#allocation1 + $0x3] ss:$9 sm:$0xff] %v8821_v8 }
 0x3f7   : > { %3757 = vst [vmem:[#allocation1 + $0x4] ss:$9 sm:$0xff] %v3338_v18  ;;  %v8850_v18 = vrot.slane %v8823_v30, 6 }
 0x3f8   : > { %3758 = vst [vmem:[#allocation1 + $0x5] ss:$9 sm:$0xff] %v8823_v30 }
 0x3f9   : > { %3759 = vst [vmem:[#allocation1 + $0x6] ss:$9 sm:$0xff] %v8830_v49 }
 0x3fa   : > { %3760 = vst [vmem:[#allocation1 + $0x7] ss:$9 sm:$0xff] %v8833_v26 }
 0x3fb   : > { %10393 = vst [vmem:[#allocation115_spill] sm:$0xff] %v8850_v18 }
 0x401   : > { %v3761_v22 = vld [vmem:[#allocation1] sm:$0xff] }
 0x402   : > { %3762 = vst [vmem:[#allocation1] ss:$9 sm:$0xff] %v8839_v57  ;;  %6886 = vmatmul.msk.f32.gmra.mxu3 %vm2506_vm10, %v3761_v22  ;;  %v8867_v22 = vrot.slane %v8856_v9, 2 }
 0x403   : > { %3763 = vst [vmem:[#allocation1 + $0x1] ss:$9 sm:$0xff] %v8842_v58 }
 0x404   : > { %3764 = vst [vmem:[#allocation1 + $0x2] ss:$9 sm:$0xff] %v8845_v62 }
 0x405   : > { %3765 = vst [vmem:[#allocation1 + $0x3] ss:$9 sm:$0xff] %v8850_v18 }
 0x406   : > { %3766 = vst [vmem:[#allocation1 + $0x4] ss:$9 sm:$0xff] %v8854_v60 }
 0x407   : > { %3767 = vst [vmem:[#allocation1 + $0x5] ss:$9 sm:$0xff] %v3340_v15  ;;  %v8878_v15 = vrot.slane %v8856_v9, 5 }
 0x408   : > { %3768 = vst [vmem:[#allocation1 + $0x6] ss:$9 sm:$0xff] %v8856_v9 }
 0x409   : > { %3769 = vst [vmem:[#allocation1 + $0x7] ss:$9 sm:$0xff] %v8862_v27 }
 0x40a   : > { %10397 = vst [vmem:[#allocation119_spill] sm:$0xff] %v8867_v22 }
 0x40b   : > { %10400 = vst [vmem:[#allocation122_spill] sm:$0xff] %v8878_v15 }
 0x410   : > { %v3770_v5 = vld [vmem:[#allocation1] sm:$0xff] }
 0x411   : > { %3771 = vst [vmem:[#allocation1] ss:$9 sm:$0xff] %v8867_v22  ;;  %6887 = vmatmul.msk.f32.gmra.mxu3 %vm2506_vm10, %v3770_v5  ;;  %v8891_v5 = vld [vmem:[#allocation4 + $0x81] sm:$0xff] }
 0x412   : > { %3772 = vst [vmem:[#allocation1 + $0x1] ss:$9 sm:$0xff] %v8870_v47  ;;  %v8895_v14 = vrot.slane %v8891_v5, 1  ;;  %v8898_v0 = vrot.slane %v8891_v5, 2  ;;  %v8901_v29 = vrot.slane %v8891_v5, 3  ;;  %v8906_v40 = vrot.slane %v8891_v5, 4 }
 0x413   : > { %3773 = vst [vmem:[#allocation1 + $0x2] ss:$9 sm:$0xff] %v8873_v56 }
 0x414   : > { %3774 = vst [vmem:[#allocation1 + $0x3] ss:$9 sm:$0xff] %v8878_v15 }
 0x415   : > { %3775 = vst [vmem:[#allocation1 + $0x4] ss:$9 sm:$0xff] %v8882_v59  ;;  %v3344_v59 = vld [vmem:[#allocation4 + $0x89] sm:$0x1] }
 0x416   : > { %3776 = vst [vmem:[#allocation1 + $0x5] ss:$9 sm:$0xff] %v8886_v44  ;;  %v8914_v44 = vrot.slane %v8891_v5, 6 }
 0x417   : > { %10403 = vst [vmem:[#allocation125_spill] sm:$0xff] %v8891_v5 }
 0x418   : > { %3777 = vst [vmem:[#allocation1 + $0x6] ss:$9 sm:$0xff] %v3342_v33  ;;  %v8910_v33 = vrot.slane %v8891_v5, 5 }
 0x419   : > { %3778 = vst [vmem:[#allocation1 + $0x7] ss:$9 sm:$0xff] %v8891_v5 }
 0x41a   : > { %10404 = vst [vmem:[#allocation126_spill] sm:$0xff] %v8895_v14 }
 0x41b   : > { %10405 = vst [vmem:[#allocation127_spill] sm:$0xff] %v8898_v0 }
 0x41c   : > { %10406 = vst [vmem:[#allocation128_spill] sm:$0xff] %v8901_v29 }
 0x41d   : > { %10407 = vst [vmem:[#allocation129_spill] sm:$0xff] %v8906_v40 }
 0x41e   : > { %10408 = vst [vmem:[#allocation130_spill] sm:$0xff] %v8910_v33 }
 0x41f   : > { %10409 = vst [vmem:[#allocation131_spill] sm:$0xff] %v8914_v44 }
 0x420   : > { %v3779_v50 = vld [vmem:[#allocation1] sm:$0xff] }
 0x421   : > { %3780 = vst [vmem:[#allocation1] ss:$9 sm:$0xff] %v8895_v14  ;;  %6888 = vmatmul.msk.f32.gmra.mxu3 %vm2506_vm10, %v3779_v50  ;;  %v8918_v14 = vrot.slane %v8891_v5, 7  ;;  %v3345_v50 = vld [vmem:[#allocation4 + $0x91] sm:$0xff] }
 0x422   : > { %3781 = vst [vmem:[#allocation1 + $0x1] ss:$9 sm:$0xff] %v8898_v0  ;;  %v8923_v0 = vld [vmem:[#allocation4 + $0x11] sm:$0xff]  ;;  %v3422_v15 = vrot.slane %v3345_v50, 2  ;;  %v3424_v47 = vrot.slane %v3345_v50, 4 }
 0x423   : > { %3782 = vst [vmem:[#allocation1 + $0x2] ss:$9 sm:$0xff] %v8901_v29  ;;  %6919 = vmatmul.msk.f32.gmra.mxu2 %vm2506_vm10, %v8923_v0  ;;  %v3421_v29 = vrot.slane %v3345_v50, 1 }
 0x424   : > { %3783 = vst [vmem:[#allocation1 + $0x3] ss:$9 sm:$0xff] %v8906_v40  ;;  %v3423_v40 = vrot.slane %v3345_v50, 3 }
 0x425   : > { %10410 = vst [vmem:[#allocation132_spill] sm:$0xff] %v8918_v14 }
 0x426   : > { %3784 = vst [vmem:[#allocation1 + $0x4] ss:$9 sm:$0xff] %v8910_v33  ;;  %v3425_v33 = vrot.slane %v3345_v50, 5 }
 0x427   : > { %3785 = vst [vmem:[#allocation1 + $0x5] ss:$9 sm:$0xff] %v8914_v44  ;;  %v3426_v44 = vrot.slane %v3345_v50, 6 }
 0x428   : > { %3786 = vst [vmem:[#allocation1 + $0x6] ss:$9 sm:$0xff] %v8918_v14  ;;  %v8928_v14 = vld [vmem:[#allocation4 + $0x21] sm:$0xff] }
 0x429   : > { %3787 = vst [vmem:[#allocation1 + $0x7] ss:$9 sm:$0xff] %v3344_v59  ;;  %v3427_v59 = vrot.slane %v3345_v50, 7 }
 0x42a   : > { %10411 = vst [vmem:[#allocation133_spill] sm:$0xff] %v8923_v0  ;;  %v8932_v0 = vld [vmem:[#allocation4 + $0x31] sm:$0xff] }
 0x42b   : > { %6920 = vmatmul.msk.f32.gmra.mxu2 %vm2506_vm10, %v8928_v14  ;;  %10412 = vst [vmem:[#allocation134_spill] sm:$0xff] %v8932_v0 }
 0x430   : > { %v3788_v56 = vld [vmem:[#allocation1] sm:$0xff] }
 0x431   : > { %3789 = vst [vmem:[#allocation1] ss:$9 sm:$0xff] %v3345_v50  ;;  %6889 = vmatmul.msk.f32.gmra.mxu3 %vm2506_vm10, %v3788_v56  ;;  %v3346_v56 = vld [vmem:[#allocation4 + $0x99] sm:$0x1]  ;;  %v3911_v50 = vrot.slane %v8757_v7, 4 }
 0x432   : > { %3790 = vst [vmem:[#allocation1 + $0x1] ss:$9 sm:$0xff] %v3421_v29 }
 0x433   : > { %3791 = vst [vmem:[#allocation1 + $0x2] ss:$9 sm:$0xff] %v3422_v15  ;;  %6921 = vmatmul.msk.f32.gmra.mxu2 %vm2506_vm10, %v8932_v0  ;;  %v8937_v15 = vld [vmem:[#allocation4 + $0x41] sm:$0xff] }
 0x434   : > { %3792 = vst [vmem:[#allocation1 + $0x3] ss:$9 sm:$0xff] %v3423_v40  ;;  %v3908_v40 = vrot.slane %v8757_v7, 1  ;;  %v8954_v0 = vld [vmem:[#allocation4 + $0x61] sm:$0xff] }
 0x435   : > { %3793 = vst [vmem:[#allocation1 + $0x4] ss:$9 sm:$0xff] %v3424_v47 }
 0x436   : > { %3794 = vst [vmem:[#allocation1 + $0x5] ss:$9 sm:$0xff] %v3425_v33  ;;  %v3910_v33 = vrot.slane %v8757_v7, 3 }
 0x437   : > { %3795 = vst [vmem:[#allocation1 + $0x6] ss:$9 sm:$0xff] %v3426_v44  ;;  %v3909_v44 = vrot.slane %v8757_v7, 2 }
 0x438   : > { %3796 = vst [vmem:[#allocation1 + $0x7] ss:$9 sm:$0xff] %v3427_v59  ;;  %v3912_v59 = vrot.slane %v8757_v7, 5 }
 0x439   : > { %10413 = vst [vmem:[#allocation135_spill] sm:$0xff] %v8937_v15 }
 0x43b   : > { %6922 = vmatmul.msk.f32.gmra.mxu2 %vm2506_vm10, %v8937_v15  ;;  %v8950_v15 = vld [vmem:[#allocation4 + $0x51] sm:$0xff] }
 0x43f   : > { %v3797_v29 = vld [vmem:[#allocation1] sm:$0xff] }
 0x440   : > { %3798 = vst [vmem:[#allocation1] ss:$9 sm:$0xff] %v3346_v56  ;;  %6890 = vmatmul.msk.f32.gmra.mxu3 %vm2506_vm10, %v3797_v29  ;;  %v3913_v56 = vrot.slane %v8757_v7, 6  ;;  %v3914_v29 = vrot.slane %v8757_v7, 7 }
 0x443   : > { %6923 = vmatmul.msk.f32.gmra.mxu2 %vm2506_vm10, %v8950_v15 }
 0x447   : > { %v3799_v47 = vld [vmem:[#allocation1] sm:$0xff] }
 0x448   : > { %3973 = vst [vmem:[#allocation1] ss:$9 sm:$0xff] %v8757_v7  ;;  %6891 = vmatmul.msk.f32.gmra.mxu3 %vm2506_vm10, %v3799_v47  ;;  %v3873_v47 = vld [vmem:[#allocation4 + $0x9] sm:$0x1]  ;;  %v8964_v7 = vld [vmem:[#allocation4 + $0x71] sm:$0xff] }
 0x449   : > { %3975 = vst [vmem:[#allocation1 + $0x1] ss:$9 sm:$0xff] %v3908_v40 }
 0x44a   : > { %3977 = vst [vmem:[#allocation1 + $0x2] ss:$9 sm:$0xff] %v3909_v44  ;;  %v3875_v44 = vld [vmem:[#allocation4 + $0x19] sm:$0x1] }
 0x44b   : > { %3979 = vst [vmem:[#allocation1 + $0x3] ss:$9 sm:$0xff] %v3910_v33  ;;  %6924 = vmatmul.msk.f32.gmra.mxu2 %vm2506_vm10, %v8954_v0 }
 0x44c   : > { %3981 = vst [vmem:[#allocation1 + $0x4] ss:$9 sm:$0xff] %v3911_v50  ;;  %v3877_v50 = vld [vmem:[#allocation4 + $0x29] sm:$0x1] }
 0x44d   : > { %3983 = vst [vmem:[#allocation1 + $0x5] ss:$9 sm:$0xff] %v3912_v59 }
 0x44e   : > { %3985 = vst [vmem:[#allocation1 + $0x6] ss:$9 sm:$0xff] %v3913_v56 }
 0x44f   : > { %3987 = vst [vmem:[#allocation1 + $0x7] ss:$9 sm:$0xff] %v3914_v29  ;;  %v3879_v29 = vld [vmem:[#allocation4 + $0x39] sm:$0x1] }
 0x453   : > { %6925 = vmatmul.msk.f32.gmra.mxu2 %vm2506_vm10, %v8964_v7 }
 0x456   : > { %v8958_v40 = vld [vmem:[#allocation1] sm:$0xff] }
 0x457   : > { %3989 = vst [vmem:[#allocation1] ss:$9 sm:$0xff] %v3873_v47 }
 0x458   : > { %3990 = vst [vmem:[#allocation1 + $0x1] ss:$9 sm:$0xff] %v8656_v34  ;;  %v10480_v34 = vld [vmem:[#allocation56_spill] sm:$0xff] }
 0x459   : > { %3991 = vst [vmem:[#allocation1 + $0x2] ss:$9 sm:$0xff] %v8659_v23  ;;  %v10479_v23 = vld [vmem:[#allocation55_spill] sm:$0xff] }
 0x45a   : > { %3992 = vst [vmem:[#allocation1 + $0x3] ss:$9 sm:$0xff] %v8662_v35  ;;  %v10478_v35 = vld [vmem:[#allocation54_spill] sm:$0xff] }
 0x45b   : > { %3993 = vst [vmem:[#allocation1 + $0x4] ss:$9 sm:$0xff] %v8667_v11  ;;  %6926 = vmatmul.msk.f32.gmra.mxu2 %vm2506_vm10, %v8891_v5 }
 0x45c   : > { %3994 = vst [vmem:[#allocation1 + $0x5] ss:$9 sm:$0xff] %v8671_v39  ;;  %v10476_v39 = vld [vmem:[#allocation53_spill] sm:$0xff] }
 0x45d   : > { %3995 = vst [vmem:[#allocation1 + $0x6] ss:$9 sm:$0xff] %v8675_v61  ;;  %v4168_v61 = vld [vmem:[#allocation4 + $0x68] sm:$0x1] }
 0x45e   : > { %3996 = vst [vmem:[#allocation1 + $0x7] ss:$9 sm:$0xff] %v8679_v46  ;;  %v3839_v46 = vpop.f32.mrf.mxu3 }
 0x465   : > { %v8973_v33 = vld [vmem:[#allocation1] sm:$0xff] }
 0x466   : > { %3998 = vst [vmem:[#allocation1] ss:$9 sm:$0xff] %v8683_v3  ;;  %v10474_v3 = vld [vmem:[#allocation50_spill] sm:$0xff] }
 0x467   : > { %3999 = vst [vmem:[#allocation1 + $0x1] ss:$9 sm:$0xff] %v3875_v44  ;;  %v3881_v44 = vld [vmem:[#allocation4 + $0x49] sm:$0x1] }
 0x468   : > { %4000 = vst [vmem:[#allocation1 + $0x2] ss:$9 sm:$0xff] %v8688_v12  ;;  %v10473_v12 = vld [vmem:[#allocation49_spill] sm:$0xff] }
 0x469   : > { %4001 = vst [vmem:[#allocation1 + $0x3] ss:$9 sm:$0xff] %v8691_v2  ;;  %v10472_v2 = vld [vmem:[#allocation48_spill] sm:$0xff] }
 0x46a   : > { %4002 = vst [vmem:[#allocation1 + $0x4] ss:$9 sm:$0xff] %v8694_v63  ;;  %v10471_v63 = vld [vmem:[#allocation47_spill] sm:$0xff] }
 0x46b   : > { %4003 = vst [vmem:[#allocation1 + $0x5] ss:$9 sm:$0xff] %v8698_v53  ;;  %v10469_v53 = vld [vmem:[#allocation43_spill] sm:$0xff] }
 0x46c   : > { %4004 = vst [vmem:[#allocation1 + $0x6] ss:$9 sm:$0xff] %v8702_v54  ;;  %v10468_v54 = vld [vmem:[#allocation45_spill] sm:$0xff] }
 0x46d   : > { %4005 = vst [vmem:[#allocation1 + $0x7] ss:$9 sm:$0xff] %v8706_v21  ;;  %v4166_v21 = vld [vmem:[#allocation4 + $0x58] sm:$0x1] }
 0x474   : > { %v8982_v59 = vld [vmem:[#allocation1] sm:$0xff] }
 0x475   : > { %4007 = vst [vmem:[#allocation1] ss:$9 sm:$0xff] %v8710_v55  ;;  %v10466_v55 = vld [vmem:[#allocation42_spill] sm:$0xff] }
 0x476   : > { %4008 = vst [vmem:[#allocation1 + $0x1] ss:$9 sm:$0xff] %v8716_v31  ;;  %v10464_v31 = vld [vmem:[#allocation40_spill] sm:$0xff] }
 0x477   : > { %4009 = vst [vmem:[#allocation1 + $0x2] ss:$9 sm:$0xff] %v3877_v50 }
 0x478   : > { %4010 = vst [vmem:[#allocation1 + $0x3] ss:$9 sm:$0xff] %v8718_v1 }
 0x479   : > { %4011 = vst [vmem:[#allocation1 + $0x4] ss:$9 sm:$0xff] %v8722_v43  ;;  %v10463_v43 = vld [vmem:[#allocation39_spill] sm:$0xff] }
 0x47a   : > { %4012 = vst [vmem:[#allocation1 + $0x5] ss:$9 sm:$0xff] %v8725_v51  ;;  %v10462_v51 = vld [vmem:[#allocation38_spill] sm:$0xff] }
 0x47b   : > { %4013 = vst [vmem:[#allocation1 + $0x6] ss:$9 sm:$0xff] %v8729_v24  ;;  %v4164_v24 = vld [vmem:[#allocation4 + $0x48] sm:$0x1] }
 0x47c   : > { %4014 = vst [vmem:[#allocation1 + $0x7] ss:$9 sm:$0xff] %v8733_v42  ;;  %v10459_v42 = vld [vmem:[#allocation36_spill] sm:$0xff] }
 0x483   : > { %v8991_v56 = vld [vmem:[#allocation1] sm:$0xff] }
 0x484   : > { %4016 = vst [vmem:[#allocation1] ss:$9 sm:$0xff] %v8737_v13  ;;  %v10457_v13 = vld [vmem:[#allocation33_spill] sm:$0xff] }
 0x485   : > { %4017 = vst [vmem:[#allocation1 + $0x1] ss:$9 sm:$0xff] %v8743_v52 }
 0x486   : > { %4018 = vst [vmem:[#allocation1 + $0x2] ss:$9 sm:$0xff] %v8748_v36  ;;  %v10456_v36 = vld [vmem:[#allocation32_spill] sm:$0xff] }
 0x487   : > { %4019 = vst [vmem:[#allocation1 + $0x3] ss:$9 sm:$0xff] %v3879_v29  ;;  %v3883_v29 = vld [vmem:[#allocation4 + $0x59] sm:$0x1] }
 0x488   : > { %4020 = vst [vmem:[#allocation1 + $0x4] ss:$9 sm:$0xff] %v8745_v48  ;;  %v10453_v48 = vld [vmem:[#allocation27_spill] sm:$0xff] }
 0x489   : > { %4021 = vst [vmem:[#allocation1 + $0x5] ss:$9 sm:$0xff] %v8764_v16  ;;  %v4446_v16 = vld [vmem:[#allocation4 + $0x91] sm:$0xff] }
 0x48a   : > { %4022 = vst [vmem:[#allocation1 + $0x6] ss:$9 sm:$0xff] %v8767_v20  ;;  %v4162_v20 = vld [vmem:[#allocation4 + $0x38] sm:$0x1] }
 0x48b   : > { %4023 = vst [vmem:[#allocation1 + $0x7] ss:$9 sm:$0xff] %v8771_v32  ;;  %v10450_v32 = vld [vmem:[#allocation26_spill] sm:$0xff] }
 0x492   : > { %v9000_v47 = vld [vmem:[#allocation1] sm:$0xff] }
 0x493   : > { %4025 = vst [vmem:[#allocation1] ss:$9 sm:$0xff] %v8775_v37  ;;  %v10449_v37 = vld [vmem:[#allocation25_spill] sm:$0xff] }
 0x494   : > { %4026 = vst [vmem:[#allocation1 + $0x1] ss:$9 sm:$0xff] %v8782_v19  ;;  %v10448_v19 = vld [vmem:[#allocation24_spill] sm:$0xff] }
 0x495   : > { %4027 = vst [vmem:[#allocation1 + $0x2] ss:$9 sm:$0xff] %v8785_v10  ;;  %v10445_v10 = vld [vmem:[#allocation20_spill] sm:$0xff] }
 0x496   : > { %4028 = vst [vmem:[#allocation1 + $0x3] ss:$9 sm:$0xff] %v8788_v38  ;;  %v10444_v38 = vld [vmem:[#allocation21_spill] sm:$0xff] }
 0x497   : > { %4029 = vst [vmem:[#allocation1 + $0x4] ss:$9 sm:$0xff] %v3881_v44 }
 0x498   : > { %4030 = vst [vmem:[#allocation1 + $0x5] ss:$9 sm:$0xff] %v8790_v4  ;;  %v4160_v4 = vld [vmem:[#allocation4 + $0x28] sm:$0x1] }
 0x499   : > { %4031 = vst [vmem:[#allocation1 + $0x6] ss:$9 sm:$0xff] %v8797_v25  ;;  %v10443_v25 = vld [vmem:[#allocation19_spill] sm:$0xff] }
 0x49a   : > { %4032 = vst [vmem:[#allocation1 + $0x7] ss:$9 sm:$0xff] %v8800_v41 }
 0x4a1   : > { %v9009_v50 = vld [vmem:[#allocation1] sm:$0xff] }
 0x4a2   : > { %4034 = vst [vmem:[#allocation1] ss:$9 sm:$0xff] %v8804_v45  ;;  %v10442_v45 = vld [vmem:[#allocation18_spill] sm:$0xff] }
 0x4a3   : > { %4035 = vst [vmem:[#allocation1 + $0x1] ss:$9 sm:$0xff] %v8811_v17  ;;  %v3885_v17 = vld [vmem:[#allocation4 + $0x69] sm:$0x1] }
 0x4a4   : > { %4036 = vst [vmem:[#allocation1 + $0x2] ss:$9 sm:$0xff] %v8814_v6  ;;  %v10440_v6 = vld [vmem:[#allocation16_spill] sm:$0xff] }
 0x4a5   : > { %4037 = vst [vmem:[#allocation1 + $0x3] ss:$9 sm:$0xff] %v8817_v28 }
 0x4a6   : > { %4038 = vst [vmem:[#allocation1 + $0x4] ss:$9 sm:$0xff] %v8821_v8 }
 0x4a7   : > { %4039 = vst [vmem:[#allocation1 + $0x5] ss:$9 sm:$0xff] %v3883_v29 }
 0x4a8   : > { %4040 = vst [vmem:[#allocation1 + $0x6] ss:$9 sm:$0xff] %v8823_v30  ;;  %v10427_v30 = vld [vmem:[#allocation134_spill] sm:$0xff] }
 0x4a9   : > { %4041 = vst [vmem:[#allocation1 + $0x7] ss:$9 sm:$0xff] %v8830_v49  ;;  %v10416_v49 = vld [vmem:[#allocation122_spill] sm:$0xff] }
 0x4b0   : > { %v9018_v44 = vld [vmem:[#allocation1] sm:$0xff] }
 0x4b1   : > { %4043 = vst [vmem:[#allocation1] ss:$9 sm:$0xff] %v8833_v26  ;;  %v10414_v26 = vld [vmem:[#allocation120_spill] sm:$0xff] }
 0x4b2   : > { %4044 = vst [vmem:[#allocation1 + $0x1] ss:$9 sm:$0xff] %v8839_v57  ;;  %v10415_v57 = vld [vmem:[#allocation121_spill] sm:$0xff] }
 0x4b3   : > { %4045 = vst [vmem:[#allocation1 + $0x2] ss:$9 sm:$0xff] %v8842_v58  ;;  %v3887_v58 = vld [vmem:[#allocation4 + $0x79] sm:$0x1] }
 0x4b4   : > { %4046 = vst [vmem:[#allocation1 + $0x3] ss:$9 sm:$0xff] %v8845_v62  ;;  %v10417_v62 = vld [vmem:[#allocation123_spill] sm:$0xff] }
 0x4b5   : > { %4047 = vst [vmem:[#allocation1 + $0x4] ss:$9 sm:$0xff] %v8850_v18  ;;  %v10418_v18 = vld [vmem:[#allocation124_spill] sm:$0xff] }
 0x4b6   : > { %4048 = vst [vmem:[#allocation1 + $0x5] ss:$9 sm:$0xff] %v8854_v60 }
 0x4b7   : > { %4049 = vst [vmem:[#allocation1 + $0x6] ss:$9 sm:$0xff] %v3885_v17 }
 0x4b8   : > { %4050 = vst [vmem:[#allocation1 + $0x7] ss:$9 sm:$0xff] %v8856_v9  ;;  %v10419_v9 = vld [vmem:[#allocation126_spill] sm:$0xff] }
 0x4bf   : > { %v9027_v29 = vld [vmem:[#allocation1] sm:$0xff] }
 0x4c0   : > { %4052 = vst [vmem:[#allocation1] ss:$9 sm:$0xff] %v8862_v27  ;;  %v10420_v27 = vld [vmem:[#allocation127_spill] sm:$0xff] }
 0x4c1   : > { %4053 = vst [vmem:[#allocation1 + $0x1] ss:$9 sm:$0xff] %v8867_v22  ;;  %v10421_v22 = vld [vmem:[#allocation128_spill] sm:$0xff] }
 0x4c2   : > { %4054 = vst [vmem:[#allocation1 + $0x2] ss:$9 sm:$0xff] %v10414_v26  ;;  %v10422_v26 = vld [vmem:[#allocation129_spill] sm:$0xff] }
 0x4c3   : > { %4055 = vst [vmem:[#allocation1 + $0x3] ss:$9 sm:$0xff] %v10415_v57  ;;  %v10423_v57 = vld [vmem:[#allocation130_spill] sm:$0xff] }
 0x4c4   : > { %4056 = vst [vmem:[#allocation1 + $0x4] ss:$9 sm:$0xff] %v10416_v49 }
 0x4c5   : > { %4057 = vst [vmem:[#allocation1 + $0x5] ss:$9 sm:$0xff] %v10417_v62  ;;  %v6956_v62 = vld [vmem:[%s10069_s7 + $0x20] sm:$0xff] }
 0x4c6   : > { %4058 = vst [vmem:[#allocation1 + $0x6] ss:$9 sm:$0xff] %v10418_v18  ;;  %v10424_v18 = vld [vmem:[#allocation131_spill] sm:$0xff]  ;;  %5131 = vmatpush.msra.mxu2 %v6956_v62  ;;  %v6916_v62 = vld [vmem:[%s10069_s7 + $0x8] sm:$0xff] }
 0x4c7   : > { %4059 = vst [vmem:[#allocation1 + $0x7] ss:$9 sm:$0xff] %v3887_v58  ;;  %v10425_v58 = vld [vmem:[#allocation132_spill] sm:$0xff]  ;;  %4573 = vmatpush.msra.mxu3 %v6916_v62 }
 0x4c8   : > { %v10436_v62 = vld [vmem:[#allocation12_spill] sm:$0xff] }
 0x4ce   : > { %v9036_v17 = vld [vmem:[#allocation1] sm:$0xff] }
 0x4cf   : > { %4061 = vst [vmem:[#allocation1] ss:$9 sm:$0xff] %v8891_v5  ;;  %v10426_v5 = vld [vmem:[#allocation133_spill] sm:$0xff] }
 0x4d0   : > { %4062 = vst [vmem:[#allocation1 + $0x1] ss:$9 sm:$0xff] %v10419_v9  ;;  %6957 = vmatmul.msk.f32.vlgmr.msra.gmra.mxu2 %vm2506_vm10, %v10426_v5  ;;  %v3889_v9 = vld [vmem:[#allocation4 + $0x89] sm:$0x1]  ;;  %6927 = vmatmul.msk.f32.vlgmr.msra.gmra.mxu3 %vm2506_vm10, %v10426_v5  ;;  %v4156_v5 = vld [vmem:[#allocation4 + $0x8] sm:$0x1] }
 0x4d1   : > { %4063 = vst [vmem:[#allocation1 + $0x2] ss:$9 sm:$0xff] %v10420_v27 }
 0x4d2   : > { %4064 = vst [vmem:[#allocation1 + $0x3] ss:$9 sm:$0xff] %v10421_v22 }
 0x4d3   : > { %4065 = vst [vmem:[#allocation1 + $0x4] ss:$9 sm:$0xff] %v10422_v26 }
 0x4d4   : > { %4066 = vst [vmem:[#allocation1 + $0x5] ss:$9 sm:$0xff] %v10423_v57  ;;  %v4155_v57 = vld [vmem:[#allocation4] sm:$0xff] }
 0x4d5   : > { %4067 = vst [vmem:[#allocation1 + $0x6] ss:$9 sm:$0xff] %v10424_v18  ;;  %v4191_v26 = vrot.slane %v4155_v57, 1  ;;  %v4192_v22 = vrot.slane %v4155_v57, 2  ;;  %v6892_v18 = vld [vmem:[%s10069_s7 + $0x30] sm:$0xff]  ;;  %v4193_v49 = vrot.slane %v4155_v57, 3 }
 0x4d6   : > { %4068 = vst [vmem:[#allocation1 + $0x7] ss:$9 sm:$0xff] %v10425_v58  ;;  %4109 = vmatpush.msrb.mxu0 %v6892_v18  ;;  %v4195_v60 = vrot.slane %v4155_v57, 5  ;;  %v4196_v8 = vrot.slane %v4155_v57, 6  ;;  %v4197_v28 = vrot.slane %v4155_v57, 7  ;;  %v10428_v18 = vld [vmem:[#allocation135_spill] sm:$0xff] }
 0x4d7   : > { %6893 = vmatmul.msk.f32.vlgmr.msrb.gmra.mxu0 %vm2506_vm10, %v8958_v40 }
 0x4d8   : > { %6958 = vmatmul.msk.f32.gmra.mxu2 %vm2506_vm10, %v8928_v14  ;;  %6928 = vmatmul.msk.f32.gmra.mxu3 %vm2506_vm10, %v8928_v14  ;;  %v10431_v14 = vld [vmem:[#allocation7_spill] sm:$0xff] }
 0x4dd   : > { %v9051_v27 = vld [vmem:[#allocation1] sm:$0xff] }
 0x4de   : > { %4070 = vst [vmem:[#allocation1] ss:$9 sm:$0xff] %v3889_v9  ;;  %v4194_v9 = vrot.slane %v4155_v57, 4 }
 0x4df   : > { %6894 = vmatmul.msk.f32.gmra.mxu0 %vm2506_vm10, %v8973_v33  ;;  %v10435_v33 = vld [vmem:[#allocation11_spill] sm:$0xff] }
 0x4e0   : > { %6959 = vmatmul.msk.f32.gmra.mxu2 %vm2506_vm10, %v10427_v30  ;;  %6929 = vmatmul.msk.f32.gmra.mxu3 %vm2506_vm10, %v10427_v30 }
 0x4e5   : > { %v9061_v58 = vld [vmem:[#allocation1] sm:$0xff] }
 0x4e6   : > { %4256 = vst [vmem:[#allocation1] ss:$9 sm:$0xff] %v4155_v57  ;;  %v10429_v57 = vld [vmem:[#allocation5_spill] sm:$0xff] }
 0x4e7   : > { %4258 = vst [vmem:[#allocation1 + $0x1] ss:$9 sm:$0xff] %v4191_v26  ;;  %v9075_v26 = vpop.f32.mrf.mxu2  ;;  %6895 = vmatmul.msk.f32.gmra.mxu0 %vm2506_vm10, %v8982_v59  ;;  %v4158_v59 = vld [vmem:[#allocation4 + $0x18] sm:$0x1] }
 0x4e8   : > { %4260 = vst [vmem:[#allocation1 + $0x2] ss:$9 sm:$0xff] %v4192_v22  ;;  %6960 = vmatmul.msk.f32.gmra.mxu2 %vm2506_vm10, %v10428_v18  ;;  %6930 = vmatmul.msk.f32.gmra.mxu3 %vm2506_vm10, %v10428_v18  ;;  %v10439_v18 = vld [vmem:[#allocation15_spill] sm:$0xff] }
 0x4e9   : > { %4262 = vst [vmem:[#allocation1 + $0x3] ss:$9 sm:$0xff] %v4193_v49  ;;  %v10434_v49 = vld [vmem:[#allocation10_spill] sm:$0xff] }
 0x4ea   : > { %4264 = vst [vmem:[#allocation1 + $0x4] ss:$9 sm:$0xff] %v4194_v9 }
 0x4eb   : > { %4266 = vst [vmem:[#allocation1 + $0x5] ss:$9 sm:$0xff] %v4195_v60  ;;  %v10430_v60 = vld [vmem:[#allocation6_spill] sm:$0xff] }
 0x4ec   : > { %4268 = vst [vmem:[#allocation1 + $0x6] ss:$9 sm:$0xff] %v4196_v8  ;;  %v10432_v8 = vld [vmem:[#allocation8_spill] sm:$0xff] }
 0x4ed   : > { %4270 = vst [vmem:[#allocation1 + $0x7] ss:$9 sm:$0xff] %v4197_v28  ;;  %v10433_v28 = vld [vmem:[#allocation9_spill] sm:$0xff] }
 0x4ef   : > { %v9091_v22 = vpop.f32.mrf.mxu2  ;;  %6896 = vmatmul.msk.f32.gmra.mxu0 %vm2506_vm10, %v8991_v56  ;;  %v10438_v56 = vld [vmem:[#allocation14_spill] sm:$0xff] }
 0x4f0   : > { %6961 = vmatmul.msk.f32.gmra.mxu2 %vm2506_vm10, %v8950_v15  ;;  %6931 = vmatmul.msk.f32.gmra.mxu3 %vm2506_vm10, %v8950_v15  ;;  %v5089_v15 = vld [vmem:[#allocation4 + $0x81] sm:$0xff] }
 0x4f4   : > { %v9077_v40 = vld [vmem:[#allocation1] sm:$0xff] }
 0x4f5   : > { %4272 = vst [vmem:[#allocation1] ss:$9 sm:$0xff] %v4156_v5  ;;  %v10437_v5 = vld [vmem:[#allocation13_spill] sm:$0xff] }
 0x4f6   : > { %4273 = vst [vmem:[#allocation1 + $0x1] ss:$9 sm:$0xff] %v10429_v57 }
 0x4f7   : > { %4274 = vst [vmem:[#allocation1 + $0x2] ss:$9 sm:$0xff] %v10430_v60  ;;  %v9103_v9 = vpop.f32.mrf.mxu2  ;;  %6897 = vmatmul.msk.f32.gmra.mxu0 %vm2506_vm10, %v9000_v47 }
 0x4f8   : > { %4275 = vst [vmem:[#allocation1 + $0x3] ss:$9 sm:$0xff] %v10431_v14  ;;  %6962 = vmatmul.msk.f32.gmra.mxu2 %vm2506_vm10, %v8954_v0  ;;  %6932 = vmatmul.msk.f32.gmra.mxu3 %vm2506_vm10, %v8954_v0  ;;  %v10446_v0 = vld [vmem:[#allocation22_spill] sm:$0xff] }
 0x4f9   : > { %4276 = vst [vmem:[#allocation1 + $0x4] ss:$9 sm:$0xff] %v10432_v8 }
 0x4fa   : > { %4277 = vst [vmem:[#allocation1 + $0x5] ss:$9 sm:$0xff] %v10433_v28 }
 0x4fb   : > { %4278 = vst [vmem:[#allocation1 + $0x6] ss:$9 sm:$0xff] %v10434_v49 }
 0x4fc   : > { %4279 = vst [vmem:[#allocation1 + $0x7] ss:$9 sm:$0xff] %v10435_v33 }
 0x4ff   : > { %6898 = vmatmul.msk.f32.gmra.mxu0 %vm2506_vm10, %v9009_v50  ;;  %v9121_v47 = vpop.f32.mrf.mxu2  ;;  %v10447_v50 = vld [vmem:[#allocation23_spill] sm:$0xff] }
 0x500   : > { %6963 = vmatmul.msk.f32.gmra.mxu2 %vm2506_vm10, %v8964_v7  ;;  %6933 = vmatmul.msk.f32.gmra.mxu3 %vm2506_vm10, %v8964_v7  ;;  %v10452_v7 = vld [vmem:[#allocation29_spill] sm:$0xff] }
 0x503   : > { %v9100_v30 = vld [vmem:[#allocation1] sm:$0xff] }
 0x504   : > { %4281 = vst [vmem:[#allocation1] ss:$9 sm:$0xff] %v10436_v62 }
 0x505   : > { %4282 = vst [vmem:[#allocation1 + $0x1] ss:$9 sm:$0xff] %v4158_v59  ;;  %v10441_v59 = vld [vmem:[#allocation17_spill] sm:$0xff] }
 0x506   : > { %4283 = vst [vmem:[#allocation1 + $0x2] ss:$9 sm:$0xff] %v10437_v5 }
 0x507   : > { %4284 = vst [vmem:[#allocation1 + $0x3] ss:$9 sm:$0xff] %v10438_v56  ;;  %6899 = vmatmul.msk.f32.gmra.mxu0 %vm2506_vm10, %v9018_v44  ;;  %v10451_v44 = vld [vmem:[#allocation28_spill] sm:$0xff] }
 0x508   : > { %4285 = vst [vmem:[#allocation1 + $0x4] ss:$9 sm:$0xff] %v10439_v18  ;;  %6964 = vmatmul.msk.f32.gmra.mxu2 %vm2506_vm10, %v5089_v15  ;;  %6934 = vmatmul.msk.f32.gmra.mxu3 %vm2506_vm10, %v5089_v15  ;;  %v10455_v15 = vld [vmem:[#allocation31_spill] sm:$0xff] }
 0x509   : > { %4286 = vst [vmem:[#allocation1 + $0x5] ss:$9 sm:$0xff] %v10440_v6 }
 0x50a   : > { %4287 = vst [vmem:[#allocation1 + $0x6] ss:$9 sm:$0xff] %v10441_v59 }
 0x50b   : > { %4288 = vst [vmem:[#allocation1 + $0x7] ss:$9 sm:$0xff] %v10442_v45 }
 0x50f   : > { %6900 = vmatmul.msk.f32.gmra.mxu0 %vm2506_vm10, %v9027_v29  ;;  %v10454_v29 = vld [vmem:[#allocation30_spill] sm:$0xff] }
 0x510   : > { %6935 = vmatmul.msk.f32.gmra.mxu3 %vm2506_vm10, %v4446_v16  ;;  %v10461_v16 = vld [vmem:[#allocation35_spill] sm:$0xff] }
 0x512   : > { %v4289_v41 = vld [vmem:[#allocation1] sm:$0xff] }
 0x513   : > { %4290 = vst [vmem:[#allocation1] ss:$9 sm:$0xff] %v10443_v25 }
 0x514   : > { %4291 = vst [vmem:[#allocation1 + $0x1] ss:$9 sm:$0xff] %v10444_v38 }
 0x515   : > { %4292 = vst [vmem:[#allocation1 + $0x2] ss:$9 sm:$0xff] %v4160_v4 }
 0x516   : > { %4293 = vst [vmem:[#allocation1 + $0x3] ss:$9 sm:$0xff] %v10445_v10 }
 0x517   : > { %4294 = vst [vmem:[#allocation1 + $0x4] ss:$9 sm:$0xff] %v10446_v0  ;;  %6901 = vmatmul.msk.f32.gmra.mxu0 %vm2506_vm10, %v9036_v17  ;;  %v10460_v17 = vld [vmem:[#allocation37_spill] sm:$0xff] }
 0x518   : > { %4295 = vst [vmem:[#allocation1 + $0x5] ss:$9 sm:$0xff] %v10447_v50 }
 0x519   : > { %4296 = vst [vmem:[#allocation1 + $0x6] ss:$9 sm:$0xff] %v10448_v19 }
 0x51a   : > { %4297 = vst [vmem:[#allocation1 + $0x7] ss:$9 sm:$0xff] %v10449_v37 }
 0x51f   : > { %6902 = vmatmul.msk.f32.gmra.mxu0 %vm2506_vm10, %v9051_v27  ;;  %v6904_v27 = vld [vmem:[%s10069_s7 + $0x40] sm:$0xff] }
 0x520   : > { %4392 = vmatpush.msrb.mxu1 %v6904_v27  ;;  %v10470_v27 = vld [vmem:[#allocation46_spill] sm:$0xff] }
 0x521   : > { %v4298_v4 = vld [vmem:[#allocation1] sm:$0xff]  ;;  %6905 = vmatmul.msk.f32.vlgmr.msrb.gmra.mxu1 %vm2506_vm10, %v9077_v40 }
 0x522   : > { %4299 = vst [vmem:[#allocation1] ss:$9 sm:$0xff] %v10450_v32 }
 0x523   : > { %4300 = vst [vmem:[#allocation1 + $0x1] ss:$9 sm:$0xff] %v10451_v44 }
 0x524   : > { %4301 = vst [vmem:[#allocation1 + $0x2] ss:$9 sm:$0xff] %v10452_v7 }
 0x525   : > { %4302 = vst [vmem:[#allocation1 + $0x3] ss:$9 sm:$0xff] %v4162_v20  ;;  %v10458_v20 = vld [vmem:[#allocation34_spill] sm:$0xff] }
 0x526   : > { %4303 = vst [vmem:[#allocation1 + $0x4] ss:$9 sm:$0xff] %v10453_v48 }
 0x527   : > { %4304 = vst [vmem:[#allocation1 + $0x5] ss:$9 sm:$0xff] %v10454_v29  ;;  %6903 = vmatmul.msk.f32.gmra.mxu0 %vm2506_vm10, %v9061_v58  ;;  %v10467_v58 = vld [vmem:[#allocation44_spill] sm:$0xff] }
 0x528   : > { %4305 = vst [vmem:[#allocation1 + $0x6] ss:$9 sm:$0xff] %v10455_v15 }
 0x529   : > { %4306 = vst [vmem:[#allocation1 + $0x7] ss:$9 sm:$0xff] %v10456_v36  ;;  %6906 = vmatmul.msk.f32.gmra.mxu1 %vm2506_vm10, %v9100_v30  ;;  %v10477_v30 = vld [vmem:[#allocation51_spill] sm:$0xff] }
 0x530   : > { %v4307_v52 = vld [vmem:[#allocation1] sm:$0xff] }
 0x531   : > { %4308 = vst [vmem:[#allocation1] ss:$9 sm:$0xff] %v10457_v13  ;;  %6907 = vmatmul.msk.f32.gmra.mxu1 %vm2506_vm10, %v4289_v41  ;;  %v3842_v41 = vpop.f32.mrf.mxu3 }
 0x532   : > { %4309 = vst [vmem:[#allocation1 + $0x1] ss:$9 sm:$0xff] %v10458_v20 }
 0x533   : > { %4310 = vst [vmem:[#allocation1 + $0x2] ss:$9 sm:$0xff] %v10459_v42 }
 0x534   : > { %4311 = vst [vmem:[#allocation1 + $0x3] ss:$9 sm:$0xff] %v10460_v17 }
 0x535   : > { %4312 = vst [vmem:[#allocation1 + $0x4] ss:$9 sm:$0xff] %v4164_v24  ;;  %v10465_v24 = vld [vmem:[#allocation41_spill] sm:$0xff] }
 0x536   : > { %4313 = vst [vmem:[#allocation1 + $0x5] ss:$9 sm:$0xff] %v10461_v16 }
 0x537   : > { %4314 = vst [vmem:[#allocation1 + $0x6] ss:$9 sm:$0xff] %v10462_v51 }
 0x538   : > { %4315 = vst [vmem:[#allocation1 + $0x7] ss:$9 sm:$0xff] %v10463_v43 }
 0x539   : > { %6908 = vmatmul.msk.f32.gmra.mxu1 %vm2506_vm10, %v4298_v4  ;;  %v4170_v4 = vld [vmem:[#allocation4 + $0x78] sm:$0x1] }
 0x53f   : > { %v4316_v1 = vld [vmem:[#allocation1] sm:$0xff] }
 0x540   : > { %4317 = vst [vmem:[#allocation1] ss:$9 sm:$0xff] %v10464_v31 }
 0x541   : > { %4318 = vst [vmem:[#allocation1 + $0x1] ss:$9 sm:$0xff] %v10465_v24  ;;  %6909 = vmatmul.msk.f32.gmra.mxu1 %vm2506_vm10, %v4307_v52  ;;  %v3845_v52 = vpop.f32.mrf.mxu3 }
 0x542   : > { %4319 = vst [vmem:[#allocation1 + $0x2] ss:$9 sm:$0xff] %v10466_v55 }
 0x543   : > { %4320 = vst [vmem:[#allocation1 + $0x3] ss:$9 sm:$0xff] %v10467_v58 }
 0x544   : > { %4321 = vst [vmem:[#allocation1 + $0x4] ss:$9 sm:$0xff] %v10468_v54 }
 0x545   : > { %4322 = vst [vmem:[#allocation1 + $0x5] ss:$9 sm:$0xff] %v4166_v21  ;;  %v10475_v21 = vld [vmem:[#allocation52_spill] sm:$0xff] }
 0x546   : > { %4323 = vst [vmem:[#allocation1 + $0x6] ss:$9 sm:$0xff] %v10469_v53 }
 0x547   : > { %4324 = vst [vmem:[#allocation1 + $0x7] ss:$9 sm:$0xff] %v10470_v27 }
 0x549   : > { %6910 = vmatmul.msk.f32.gmra.mxu1 %vm2506_vm10, %v4316_v1 }
 0x54e   : > { %v4325_v40 = vld [vmem:[#allocation1] sm:$0xff] }
 0x54f   : > { %4326 = vst [vmem:[#allocation1] ss:$9 sm:$0xff] %v10471_v63 }
 0x550   : > { %4327 = vst [vmem:[#allocation1 + $0x1] ss:$9 sm:$0xff] %v10472_v2  ;;  %v10485_v2 = vld [vmem:[#allocation61_spill] sm:$0xff] }
 0x551   : > { %4328 = vst [vmem:[#allocation1 + $0x2] ss:$9 sm:$0xff] %v10473_v12  ;;  %v10484_v12 = vld [vmem:[#allocation60_spill] sm:$0xff]  ;;  %6911 = vmatmul.msk.f32.gmra.mxu1 %vm2506_vm10, %v4325_v40  ;;  %v3846_v40 = vadd.f32 %v3845_v52, %v9103_v9 }
 0x552   : > { %4329 = vst [vmem:[#allocation1 + $0x3] ss:$9 sm:$0xff] %v10474_v3  ;;  %v10481_v3 = vld [vmem:[#allocation57_spill] sm:$0xff] }
 0x553   : > { %4330 = vst [vmem:[#allocation1 + $0x4] ss:$9 sm:$0xff] %v10475_v21  ;;  %v10482_v21 = vld [vmem:[#allocation58_spill] sm:$0xff] }
 0x554   : > { %4331 = vst [vmem:[#allocation1 + $0x5] ss:$9 sm:$0xff] %v10476_v39  ;;  %v10483_v39 = vld [vmem:[#allocation59_spill] sm:$0xff] }
 0x555   : > { %4332 = vst [vmem:[#allocation1 + $0x6] ss:$9 sm:$0xff] %v4168_v61  ;;  %v3840_v61 = vadd.f32 %v3839_v46, %v9075_v26  ;;  %v10488_v46 = vld [vmem:[#allocation64_spill] sm:$0xff]  ;;  %v3843_v26 = vadd.f32 %v3842_v41, %v9091_v22  ;;  %v4172_v22 = vld [vmem:[#allocation4 + $0x88] sm:$0x1] }
 0x556   : > { %4333 = vst [vmem:[#allocation1 + $0x7] ss:$9 sm:$0xff] %v10477_v30  ;;  %v4111_v30 = vpop.f32.mrf.mxu0 }
 0x55d   : > { %v4334_v11 = vld [vmem:[#allocation1] sm:$0xff] }
 0x55e   : > { %4335 = vst [vmem:[#allocation1] ss:$9 sm:$0xff] %v10478_v35  ;;  %v9191_v35 = vadd.f32 %v4111_v30, %v3840_v61  ;;  %v10489_v30 = vld [vmem:[#allocation65_spill] sm:$0xff]  ;;  %v10490_v61 = vld [vmem:[#allocation66_spill] sm:$0xff]  ;;  %6912 = vmatmul.msk.f32.gmra.mxu1 %vm2506_vm10, %v4334_v11 }
 0x55f   : > { %4336 = vst [vmem:[#allocation1 + $0x1] ss:$9 sm:$0xff] %v10479_v23  ;;  %v4114_v23 = vpop.f32.mrf.mxu0 }
 0x560   : > { %4337 = vst [vmem:[#allocation1 + $0x2] ss:$9 sm:$0xff] %v10480_v34  ;;  %v9202_v1 = vadd.f32 %v4114_v23, %v3843_v26 }
 0x561   : > { %4338 = vst [vmem:[#allocation1 + $0x3] ss:$9 sm:$0xff] %v10481_v3  ;;  %v10486_v3 = vld [vmem:[#allocation62_spill] sm:$0xff] }
 0x562   : > { %4339 = vst [vmem:[#allocation1 + $0x4] ss:$9 sm:$0xff] %v10482_v21  ;;  %v10493_v21 = vld [vmem:[#allocation68_spill] sm:$0xff] }
 0x563   : > { %4340 = vst [vmem:[#allocation1 + $0x5] ss:$9 sm:$0xff] %v10483_v39  ;;  %v10487_v39 = vld [vmem:[#allocation63_spill] sm:$0xff] }
 0x564   : > { %4341 = vst [vmem:[#allocation1 + $0x6] ss:$9 sm:$0xff] %v10484_v12  ;;  %v10492_v12 = vld [vmem:[#allocation67_spill] sm:$0xff] }
 0x565   : > { %4342 = vst [vmem:[#allocation1 + $0x7] ss:$9 sm:$0xff] %v4170_v4  ;;  %v3848_v4 = vpop.f32.mrf.mxu3 }
 0x566   : > { %10491 = vst [vmem:[#allocation133_spill] sm:$0xff] %v9202_v1  ;;  %v3849_v23 = vadd.f32 %v3848_v4, %v9121_v47  ;;  %v4693_v47 = vld [vmem:[#allocation4 + $0x18] sm:$0x1] }
 0x56c   : > { %v4343_v34 = vld [vmem:[#allocation1] sm:$0xff] }
 0x56d   : > { %4344 = vst [vmem:[#allocation1] ss:$9 sm:$0xff] %v10485_v2  ;;  %v4117_v2 = vpop.f32.mrf.mxu0  ;;  %6913 = vmatmul.msk.f32.gmra.mxu1 %vm2506_vm10, %v4343_v34 }
 0x56e   : > { %4345 = vst [vmem:[#allocation1 + $0x1] ss:$9 sm:$0xff] %v10486_v3 }
 0x56f   : > { %4346 = vst [vmem:[#allocation1 + $0x2] ss:$9 sm:$0xff] %v10487_v39  ;;  %v3851_v39 = vpop.f32.mrf.mxu3 }
 0x570   : > { %4347 = vst [vmem:[#allocation1 + $0x3] ss:$9 sm:$0xff] %v10488_v46  ;;  %v9208_v46 = vadd.f32 %v4117_v2, %v3846_v40  ;;  %v10509_v40 = vld [vmem:[#allocation63_spill] sm:$0xff] }
 0x571   : > { %4348 = vst [vmem:[#allocation1 + $0x4] ss:$9 sm:$0xff] %v10489_v30  ;;  %v3680_v30 = vpop.f32.mrf.mxu2 }
 0x572   : > { %4349 = vst [vmem:[#allocation1 + $0x5] ss:$9 sm:$0xff] %v10490_v61  ;;  %v3852_v34 = vadd.f32 %v3851_v39, %v3680_v30 }
 0x573   : > { %4350 = vst [vmem:[#allocation1 + $0x6] ss:$9 sm:$0xff] %v10492_v12 }
 0x574   : > { %4351 = vst [vmem:[#allocation1 + $0x7] ss:$9 sm:$0xff] %v10493_v21 }
 0x575   : > { %v4120_v3 = vpop.f32.mrf.mxu0 }
 0x576   : > { %v9212_v26 = vadd.f32 %v4120_v3, %v3849_v23  ;;  %v4707_v23 = vld [vmem:[#allocation4 + $0x88] sm:$0x1] }
 0x577   : > { %v3854_v11 = vpop.f32.mrf.mxu3 }
 0x579   : > { %v3683_v2 = vpop.f32.mrf.mxu2 }
 0x57a   : > { %v3855_v9 = vadd.f32 %v3854_v11, %v3683_v2  ;;  %v10512_v11 = vld [vmem:[#allocation68_spill] sm:$0xff] }
 0x57b   : > { %v4352_v41 = vld [vmem:[#allocation1] sm:$0xff] }
 0x57c   : > { %4353 = vst [vmem:[#allocation1] ss:$9 sm:$0xff] %v4172_v22  ;;  %6914 = vmatmul.msk.f32.gmra.mxu1 %vm2506_vm10, %v4352_v41  ;;  %v10510_v22 = vld [vmem:[#allocation64_spill] sm:$0xff]  ;;  %v10511_v41 = vld [vmem:[#allocation65_spill] sm:$0xff] }
 0x57d   : > { %v4123_v21 = vpop.f32.mrf.mxu0 }
 0x57e   : > { %v9222_v3 = vadd.f32 %v4123_v21, %v3852_v34  ;;  %v10513_v34 = vld [vmem:[#allocation69_spill] sm:$0xff] }
 0x583   : > { %v4354_v1 = vld [vmem:[#allocation1] sm:$0xff] }
 0x584   : > { %4782 = vst [vmem:[#allocation1] ss:$9 sm:$0xff] %v10429_v57  ;;  %6915 = vmatmul.msk.f32.gmra.mxu1 %vm2506_vm10, %v4354_v1  ;;  %v4695_v1 = vld [vmem:[#allocation4 + $0x28] sm:$0x1] }
 0x585   : > { %4784 = vst [vmem:[#allocation1 + $0x1] ss:$9 sm:$0xff] %v10430_v60  ;;  %v4126_v57 = vpop.f32.mrf.mxu0  ;;  %v3857_v60 = vpop.f32.mrf.mxu3 }
 0x586   : > { %4786 = vst [vmem:[#allocation1 + $0x2] ss:$9 sm:$0xff] %v10431_v14  ;;  %v3686_v14 = vpop.f32.mrf.mxu2  ;;  %v9226_v4 = vadd.f32 %v4126_v57, %v3855_v9  ;;  %v10514_v57 = vld [vmem:[#allocation70_spill] sm:$0xff]  ;;  %v10517_v9 = vld [vmem:[#allocation73_spill] sm:$0xff] }
 0x587   : > { %4788 = vst [vmem:[#allocation1 + $0x3] ss:$9 sm:$0xff] %v10432_v8  ;;  %v3858_v8 = vadd.f32 %v3857_v60, %v3686_v14  ;;  %v10515_v60 = vld [vmem:[#allocation71_spill] sm:$0xff]  ;;  %v10516_v14 = vld [vmem:[#allocation72_spill] sm:$0xff] }
 0x588   : > { %4790 = vst [vmem:[#allocation1 + $0x4] ss:$9 sm:$0xff] %v10433_v28  ;;  %v6937_v28 = vld [vmem:[%s10069_s7 + $0x28] sm:$0xff] }
 0x589   : > { %4792 = vst [vmem:[#allocation1 + $0x5] ss:$9 sm:$0xff] %v10434_v49  ;;  %4903 = vmatpush.msra.mxu0 %v6937_v28  ;;  %v10521_v28 = vld [vmem:[#allocation77_spill] sm:$0xff] }
 0x58a   : > { %4794 = vst [vmem:[#allocation1 + $0x6] ss:$9 sm:$0xff] %v10435_v33 }
 0x58b   : > { %4796 = vst [vmem:[#allocation1 + $0x7] ss:$9 sm:$0xff] %v10436_v62 }
 0x58d   : > { %v4129_v39 = vpop.f32.mrf.mxu0  ;;  %v3860_v33 = vpop.f32.mrf.mxu3 }
 0x58e   : > { %v9232_v49 = vadd.f32 %v4129_v39, %v3858_v8  ;;  %v3689_v62 = vpop.f32.mrf.mxu2 }
 0x58f   : > { %v3861_v21 = vadd.f32 %v3860_v33, %v3689_v62  ;;  %v10522_v33 = vld [vmem:[#allocation133_spill] sm:$0xff] }
 0x592   : > { %v4797_v52 = vld [vmem:[#allocation1] sm:$0xff] }
 0x593   : > { %4798 = vst [vmem:[#allocation1] ss:$9 sm:$0xff] %v4693_v47  ;;  %6938 = vmatmul.msk.f32.vlgmr.msra.gmra.mxu0 %vm2506_vm10, %v4797_v52  ;;  %v10520_v47 = vld [vmem:[#allocation76_spill] sm:$0xff] }
 0x594   : > { %4799 = vst [vmem:[#allocation1 + $0x1] ss:$9 sm:$0xff] %v10437_v5  ;;  %v4603_v52 = vld [vmem:[#allocation4 + $0x19] sm:$0x1] }
 0x595   : > { %4800 = vst [vmem:[#allocation1 + $0x2] ss:$9 sm:$0xff] %v10438_v56  ;;  %v4132_v5 = vpop.f32.mrf.mxu0 }
 0x596   : > { %4801 = vst [vmem:[#allocation1 + $0x3] ss:$9 sm:$0xff] %v10439_v18  ;;  %v9241_v30 = vadd.f32 %v4132_v5, %v3861_v21  ;;  %v3863_v18 = vpop.f32.mrf.mxu3  ;;  %v10523_v5 = vld [vmem:[#allocation78_spill] sm:$0xff]  ;;  %v10524_v21 = vld [vmem:[#allocation79_spill] sm:$0xff] }
 0x597   : > { %4802 = vst [vmem:[#allocation1 + $0x4] ss:$9 sm:$0xff] %v10440_v6  ;;  %v3692_v6 = vpop.f32.mrf.mxu2 }
 0x598   : > { %4803 = vst [vmem:[#allocation1 + $0x5] ss:$9 sm:$0xff] %v10441_v59 }
 0x599   : > { %4804 = vst [vmem:[#allocation1 + $0x6] ss:$9 sm:$0xff] %v10442_v45  ;;  %v3864_v45 = vadd.f32 %v3863_v18, %v3692_v6  ;;  %v10527_v18 = vld [vmem:[#allocation82_spill] sm:$0xff]  ;;  %v10528_v6 = vld [vmem:[#allocation83_spill] sm:$0xff] }
 0x59a   : > { %4805 = vst [vmem:[#allocation1 + $0x7] ss:$9 sm:$0xff] %v10443_v25 }
 0x59d   : > { %v4135_v59 = vpop.f32.mrf.mxu0 }
 0x59e   : > { %v9249_v25 = vadd.f32 %v4135_v59, %v3864_v45 }
 0x59f   : > { %v3695_v45 = vpop.f32.mrf.mxu2 }
 0x5a1   : > { %v4806_v56 = vld [vmem:[#allocation1] sm:$0xff] }
 0x5a2   : > { %4807 = vst [vmem:[#allocation1] ss:$9 sm:$0xff] %v10444_v38  ;;  %6939 = vmatmul.msk.f32.gmra.mxu0 %vm2506_vm10, %v4806_v56  ;;  %v10525_v56 = vld [vmem:[#allocation80_spill] sm:$0xff] }
 0x5a3   : > { %4808 = vst [vmem:[#allocation1 + $0x1] ss:$9 sm:$0xff] %v4695_v1  ;;  %v10526_v1 = vld [vmem:[#allocation81_spill] sm:$0xff] }
 0x5a4   : > { %4809 = vst [vmem:[#allocation1 + $0x2] ss:$9 sm:$0xff] %v10445_v10  ;;  %v4697_v10 = vld [vmem:[#allocation4 + $0x38] sm:$0x1] }
 0x5a5   : > { %4810 = vst [vmem:[#allocation1 + $0x3] ss:$9 sm:$0xff] %v10446_v0 }
 0x5a6   : > { %4811 = vst [vmem:[#allocation1 + $0x4] ss:$9 sm:$0xff] %v10447_v50  ;;  %v10500_v50 = vld [vmem:[#allocation54_spill] sm:$0xff] }
 0x5a7   : > { %4812 = vst [vmem:[#allocation1 + $0x5] ss:$9 sm:$0xff] %v10448_v19 }
 0x5a8   : > { %4813 = vst [vmem:[#allocation1 + $0x6] ss:$9 sm:$0xff] %v10449_v37  ;;  %v6936_v37 = vld [vmem:[%s10069_s7 + $0x18] sm:$0xff] }
 0x5a9   : > { %4814 = vst [vmem:[#allocation1 + $0x7] ss:$9 sm:$0xff] %v10450_v32  ;;  %5053 = vmatpush.msra.mxu1 %v6936_v37  ;;  %v4394_v32 = vpop.f32.mrf.mxu1 }
 0x5aa   : > { %v9265_v19 = vadd.f32 %v4394_v32, %v9191_v35  ;;  %v10497_v35 = vld [vmem:[#allocation52_spill] sm:$0xff] }
 0x5ab   : > { %v10529_v32 = vld [vmem:[#allocation84_spill] sm:$0xff] }
 0x5b0   : > { %v4815_v38 = vld [vmem:[#allocation1] sm:$0xff] }
 0x5b1   : > { %4816 = vst [vmem:[#allocation1] ss:$9 sm:$0xff] %v10451_v44  ;;  %6940 = vmatmul.msk.f32.gmra.mxu0 %vm2506_vm10, %v4815_v38  ;;  %v10501_v44 = vld [vmem:[#allocation55_spill] sm:$0xff]  ;;  %v4397_v39 = vpop.f32.mrf.mxu1 }
 0x5b2   : > { %4817 = vst [vmem:[#allocation1 + $0x1] ss:$9 sm:$0xff] %v10452_v7  ;;  %v10502_v7 = vld [vmem:[#allocation56_spill] sm:$0xff]  ;;  %v9319_v62 = vadd.f32 %v4397_v39, %v10522_v33  ;;  %v10550_v39 = vld [vmem:[#allocation105_spill] sm:$0xff]  ;;  %v10552_v33 = vld [vmem:[#allocation107_spill] sm:$0xff] }
 0x5b3   : > { %4818 = vst [vmem:[#allocation1 + $0x2] ss:$9 sm:$0xff] %v4697_v10  ;;  %v4605_v10 = vld [vmem:[#allocation4 + $0x29] sm:$0x1] }
 0x5b4   : > { %4819 = vst [vmem:[#allocation1 + $0x3] ss:$9 sm:$0xff] %v10453_v48  ;;  %v4699_v48 = vld [vmem:[#allocation4 + $0x48] sm:$0x1] }
 0x5b5   : > { %4820 = vst [vmem:[#allocation1 + $0x4] ss:$9 sm:$0xff] %v10454_v29  ;;  %v10503_v29 = vld [vmem:[#allocation57_spill] sm:$0xff] }
 0x5b6   : > { %4821 = vst [vmem:[#allocation1 + $0x5] ss:$9 sm:$0xff] %v10455_v15  ;;  %v10504_v15 = vld [vmem:[#allocation58_spill] sm:$0xff] }
 0x5b7   : > { %4822 = vst [vmem:[#allocation1 + $0x6] ss:$9 sm:$0xff] %v10456_v36 }
 0x5b8   : > { %4823 = vst [vmem:[#allocation1 + $0x7] ss:$9 sm:$0xff] %v10457_v13 }
 0x5b9   : > { %v4400_v59 = vpop.f32.mrf.mxu1 }
 0x5ba   : > { %v9328_v38 = vadd.f32 %v4400_v59, %v9208_v46  ;;  %v10533_v46 = vld [vmem:[#allocation88_spill] sm:$0xff] }
 0x5bf   : > { %v4824_v0 = vld [vmem:[#allocation1] sm:$0xff] }
 0x5c0   : > { %4825 = vst [vmem:[#allocation1] ss:$9 sm:$0xff] %v10458_v20  ;;  %6941 = vmatmul.msk.f32.gmra.mxu0 %vm2506_vm10, %v4824_v0  ;;  %v10505_v20 = vld [vmem:[#allocation59_spill] sm:$0xff] }
 0x5c1   : > { %4826 = vst [vmem:[#allocation1 + $0x1] ss:$9 sm:$0xff] %v10459_v42  ;;  %v4701_v42 = vld [vmem:[#allocation4 + $0x58] sm:$0x1]  ;;  %v4403_v0 = vpop.f32.mrf.mxu1 }
 0x5c2   : > { %4827 = vst [vmem:[#allocation1 + $0x2] ss:$9 sm:$0xff] %v10460_v17  ;;  %v4705_v17 = vld [vmem:[#allocation4 + $0x78] sm:$0x1] }
 0x5c3   : > { %4828 = vst [vmem:[#allocation1 + $0x3] ss:$9 sm:$0xff] %v4699_v48  ;;  %v10530_v48 = vld [vmem:[#allocation85_spill] sm:$0xff] }
 0x5c4   : > { %4829 = vst [vmem:[#allocation1 + $0x4] ss:$9 sm:$0xff] %v10461_v16  ;;  %v10506_v16 = vld [vmem:[#allocation60_spill] sm:$0xff] }
 0x5c5   : > { %4830 = vst [vmem:[#allocation1 + $0x5] ss:$9 sm:$0xff] %v10462_v51  ;;  %v10494_v51 = vld [vmem:[#allocation48_spill] sm:$0xff] }
 0x5c6   : > { %4831 = vst [vmem:[#allocation1 + $0x6] ss:$9 sm:$0xff] %v10463_v43  ;;  %v10495_v43 = vld [vmem:[#allocation49_spill] sm:$0xff] }
 0x5c7   : > { %4832 = vst [vmem:[#allocation1 + $0x7] ss:$9 sm:$0xff] %v10464_v31  ;;  %v10496_v31 = vld [vmem:[#allocation50_spill] sm:$0xff] }
 0x5ce   : > { %v4833_v36 = vld [vmem:[#allocation1] sm:$0xff] }
 0x5cf   : > { %4834 = vst [vmem:[#allocation1] ss:$9 sm:$0xff] %v10465_v24  ;;  %6942 = vmatmul.msk.f32.gmra.mxu0 %vm2506_vm10, %v4833_v36  ;;  %v10507_v24 = vld [vmem:[#allocation61_spill] sm:$0xff]  ;;  %v9334_v36 = vadd.f32 %v4403_v0, %v9212_v26  ;;  %v10559_v0 = vld [vmem:[#allocation114_spill] sm:$0xff] }
 0x5d0   : > { %4835 = vst [vmem:[#allocation1 + $0x1] ss:$9 sm:$0xff] %v10466_v55  ;;  %v4703_v55 = vld [vmem:[#allocation4 + $0x68] sm:$0x1] }
 0x5d1   : > { %4836 = vst [vmem:[#allocation1 + $0x2] ss:$9 sm:$0xff] %v10467_v58 }
 0x5d2   : > { %4837 = vst [vmem:[#allocation1 + $0x3] ss:$9 sm:$0xff] %v10468_v54  ;;  %v10498_v54 = vld [vmem:[#allocation53_spill] sm:$0xff] }
 0x5d3   : > { %4838 = vst [vmem:[#allocation1 + $0x4] ss:$9 sm:$0xff] %v4701_v42  ;;  %v10531_v42 = vld [vmem:[#allocation86_spill] sm:$0xff] }
 0x5d4   : > { %4839 = vst [vmem:[#allocation1 + $0x5] ss:$9 sm:$0xff] %v10469_v53  ;;  %v10499_v53 = vld [vmem:[#allocation51_spill] sm:$0xff] }
 0x5d5   : > { %4840 = vst [vmem:[#allocation1 + $0x6] ss:$9 sm:$0xff] %v10470_v27  ;;  %v10508_v27 = vld [vmem:[#allocation62_spill] sm:$0xff] }
 0x5d6   : > { %4841 = vst [vmem:[#allocation1 + $0x7] ss:$9 sm:$0xff] %v10471_v63 }
 0x5dd   : > { %v4842_v13 = vld [vmem:[#allocation1] sm:$0xff] }
 0x5de   : > { %4843 = vst [vmem:[#allocation1] ss:$9 sm:$0xff] %v10494_v51  ;;  %6943 = vmatmul.msk.f32.gmra.mxu0 %vm2506_vm10, %v4842_v13  ;;  %v9337_v13 = vpop.f32.mrf.mxu2  ;;  %v10532_v51 = vld [vmem:[#allocation87_spill] sm:$0xff] }
 0x5df   : > { %4844 = vst [vmem:[#allocation1 + $0x1] ss:$9 sm:$0xff] %v10495_v43  ;;  %v10534_v43 = vld [vmem:[#allocation89_spill] sm:$0xff] }
 0x5e0   : > { %4845 = vst [vmem:[#allocation1 + $0x2] ss:$9 sm:$0xff] %v10496_v31  ;;  %v10535_v31 = vld [vmem:[#allocation90_spill] sm:$0xff] }
 0x5e1   : > { %4846 = vst [vmem:[#allocation1 + $0x3] ss:$9 sm:$0xff] %v10497_v35  ;;  %v4406_v35 = vpop.f32.mrf.mxu1 }
 0x5e2   : > { %4847 = vst [vmem:[#allocation1 + $0x4] ss:$9 sm:$0xff] %v10498_v54  ;;  %v4607_v54 = vld [vmem:[#allocation4 + $0x39] sm:$0x1] }
 0x5e3   : > { %4848 = vst [vmem:[#allocation1 + $0x5] ss:$9 sm:$0xff] %v4703_v55  ;;  %v9344_v55 = vadd.f32 %v4406_v35, %v9222_v3  ;;  %v10540_v3 = vld [vmem:[#allocation95_spill] sm:$0xff] }
 0x5e4   : > { %4849 = vst [vmem:[#allocation1 + $0x6] ss:$9 sm:$0xff] %v10499_v53 }
 0x5e5   : > { %4850 = vst [vmem:[#allocation1 + $0x7] ss:$9 sm:$0xff] %v10500_v50  ;;  %v10536_v50 = vld [vmem:[#allocation91_spill] sm:$0xff] }
 0x5e6   : > { %v9346_v53 = vpop.f32.mrf.mxu2 }
 0x5ec   : > { %v4851_v63 = vld [vmem:[#allocation1] sm:$0xff] }
 0x5ed   : > { %4852 = vst [vmem:[#allocation1] ss:$9 sm:$0xff] %v10501_v44  ;;  %6944 = vmatmul.msk.f32.gmra.mxu0 %vm2506_vm10, %v4851_v63  ;;  %v10537_v63 = vld [vmem:[#allocation93_spill] sm:$0xff]  ;;  %v4409_v44 = vpop.f32.mrf.mxu1 }
 0x5ee   : > { %4853 = vst [vmem:[#allocation1 + $0x1] ss:$9 sm:$0xff] %v10502_v7  ;;  %v10538_v7 = vld [vmem:[#allocation92_spill] sm:$0xff] }
 0x5ef   : > { %4854 = vst [vmem:[#allocation1 + $0x2] ss:$9 sm:$0xff] %v10503_v29  ;;  %v9353_v29 = vadd.f32 %v4409_v44, %v9226_v4  ;;  %v10544_v4 = vld [vmem:[#allocation99_spill] sm:$0xff]  ;;  %v4615_v44 = vld [vmem:[#allocation4 + $0x79] sm:$0x1] }
 0x5f0   : > { %4855 = vst [vmem:[#allocation1 + $0x3] ss:$9 sm:$0xff] %v10504_v15  ;;  %v10539_v15 = vld [vmem:[#allocation94_spill] sm:$0xff] }
 0x5f1   : > { %4856 = vst [vmem:[#allocation1 + $0x4] ss:$9 sm:$0xff] %v10505_v20  ;;  %v10541_v20 = vld [vmem:[#allocation96_spill] sm:$0xff] }
 0x5f2   : > { %4857 = vst [vmem:[#allocation1 + $0x5] ss:$9 sm:$0xff] %v10506_v16  ;;  %v9359_v16 = vpop.f32.mrf.mxu2 }
 0x5f3   : > { %4858 = vst [vmem:[#allocation1 + $0x6] ss:$9 sm:$0xff] %v4705_v17  ;;  %v10542_v17 = vld [vmem:[#allocation97_spill] sm:$0xff] }
 0x5f4   : > { %4859 = vst [vmem:[#allocation1 + $0x7] ss:$9 sm:$0xff] %v10507_v24 }
 0x5f5   : > { %v4412_v24 = vpop.f32.mrf.mxu1 }
 0x5fb   : > { %v4860_v58 = vld [vmem:[#allocation1] sm:$0xff] }
 0x5fc   : > { %4861 = vst [vmem:[#allocation1] ss:$9 sm:$0xff] %v10508_v27  ;;  %6945 = vmatmul.msk.f32.gmra.mxu0 %vm2506_vm10, %v4860_v58  ;;  %v9362_v58 = vadd.f32 %v4412_v24, %v9232_v49  ;;  %v10547_v49 = vld [vmem:[#allocation102_spill] sm:$0xff] }
 0x5fd   : > { %4862 = vst [vmem:[#allocation1 + $0x1] ss:$9 sm:$0xff] %v10509_v40  ;;  %v4609_v40 = vld [vmem:[#allocation4 + $0x49] sm:$0x1] }
 0x5fe   : > { %4863 = vst [vmem:[#allocation1 + $0x2] ss:$9 sm:$0xff] %v10510_v22  ;;  %v10543_v22 = vld [vmem:[#allocation98_spill] sm:$0xff] }
 0x5ff   : > { %4864 = vst [vmem:[#allocation1 + $0x3] ss:$9 sm:$0xff] %v10511_v41  ;;  %v10545_v41 = vld [vmem:[#allocation100_spill] sm:$0xff] }
 0x600   : > { %4865 = vst [vmem:[#allocation1 + $0x4] ss:$9 sm:$0xff] %v10490_v61  ;;  %v10518_v61 = vld [vmem:[#allocation74_spill] sm:$0xff] }
 0x601   : > { %4866 = vst [vmem:[#allocation1 + $0x5] ss:$9 sm:$0xff] %v10492_v12  ;;  %v10519_v12 = vld [vmem:[#allocation75_spill] sm:$0xff] }
 0x602   : > { %4867 = vst [vmem:[#allocation1 + $0x6] ss:$9 sm:$0xff] %v10512_v11  ;;  %v9368_v11 = vpop.f32.mrf.mxu2 }
 0x603   : > { %4868 = vst [vmem:[#allocation1 + $0x7] ss:$9 sm:$0xff] %v4707_v23  ;;  %v4415_v23 = vpop.f32.mrf.mxu1 }
 0x60a   : > { %v4869_v2 = vld [vmem:[#allocation1] sm:$0xff] }
 0x60b   : > { %4932 = vst [vmem:[#allocation1] ss:$9 sm:$0xff] %v10513_v34  ;;  %6946 = vmatmul.msk.f32.gmra.mxu0 %vm2506_vm10, %v4869_v2  ;;  %v10546_v2 = vld [vmem:[#allocation101_spill] sm:$0xff]  ;;  %v9372_v34 = vadd.f32 %v4415_v23, %v9241_v30  ;;  %v4611_v30 = vld [vmem:[#allocation4 + $0x59] sm:$0x1]  ;;  %v5170_v23 = vrot.slane %v9265_v19, 4 }
 0x60c   : > { %4934 = vst [vmem:[#allocation1 + $0x1] ss:$9 sm:$0xff] %v10514_v57  ;;  %v10548_v57 = vld [vmem:[#allocation103_spill] sm:$0xff] }
 0x60d   : > { %4936 = vst [vmem:[#allocation1 + $0x2] ss:$9 sm:$0xff] %v10515_v60  ;;  %v10549_v60 = vld [vmem:[#allocation104_spill] sm:$0xff] }
 0x60e   : > { %4938 = vst [vmem:[#allocation1 + $0x3] ss:$9 sm:$0xff] %v10516_v14  ;;  %v4418_v14 = vpop.f32.mrf.mxu1 }
 0x60f   : > { %4940 = vst [vmem:[#allocation1 + $0x4] ss:$9 sm:$0xff] %v10517_v9  ;;  %v9378_v9 = vadd.f32 %v4418_v14, %v9249_v25  ;;  %v10572_v14 = vld [vmem:[#allocation127_spill] sm:$0xff] }
 0x610   : > { %4942 = vst [vmem:[#allocation1 + $0x5] ss:$9 sm:$0xff] %v10518_v61  ;;  %v3866_v61 = vpop.f32.mrf.mxu3 }
 0x611   : > { %4944 = vst [vmem:[#allocation1 + $0x6] ss:$9 sm:$0xff] %v10519_v12  ;;  %v9380_v12 = vpop.f32.mrf.mxu2 }
 0x612   : > { %4946 = vst [vmem:[#allocation1 + $0x7] ss:$9 sm:$0xff] %v10520_v47  ;;  %v3867_v47 = vadd.f32 %v3866_v61, %v3695_v45  ;;  %v5172_v61 = vrot.slane %v9265_v19, 6 }
 0x616   : > { %v4421_v25 = vpop.f32.mrf.mxu1 }
 0x619   : > { %v4947_v8 = vld [vmem:[#allocation1] sm:$0xff]  ;;  %v9392_v59 = vpop.f32.mrf.mxu2 }
 0x61a   : > { %4948 = vst [vmem:[#allocation1] ss:$9 sm:$0xff] %v4603_v52  ;;  %6947 = vmatmul.msk.f32.vlgmr.msra.gmra.mxu1 %vm2506_vm10, %v4947_v8  ;;  %v4138_v8 = vpop.f32.mrf.mxu0 }
 0x61b   : > { %4949 = vst [vmem:[#allocation1 + $0x1] ss:$9 sm:$0xff] %v10521_v28  ;;  %v10551_v28 = vld [vmem:[#allocation106_spill] sm:$0xff] }
 0x61c   : > { %4950 = vst [vmem:[#allocation1 + $0x2] ss:$9 sm:$0xff] %v10523_v5  ;;  %v4153_v5 = vadd.f32 %v4138_v8, %v3867_v47  ;;  %v5173_v8 = vrot.slane %v9265_v19, 7 }
 0x61d   : > { %4951 = vst [vmem:[#allocation1 + $0x3] ss:$9 sm:$0xff] %v10524_v21  ;;  %v10553_v21 = vld [vmem:[#allocation108_spill] sm:$0xff] }
 0x61e   : > { %4952 = vst [vmem:[#allocation1 + $0x4] ss:$9 sm:$0xff] %v10525_v56  ;;  %v10554_v56 = vld [vmem:[#allocation109_spill] sm:$0xff] }
 0x61f   : > { %4953 = vst [vmem:[#allocation1 + $0x5] ss:$9 sm:$0xff] %v10526_v1  ;;  %v9388_v1 = vadd.f32 %v4421_v25, %v4153_v5  ;;  %v4617_v5 = vld [vmem:[#allocation4 + $0x89] sm:$0x1] }
 0x620   : > { %4954 = vst [vmem:[#allocation1 + $0x6] ss:$9 sm:$0xff] %v10527_v18  ;;  %v10555_v18 = vld [vmem:[#allocation110_spill] sm:$0xff] }
 0x621   : > { %4955 = vst [vmem:[#allocation1 + $0x7] ss:$9 sm:$0xff] %v10528_v6  ;;  %v10556_v6 = vld [vmem:[#allocation111_spill] sm:$0xff] }
 0x628   : > { %v4956_v37 = vld [vmem:[#allocation1] sm:$0xff] }
 0x629   : > { %4957 = vst [vmem:[#allocation1] ss:$9 sm:$0xff] %v10529_v32  ;;  %6948 = vmatmul.msk.f32.gmra.mxu1 %vm2506_vm10, %v4956_v37  ;;  %v10558_v37 = vld [vmem:[#allocation113_spill] sm:$0xff]  ;;  %v4613_v32 = vld [vmem:[#allocation4 + $0x69] sm:$0x1] }
 0x62a   : > { %4958 = vst [vmem:[#allocation1 + $0x1] ss:$9 sm:$0xff] %v4605_v10  ;;  %v10557_v10 = vld [vmem:[#allocation112_spill] sm:$0xff] }
 0x62b   : > { %4959 = vst [vmem:[#allocation1 + $0x2] ss:$9 sm:$0xff] %v10530_v48  ;;  %v10560_v48 = vld [vmem:[#allocation115_spill] sm:$0xff] }
 0x62c   : > { %4960 = vst [vmem:[#allocation1 + $0x3] ss:$9 sm:$0xff] %v10531_v42  ;;  %v9399_v42 = vpop.f32.mrf.mxu2 }
 0x62d   : > { %4961 = vst [vmem:[#allocation1 + $0x4] ss:$9 sm:$0xff] %v10532_v51  ;;  %v10561_v51 = vld [vmem:[#allocation116_spill] sm:$0xff] }
 0x62e   : > { %4962 = vst [vmem:[#allocation1 + $0x5] ss:$9 sm:$0xff] %v10533_v46  ;;  %v10562_v46 = vld [vmem:[#allocation117_spill] sm:$0xff] }
 0x62f   : > { %4963 = vst [vmem:[#allocation1 + $0x6] ss:$9 sm:$0xff] %v10534_v43  ;;  %v10563_v43 = vld [vmem:[#allocation118_spill] sm:$0xff] }
 0x630   : > { %4964 = vst [vmem:[#allocation1 + $0x7] ss:$9 sm:$0xff] %v10535_v31  ;;  %v9404_v31 = vpop.f32.mrf.mxu3 }
 0x634   : > { %v9406_v35 = vpop.f32.mrf.mxu2 }
 0x637   : > { %v4965_v26 = vld [vmem:[#allocation1] sm:$0xff] }
 0x638   : > { %4966 = vst [vmem:[#allocation1] ss:$9 sm:$0xff] %v10536_v50  ;;  %6949 = vmatmul.msk.f32.gmra.mxu1 %vm2506_vm10, %v4965_v26  ;;  %v10564_v26 = vld [vmem:[#allocation119_spill] sm:$0xff]  ;;  %v10565_v50 = vld [vmem:[#allocation120_spill] sm:$0xff] }
 0x639   : > { %4967 = vst [vmem:[#allocation1 + $0x1] ss:$9 sm:$0xff] %v10537_v63  ;;  %v10566_v63 = vld [vmem:[#allocation121_spill] sm:$0xff] }
 0x63a   : > { %4968 = vst [vmem:[#allocation1 + $0x2] ss:$9 sm:$0xff] %v4607_v54 }
 0x63b   : > { %4969 = vst [vmem:[#allocation1 + $0x3] ss:$9 sm:$0xff] %v10538_v7  ;;  %v10567_v7 = vld [vmem:[#allocation122_spill] sm:$0xff] }
 0x63c   : > { %4970 = vst [vmem:[#allocation1 + $0x4] ss:$9 sm:$0xff] %v10539_v15  ;;  %v10568_v15 = vld [vmem:[#allocation123_spill] sm:$0xff] }
 0x63d   : > { %4971 = vst [vmem:[#allocation1 + $0x5] ss:$9 sm:$0xff] %v10540_v3  ;;  %v4575_v3 = vpop.f32.mrf.mxu3 }
 0x63e   : > { %4972 = vst [vmem:[#allocation1 + $0x6] ss:$9 sm:$0xff] %v10541_v20  ;;  %v10569_v20 = vld [vmem:[#allocation124_spill] sm:$0xff]  ;;  %v4576_v24 = vadd.f32 %v4575_v3, %v9346_v53 }
 0x63f   : > { %4973 = vst [vmem:[#allocation1 + $0x7] ss:$9 sm:$0xff] %v10542_v17  ;;  %v10570_v17 = vld [vmem:[#allocation125_spill] sm:$0xff] }
 0x646   : > { %v4974_v27 = vld [vmem:[#allocation1] sm:$0xff] }
 0x647   : > { %4975 = vst [vmem:[#allocation1] ss:$9 sm:$0xff] %v10543_v22  ;;  %6950 = vmatmul.msk.f32.gmra.mxu1 %vm2506_vm10, %v4974_v27  ;;  %v9417_v27 = vpop.f32.mrf.mxu2  ;;  %v5321_v22 = vrot.slane %v4576_v24, 5 }
 0x648   : > { %4976 = vst [vmem:[#allocation1 + $0x1] ss:$9 sm:$0xff] %v10544_v4  ;;  %v5322_v4 = vrot.slane %v4576_v24, 6 }
 0x649   : > { %4977 = vst [vmem:[#allocation1 + $0x2] ss:$9 sm:$0xff] %v10545_v41  ;;  %v5385_v47 = vperm.slane %v5321_v22, 0  ;;  %v9461_v22 = vpop.f32.mrf.mxu0 }
 0x64a   : > { %4978 = vst [vmem:[#allocation1 + $0x3] ss:$9 sm:$0xff] %v4609_v40  ;;  %v5320_v40 = vrot.slane %v4576_v24, 4 }
 0x64b   : > { %4979 = vst [vmem:[#allocation1 + $0x4] ss:$9 sm:$0xff] %v10546_v2  ;;  %v9423_v2 = vld [vmem:[%s10070_s8] ss:$0 sm:$0xff] }
 0x64c   : > { %4980 = vst [vmem:[#allocation1 + $0x5] ss:$9 sm:$0xff] %v10547_v49  ;;  %v5323_v49 = vrot.slane %v4576_v24, 7  ;;  %v5384_v53 = vperm.slane %v5320_v40, 0 }
 0x64d   : > { %4981 = vst [vmem:[#allocation1 + $0x6] ss:$9 sm:$0xff] %v10548_v57  ;;  %v10571_v57 = vld [vmem:[#allocation126_spill] sm:$0xff] }
 0x64e   : > { %4982 = vst [vmem:[#allocation1 + $0x7] ss:$9 sm:$0xff] %v10549_v60  ;;  %v5171_v60 = vrot.slane %v9265_v19, 5  ;;  %v5387_v25 = vperm.slane %v5323_v49, 0 }
 0x655   : > { %v4983_v52 = vld [vmem:[#allocation1] sm:$0xff] }
 0x656   : > { %4984 = vst [vmem:[#allocation1] ss:$9 sm:$0xff] %v10550_v39  ;;  %6951 = vmatmul.msk.f32.gmra.mxu1 %vm2506_vm10, %v4983_v52  ;;  %v10573_v52 = vld [vmem:[#allocation128_spill] sm:$0xff]  ;;  %v5386_v39 = vperm.slane %v5322_v4, 0 }
 0x657   : > { %4985 = vst [vmem:[#allocation1 + $0x1] ss:$9 sm:$0xff] %v10551_v28  ;;  %v5531_v28 = vsel %vm5526_vm12, %v5170_v23, %v5384_v53 }
 0x658   : > { %4986 = vst [vmem:[#allocation1 + $0x2] ss:$9 sm:$0xff] %v10552_v33  ;;  %v9435_v33 = vrot.slane %v9423_v2, 2 }
 0x659   : > { %4987 = vst [vmem:[#allocation1 + $0x3] ss:$9 sm:$0xff] %v10553_v21  ;;  %v9437_v21 = vpop.f32.mrf.mxu2 }
 0x65a   : > { %4988 = vst [vmem:[#allocation1 + $0x4] ss:$9 sm:$0xff] %v4611_v30  ;;  %v10574_v30 = vld [vmem:[#allocation129_spill] sm:$0xff] }
 0x65b   : > { %4989 = vst [vmem:[#allocation1 + $0x5] ss:$9 sm:$0xff] %v10554_v56  ;;  %v10575_v56 = vld [vmem:[#allocation130_spill] sm:$0xff] }
 0x65c   : > { %4990 = vst [vmem:[#allocation1 + $0x6] ss:$9 sm:$0xff] %v10555_v18  ;;  %v5532_v18 = vsel %vm5526_vm12, %v5171_v60, %v5385_v47 }
 0x65d   : > { %4991 = vst [vmem:[#allocation1 + $0x7] ss:$9 sm:$0xff] %v10556_v6  ;;  %v9442_v6 = vrot.slane %v9423_v2, 4 }
 0x664   : > { %v4992_v45 = vld [vmem:[#allocation1] sm:$0xff] }
 0x665   : > { %4993 = vst [vmem:[#allocation1] ss:$9 sm:$0xff] %v10557_v10  ;;  %6952 = vmatmul.msk.f32.gmra.mxu1 %vm2506_vm10, %v4992_v45  ;;  %v5317_v45 = vrot.slane %v4576_v24, 1  ;;  %v10576_v10 = vld [vmem:[#allocation131_spill] sm:$0xff] }
 0x666   : > { %4994 = vst [vmem:[#allocation1 + $0x1] ss:$9 sm:$0xff] %v10558_v37  ;;  %v5533_v37 = vsel %vm5526_vm12, %v5172_v61, %v5386_v39 }
 0x667   : > { %4995 = vst [vmem:[#allocation1 + $0x2] ss:$9 sm:$0xff] %v10559_v0  ;;  %v5318_v0 = vrot.slane %v4576_v24, 2 }
 0x668   : > { %4996 = vst [vmem:[#allocation1 + $0x3] ss:$9 sm:$0xff] %v10560_v48  ;;  %v10577_v48 = vld [vmem:[#allocation132_spill] sm:$0xff] }
 0x669   : > { %4997 = vst [vmem:[#allocation1 + $0x4] ss:$9 sm:$0xff] %v10561_v51  ;;  %v5534_v51 = vsel %vm5526_vm12, %v5173_v8, %v5387_v25  ;;  %v4905_v25 = vpop.f32.mrf.mxu0 }
 0x66a   : > { %4998 = vst [vmem:[#allocation1 + $0x5] ss:$9 sm:$0xff] %v4613_v32  ;;  %v9447_v32 = vrot.slane %v9423_v2, 6 }
 0x66b   : > { %4999 = vst [vmem:[#allocation1 + $0x6] ss:$9 sm:$0xff] %v10562_v46  ;;  %v6021_v46 = vadd.f32 %v9423_v2, %v5531_v28 }
 0x66c   : > { %5000 = vst [vmem:[#allocation1 + $0x7] ss:$9 sm:$0xff] %v10563_v43  ;;  %v5319_v43 = vrot.slane %v4576_v24, 3  ;;  %v6024_v3 = vadd.f32 %v9447_v32, %v5534_v51 }
 0x66e   : > { %v5383_v40 = vperm.slane %v5319_v43, 0 }
 0x673   : > { %v5001_v54 = vld [vmem:[#allocation1] sm:$0xff] }
 0x674   : > { %5002 = vst [vmem:[#allocation1] ss:$9 sm:$0xff] %v10564_v26  ;;  %6953 = vmatmul.msk.f32.gmra.mxu1 %vm2506_vm10, %v5001_v54  ;;  %v5167_v54 = vrot.slane %v9265_v19, 1  ;;  %v6022_v26 = vadd.f32 %v9435_v33, %v5532_v18 }
 0x675   : > { %5003 = vst [vmem:[#allocation1 + $0x1] ss:$9 sm:$0xff] %v10565_v50  ;;  %v5380_v50 = vperm.slane %v4576_v24, 0 }
 0x676   : > { %5004 = vst [vmem:[#allocation1 + $0x2] ss:$9 sm:$0xff] %v10566_v63  ;;  %v5168_v63 = vrot.slane %v9265_v19, 2 }
 0x677   : > { %5005 = vst [vmem:[#allocation1 + $0x3] ss:$9 sm:$0xff] %v10567_v7  ;;  %v5381_v7 = vperm.slane %v5317_v45, 0 }
 0x678   : > { %5006 = vst [vmem:[#allocation1 + $0x4] ss:$9 sm:$0xff] %v10568_v15  ;;  %v5169_v15 = vrot.slane %v9265_v19, 3 }
 0x679   : > { %5007 = vst [vmem:[#allocation1 + $0x5] ss:$9 sm:$0xff] %v10569_v20  ;;  %v5382_v20 = vperm.slane %v5318_v0, 0  ;;  %v5528_v24 = vsel %vm5526_vm12, %v5167_v54, %v5381_v7 }
 0x67a   : > { %5008 = vst [vmem:[#allocation1 + $0x6] ss:$9 sm:$0xff] %v4615_v44  ;;  %v6023_v44 = vadd.f32 %v9442_v6, %v5533_v37  ;;  %v5530_v23 = vsel %vm5526_vm12, %v5169_v15, %v5383_v40 }
 0x67b   : > { %5009 = vst [vmem:[#allocation1 + $0x7] ss:$9 sm:$0xff] %v10570_v17  ;;  %v5527_v17 = vsel %vm5526_vm12, %v9265_v19, %v5380_v50  ;;  %v5529_v4 = vsel %vm5526_vm12, %v5168_v63, %v5382_v20  ;;  %v6018_v19 = vadd.f32 %v9435_v33, %v5528_v24 }
 0x67c   : > { %v6017_v49 = vadd.f32 %v9423_v2, %v5527_v17  ;;  %v6019_v53 = vadd.f32 %v9442_v6, %v5529_v4 }
 0x682   : > { %v5010_v41 = vld [vmem:[#allocation1] sm:$0xff] }
 0x683   : > { %5011 = vst [vmem:[#allocation1] ss:$9 sm:$0xff] %v10571_v57  ;;  %6954 = vmatmul.msk.f32.gmra.mxu1 %vm2506_vm10, %v5010_v41  ;;  %v9464_v41 = vpop.f32.mrf.mxu1  ;;  %v5133_v57 = vpop.f32.mrf.mxu2 }
 0x684   : > { %5012 = vst [vmem:[#allocation1 + $0x1] ss:$9 sm:$0xff] %v10572_v14  ;;  %v6020_v14 = vadd.f32 %v9447_v32, %v5530_v23  ;;  %v5751_v61 = vrot.slane %v5133_v57, 1  ;;  %v5752_v47 = vrot.slane %v5133_v57, 2  ;;  %v5753_v39 = vrot.slane %v5133_v57, 3 }
 0x685   : > { %5013 = vst [vmem:[#allocation1 + $0x2] ss:$9 sm:$0xff] %v10573_v52  ;;  %v10578_v52 = vmov 0.0   ;;  %v5754_v28 = vrot.slane %v5133_v57, 4  ;;  %v5756_v18 = vrot.slane %v5133_v57, 6  ;;  %v5757_v45 = vrot.slane %v5133_v57, 7 }
 0x686   : > { %5014 = vst [vmem:[#allocation1 + $0x3] ss:$9 sm:$0xff] %v10574_v30  ;;  %v9479_v8 = vperm.slane %v10578_v52, 0  ;;  %v5807_v0 = vperm.slane %v5133_v57, 0  ;;  %v5809_v51 = vperm.slane %v5752_v47, 0  ;;  %v4578_v47 = vpop.f32.mrf.mxu3 }
 0x687   : > { %5015 = vst [vmem:[#allocation1 + $0x4] ss:$9 sm:$0xff] %v10575_v56  ;;  %v5811_v63 = vperm.slane %v5754_v28, 0  ;;  %v5813_v23 = vperm.slane %v5756_v18, 0 }
 0x688   : > { %5016 = vst [vmem:[#allocation1 + $0x5] ss:$9 sm:$0xff] %v10576_v10  ;;  %v5535_v10 = vsel %vm5526_vm12, %v9319_v62, %v9479_v8 }
 0x689   : > { %5017 = vst [vmem:[#allocation1 + $0x6] ss:$9 sm:$0xff] %v10577_v48  ;;  %v5808_v48 = vperm.slane %v5751_v61, 0  ;;  %v5814_v61 = vperm.slane %v5757_v45, 0 }
 0x68a   : > { %5018 = vst [vmem:[#allocation1 + $0x7] ss:$9 sm:$0xff] %v4617_v5  ;;  %v5755_v5 = vrot.slane %v5133_v57, 5 }
 0x68b   : > { %6331 = vst [vmem:[#allocation1 + $0x20] ss:$4 sm:$0xff] %v6021_v46  ;;  %v5810_v46 = vperm.slane %v5753_v39, 0 }
 0x68c   : > { %6333 = vst [vmem:[#allocation1 + $0x21] ss:$4 sm:$0xff] %v6022_v26  ;;  %v5812_v4 = vperm.slane %v5755_v5, 0  ;;  %v4579_v5 = vadd.f32 %v4578_v47, %v9359_v16 }
 0x68d   : > { %6335 = vst [vmem:[#allocation1 + $0x22] ss:$4 sm:$0xff] %v6023_v44  ;;  %v6025_v44 = vadd.f32 %v9423_v2, %v5535_v10 }
 0x68e   : > { %6337 = vst [vmem:[#allocation1 + $0x23] ss:$4 sm:$0xff] %v6024_v3  ;;  %v5324_v10 = vrot.slane %v4579_v5, 1 }
 0x691   : > { %v5019_v60 = vld [vmem:[#allocation1] sm:$0xff] }
 0x692   : > { %6323 = vst [vmem:[#allocation1] ss:$4 sm:$0xff] %v6017_v49  ;;  %6955 = vmatmul.msk.f32.gmra.mxu1 %vm2506_vm10, %v5019_v60 }
 0x693   : > { %6325 = vst [vmem:[#allocation1 + $0x1] ss:$4 sm:$0xff] %v6018_v19 }
 0x694   : > { %6327 = vst [vmem:[#allocation1 + $0x2] ss:$4 sm:$0xff] %v6019_v53 }
 0x695   : > { %6329 = vst [vmem:[#allocation1 + $0x3] ss:$4 sm:$0xff] %v6020_v14  ;;  %v6339_v30 = vld.sshfl [vmem:[#allocation1 + $0x20] sm:$0xff pattern:$0x73625140] }
 0x696   : > { %6586 = vst.msk [vmem:[%s9476_s10 + $0x8] sm:$0xff] %vm1358_vm2, %v6339_v30 }
 0x697   : > { %v5055_v56 = vpop.f32.mrf.mxu1 }
 0x698   : > { %v5056_v37 = vadd.f32 %v5055_v56, %v4905_v25 }
 0x69a   : > { %v5617_v43 = vrot.slane %v5056_v37, 1  ;;  %v5618_v54 = vrot.slane %v5056_v37, 2  ;;  %v5619_v26 = vrot.slane %v5056_v37, 3  ;;  %v5620_v50 = vrot.slane %v5056_v37, 4 }
 0x69b   : > { %v5621_v7 = vrot.slane %v5056_v37, 5  ;;  %v5935_v15 = vsel %vm5526_vm12, %v5056_v37, %v5807_v0  ;;  %v5622_v20 = vrot.slane %v5056_v37, 6  ;;  %v5623_v49 = vrot.slane %v5056_v37, 7 }
 0x69c   : > { %v6338_v3 = vld.sshfl [vmem:[#allocation1] sm:$0xff pattern:$0x73625140]  ;;  %v5936_v17 = vsel %vm5526_vm12, %v5617_v43, %v5808_v48  ;;  %v5937_v40 = vsel %vm5526_vm12, %v5618_v54, %v5809_v51  ;;  %v5938_v24 = vsel %vm5526_vm12, %v5619_v26, %v5810_v46  ;;  %v6026_v57 = vadd.f32 %v9423_v2, %v5935_v15  ;;  %v4908_v48 = vpop.f32.mrf.mxu0 }
 0x69d   : > { %6340 = vst [vmem:[#allocation1] ss:$4 sm:$0xff] %v6025_v44  ;;  %v5939_v60 = vsel %vm5526_vm12, %v5620_v50, %v5811_v63  ;;  %v6027_v19 = vadd.f32 %v9435_v33, %v5936_v17  ;;  %v6028_v53 = vadd.f32 %v9442_v6, %v5937_v40  ;;  %v6029_v14 = vadd.f32 %v9447_v32, %v5938_v24 }
 0x69e   : > { %6585 = vst.msk [vmem:[%s9476_s10] sm:$0xff] %vm1358_vm2, %v6338_v3  ;;  %v5940_v52 = vsel %vm5526_vm12, %v5621_v7, %v5812_v4  ;;  %v5941_v39 = vsel %vm5526_vm12, %v5622_v20, %v5813_v23  ;;  %v5942_v30 = vsel %vm5526_vm12, %v5623_v49, %v5814_v61  ;;  %v6030_v28 = vadd.f32 %v9423_v2, %v5939_v60 }
 0x69f   : > { %6342 = vst [vmem:[#allocation1 + $0x20] ss:$4 sm:$0xff] %v6026_v57  ;;  %v6031_v25 = vadd.f32 %v9435_v33, %v5940_v52  ;;  %v6032_v56 = vadd.f32 %v9442_v6, %v5941_v39  ;;  %v6033_v18 = vadd.f32 %v9447_v32, %v5942_v30  ;;  %v5325_v37 = vrot.slane %v4579_v5, 2 }
 0x6a0   : > { %6343 = vst [vmem:[#allocation1 + $0x21] ss:$4 sm:$0xff] %v6027_v19  ;;  %v5174_v0 = vrot.slane %v9319_v62, 1  ;;  %v5326_v51 = vrot.slane %v4579_v5, 3  ;;  %v5389_v46 = vperm.slane %v4579_v5, 0  ;;  %v5175_v43 = vrot.slane %v9319_v62, 2 }
 0x6a1   : > { %6344 = vst [vmem:[#allocation1 + $0x22] ss:$4 sm:$0xff] %v6028_v53  ;;  %v5176_v26 = vrot.slane %v9319_v62, 3  ;;  %v5390_v63 = vperm.slane %v5324_v10, 0  ;;  %v5177_v44 = vrot.slane %v9319_v62, 4  ;;  %v5391_v7 = vperm.slane %v5325_v37, 0 }
 0x6a2   : > { %6345 = vst [vmem:[#allocation1 + $0x23] ss:$4 sm:$0xff] %v6029_v14  ;;  %v5536_v15 = vsel %vm5526_vm12, %v5174_v0, %v5389_v46  ;;  %v5327_v20 = vrot.slane %v4579_v5, 4  ;;  %v5392_v17 = vperm.slane %v5326_v51, 0  ;;  %v5328_v24 = vrot.slane %v4579_v5, 5 }
 0x6a3   : > { %v5537_v40 = vsel %vm5526_vm12, %v5175_v43, %v5390_v63  ;;  %v5329_v4 = vrot.slane %v4579_v5, 6  ;;  %v5538_v23 = vsel %vm5526_vm12, %v5176_v26, %v5391_v7  ;;  %v5330_v57 = vrot.slane %v4579_v5, 7 }
 0x6a4   : > { %v6341_v45 = vld.sshfl [vmem:[#allocation1] sm:$0xff pattern:$0x73625140]  ;;  %v5178_v60 = vrot.slane %v9319_v62, 5  ;;  %v5539_v19 = vsel %vm5526_vm12, %v5177_v44, %v5392_v17  ;;  %v6035_v53 = vadd.f32 %v9423_v2, %v5536_v15  ;;  %v5179_v14 = vrot.slane %v9319_v62, 6 }
 0x6a5   : > { %6347 = vst [vmem:[#allocation1] ss:$4 sm:$0xff] %v6030_v28  ;;  %v6036_v61 = vadd.f32 %v9435_v33, %v5537_v40  ;;  %v5393_v52 = vperm.slane %v5327_v20, 0  ;;  %v5180_v39 = vrot.slane %v9319_v62, 7  ;;  %v6037_v30 = vadd.f32 %v9442_v6, %v5538_v23  ;;  %v5136_v62 = vpop.f32.mrf.mxu2 }
 0x6a6   : > { %6348 = vst [vmem:[#allocation1 + $0x1] ss:$4 sm:$0xff] %v6031_v25  ;;  %v5058_v16 = vpop.f32.mrf.mxu1  ;;  %v5394_v28 = vperm.slane %v5328_v24, 0  ;;  %v6038_v5 = vadd.f32 %v9447_v32, %v5539_v19  ;;  %v5395_v25 = vperm.slane %v5329_v4, 0  ;;  %v5181_v10 = vrot.slane %v9328_v38, 1 }
 0x6a7   : > { %6349 = vst [vmem:[#allocation1 + $0x2] ss:$4 sm:$0xff] %v6032_v56  ;;  %v9508_v54 = vadd.f32 %v5058_v16, %v4908_v48  ;;  %v5540_v56 = vsel %vm5526_vm12, %v5178_v60, %v5393_v52  ;;  %v5758_v26 = vrot.slane %v5136_v62, 1  ;;  %v5759_v63 = vrot.slane %v5136_v62, 2 }
 0x6a8   : > { %6350 = vst [vmem:[#allocation1 + $0x3] ss:$4 sm:$0xff] %v6033_v18  ;;  %v5396_v18 = vperm.slane %v5330_v57, 0  ;;  %v5542_v37 = vsel %vm5526_vm12, %v5180_v39, %v5395_v25  ;;  %v6039_v0 = vadd.f32 %v9423_v2, %v5540_v56  ;;  %v5544_v43 = vsel %vm5526_vm12, %v5181_v10, %v9479_v8 }
 0x6a9   : > { %v6346_v50 = vld.sshfl [vmem:[#allocation1 + $0x20] sm:$0xff pattern:$0x73625140]  ;;  %6588 = vst.msk [vmem:[%s9476_s10 + $0x10] sm:$0x1] %vm6587_vm13, %v6341_v45  ;;  %v5943_v3 = vsel %vm5526_vm12, %v9508_v54, %v9479_v8  ;;  %v5541_v45 = vsel %vm5526_vm12, %v5179_v14, %v5394_v28  ;;  %v6041_v46 = vadd.f32 %v9442_v6, %v5542_v37  ;;  %v5624_v44 = vrot.slane %v9508_v54, 1  ;;  %v4911_v28 = vpop.f32.mrf.mxu0 }
 0x6aa   : > { %6589 = vst.msk [vmem:[%s9476_s10 + $0x18] sm:$0xff] %vm1358_vm2, %v6346_v50  ;;  %v6034_v49 = vadd.f32 %v9423_v2, %v5943_v3  ;;  %v5543_v48 = vsel %vm5526_vm12, %v9328_v38, %v5396_v18  ;;  %v6040_v16 = vadd.f32 %v9435_v33, %v5541_v45  ;;  %v5760_v7 = vrot.slane %v5136_v62, 3  ;;  %v4581_v18 = vpop.f32.mrf.mxu3 }
 0x6ab   : > { %v6042_v50 = vadd.f32 %v9447_v32, %v5543_v48  ;;  %v6043_v15 = vadd.f32 %v9423_v2, %v5544_v43  ;;  %v5625_v3 = vrot.slane %v9508_v54, 2  ;;  %v5761_v20 = vrot.slane %v5136_v62, 4 }
 0x6ac   : > { %6351 = vst [vmem:[#allocation1 + $0x20] ss:$4 sm:$0xff] %v6034_v49  ;;  %v5815_v17 = vperm.slane %v5136_v62, 0  ;;  %v5626_v40 = vrot.slane %v9508_v54, 3  ;;  %v5762_v4 = vrot.slane %v5136_v62, 5  ;;  %v5816_v23 = vperm.slane %v5758_v26, 0 }
 0x6ad   : > { %v5627_v49 = vrot.slane %v9508_v54, 4  ;;  %v5763_v57 = vrot.slane %v5136_v62, 6  ;;  %v5817_v60 = vperm.slane %v5759_v63, 0  ;;  %v5628_v19 = vrot.slane %v9508_v54, 5 }
 0x6ae   : > { %v5629_v52 = vrot.slane %v9508_v54, 6  ;;  %v5945_v39 = vsel %vm5526_vm12, %v5625_v3, %v5816_v23  ;;  %v5820_v56 = vperm.slane %v5762_v4, 0  ;;  %v4582_v43 = vadd.f32 %v4581_v18, %v9368_v11 }
 0x6af   : > { %v6352_v47 = vld.sshfl [vmem:[#allocation1] sm:$0xff pattern:$0x73625140]  ;;  %v5946_v25 = vsel %vm5526_vm12, %v5626_v40, %v5817_v60  ;;  %v6045_v48 = vadd.f32 %v9435_v33, %v5945_v39  ;;  %v5187_v18 = vrot.slane %v9328_v38, 7 }
 0x6b0   : > { %6354 = vst [vmem:[#allocation1] ss:$4 sm:$0xff] %v6035_v53  ;;  %v5944_v53 = vsel %vm5526_vm12, %v5624_v44, %v5815_v17  ;;  %v5332_v40 = vrot.slane %v4582_v43, 2  ;;  %v5333_v23 = vrot.slane %v4582_v43, 3  ;;  %v5397_v60 = vperm.slane %v4582_v43, 0 }
 0x6b1   : > { %6355 = vst [vmem:[#allocation1 + $0x1] ss:$4 sm:$0xff] %v6036_v61  ;;  %v5764_v61 = vrot.slane %v5136_v62, 7  ;;  %v6044_v10 = vadd.f32 %v9423_v2, %v5944_v53  ;;  %v5821_v62 = vperm.slane %v5763_v57, 0  ;;  %v5334_v57 = vrot.slane %v4582_v43, 4 }
 0x6b2   : > { %6356 = vst [vmem:[#allocation1 + $0x2] ss:$4 sm:$0xff] %v6037_v30  ;;  %v5819_v30 = vperm.slane %v5761_v20, 0  ;;  %v5331_v20 = vrot.slane %v4582_v43, 1  ;;  %v5335_v53 = vrot.slane %v4582_v43, 5  ;;  %v5399_v39 = vperm.slane %v5332_v40, 0 }
 0x6b3   : > { %6357 = vst [vmem:[#allocation1 + $0x3] ss:$4 sm:$0xff] %v6038_v5  ;;  %v6353_v51 = vld.sshfl [vmem:[#allocation1 + $0x20] sm:$0xff pattern:$0x73625140]  ;;  %v5630_v5 = vrot.slane %v9508_v54, 7  ;;  %v6046_v54 = vadd.f32 %v9442_v6, %v5946_v25 }
 0x6b4   : > { %6590 = vst.msk [vmem:[%s9476_s10 + $0x20] sm:$0xff] %vm1358_vm2, %v6352_v47  ;;  %v5818_v47 = vperm.slane %v5760_v7, 0  ;;  %v5337_v25 = vrot.slane %v4582_v43, 7 }
 0x6b5   : > { %6358 = vst [vmem:[#allocation1 + $0x20] ss:$4 sm:$0xff] %v6039_v0  ;;  %v5061_v14 = vpop.f32.mrf.mxu1  ;;  %v5948_v0 = vsel %vm5526_vm12, %v5628_v19, %v5819_v30  ;;  %v5950_v26 = vsel %vm5526_vm12, %v5630_v5, %v5821_v62  ;;  %v5184_v19 = vrot.slane %v9328_v38, 4  ;;  %v5186_v30 = vrot.slane %v9328_v38, 6 }
 0x6b6   : > { %6359 = vst [vmem:[#allocation1 + $0x21] ss:$4 sm:$0xff] %v6040_v16  ;;  %v5947_v45 = vsel %vm5526_vm12, %v5627_v49, %v5818_v47  ;;  %v9562_v37 = vadd.f32 %v5061_v14, %v4911_v28  ;;  %v6048_v44 = vadd.f32 %v9423_v2, %v5948_v0  ;;  %v6050_v11 = vadd.f32 %v9442_v6, %v5950_v26 }
 0x6b7   : > { %6360 = vst [vmem:[#allocation1 + $0x22] ss:$4 sm:$0xff] %v6041_v46  ;;  %v5949_v46 = vsel %vm5526_vm12, %v5629_v52, %v5820_v56  ;;  %v5183_v49 = vrot.slane %v9328_v38, 3  ;;  %v5398_v14 = vperm.slane %v5331_v20, 0  ;;  %v5336_v52 = vrot.slane %v4582_v43, 6 }
 0x6b8   : > { %6361 = vst [vmem:[#allocation1 + $0x23] ss:$4 sm:$0xff] %v6042_v50  ;;  %v6047_v50 = vadd.f32 %v9447_v32, %v5947_v45  ;;  %v5631_v7 = vrot.slane %v9562_v37, 1  ;;  %v6049_v3 = vadd.f32 %v9435_v33, %v5949_v46  ;;  %v5400_v56 = vperm.slane %v5333_v23, 0 }
 0x6b9   : > { %6591 = vst.msk [vmem:[%s9476_s10 + $0x28] sm:$0x1] %vm6587_vm13, %v6353_v51  ;;  %v5822_v51 = vperm.slane %v5764_v61, 0  ;;  %v5185_v61 = vrot.slane %v9328_v38, 5  ;;  %v5546_v45 = vsel %vm5526_vm12, %v5183_v49, %v5398_v14  ;;  %v5547_v62 = vsel %vm5526_vm12, %v5184_v19, %v5399_v39 }
 0x6ba   : > { %v6362_v24 = vld.sshfl [vmem:[#allocation1] sm:$0xff pattern:$0x73625140]  ;;  %v5952_v4 = vsel %vm5526_vm12, %v5631_v7, %v9479_v8  ;;  %v5402_v0 = vperm.slane %v5335_v53, 0  ;;  %v5403_v46 = vperm.slane %v5336_v52, 0  ;;  %v5404_v26 = vperm.slane %v5337_v25, 0 }
 0x6bb   : > { %6364 = vst [vmem:[#allocation1] ss:$4 sm:$0xff] %v6043_v15  ;;  %v5951_v15 = vsel %vm5526_vm12, %v9562_v37, %v5822_v51  ;;  %v6052_v47 = vadd.f32 %v9423_v2, %v5952_v4  ;;  %v5188_v51 = vrot.slane %v9334_v36, 1  ;;  %v5633_v53 = vrot.slane %v9562_v37, 3 }
 0x6bc   : > { %6592 = vst.msk [vmem:[%s9476_s10 + $0x30] sm:$0xff] %vm1358_vm2, %v6362_v24  ;;  %v6051_v17 = vadd.f32 %v9447_v32, %v5951_v15  ;;  %v5182_v24 = vrot.slane %v9328_v38, 2  ;;  %v6054_v38 = vadd.f32 %v9435_v33, %v5546_v45  ;;  %v5551_v7 = vsel %vm5526_vm12, %v9334_v36, %v5403_v46  ;;  %v5139_v15 = vpop.f32.mrf.mxu2 }
 0x6bd   : > { %v5765_v4 = vrot.slane %v5139_v15, 1  ;;  %v5766_v49 = vrot.slane %v5139_v15, 2  ;;  %v5768_v52 = vrot.slane %v5139_v15, 4  ;;  %v5769_v39 = vrot.slane %v5139_v15, 5 }
 0x6be   : > { %v5545_v28 = vsel %vm5526_vm12, %v5182_v24, %v5397_v60  ;;  %v6059_v24 = vadd.f32 %v9442_v6, %v5551_v7  ;;  %v5767_v60 = vrot.slane %v5139_v15, 3  ;;  %v5637_v46 = vrot.slane %v9562_v37, 7 }
 0x6bf   : > { %v6363_v16 = vld.sshfl [vmem:[#allocation1 + $0x20] sm:$0xff pattern:$0x73625140]  ;;  %v5825_v25 = vperm.slane %v5766_v49, 0 }
 0x6c0   : > { %6366 = vst [vmem:[#allocation1 + $0x20] ss:$4 sm:$0xff] %v6044_v10  ;;  %v5401_v10 = vperm.slane %v5334_v57, 0  ;;  %v5632_v57 = vrot.slane %v9562_v37, 2 }
 0x6c1   : > { %6367 = vst [vmem:[#allocation1 + $0x21] ss:$4 sm:$0xff] %v6045_v48  ;;  %v5548_v48 = vsel %vm5526_vm12, %v5185_v61, %v5400_v56  ;;  %v5823_v61 = vperm.slane %v5139_v15, 0 }
 0x6c2   : > { %v6365_v63 = vld.sshfl [vmem:[#allocation1] sm:$0xff pattern:$0x73625140]  ;;  %6368 = vst [vmem:[#allocation1 + $0x22] ss:$4 sm:$0xff] %v6046_v54  ;;  %v5549_v54 = vsel %vm5526_vm12, %v5186_v30, %v5401_v10  ;;  %v5824_v30 = vperm.slane %v5765_v4, 0 }
 0x6c3   : > { %6369 = vst [vmem:[#allocation1 + $0x23] ss:$4 sm:$0xff] %v6047_v50  ;;  %v5550_v50 = vsel %vm5526_vm12, %v5187_v18, %v5402_v0  ;;  %v5953_v18 = vsel %vm5526_vm12, %v5632_v57, %v5823_v61  ;;  %v5826_v0 = vperm.slane %v5767_v60, 0 }
 0x6c4   : > { %6371 = vst [vmem:[#allocation1] ss:$4 sm:$0xff] %v6048_v44  ;;  %v6056_v44 = vadd.f32 %v9447_v32, %v5548_v48  ;;  %v6058_v20 = vadd.f32 %v9435_v33, %v5550_v50  ;;  %v5064_v14 = vpop.f32.mrf.mxu1  ;;  %v5636_v48 = vrot.slane %v9562_v37, 6  ;;  %v5828_v50 = vperm.slane %v5769_v39, 0 }
 0x6c5   : > { %6372 = vst [vmem:[#allocation1 + $0x1] ss:$4 sm:$0xff] %v6049_v3  ;;  %v6057_v3 = vadd.f32 %v9423_v2, %v5549_v54 }
 0x6c6   : > { %6373 = vst [vmem:[#allocation1 + $0x2] ss:$4 sm:$0xff] %v6050_v11  ;;  %v5552_v11 = vsel %vm5526_vm12, %v5188_v51, %v5404_v26  ;;  %v5771_v51 = vrot.slane %v5139_v15, 7  ;;  %v6062_v26 = vadd.f32 %v9423_v2, %v5953_v18 }
 0x6c7   : > { %6374 = vst [vmem:[#allocation1 + $0x3] ss:$4 sm:$0xff] %v6051_v17  ;;  %v5189_v17 = vrot.slane %v9334_v36, 2  ;;  %v6060_v23 = vadd.f32 %v9447_v32, %v5552_v11 }
 0x6c8   : > { %6593 = vst.msk [vmem:[%s9476_s10 + $0x38] sm:$0xff] %vm1358_vm2, %v6363_v16  ;;  %v6053_v16 = vadd.f32 %v9423_v2, %v5545_v28  ;;  %v4914_v28 = vpop.f32.mrf.mxu0 }
 0x6c9   : > { %6594 = vst.msk [vmem:[%s9476_s10 + $0x40] sm:$0x1] %vm6587_vm13, %v6365_v63  ;;  %v6055_v63 = vadd.f32 %v9442_v6, %v5547_v62  ;;  %v5553_v19 = vsel %vm5526_vm12, %v5189_v17, %v9479_v8  ;;  %v9624_v10 = vadd.f32 %v5064_v14, %v4914_v28  ;;  %v5770_v62 = vrot.slane %v5139_v15, 6 }
 0x6ca   : > { %v6370_v5 = vld.sshfl [vmem:[#allocation1 + $0x20] sm:$0xff pattern:$0x73625140]  ;;  %v6061_v56 = vadd.f32 %v9423_v2, %v5553_v19  ;;  %v5958_v17 = vsel %vm5526_vm12, %v5637_v46, %v5828_v50 }
 0x6cb   : > { %6375 = vst [vmem:[#allocation1 + $0x20] ss:$4 sm:$0xff] %v6052_v47  ;;  %v5634_v47 = vrot.slane %v9562_v37, 4  ;;  %v5829_v11 = vperm.slane %v5770_v62, 0  ;;  %v5639_v49 = vrot.slane %v9624_v10, 2  ;;  %v6067_v60 = vadd.f32 %v9435_v33, %v5958_v17 }
 0x6cc   : > { %6595 = vst.msk [vmem:[%s9476_s10 + $0x48] sm:$0xff] %vm1358_vm2, %v6370_v5  ;;  %v5635_v5 = vrot.slane %v9562_v37, 5 }
 0x6cd   : > { %v5955_v54 = vsel %vm5526_vm12, %v5634_v47, %v5825_v25  ;;  %v5959_v4 = vsel %vm5526_vm12, %v9624_v10, %v5829_v11  ;;  %v5190_v47 = vrot.slane %v9334_v36, 3  ;;  %v5192_v25 = vrot.slane %v9334_v36, 5 }
 0x6ce   : > { %v6376_v43 = vld.sshfl [vmem:[#allocation1] sm:$0xff pattern:$0x73625140]  ;;  %v6064_v37 = vadd.f32 %v9442_v6, %v5955_v54 }
 0x6cf   : > { %6378 = vst [vmem:[#allocation1] ss:$4 sm:$0xff] %v6053_v16  ;;  %v5954_v16 = vsel %vm5526_vm12, %v5633_v53, %v5824_v30  ;;  %v6068_v53 = vadd.f32 %v9442_v6, %v5959_v4  ;;  %v5191_v30 = vrot.slane %v9334_v36, 4 }
 0x6d0   : > { %6379 = vst [vmem:[#allocation1 + $0x1] ss:$4 sm:$0xff] %v6054_v38  ;;  %v5827_v38 = vperm.slane %v5768_v52, 0  ;;  %v5961_v52 = vsel %vm5526_vm12, %v5639_v49, %v9479_v8  ;;  %v5142_v49 = vpop.f32.mrf.mxu2 }
 0x6d1   : > { %6380 = vst [vmem:[#allocation1 + $0x2] ss:$4 sm:$0xff] %v6055_v63  ;;  %v4584_v63 = vpop.f32.mrf.mxu3 }
 0x6d2   : > { %v6377_v40 = vld.sshfl [vmem:[#allocation1 + $0x20] sm:$0xff pattern:$0x73625140]  ;;  %6381 = vst [vmem:[#allocation1 + $0x3] ss:$4 sm:$0xff] %v6056_v44  ;;  %v6063_v44 = vadd.f32 %v9435_v33, %v5954_v16  ;;  %v5957_v15 = vsel %vm5526_vm12, %v5636_v48, %v5827_v38 }
 0x6d3   : > { %6382 = vst [vmem:[#allocation1 + $0x20] ss:$4 sm:$0xff] %v6057_v3  ;;  %v5638_v3 = vrot.slane %v9624_v10, 1 }
 0x6d4   : > { %6383 = vst [vmem:[#allocation1 + $0x21] ss:$4 sm:$0xff] %v6058_v20  ;;  %v5830_v20 = vperm.slane %v5771_v51, 0  ;;  %v5194_v51 = vrot.slane %v9334_v36, 7 }
 0x6d5   : > { %6384 = vst [vmem:[#allocation1 + $0x22] ss:$4 sm:$0xff] %v6059_v24  ;;  %v4585_v24 = vadd.f32 %v4584_v63, %v9380_v12  ;;  %v5195_v63 = vrot.slane %v9344_v55, 1 }
 0x6d6   : > { %6385 = vst [vmem:[#allocation1 + $0x23] ss:$4 sm:$0xff] %v6060_v23  ;;  %v6066_v23 = vadd.f32 %v9423_v2, %v5957_v15  ;;  %v5960_v57 = vsel %vm5526_vm12, %v5638_v3, %v5830_v20 }
 0x6d7   : > { %6596 = vst.msk [vmem:[%s9476_s10 + $0x50] sm:$0xff] %vm1358_vm2, %v6376_v43  ;;  %v5956_v43 = vsel %vm5526_vm12, %v5635_v5, %v5826_v0  ;;  %v5338_v12 = vrot.slane %v4585_v24, 1  ;;  %v6069_v14 = vadd.f32 %v9447_v32, %v5960_v57  ;;  %v5339_v61 = vrot.slane %v4585_v24, 2 }
 0x6d8   : > { %6597 = vst.msk [vmem:[%s9476_s10 + $0x58] sm:$0x1] %vm6587_vm13, %v6377_v40  ;;  %v6065_v40 = vadd.f32 %v9447_v32, %v5956_v43  ;;  %v5340_v39 = vrot.slane %v4585_v24, 3  ;;  %v5341_v28 = vrot.slane %v4585_v24, 4  ;;  %v5405_v5 = vperm.slane %v4585_v24, 0 }
 0x6d9   : > { %v6386_v45 = vld.sshfl [vmem:[#allocation1] sm:$0xff pattern:$0x73625140]  ;;  %v5406_v18 = vperm.slane %v5338_v12, 0  ;;  %v6070_v0 = vadd.f32 %v9423_v2, %v5961_v52  ;;  %v5343_v48 = vrot.slane %v4585_v24, 6  ;;  %v5407_v16 = vperm.slane %v5339_v61, 0 }
 0x6da   : > { %6598 = vst.msk [vmem:[%s9476_s10 + $0x60] sm:$0xff] %vm1358_vm2, %v6386_v45  ;;  %v5193_v45 = vrot.slane %v9334_v36, 6  ;;  %v5554_v46 = vsel %vm5526_vm12, %v5190_v47, %v5405_v5  ;;  %v5344_v54 = vrot.slane %v4585_v24, 7  ;;  %v5408_v38 = vperm.slane %v5340_v39, 0 }
 0x6db   : > { %6388 = vst [vmem:[#allocation1] ss:$4 sm:$0xff] %v6061_v56  ;;  %v5342_v56 = vrot.slane %v4585_v24, 5  ;;  %v5555_v43 = vsel %vm5526_vm12, %v5191_v30, %v5406_v18  ;;  %v5556_v50 = vsel %vm5526_vm12, %v5192_v25, %v5407_v16  ;;  %v6071_v3 = vadd.f32 %v9423_v2, %v5554_v46  ;;  %v5067_v30 = vpop.f32.mrf.mxu1  ;;  %v4917_v18 = vpop.f32.mrf.mxu0 }
 0x6dc   : > { %v5196_v36 = vrot.slane %v9344_v55, 2  ;;  %v5411_v11 = vperm.slane %v5343_v48, 0  ;;  %v5412_v17 = vperm.slane %v5344_v54, 0  ;;  %v5772_v61 = vrot.slane %v5142_v49, 1 }
 0x6dd   : > { %v6387_v7 = vld.sshfl [vmem:[#allocation1 + $0x20] sm:$0xff pattern:$0x73625140]  ;;  %v5773_v52 = vrot.slane %v5142_v49, 2  ;;  %v5640_v39 = vrot.slane %v9624_v10, 3  ;;  %v5641_v25 = vrot.slane %v9624_v10, 4  ;;  %v9691_v16 = vadd.f32 %v5067_v30, %v4917_v18 }
 0x6de   : > { %6390 = vst [vmem:[#allocation1 + $0x20] ss:$4 sm:$0xff] %v6062_v26  ;;  %v5409_v26 = vperm.slane %v5341_v28, 0  ;;  %v5774_v28 = vrot.slane %v5142_v49, 3  ;;  %v5643_v48 = vrot.slane %v9624_v10, 6 }
 0x6df   : > { %6391 = vst [vmem:[#allocation1 + $0x21] ss:$4 sm:$0xff] %v6063_v44  ;;  %v5410_v44 = vperm.slane %v5342_v56, 0  ;;  %v5831_v56 = vperm.slane %v5142_v49, 0  ;;  %v5833_v46 = vperm.slane %v5773_v52, 0 }
 0x6e0   : > { %6392 = vst [vmem:[#allocation1 + $0x22] ss:$4 sm:$0xff] %v6064_v37  ;;  %v5558_v15 = vsel %vm5526_vm12, %v5194_v51, %v5409_v26  ;;  %v6072_v37 = vadd.f32 %v9435_v33, %v5555_v43  ;;  %v5776_v51 = vrot.slane %v5142_v49, 5  ;;  %v5777_v26 = vrot.slane %v5142_v49, 6 }
 0x6e1   : > { %6393 = vst [vmem:[#allocation1 + $0x23] ss:$4 sm:$0xff] %v6065_v40  ;;  %v6073_v40 = vadd.f32 %v9442_v6, %v5556_v50  ;;  %v5559_v24 = vsel %vm5526_vm12, %v9344_v55, %v5410_v44  ;;  %v6075_v57 = vadd.f32 %v9423_v2, %v5558_v15  ;;  %v5834_v50 = vperm.slane %v5774_v28, 0 }
 0x6e2   : > { %6599 = vst.msk [vmem:[%s9476_s10 + $0x68] sm:$0xff] %vm1358_vm2, %v6387_v7  ;;  %v6389_v19 = vld.sshfl [vmem:[#allocation1] sm:$0xff pattern:$0x73625140]  ;;  %v5557_v7 = vsel %vm5526_vm12, %v5193_v45, %v5408_v38  ;;  %v5642_v45 = vrot.slane %v9624_v10, 5  ;;  %v5962_v38 = vsel %vm5526_vm12, %v5640_v39, %v5831_v56 }
 0x6e3   : > { %6395 = vst [vmem:[#allocation1] ss:$4 sm:$0xff] %v6066_v23  ;;  %v6074_v4 = vadd.f32 %v9447_v32, %v5557_v7  ;;  %v5560_v23 = vsel %vm5526_vm12, %v5195_v63, %v5411_v11  ;;  %v5644_v63 = vrot.slane %v9624_v10, 7  ;;  %v5778_v7 = vrot.slane %v5142_v49, 7 }
 0x6e4   : > { %6396 = vst [vmem:[#allocation1 + $0x1] ss:$4 sm:$0xff] %v6067_v60  ;;  %v5561_v60 = vsel %vm5526_vm12, %v5196_v36, %v5412_v17  ;;  %v5965_v11 = vsel %vm5526_vm12, %v5643_v48, %v5834_v50  ;;  %v6080_v15 = vadd.f32 %v9423_v2, %v5962_v38  ;;  %v4587_v17 = vpop.f32.mrf.mxu3  ;;  %v5200_v48 = vrot.slane %v9344_v55, 6 }
 0x6e5   : > { %6397 = vst [vmem:[#allocation1 + $0x2] ss:$4 sm:$0xff] %v6068_v53  ;;  %v6076_v53 = vadd.f32 %v9435_v33, %v5559_v24  ;;  %v6078_v47 = vadd.f32 %v9447_v32, %v5561_v60  ;;  %v5646_v24 = vrot.slane %v9691_v16, 2  ;;  %v6083_v60 = vadd.f32 %v9447_v32, %v5965_v11 }
 0x6e6   : > { %6398 = vst [vmem:[#allocation1 + $0x3] ss:$4 sm:$0xff] %v6069_v14  ;;  %v6077_v14 = vadd.f32 %v9442_v6, %v5560_v23 }
 0x6e7   : > { %6600 = vst.msk [vmem:[%s9476_s10 + $0x70] sm:$0x1] %vm6587_vm13, %v6389_v19  ;;  %v5197_v19 = vrot.slane %v9344_v55, 3 }
 0x6e8   : > { %v6394_v62 = vld.sshfl [vmem:[#allocation1 + $0x20] sm:$0xff pattern:$0x73625140] }
 0x6e9   : > { %6601 = vst.msk [vmem:[%s9476_s10 + $0x78] sm:$0xff] %vm1358_vm2, %v6394_v62  ;;  %v5562_v5 = vsel %vm5526_vm12, %v5197_v19, %v9479_v8  ;;  %v5775_v62 = vrot.slane %v5142_v49, 4 }
 0x6ea   : > { %6399 = vst [vmem:[#allocation1 + $0x20] ss:$4 sm:$0xff] %v6070_v0  ;;  %v5832_v0 = vperm.slane %v5772_v61, 0  ;;  %v6079_v54 = vadd.f32 %v9423_v2, %v5562_v5  ;;  %v5647_v61 = vrot.slane %v9691_v16, 3 }
 0x6eb   : > { %v5835_v36 = vperm.slane %v5775_v62, 0 }
 0x6ec   : > { %v5963_v44 = vsel %vm5526_vm12, %v5641_v25, %v5832_v0  ;;  %v5198_v25 = vrot.slane %v9344_v55, 4  ;;  %v5970_v56 = vsel %vm5526_vm12, %v5647_v61, %v9479_v8 }
 0x6ed   : > { %v6400_v20 = vld.sshfl [vmem:[#allocation1] sm:$0xff pattern:$0x73625140]  ;;  %v5966_v23 = vsel %vm5526_vm12, %v5644_v63, %v5835_v36  ;;  %v5202_v36 = vrot.slane %v9353_v29, 1 }
 0x6ee   : > { %6402 = vst [vmem:[#allocation1] ss:$4 sm:$0xff] %v6071_v3  ;;  %v5964_v3 = vsel %vm5526_vm12, %v5642_v45, %v5833_v46  ;;  %v5199_v45 = vrot.slane %v9344_v55, 5 }
 0x6ef   : > { %6403 = vst [vmem:[#allocation1 + $0x1] ss:$4 sm:$0xff] %v6072_v37  ;;  %v5645_v37 = vrot.slane %v9691_v16, 1  ;;  %v6082_v49 = vadd.f32 %v9442_v6, %v5964_v3 }
 0x6f0   : > { %6404 = vst [vmem:[#allocation1 + $0x2] ss:$4 sm:$0xff] %v6073_v40  ;;  %v6081_v40 = vadd.f32 %v9435_v33, %v5963_v44 }
 0x6f1   : > { %v6401_v12 = vld.sshfl [vmem:[#allocation1 + $0x20] sm:$0xff pattern:$0x73625140]  ;;  %6405 = vst [vmem:[#allocation1 + $0x3] ss:$4 sm:$0xff] %v6074_v4  ;;  %v5837_v4 = vperm.slane %v5777_v26, 0 }
 0x6f2   : > { %6406 = vst [vmem:[#allocation1 + $0x20] ss:$4 sm:$0xff] %v6075_v57  ;;  %v5838_v57 = vperm.slane %v5778_v7, 0 }
 0x6f3   : > { %6407 = vst [vmem:[#allocation1 + $0x21] ss:$4 sm:$0xff] %v6076_v53  ;;  %v4588_v53 = vadd.f32 %v4587_v17, %v9392_v59 }
 0x6f4   : > { %6408 = vst [vmem:[#allocation1 + $0x22] ss:$4 sm:$0xff] %v6077_v14  ;;  %v6084_v14 = vadd.f32 %v9423_v2, %v5966_v23 }
 0x6f5   : > { %6409 = vst [vmem:[#allocation1 + $0x23] ss:$4 sm:$0xff] %v6078_v47  ;;  %v5969_v47 = vsel %vm5526_vm12, %v5646_v24, %v5838_v57  ;;  %v5345_v59 = vrot.slane %v4588_v53, 1  ;;  %v5346_v5 = vrot.slane %v4588_v53, 2  ;;  %v5347_v18 = vrot.slane %v4588_v53, 3 }
 0x6f6   : > { %6602 = vst.msk [vmem:[%s9476_s10 + $0x80] sm:$0xff] %vm1358_vm2, %v6400_v20  ;;  %v5836_v20 = vperm.slane %v5776_v51, 0  ;;  %v6087_v28 = vadd.f32 %v9447_v32, %v5969_v47  ;;  %v5348_v62 = vrot.slane %v4588_v53, 4  ;;  %v5413_v0 = vperm.slane %v4588_v53, 0 }
 0x6f7   : > { %6603 = vst.msk [vmem:[%s9476_s10 + $0x88] sm:$0x1] %vm6587_vm13, %v6401_v12  ;;  %v5968_v12 = vsel %vm5526_vm12, %v5645_v37, %v5837_v4  ;;  %v5349_v51 = vrot.slane %v4588_v53, 5  ;;  %v5414_v46 = vperm.slane %v5345_v59, 0  ;;  %v5350_v26 = vrot.slane %v4588_v53, 6 }
 0x6f8   : > { %v6410_v43 = vld.sshfl [vmem:[#allocation1] sm:$0xff pattern:$0x73625140]  ;;  %v5967_v19 = vsel %vm5526_vm12, %v9691_v16, %v5836_v20  ;;  %v6086_v30 = vadd.f32 %v9442_v6, %v5968_v12  ;;  %v5415_v50 = vperm.slane %v5346_v5, 0  ;;  %v5563_v63 = vsel %vm5526_vm12, %v5198_v25, %v5413_v0  ;;  %v5145_v12 = vpop.f32.mrf.mxu2  ;;  %v5070_v5 = vpop.f32.mrf.mxu1 }
 0x6f9   : > { %6604 = vst.msk [vmem:[%s9476_s10 + $0x90] sm:$0xff] %vm1358_vm2, %v6410_v43  ;;  %v6085_v52 = vadd.f32 %v9435_v33, %v5967_v19  ;;  %v6088_v43 = vadd.f32 %v9423_v2, %v5970_v56  ;;  %v5351_v44 = vrot.slane %v4588_v53, 7  ;;  %v5416_v7 = vperm.slane %v5347_v18, 0  ;;  %v9742_v20 = vld [vmem:[%s10070_s8] ss:$0 sm:$0xff] }
 0x6fa   : > { %6412 = vst [vmem:[#allocation1] ss:$4 sm:$0xff] %v6079_v54  ;;  %v5201_v54 = vrot.slane %v9344_v55, 7  ;;  %v5564_v3 = vsel %vm5526_vm12, %v5199_v45, %v5414_v46  ;;  %v5417_v11 = vperm.slane %v5348_v62, 0  ;;  %v5203_v55 = vrot.slane %v9353_v29, 2  ;;  %v4920_v62 = vpop.f32.mrf.mxu0 }
 0x6fb   : > { %v5418_v37 = vperm.slane %v5349_v51, 0  ;;  %v6089_v17 = vadd.f32 %v9742_v20, %v5563_v63  ;;  %v6090_v24 = vadd.f32 %v9435_v33, %v5564_v3  ;;  %v5205_v47 = vrot.slane %v9353_v29, 4 }
 0x6fc   : > { %v6411_v10 = vld.sshfl [vmem:[#allocation1 + $0x20] sm:$0xff pattern:$0x73625140]  ;;  %v5566_v2 = vsel %vm5526_vm12, %v5201_v54, %v5416_v7  ;;  %v5567_v4 = vsel %vm5526_vm12, %v9353_v29, %v5417_v11  ;;  %v5779_v59 = vrot.slane %v5145_v12, 1  ;;  %v5780_v25 = vrot.slane %v5145_v12, 2 }
 0x6fd   : > { %6414 = vst [vmem:[#allocation1 + $0x20] ss:$4 sm:$0xff] %v6080_v15  ;;  %v5565_v15 = vsel %vm5526_vm12, %v5200_v48, %v5415_v50  ;;  %v6092_v19 = vadd.f32 %v9447_v32, %v5566_v2  ;;  %v6093_v61 = vadd.f32 %v9742_v20, %v5567_v4  ;;  %v5648_v56 = vrot.slane %v9691_v16, 4 }
 0x6fe   : > { %6415 = vst [vmem:[#allocation1 + $0x21] ss:$4 sm:$0xff] %v6081_v40  ;;  %v5204_v40 = vrot.slane %v9353_v29, 3  ;;  %v6091_v57 = vadd.f32 %v9442_v6, %v5565_v15  ;;  %v5781_v18 = vrot.slane %v5145_v12, 3  ;;  %v5571_v45 = vsel %vm5526_vm12, %v5205_v47, %v9479_v8 }
 0x6ff   : > { %6416 = vst [vmem:[#allocation1 + $0x22] ss:$4 sm:$0xff] %v6082_v49  ;;  %v5420_v49 = vperm.slane %v5351_v44, 0  ;;  %v5649_v0 = vrot.slane %v9691_v16, 5  ;;  %v5839_v48 = vperm.slane %v5145_v12, 0  ;;  %v5650_v51 = vrot.slane %v9691_v16, 6 }
 0x700   : > { %6417 = vst [vmem:[#allocation1 + $0x23] ss:$4 sm:$0xff] %v6083_v60  ;;  %v5568_v60 = vsel %vm5526_vm12, %v5202_v36, %v5418_v37  ;;  %v9766_v46 = vadd.f32 %v5070_v5, %v4920_v62  ;;  %v5782_v54 = vrot.slane %v5145_v12, 4  ;;  %v5841_v50 = vperm.slane %v5780_v25, 0 }
 0x701   : > { %6605 = vst.msk [vmem:[%s9476_s10 + $0x98] sm:$0xff] %vm1358_vm2, %v6411_v10  ;;  %v6413_v39 = vld.sshfl [vmem:[#allocation1] sm:$0xff pattern:$0x73625140]  ;;  %v5419_v10 = vperm.slane %v5350_v26, 0  ;;  %v5783_v26 = vrot.slane %v5145_v12, 5  ;;  %v6097_v63 = vadd.f32 %v9742_v20, %v5571_v45  ;;  %v5971_v44 = vsel %vm5526_vm12, %v5648_v56, %v5839_v48 }
 0x702   : > { %6419 = vst [vmem:[#allocation1] ss:$4 sm:$0xff] %v6084_v14  ;;  %v5570_v14 = vsel %vm5526_vm12, %v5204_v40, %v5420_v49  ;;  %v5784_v3 = vrot.slane %v5145_v12, 6  ;;  %v5842_v36 = vperm.slane %v5781_v18, 0  ;;  %v5785_v15 = vrot.slane %v5145_v12, 7 }
 0x703   : > { %6420 = vst [vmem:[#allocation1 + $0x1] ss:$4 sm:$0xff] %v6085_v52  ;;  %v5569_v53 = vsel %vm5526_vm12, %v5203_v55, %v5419_v10  ;;  %v6094_v52 = vadd.f32 %v9435_v33, %v5568_v60  ;;  %v5973_v55 = vsel %vm5526_vm12, %v5650_v51, %v5841_v50  ;;  %v5843_v37 = vperm.slane %v5782_v54, 0 }
 0x704   : > { %6421 = vst [vmem:[#allocation1 + $0x2] ss:$4 sm:$0xff] %v6086_v30  ;;  %v6095_v30 = vadd.f32 %v9442_v6, %v5569_v53  ;;  %v5653_v40 = vrot.slane %v9766_v46, 2  ;;  %v5844_v10 = vperm.slane %v5783_v26, 0  ;;  %v5654_v49 = vrot.slane %v9766_v46, 3 }
 0x705   : > { %6422 = vst [vmem:[#allocation1 + $0x3] ss:$4 sm:$0xff] %v6087_v28  ;;  %v6096_v28 = vadd.f32 %v9447_v32, %v5570_v14  ;;  %v6100_v60 = vadd.f32 %v9442_v6, %v5973_v55  ;;  %v5846_v53 = vperm.slane %v5785_v15, 0  ;;  %v5206_v18 = vrot.slane %v9353_v29, 5 }
 0x706   : > { %6606 = vst.msk [vmem:[%s9476_s10 + $0xa0] sm:$0x1] %vm6587_vm13, %v6413_v39  ;;  %v5208_v54 = vrot.slane %v9353_v29, 7 }
 0x707   : > { %v6418_v38 = vld.sshfl [vmem:[#allocation1 + $0x20] sm:$0xff pattern:$0x73625140] }
 0x708   : > { %6607 = vst.msk [vmem:[%s9476_s10 + $0xa8] sm:$0xff] %vm1358_vm2, %v6418_v38  ;;  %v5840_v38 = vperm.slane %v5779_v59, 0 }
 0x709   : > { %6423 = vst [vmem:[#allocation1 + $0x20] ss:$4 sm:$0xff] %v6088_v43  ;;  %v5651_v43 = vrot.slane %v9691_v16, 7  ;;  %v5652_v16 = vrot.slane %v9766_v46, 1 }
 0x70a   : > { %v5972_v11 = vsel %vm5526_vm12, %v5649_v0, %v5840_v38  ;;  %v5207_v0 = vrot.slane %v9353_v29, 6  ;;  %v5210_v29 = vrot.slane %v9362_v58, 2 }
 0x70b   : > { %v5974_v2 = vsel %vm5526_vm12, %v5651_v43, %v5842_v36  ;;  %v6099_v4 = vadd.f32 %v9435_v33, %v5972_v11  ;;  %v5976_v14 = vsel %vm5526_vm12, %v5652_v16, %v5844_v10 }
 0x70c   : > { %v6424_v23 = vld.sshfl [vmem:[#allocation1] sm:$0xff pattern:$0x73625140]  ;;  %v6101_v12 = vadd.f32 %v9447_v32, %v5974_v2  ;;  %v6103_v59 = vadd.f32 %v9435_v33, %v5976_v14  ;;  %v5148_v14 = vpop.f32.mrf.mxu2 }
 0x70d   : > { %6426 = vst [vmem:[#allocation1] ss:$4 sm:$0xff] %v6089_v17  ;;  %v6098_v17 = vadd.f32 %v9742_v20, %v5971_v44 }
 0x70e   : > { %6427 = vst [vmem:[#allocation1 + $0x1] ss:$4 sm:$0xff] %v6090_v24  ;;  %v4590_v24 = vpop.f32.mrf.mxu3 }
 0x70f   : > { %6428 = vst [vmem:[#allocation1 + $0x2] ss:$4 sm:$0xff] %v6091_v57  ;;  %v5845_v57 = vperm.slane %v5784_v3, 0  ;;  %v5209_v3 = vrot.slane %v9362_v58, 1 }
 0x710   : > { %v6425_v39 = vld.sshfl [vmem:[#allocation1 + $0x20] sm:$0xff pattern:$0x73625140]  ;;  %6429 = vst [vmem:[#allocation1 + $0x3] ss:$4 sm:$0xff] %v6092_v19  ;;  %v5975_v19 = vsel %vm5526_vm12, %v9766_v46, %v5843_v37  ;;  %v5211_v37 = vrot.slane %v9362_v58, 3 }
 0x711   : > { %6430 = vst [vmem:[#allocation1 + $0x20] ss:$4 sm:$0xff] %v6093_v61  ;;  %v4591_v61 = vadd.f32 %v4590_v24, %v9399_v42  ;;  %v5977_v47 = vsel %vm5526_vm12, %v5653_v40, %v5845_v57  ;;  %v5212_v40 = vrot.slane %v9362_v58, 4 }
 0x712   : > { %6431 = vst [vmem:[#allocation1 + $0x21] ss:$4 sm:$0xff] %v6094_v52  ;;  %v5655_v52 = vrot.slane %v9766_v46, 4  ;;  %v6104_v5 = vadd.f32 %v9442_v6, %v5977_v47 }
 0x713   : > { %6432 = vst [vmem:[#allocation1 + $0x22] ss:$4 sm:$0xff] %v6095_v30  ;;  %v6102_v30 = vadd.f32 %v9742_v20, %v5975_v19  ;;  %v5352_v42 = vrot.slane %v4591_v61, 1  ;;  %v5353_v56 = vrot.slane %v4591_v61, 2  ;;  %v5354_v62 = vrot.slane %v4591_v61, 3 }
 0x714   : > { %6433 = vst [vmem:[#allocation1 + $0x23] ss:$4 sm:$0xff] %v6096_v28  ;;  %v5979_v45 = vsel %vm5526_vm12, %v5655_v52, %v9479_v8  ;;  %v5355_v48 = vrot.slane %v4591_v61, 4  ;;  %v5421_v51 = vperm.slane %v4591_v61, 0  ;;  %v5356_v38 = vrot.slane %v4591_v61, 5 }
 0x715   : > { %6608 = vst.msk [vmem:[%s9476_s10 + $0xb0] sm:$0xff] %vm1358_vm2, %v6424_v23  ;;  %v5422_v43 = vperm.slane %v5352_v42, 0  ;;  %v6106_v50 = vadd.f32 %v9742_v20, %v5979_v45  ;;  %v5423_v44 = vperm.slane %v5353_v56, 0  ;;  %v5358_v36 = vrot.slane %v4591_v61, 7 }
 0x716   : > { %6609 = vst.msk [vmem:[%s9476_s10 + $0xb8] sm:$0x1] %vm6587_vm13, %v6425_v39  ;;  %v5978_v39 = vsel %vm5526_vm12, %v5654_v49, %v5846_v53  ;;  %v5424_v11 = vperm.slane %v5354_v62, 0  ;;  %v5425_v55 = vperm.slane %v5355_v48, 0  ;;  %v5426_v2 = vperm.slane %v5356_v38, 0 }
 0x717   : > { %v6434_v7 = vld.sshfl [vmem:[#allocation1] sm:$0xff pattern:$0x73625140]  ;;  %v6105_v25 = vadd.f32 %v9447_v32, %v5978_v39  ;;  %v5573_v15 = vsel %vm5526_vm12, %v5207_v0, %v5422_v43  ;;  %v5574_v16 = vsel %vm5526_vm12, %v5208_v54, %v5423_v44  ;;  %v5428_v57 = vperm.slane %v5358_v36, 0 }
 0x718   : > { %6610 = vst.msk [vmem:[%s9476_s10 + $0xc0] sm:$0xff] %vm1358_vm2, %v6434_v7  ;;  %v5572_v7 = vsel %vm5526_vm12, %v5206_v18, %v5421_v51  ;;  %v5575_v10 = vsel %vm5526_vm12, %v9362_v58, %v5424_v11  ;;  %v5577_v19 = vsel %vm5526_vm12, %v5210_v29, %v5426_v2  ;;  %v4923_v18 = vpop.f32.mrf.mxu0  ;;  %v5656_v45 = vrot.slane %v9766_v46, 5 }
 0x719   : > { %6436 = vst [vmem:[#allocation1] ss:$4 sm:$0xff] %v6097_v63  ;;  %v5357_v63 = vrot.slane %v4591_v61, 6  ;;  %v5213_v61 = vrot.slane %v9362_v58, 5  ;;  %v5579_v47 = vsel %vm5526_vm12, %v5212_v40, %v5428_v57  ;;  %v6112_v39 = vadd.f32 %v9435_v33, %v5577_v19  ;;  %v4593_v40 = vpop.f32.mrf.mxu3 }
 0x71a   : > { %v6114_v42 = vadd.f32 %v9447_v32, %v5579_v47  ;;  %v5657_v62 = vrot.slane %v9766_v46, 6  ;;  %v5788_v48 = vrot.slane %v5148_v14, 3  ;;  %v5847_v51 = vperm.slane %v5148_v14, 0 }
 0x71b   : > { %v6435_v23 = vld.sshfl [vmem:[#allocation1 + $0x20] sm:$0xff pattern:$0x73625140]  ;;  %v5427_v24 = vperm.slane %v5357_v63, 0  ;;  %v5580_v56 = vsel %vm5526_vm12, %v5213_v61, %v9479_v8  ;;  %v5658_v54 = vrot.slane %v9766_v46, 7  ;;  %v5789_v38 = vrot.slane %v5148_v14, 4 }
 0x71c   : > { %6438 = vst [vmem:[#allocation1 + $0x20] ss:$4 sm:$0xff] %v6098_v17  ;;  %v6107_v17 = vadd.f32 %v9742_v20, %v5572_v7  ;;  %v5980_v44 = vsel %vm5526_vm12, %v5656_v45, %v5847_v51  ;;  %v5792_v46 = vrot.slane %v5148_v14, 7  ;;  %v5215_v45 = vrot.slane %v9362_v58, 7 }
 0x71d   : > { %6439 = vst [vmem:[#allocation1 + $0x21] ss:$4 sm:$0xff] %v6099_v4  ;;  %v6108_v4 = vadd.f32 %v9435_v33, %v5573_v15  ;;  %v5578_v53 = vsel %vm5526_vm12, %v5211_v37, %v5427_v24  ;;  %v5850_v15 = vperm.slane %v5788_v48, 0  ;;  %v6116_v37 = vadd.f32 %v9742_v20, %v5980_v44 }
 0x71e   : > { %6440 = vst [vmem:[#allocation1 + $0x22] ss:$4 sm:$0xff] %v6100_v60  ;;  %v6109_v60 = vadd.f32 %v9442_v6, %v5574_v16  ;;  %v5851_v16 = vperm.slane %v5789_v38, 0  ;;  %v5854_v19 = vperm.slane %v5792_v46, 0  ;;  %v5216_v38 = vrot.slane %v9372_v34, 1 }
 0x71f   : > { %6441 = vst [vmem:[#allocation1 + $0x23] ss:$4 sm:$0xff] %v6101_v12  ;;  %v6110_v12 = vadd.f32 %v9447_v32, %v5575_v10  ;;  %v5217_v44 = vrot.slane %v9372_v34, 2 }
 0x720   : > { %6611 = vst.msk [vmem:[%s9476_s10 + $0xc8] sm:$0xff] %vm1358_vm2, %v6435_v23  ;;  %v6437_v28 = vld.sshfl [vmem:[#allocation1] sm:$0xff pattern:$0x73625140]  ;;  %v5576_v23 = vsel %vm5526_vm12, %v5209_v3, %v5425_v55  ;;  %v5791_v3 = vrot.slane %v5148_v14, 6 }
 0x721   : > { %6443 = vst [vmem:[#allocation1] ss:$4 sm:$0xff] %v6102_v30  ;;  %v6111_v52 = vadd.f32 %v9742_v20, %v5576_v23 }
 0x722   : > { %6444 = vst [vmem:[#allocation1 + $0x1] ss:$4 sm:$0xff] %v6103_v59  ;;  %v6113_v59 = vadd.f32 %v9442_v6, %v5578_v53 }
 0x723   : > { %6445 = vst [vmem:[#allocation1 + $0x2] ss:$4 sm:$0xff] %v6104_v5  ;;  %v5786_v5 = vrot.slane %v5148_v14, 1 }
 0x724   : > { %6446 = vst [vmem:[#allocation1 + $0x3] ss:$4 sm:$0xff] %v6105_v25  ;;  %v5787_v25 = vrot.slane %v5148_v14, 2 }
 0x725   : > { %6612 = vst.msk [vmem:[%s9476_s10 + $0xd0] sm:$0x1] %vm6587_vm13, %v6437_v28  ;;  %v5073_v28 = vpop.f32.mrf.mxu1  ;;  %v5848_v43 = vperm.slane %v5786_v5, 0 }
 0x726   : > { %v6442_v26 = vld.sshfl [vmem:[#allocation1 + $0x20] sm:$0xff pattern:$0x73625140]  ;;  %v9834_v0 = vadd.f32 %v5073_v28, %v4923_v18  ;;  %v5849_v63 = vperm.slane %v5787_v25, 0  ;;  %v5214_v25 = vrot.slane %v9362_v58, 6 }
 0x727   : > { %6613 = vst.msk [vmem:[%s9476_s10 + $0xd8] sm:$0xff] %vm1358_vm2, %v6442_v26  ;;  %v6115_v26 = vadd.f32 %v9742_v20, %v5580_v56  ;;  %v5981_v36 = vsel %vm5526_vm12, %v5657_v62, %v5848_v43 }
 0x728   : > { %6447 = vst [vmem:[#allocation1 + $0x20] ss:$4 sm:$0xff] %v6106_v50  ;;  %v5790_v50 = vrot.slane %v5148_v14, 5  ;;  %v5659_v11 = vrot.slane %v9834_v0, 1  ;;  %v5982_v29 = vsel %vm5526_vm12, %v5658_v54, %v5849_v63  ;;  %v5660_v55 = vrot.slane %v9834_v0, 2 }
 0x729   : > { %v5661_v2 = vrot.slane %v9834_v0, 3  ;;  %v6117_v10 = vadd.f32 %v9435_v33, %v5981_v36  ;;  %v5983_v23 = vsel %vm5526_vm12, %v9834_v0, %v5850_v15  ;;  %v6118_v57 = vadd.f32 %v9442_v6, %v5982_v29 }
 0x72a   : > { %v6119_v61 = vadd.f32 %v9447_v32, %v5983_v23  ;;  %v5663_v47 = vrot.slane %v9834_v0, 5  ;;  %v5219_v15 = vrot.slane %v9372_v34, 4 }
 0x72b   : > { %v6448_v49 = vld.sshfl [vmem:[#allocation1] sm:$0xff pattern:$0x73625140] }
 0x72c   : > { %6450 = vst [vmem:[#allocation1] ss:$4 sm:$0xff] %v6107_v17  ;;  %v5852_v17 = vperm.slane %v5790_v50, 0  ;;  %v5988_v56 = vsel %vm5526_vm12, %v5663_v47, %v9479_v8 }
 0x72d   : > { %6451 = vst [vmem:[#allocation1 + $0x1] ss:$4 sm:$0xff] %v6108_v4  ;;  %v5662_v4 = vrot.slane %v9834_v0, 4  ;;  %v6124_v43 = vadd.f32 %v9742_v20, %v5988_v56 }
 0x72e   : > { %6452 = vst [vmem:[#allocation1 + $0x2] ss:$4 sm:$0xff] %v6109_v60  ;;  %v5984_v60 = vsel %vm5526_vm12, %v5659_v11, %v5851_v16  ;;  %v5985_v53 = vsel %vm5526_vm12, %v5660_v55, %v5852_v17  ;;  %v5218_v11 = vrot.slane %v9372_v34, 3 }
 0x72f   : > { %v6449_v30 = vld.sshfl [vmem:[#allocation1 + $0x20] sm:$0xff pattern:$0x73625140]  ;;  %6453 = vst [vmem:[#allocation1 + $0x3] ss:$4 sm:$0xff] %v6110_v12  ;;  %v4594_v12 = vadd.f32 %v4593_v40, %v9406_v35 }
 0x730   : > { %6454 = vst [vmem:[#allocation1 + $0x20] ss:$4 sm:$0xff] %v6111_v52  ;;  %v5987_v52 = vsel %vm5526_vm12, %v5662_v4, %v5854_v19  ;;  %v5151_v19 = vpop.f32.mrf.mxu2 }
 0x731   : > { %6455 = vst [vmem:[#allocation1 + $0x21] ss:$4 sm:$0xff] %v6112_v39  ;;  %v6120_v39 = vadd.f32 %v9742_v20, %v5984_v60  ;;  %v5359_v28 = vrot.slane %v4594_v12, 1  ;;  %v6123_v5 = vadd.f32 %v9447_v32, %v5987_v52  ;;  %v5361_v18 = vrot.slane %v4594_v12, 3 }
 0x732   : > { %6456 = vst [vmem:[#allocation1 + $0x22] ss:$4 sm:$0xff] %v6113_v59  ;;  %v6121_v59 = vadd.f32 %v9435_v33, %v5985_v53  ;;  %v5362_v62 = vrot.slane %v4594_v12, 4  ;;  %v5429_v48 = vperm.slane %v4594_v12, 0  ;;  %v5363_v51 = vrot.slane %v4594_v12, 5 }
 0x733   : > { %6457 = vst [vmem:[#allocation1 + $0x23] ss:$4 sm:$0xff] %v6114_v42  ;;  %v5360_v42 = vrot.slane %v4594_v12, 2  ;;  %v5430_v54 = vperm.slane %v5359_v28, 0  ;;  %v5365_v58 = vrot.slane %v4594_v12, 7  ;;  %v5221_v53 = vrot.slane %v9372_v34, 6  ;;  %v4926_v28 = vpop.f32.mrf.mxu0 }
 0x734   : > { %6614 = vst.msk [vmem:[%s9476_s10 + $0xe0] sm:$0xff] %vm1358_vm2, %v6448_v49  ;;  %v5853_v49 = vperm.slane %v5791_v3, 0  ;;  %v5581_v63 = vsel %vm5526_vm12, %v5214_v25, %v5429_v48  ;;  %v5432_v3 = vperm.slane %v5361_v18, 0  ;;  %v5433_v46 = vperm.slane %v5362_v62, 0 }
 0x735   : > { %6615 = vst.msk [vmem:[%s9476_s10 + $0xe8] sm:$0x1] %vm6587_vm13, %v6449_v30  ;;  %v5431_v50 = vperm.slane %v5360_v42, 0  ;;  %v5582_v36 = vsel %vm5526_vm12, %v5215_v45, %v5430_v54  ;;  %v5434_v55 = vperm.slane %v5363_v51, 0  ;;  %v6125_v16 = vadd.f32 %v9742_v20, %v5581_v63 }
 0x736   : > { %v6458_v7 = vld.sshfl [vmem:[#allocation1] sm:$0xff pattern:$0x73625140]  ;;  %v5986_v14 = vsel %vm5526_vm12, %v5661_v2, %v5853_v49  ;;  %v5584_v2 = vsel %vm5526_vm12, %v5216_v38, %v5432_v3  ;;  %v6126_v40 = vadd.f32 %v9435_v33, %v5582_v36  ;;  %v5436_v4 = vperm.slane %v5365_v58, 0 }
 0x737   : > { %6460 = vst [vmem:[#allocation1] ss:$4 sm:$0xff] %v6115_v26  ;;  %v6122_v35 = vadd.f32 %v9442_v6, %v5986_v14  ;;  %v5364_v26 = vrot.slane %v4594_v12, 6  ;;  %v5583_v29 = vsel %vm5526_vm12, %v9372_v34, %v5431_v50  ;;  %v5586_v23 = vsel %vm5526_vm12, %v5218_v11, %v5434_v55 }
 0x738   : > { %6616 = vst.msk [vmem:[%s9476_s10 + $0xf0] sm:$0xff] %vm1358_vm2, %v6458_v7  ;;  %v6127_v49 = vadd.f32 %v9442_v6, %v5583_v29  ;;  %v6128_v60 = vadd.f32 %v9447_v32, %v5584_v2  ;;  %v5794_v42 = vrot.slane %v5151_v19, 2  ;;  %v5665_v25 = vrot.slane %v9834_v0, 7 }
 0x739   : > { %v5435_v17 = vperm.slane %v5364_v26, 0  ;;  %v5855_v18 = vperm.slane %v5151_v19, 0  ;;  %v5795_v45 = vrot.slane %v5151_v19, 3  ;;  %v5796_v51 = vrot.slane %v5151_v19, 4 }
 0x73a   : > { %v6459_v24 = vld.sshfl [vmem:[#allocation1 + $0x20] sm:$0xff pattern:$0x73625140]  ;;  %v5857_v26 = vperm.slane %v5794_v42, 0  ;;  %v5798_v63 = vrot.slane %v5151_v19, 6  ;;  %v5223_v42 = vrot.slane %v9378_v9, 1 }
 0x73b   : > { %6462 = vst [vmem:[#allocation1 + $0x20] ss:$4 sm:$0xff] %v6116_v37  ;;  %v5220_v37 = vrot.slane %v9372_v34, 5  ;;  %v5858_v58 = vperm.slane %v5795_v45, 0  ;;  %v5224_v45 = vrot.slane %v9378_v9, 2 }
 0x73c   : > { %6463 = vst [vmem:[#allocation1 + $0x21] ss:$4 sm:$0xff] %v6117_v10  ;;  %v5585_v10 = vsel %vm5526_vm12, %v5217_v44, %v5433_v46  ;;  %v5799_v44 = vrot.slane %v5151_v19, 7  ;;  %v5859_v46 = vperm.slane %v5796_v51, 0 }
 0x73d   : > { %6464 = vst [vmem:[#allocation1 + $0x22] ss:$4 sm:$0xff] %v6118_v57  ;;  %v5587_v57 = vsel %vm5526_vm12, %v5219_v15, %v5435_v17  ;;  %v5588_v12 = vsel %vm5526_vm12, %v5220_v37, %v5436_v4  ;;  %v6129_v14 = vadd.f32 %v9742_v20, %v5585_v10  ;;  %v4596_v37 = vpop.f32.mrf.mxu3 }
 0x73e   : > { %6617 = vst.msk [vmem:[%s9476_s10 + $0xf8] sm:$0xff] %vm1358_vm2, %v6459_v24  ;;  %v6461_v30 = vld.sshfl [vmem:[#allocation1] sm:$0xff pattern:$0x73625140]  ;;  %v6131_v52 = vadd.f32 %v9442_v6, %v5587_v57  ;;  %v5862_v4 = vperm.slane %v5799_v44, 0  ;;  %v5227_v44 = vrot.slane %v9378_v9, 5 }
 0x73f   : > { %6465 = vst [vmem:[#allocation1 + $0x23] ss:$4 sm:$0xff] %v6119_v61  ;;  %v6130_v61 = vadd.f32 %v9435_v33, %v5586_v23 }
 0x740   : > { %6467 = vst [vmem:[#allocation1] ss:$4 sm:$0xff] %v6120_v39  ;;  %v5076_v39 = vpop.f32.mrf.mxu1 }
 0x741   : > { %6468 = vst [vmem:[#allocation1 + $0x1] ss:$4 sm:$0xff] %v6121_v59  ;;  %v6132_v59 = vadd.f32 %v9447_v32, %v5588_v12  ;;  %v9905_v56 = vadd.f32 %v5076_v39, %v4926_v28 }
 0x742   : > { %6469 = vst [vmem:[#allocation1 + $0x2] ss:$4 sm:$0xff] %v6122_v35  ;;  %v5589_v35 = vsel %vm5526_vm12, %v5221_v53, %v9479_v8 }
 0x743   : > { %6470 = vst [vmem:[#allocation1 + $0x3] ss:$4 sm:$0xff] %v6123_v5  ;;  %v5664_v5 = vrot.slane %v9834_v0, 6  ;;  %v6133_v48 = vadd.f32 %v9742_v20, %v5589_v35  ;;  %v5666_v50 = vrot.slane %v9905_v56, 1  ;;  %v5668_v36 = vrot.slane %v9905_v56, 3 }
 0x744   : > { %6618 = vst.msk [vmem:[%s9476_s10 + $0x100] sm:$0x1] %vm6587_vm13, %v6461_v30  ;;  %v5793_v30 = vrot.slane %v5151_v19, 1  ;;  %v5991_v11 = vsel %vm5526_vm12, %v9905_v56, %v5857_v26  ;;  %v5669_v55 = vrot.slane %v9905_v56, 4  ;;  %v5670_v2 = vrot.slane %v9905_v56, 5 }
 0x745   : > { %v5989_v54 = vsel %vm5526_vm12, %v5664_v5, %v5855_v18  ;;  %v5992_v17 = vsel %vm5526_vm12, %v5666_v50, %v5858_v58  ;;  %v5671_v53 = vrot.slane %v9905_v56, 6 }
 0x746   : > { %v6466_v7 = vld.sshfl [vmem:[#allocation1 + $0x20] sm:$0xff pattern:$0x73625140]  ;;  %v5856_v62 = vperm.slane %v5793_v30, 0  ;;  %v6134_v3 = vadd.f32 %v9742_v20, %v5989_v54  ;;  %v5996_v12 = vsel %vm5526_vm12, %v5670_v2, %v5862_v4  ;;  %v5222_v30 = vrot.slane %v9372_v34, 7 }
 0x747   : > { %6471 = vst [vmem:[#allocation1 + $0x20] ss:$4 sm:$0xff] %v6124_v43  ;;  %v5797_v43 = vrot.slane %v5151_v19, 5  ;;  %v6137_v19 = vadd.f32 %v9447_v32, %v5992_v17  ;;  %v5225_v54 = vrot.slane %v9378_v9, 3 }
 0x748   : > { %6619 = vst.msk [vmem:[%s9476_s10 + $0x108] sm:$0xff] %vm1358_vm2, %v6466_v7  ;;  %v5990_v0 = vsel %vm5526_vm12, %v5665_v25, %v5856_v62  ;;  %v5667_v7 = vrot.slane %v9905_v56, 2 }
 0x749   : > { %v6135_v15 = vadd.f32 %v9435_v33, %v5990_v0  ;;  %v5226_v0 = vrot.slane %v9378_v9, 4 }
 0x74a   : > { %v6472_v24 = vld.sshfl [vmem:[#allocation1] sm:$0xff pattern:$0x73625140]  ;;  %v5993_v10 = vsel %vm5526_vm12, %v5667_v7, %v5859_v46 }
 0x74b   : > { %6474 = vst [vmem:[#allocation1] ss:$4 sm:$0xff] %v6125_v16  ;;  %v5860_v16 = vperm.slane %v5797_v43, 0 }
 0x74c   : > { %6475 = vst [vmem:[#allocation1 + $0x1] ss:$4 sm:$0xff] %v6126_v40  ;;  %v5861_v40 = vperm.slane %v5798_v63, 0 }
 0x74d   : > { %6476 = vst [vmem:[#allocation1 + $0x2] ss:$4 sm:$0xff] %v6127_v49  ;;  %v5994_v23 = vsel %vm5526_vm12, %v5668_v36, %v5860_v16  ;;  %v4597_v49 = vadd.f32 %v4596_v37, %v9417_v27  ;;  %v5228_v36 = vrot.slane %v9378_v9, 6 }
 0x74e   : > { %v6473_v47 = vld.sshfl [vmem:[#allocation1 + $0x20] sm:$0xff pattern:$0x73625140]  ;;  %6477 = vst [vmem:[#allocation1 + $0x3] ss:$4 sm:$0xff] %v6128_v60  ;;  %v5995_v60 = vsel %vm5526_vm12, %v5669_v55, %v5861_v40 }
 0x74f   : > { %6478 = vst [vmem:[#allocation1 + $0x20] ss:$4 sm:$0xff] %v6129_v14  ;;  %v6138_v14 = vadd.f32 %v9742_v20, %v5993_v10  ;;  %v5366_v27 = vrot.slane %v4597_v49, 1  ;;  %v5367_v39 = vrot.slane %v4597_v49, 2  ;;  %v5368_v35 = vrot.slane %v4597_v49, 3 }
 0x750   : > { %6479 = vst [vmem:[#allocation1 + $0x21] ss:$4 sm:$0xff] %v6130_v61  ;;  %v6139_v61 = vadd.f32 %v9435_v33, %v5994_v23  ;;  %v5369_v28 = vrot.slane %v4597_v49, 4  ;;  %v5437_v5 = vperm.slane %v4597_v49, 0  ;;  %v5370_v25 = vrot.slane %v4597_v49, 5  ;;  %v5079_v23 = vpop.f32.mrf.mxu1 }
 0x751   : > { %6480 = vst [vmem:[#allocation1 + $0x22] ss:$4 sm:$0xff] %v6131_v52  ;;  %v6141_v52 = vadd.f32 %v9447_v32, %v5996_v12  ;;  %v5438_v18 = vperm.slane %v5366_v27, 0  ;;  %v5439_v51 = vperm.slane %v5367_v39, 0  ;;  %v5372_v43 = vrot.slane %v4597_v49, 7 }
 0x752   : > { %6481 = vst [vmem:[#allocation1 + $0x23] ss:$4 sm:$0xff] %v6132_v59  ;;  %v5997_v59 = vsel %vm5526_vm12, %v5671_v53, %v9479_v8  ;;  %v5590_v34 = vsel %vm5526_vm12, %v5222_v30, %v5437_v5  ;;  %v5440_v26 = vperm.slane %v5368_v35, 0  ;;  %v5441_v63 = vperm.slane %v5369_v28, 0  ;;  %v4929_v53 = vpop.f32.mrf.mxu0 }
 0x753   : > { %6620 = vst.msk [vmem:[%s9476_s10 + $0x110] sm:$0xff] %vm1358_vm2, %v6472_v24  ;;  %v6136_v24 = vadd.f32 %v9442_v6, %v5991_v11  ;;  %v6142_v62 = vadd.f32 %v9742_v20, %v5997_v59  ;;  %v5591_v50 = vsel %vm5526_vm12, %v9378_v9, %v5438_v18  ;;  %v5592_v7 = vsel %vm5526_vm12, %v5223_v42, %v5439_v51 }
 0x754   : > { %6621 = vst.msk [vmem:[%s9476_s10 + $0x118] sm:$0x1] %vm6587_vm13, %v6473_v47  ;;  %v6140_v47 = vadd.f32 %v9442_v6, %v5995_v60  ;;  %v5442_v58 = vperm.slane %v5370_v25, 0  ;;  %v5593_v11 = vsel %vm5526_vm12, %v5224_v45, %v5440_v26  ;;  %v5444_v16 = vperm.slane %v5372_v43, 0 }
 0x755   : > { %v6482_v38 = vld.sshfl [vmem:[#allocation1] sm:$0xff pattern:$0x73625140]  ;;  %v6145_v2 = vadd.f32 %v9442_v6, %v5592_v7  ;;  %v6146_v40 = vadd.f32 %v9447_v32, %v5593_v11  ;;  %v5229_v10 = vrot.slane %v9378_v9, 7  ;;  %v9972_v9 = vadd.f32 %v5079_v23, %v4929_v53 }
 0x756   : > { %6484 = vst [vmem:[#allocation1] ss:$4 sm:$0xff] %v6133_v48  ;;  %v5371_v48 = vrot.slane %v4597_v49, 6  ;;  %v5595_v37 = vsel %vm5526_vm12, %v5226_v0, %v5442_v58  ;;  %v5154_v49 = vpop.f32.mrf.mxu2 }
 0x757   : > { %6622 = vst.msk [vmem:[%s9476_s10 + $0x120] sm:$0xff] %vm1358_vm2, %v6482_v38  ;;  %v5801_v27 = vrot.slane %v5154_v49, 2  ;;  %v5802_v39 = vrot.slane %v5154_v49, 3  ;;  %v5673_v59 = vrot.slane %v9972_v9, 1  ;;  %v5803_v35 = vrot.slane %v5154_v49, 4 }
 0x758   : > { %v5443_v46 = vperm.slane %v5371_v48, 0  ;;  %v5674_v18 = vrot.slane %v9972_v9, 2  ;;  %v5805_v45 = vrot.slane %v5154_v49, 6  ;;  %v5675_v48 = vrot.slane %v9972_v9, 3 }
 0x759   : > { %v6483_v29 = vld.sshfl [vmem:[#allocation1 + $0x20] sm:$0xff pattern:$0x73625140]  ;;  %v5865_v25 = vperm.slane %v5801_v27, 0  ;;  %v5867_v26 = vperm.slane %v5803_v35, 0  ;;  %v5678_v7 = vrot.slane %v9972_v9, 6 }
 0x75a   : > { %6486 = vst [vmem:[#allocation1 + $0x20] ss:$4 sm:$0xff] %v6134_v3  ;;  %v6143_v3 = vadd.f32 %v9742_v20, %v5590_v34  ;;  %v5596_v17 = vsel %vm5526_vm12, %v5227_v44, %v5443_v46  ;;  %v5866_v34 = vperm.slane %v5802_v39, 0  ;;  %v4599_v44 = vpop.f32.mrf.mxu3  ;;  %v5232_v27 = vrot.slane %v9388_v1, 3 }
 0x75b   : > { %6487 = vst [vmem:[#allocation1 + $0x21] ss:$4 sm:$0xff] %v6135_v15  ;;  %v5594_v15 = vsel %vm5526_vm12, %v5225_v54, %v5441_v63  ;;  %v6000_v43 = vsel %vm5526_vm12, %v5673_v59, %v5865_v25  ;;  %v6002_v11 = vsel %vm5526_vm12, %v5675_v48, %v5867_v26  ;;  %v5233_v59 = vrot.slane %v9388_v1, 4 }
 0x75c   : > { %6623 = vst.msk [vmem:[%s9476_s10 + $0x128] sm:$0xff] %vm1358_vm2, %v6483_v29  ;;  %v6144_v29 = vadd.f32 %v9435_v33, %v5591_v50  ;;  %v6147_v4 = vadd.f32 %v9742_v20, %v5594_v15  ;;  %v5677_v50 = vrot.slane %v9972_v9, 5  ;;  %v6001_v58 = vsel %vm5526_vm12, %v5674_v18, %v5866_v34 }
 0x75d   : > { %v6485_v57 = vld.sshfl [vmem:[#allocation1] sm:$0xff pattern:$0x73625140]  ;;  %6488 = vst [vmem:[#allocation1 + $0x22] ss:$4 sm:$0xff] %v6136_v24  ;;  %v5597_v24 = vsel %vm5526_vm12, %v5228_v36, %v5444_v16  ;;  %v5869_v36 = vperm.slane %v5805_v45, 0  ;;  %v6154_v46 = vadd.f32 %v9442_v6, %v6000_v43 }
 0x75e   : > { %6624 = vst.msk [vmem:[%s9476_s10 + $0x130] sm:$0x1] %vm6587_vm13, %v6485_v57  ;;  %v6148_v57 = vadd.f32 %v9435_v33, %v5595_v37  ;;  %v6150_v12 = vadd.f32 %v9447_v32, %v5597_v24  ;;  %v5235_v45 = vrot.slane %v9388_v1, 6 }
 0x75f   : > { %6489 = vst [vmem:[#allocation1 + $0x23] ss:$4 sm:$0xff] %v6137_v19  ;;  %v6149_v19 = vadd.f32 %v9442_v6, %v5596_v17  ;;  %v6004_v37 = vsel %vm5526_vm12, %v5677_v50, %v5869_v36  ;;  %v5679_v17 = vrot.slane %v9972_v9, 7 }
 0x760   : > { %6491 = vst [vmem:[#allocation1] ss:$4 sm:$0xff] %v6138_v14  ;;  %v5800_v14 = vrot.slane %v5154_v49, 1 }
 0x761   : > { %6492 = vst [vmem:[#allocation1 + $0x1] ss:$4 sm:$0xff] %v6139_v61  ;;  %v5598_v61 = vsel %vm5526_vm12, %v5229_v10, %v9479_v8  ;;  %v6156_v10 = vadd.f32 %v9742_v20, %v6002_v11 }
 0x762   : > { %6493 = vst [vmem:[#allocation1 + $0x2] ss:$4 sm:$0xff] %v6140_v47  ;;  %v5672_v47 = vrot.slane %v9905_v56, 7  ;;  %v6151_v30 = vadd.f32 %v9742_v20, %v5598_v61  ;;  %v5864_v28 = vperm.slane %v5800_v14, 0  ;;  %v5804_v56 = vrot.slane %v5154_v49, 5 }
 0x763   : > { %6494 = vst [vmem:[#allocation1 + $0x3] ss:$4 sm:$0xff] %v6141_v52  ;;  %v5863_v52 = vperm.slane %v5154_v49, 0  ;;  %v5231_v14 = vrot.slane %v9388_v1, 2 }
 0x764   : > { %v5999_v51 = vsel %vm5526_vm12, %v9972_v9, %v5864_v28  ;;  %v5868_v63 = vperm.slane %v5804_v56, 0  ;;  %v5234_v56 = vrot.slane %v9388_v1, 5 }
 0x765   : > { %v5998_v5 = vsel %vm5526_vm12, %v5672_v47, %v5863_v52 }
 0x766   : > { %v6490_v38 = vld.sshfl [vmem:[#allocation1 + $0x20] sm:$0xff pattern:$0x73625140]  ;;  %v6152_v54 = vadd.f32 %v9742_v20, %v5998_v5  ;;  %v3870_v5 = vadd.f32 %v9404_v31, %v9337_v13 }
 0x767   : > { %6495 = vst [vmem:[#allocation1 + $0x20] ss:$4 sm:$0xff] %v6142_v62  ;;  %v5806_v62 = vrot.slane %v5154_v49, 7 }
 0x768   : > { %6625 = vst.msk [vmem:[%s9476_s10 + $0x138] sm:$0xff] %vm1358_vm2, %v6490_v38  ;;  %v5676_v38 = vrot.slane %v9972_v9, 4 }
 0x769   : > { %v5870_v15 = vperm.slane %v5806_v62, 0 }
 0x76a   : > { %v6496_v55 = vld.sshfl [vmem:[#allocation1] sm:$0xff pattern:$0x73625140] }
 0x76b   : > { %6498 = vst [vmem:[#allocation1] ss:$4 sm:$0xff] %v6143_v3  ;;  %v6153_v3 = vadd.f32 %v9435_v33, %v5999_v51  ;;  %v5236_v51 = vrot.slane %v9388_v1, 7 }
 0x76c   : > { %6499 = vst [vmem:[#allocation1 + $0x1] ss:$4 sm:$0xff] %v6144_v29  ;;  %v6003_v29 = vsel %vm5526_vm12, %v5676_v38, %v5868_v63 }
 0x76d   : > { %6500 = vst [vmem:[#allocation1 + $0x2] ss:$4 sm:$0xff] %v6145_v2  ;;  %v6155_v2 = vadd.f32 %v9447_v32, %v6001_v58  ;;  %v6157_v24 = vadd.f32 %v9435_v33, %v6003_v29 }
 0x76e   : > { %v6497_v60 = vld.sshfl [vmem:[#allocation1 + $0x20] sm:$0xff pattern:$0x73625140]  ;;  %6501 = vst [vmem:[#allocation1 + $0x3] ss:$4 sm:$0xff] %v6146_v40  ;;  %v6005_v40 = vsel %vm5526_vm12, %v5678_v7, %v5870_v15 }
 0x76f   : > { %6502 = vst [vmem:[#allocation1 + $0x20] ss:$4 sm:$0xff] %v6147_v4  ;;  %v6158_v4 = vadd.f32 %v9442_v6, %v6004_v37  ;;  %v6159_v23 = vadd.f32 %v9447_v32, %v6005_v40 }
 0x770   : > { %6503 = vst [vmem:[#allocation1 + $0x21] ss:$4 sm:$0xff] %v6148_v57  ;;  %v6006_v57 = vsel %vm5526_vm12, %v5679_v17, %v9479_v8 }
 0x771   : > { %6504 = vst [vmem:[#allocation1 + $0x22] ss:$4 sm:$0xff] %v6149_v19  ;;  %v5230_v19 = vrot.slane %v9388_v1, 1  ;;  %v6160_v52 = vadd.f32 %v9742_v20, %v6006_v57 }
 0x772   : > { %6505 = vst [vmem:[#allocation1 + $0x23] ss:$4 sm:$0xff] %v6150_v12 }
 0x773   : > { %6626 = vst.msk [vmem:[%s9476_s10 + $0x140] sm:$0xff] %vm1358_vm2, %v6496_v55  ;;  %v4600_v55 = vadd.f32 %v4599_v44, %v9437_v21 }
 0x774   : > { %6627 = vst.msk [vmem:[%s9476_s10 + $0x148] sm:$0x1] %vm6587_vm13, %v6497_v60 }
 0x775   : > { %v6506_v42 = vld.sshfl [vmem:[#allocation1] sm:$0xff pattern:$0x73625140]  ;;  %v5373_v21 = vrot.slane %v4600_v55, 1  ;;  %v5374_v49 = vrot.slane %v4600_v55, 2  ;;  %v5375_v60 = vrot.slane %v4600_v55, 3 }
 0x776   : > { %6508 = vst [vmem:[#allocation1] ss:$4 sm:$0xff] %v6151_v30  ;;  %v5376_v53 = vrot.slane %v4600_v55, 4  ;;  %v5377_v12 = vrot.slane %v4600_v55, 5  ;;  %v5445_v9 = vperm.slane %v4600_v55, 0  ;;  %v5378_v61 = vrot.slane %v4600_v55, 6 }
 0x777   : > { %6628 = vst.msk [vmem:[%s9476_s10 + $0x150] sm:$0xff] %vm1358_vm2, %v6506_v42  ;;  %v5446_v47 = vperm.slane %v5373_v21, 0  ;;  %v5379_v39 = vrot.slane %v4600_v55, 7  ;;  %v5447_v30 = vperm.slane %v5374_v49, 0  ;;  %v5448_v42 = vperm.slane %v5375_v60, 0 }
 0x778   : > { %v5599_v35 = vsel %vm5526_vm12, %v9388_v1, %v5445_v9  ;;  %v5449_v18 = vperm.slane %v5376_v53, 0  ;;  %v5450_v48 = vperm.slane %v5377_v12, 0  ;;  %v5451_v31 = vperm.slane %v5378_v61, 0 }
 0x779   : > { %v6507_v0 = vld.sshfl [vmem:[#allocation1 + $0x20] sm:$0xff pattern:$0x73625140]  ;;  %v5600_v25 = vsel %vm5526_vm12, %v5230_v19, %v5446_v47  ;;  %v5601_v62 = vsel %vm5526_vm12, %v5231_v14, %v5447_v30  ;;  %v5602_v34 = vsel %vm5526_vm12, %v5232_v27, %v5448_v42  ;;  %v6161_v13 = vadd.f32 %v9742_v20, %v5599_v35 }
 0x77a   : > { %6510 = vst [vmem:[#allocation1 + $0x20] ss:$4 sm:$0xff] %v6152_v54  ;;  %v5603_v54 = vsel %vm5526_vm12, %v5233_v59, %v5449_v18  ;;  %v6162_v38 = vadd.f32 %v9435_v33, %v5600_v25  ;;  %v5452_v26 = vperm.slane %v5379_v39, 0  ;;  %v5604_v50 = vsel %vm5526_vm12, %v5234_v56, %v5450_v48 }
 0x77b   : > { %6629 = vst.msk [vmem:[%s9476_s10 + $0x158] sm:$0xff] %vm1358_vm2, %v6507_v0  ;;  %v4154_v0 = vadd.f32 %v9461_v22, %v3870_v5  ;;  %v6163_v63 = vadd.f32 %v9442_v6, %v5601_v62  ;;  %v5605_v1 = vsel %vm5526_vm12, %v5235_v45, %v5451_v31  ;;  %v6164_v44 = vadd.f32 %v9447_v32, %v5602_v34 }
 0x77c   : > { %6511 = vst [vmem:[#allocation1 + $0x21] ss:$4 sm:$0xff] %v6153_v3  ;;  %v5606_v7 = vsel %vm5526_vm12, %v5236_v51, %v5452_v26  ;;  %v6165_v58 = vadd.f32 %v9742_v20, %v5603_v54  ;;  %v6166_v22 = vadd.f32 %v9435_v33, %v5604_v50  ;;  %v6167_v11 = vadd.f32 %v9442_v6, %v5605_v1 }
 0x77d   : > { %v6509_v16 = vld.sshfl [vmem:[#allocation1] sm:$0xff pattern:$0x73625140]  ;;  %6512 = vst [vmem:[#allocation1 + $0x22] ss:$4 sm:$0xff] %v6154_v46  ;;  %v4437_v3 = vadd.f32 %v9464_v41, %v4154_v0  ;;  %v6168_v46 = vadd.f32 %v9447_v32, %v5606_v7 }
 0x77e   : > { %6630 = vst.msk [vmem:[%s9476_s10 + $0x160] sm:$0x1] %vm6587_vm13, %v6509_v16 }
 0x77f   : > { %6513 = vst [vmem:[#allocation1 + $0x23] ss:$4 sm:$0xff] %v6155_v2  ;;  %v5607_v15 = vsel %vm5526_vm12, %v4437_v3, %v9479_v8 }
 0x780   : > { %6515 = vst [vmem:[#allocation1] ss:$4 sm:$0xff] %v6156_v10  ;;  %v6169_v41 = vadd.f32 %v9742_v20, %v5607_v15 }
 0x781   : > { %6516 = vst [vmem:[#allocation1 + $0x1] ss:$4 sm:$0xff] %v6157_v24 }
 0x782   : > { %6517 = vst [vmem:[#allocation1 + $0x2] ss:$4 sm:$0xff] %v6158_v4 }
 0x783   : > { %6518 = vst [vmem:[#allocation1 + $0x3] ss:$4 sm:$0xff] %v6159_v23 }
 0x786   : > { %v6514_v28 = vld.sshfl [vmem:[#allocation1 + $0x20] sm:$0xff pattern:$0x73625140] }
 0x787   : > { %6519 = vst [vmem:[#allocation1 + $0x20] ss:$4 sm:$0xff] %v6160_v52 }
 0x788   : > { %6631 = vst.msk [vmem:[%s9476_s10 + $0x168] sm:$0xff] %vm1358_vm2, %v6514_v28 }
 0x78a   : > { %v6520_v43 = vld.sshfl [vmem:[#allocation1] sm:$0xff pattern:$0x73625140] }
 0x78b   : > { %6522 = vst [vmem:[#allocation1] ss:$4 sm:$0xff] %v6161_v13 }
 0x78c   : > { %6523 = vst [vmem:[#allocation1 + $0x1] ss:$4 sm:$0xff] %v6162_v38 }
 0x78d   : > { %6524 = vst [vmem:[#allocation1 + $0x2] ss:$4 sm:$0xff] %v6163_v63 }
 0x78e   : > { %v6521_v36 = vld.sshfl [vmem:[#allocation1 + $0x20] sm:$0xff pattern:$0x73625140]  ;;  %6525 = vst [vmem:[#allocation1 + $0x3] ss:$4 sm:$0xff] %v6164_v44 }
 0x78f   : > { %6526 = vst [vmem:[#allocation1 + $0x20] ss:$4 sm:$0xff] %v6165_v58 }
 0x790   : > { %6527 = vst [vmem:[#allocation1 + $0x21] ss:$4 sm:$0xff] %v6166_v22 }
 0x791   : > { %6528 = vst [vmem:[#allocation1 + $0x22] ss:$4 sm:$0xff] %v6167_v11 }
 0x792   : > { %6529 = vst [vmem:[#allocation1 + $0x23] ss:$4 sm:$0xff] %v6168_v46 }
 0x793   : > { %6632 = vst.msk [vmem:[%s9476_s10 + $0x170] sm:$0xff] %vm1358_vm2, %v6520_v43 }
 0x794   : > { %6633 = vst.msk [vmem:[%s9476_s10 + $0x178] sm:$0x1] %vm6587_vm13, %v6521_v36 }
 0x795   : > { %v6530_v33 = vld.sshfl [vmem:[#allocation1] sm:$0xff pattern:$0x73625140] }
 0x796   : > { %6532 = vst [vmem:[#allocation1] ss:$4 sm:$0xff] %v6169_v41 }
 0x797   : > { %6634 = vst.msk [vmem:[%s9476_s10 + $0x180] sm:$0xff] %vm1358_vm2, %v6530_v33 }
 0x799   : > { %v6531_v6 = vld.sshfl [vmem:[#allocation1 + $0x20] sm:$0xff pattern:$0x73625140] }
 0x79a   : > { %6635 = vst.msk [vmem:[%s9476_s10 + $0x188] sm:$0xff] %vm1358_vm2, %v6531_v6 }
 0x79d   : > { %v6533_v32 = vld.sshfl [vmem:[#allocation1] sm:$0xff pattern:$0x73625140] }
 0x79e   : > { %6636 = vst.msk [vmem:[%s9476_s10 + $0x190] sm:$0x1] %vm6587_vm13, %v6533_v32 }
 0x79f PF: > { %s19_s30 = sadd.s32 1, %s6994_s30  }
 0x7a0   : > { %p16_p4 = scmp.ge.s32.totalorder %s19_s30, 4  }
 0x7a2   :  { %18 = sbr.rel (!%p16_p4) target bundleno = 1 (0x1), region = 164 }

</bundles_post_ra>
